<compile_context>
chip_gen: v7x
topology: tpu7x:2x2x1
jax: 0.10.0
libtpu: 0.0.40
codegen_flags: <defaults>
</compile_context>

<pallas_src>
import functools

import jax
import jax.numpy as jnp
from jax import lax
from jax.experimental import pallas as pl
from jax.experimental.pallas import tpu as pltpu

_LANE = 128
_SUBLANE = 8


def _leaky(x, slope):
    return jnp.where(x >= 0, x, slope * x)


def _round_up(n, m):
    return ((n + m - 1) // m) * m


# --------------------------------------------------------------------------- #
# Kernel
# --------------------------------------------------------------------------- #
def _dcb4_kernel(
    x_top_ref, x_mid_ref, x_bot_ref,      # (1,1,W,Cip), (1,TH,W,Cip), (1,1,W,Cip)
    w1a_ref, b1a_ref,                     # conv1 (+ adaptor fused along N)
    wd_ref, bd_ref,                       # depthwise taps (9, Cip), bias (1, Cip)
    w2_ref, b2_ref,                       # conv2
    wf_ref, bf_ref,                       # ConvFFN3 expansion conv (both halves fused)
    wo_ref, bo_ref,                       # ConvFFN3 conv_out
    o_ref,                                # (1, TH, W, Cop)
    *, TH, W, w_img, cin_p, cout_p, int_p, slope_depth, has_adaptor, th_chunk,
):
    f32 = jnp.float32
    mm_dtype = w2_ref.dtype               # bf16 by default, f32 for exact validation

    def mm(a, w_ref, b_ref):
        return jnp.dot(a.astype(mm_dtype), w_ref[...],
                       preferred_element_type=f32) + b_ref[...]

    t_idx = pl.program_id(1)
    n_t = pl.num_programs(1)
    m_rows = (TH + 2) * W

    # ---- DepthConv: conv1 (1x1) + LeakyReLU; adaptor fused into the same matmul.
    # The interior band is read straight from the pipelined input buffer (no
    # staging copy into scratch).
    x_mid = x_mid_ref[0].reshape(TH * W, cin_p)
    z_mid = mm(x_mid, w1a_ref, b1a_ref)
    if has_adaptor:
        h1_mid = _leaky(z_mid[:, :cin_p], slope_depth)     # 128-aligned lane slice
        ident = z_mid[:, cin_p:]                           # (TH*W, Cop)
    else:
        h1_mid = _leaky(z_mid, slope_depth)
        ident = x_mid                                      # Cip == Cop

    # conv1 on the two 1-row halos; zero where they fall outside the image.
    def _halo(x_row_ref, valid):
        h = _leaky(mm(x_row_ref[0, 0], w1a_ref, b1a_ref)[:, :cin_p], slope_depth)
        return jnp.where(valid, h, 0.0)

    h1_top = _halo(x_top_ref, t_idx > 0)
    h1_bot = _halo(x_bot_ref, t_idx < n_t - 1)

    # Stitch along the (untiled) leading axis -- aligned, cheap.
    h1_3d = jnp.concatenate(
        [h1_top.reshape(1, W, cin_p),
         h1_mid.reshape(TH, W, cin_p),
         h1_bot.reshape(1, W, cin_p)], axis=0)             # (TH+2, W, Cip)
    h1 = h1_3d.reshape(m_rows, cin_p)

    # ---- depthwise 3x3, padding=1 ----
    # +-1 column shifts via sublane rolls + true-width boundary masks (XLU work,
    # no relayouts).  A roll of (-1) % m_rows is the modular equivalent of -1.
    wpos = lax.broadcasted_iota(jnp.int32, (m_rows, 1), 0) % W
    left = jnp.where(wpos > 0, pltpu.roll(h1, 1, axis=0), 0.0)                    # dx = 0
    right = jnp.where(wpos < w_img - 1, pltpu.roll(h1, (-1) % m_rows, axis=0), 0.0)  # dx = 2
    stacks = (left.reshape(TH + 2, W, cin_p),
              h1_3d,
              right.reshape(TH + 2, W, cin_p))

    wd = wd_ref[...]                       # (9, Cip), loaded once outside the tap loop
    acc = jnp.zeros((TH, W, cin_p), f32)
    for dy in range(3):
        for dx in range(3):
            tap = dy * 3 + dx
            acc = acc + stacks[dx][dy:dy + TH] * wd[tap:tap + 1, :]
    d_flat = (acc + bd_ref[...]).reshape(TH * W, cin_p)

    # ---- conv2 (1x1) + residual ----
    t_out = mm(d_flat, w2_ref, b2_ref) + ident             # (TH*W, Cop)

    # ---- ConvFFN3: one fused expansion matmul, chunked over band rows so the
    # (rows, 2*int_p) transient never dominates peak VMEM (th_chunk divides TH).
    for r0 in range(0, TH, th_chunk):
        t_c = t_out[r0 * W:(r0 + th_chunk) * W]
        z = mm(t_c, wf_ref, bf_ref)                        # (rows, 2*int_p)
        o = _leaky(z[:, :int_p], 0.1) + _leaky(z[:, int_p:], 0.01)
        out_c = t_c + mm(o, wo_ref, bo_ref)
        o_ref[0, r0:r0 + th_chunk, :, :] = out_c.reshape(th_chunk, W, cout_p)


# --------------------------------------------------------------------------- #
# Wrapper helpers
# --------------------------------------------------------------------------- #
def _pad2(w, rows, cols):
    w = jnp.asarray(w, jnp.float32)
    return jnp.pad(w, ((0, rows - w.shape[0]), (0, cols - w.shape[1])))


def _pad_bias(b, cols):
    b = jnp.asarray(b, jnp.float32).reshape(1, -1)
    return jnp.pad(b, ((0, 0), (0, cols - b.shape[1])))


def _default_vmem_limit():
    """Generation-aware VMEM request: ~32 MiB on v7x (64 MiB/TC), ~64 MiB otherwise."""
    cap = 128 * 1024 * 1024
    try:
        cap = int(pltpu.get_tpu_info().vmem_capacity_bytes)
    except Exception:
        pass
    return int(min(64 * 1024 * 1024, max(32 * 1024 * 1024, cap // 2)))


def _pick_tile_h(N, H, cap_rows):
    """Largest divisor of H within cap_rows, preferring a total grid that is
    >= 2 and even so both v7x TensorCores get work (megacore sharding)."""
    divs = [d for d in range(1, H + 1) if H % d == 0 and d <= max(int(cap_rows), 1)]
    if not divs:
        return 1

    def score(th):
        total = N * (H // th)
        return (total >= 2, total % 2 == 0, th)

    return max(divs, key=score)


def _pick_ffn_chunk(TH, W, target_rows=1024):
    """Largest divisor of TH whose row-chunk (chunk*W) stays within target_rows."""
    best = 1
    for c in range(1, TH + 1):
        if TH % c == 0 and c * W <= max(target_rows, W):
            best = c
    return best


def prepare_params(params, *, use_bf16_matmul=True):
    """Pad weights to lane-dense matmul layout; cast matmul operands to bf16
    (default) while biases / depthwise taps stay f32."""
    (w1, b1, wd_cij, bd, w2, b2, wa, ba, wf, bf, wo, bo) = params
    Cin = w1.shape[0]
    Cout = w2.shape[1]
    internal = wo.shape[0]
    has_adaptor = Cin != Cout
    cin_p = _round_up(Cin, _LANE)
    cout_p = _round_up(Cout, _LANE)
    int_p = _round_up(internal, _LANE)

    w1_p, b1_p = _pad2(w1, cin_p, cin_p), _pad_bias(b1, cin_p)
    if has_adaptor:
        # conv1 and the adaptor read the same input -> fuse into a single matmul;
        # the split boundary (cin_p) is 128-aligned so the in-kernel slice is free.
        w1a = jnp.concatenate([w1_p, _pad2(wa, cin_p, cout_p)], axis=1)
        b1a = jnp.concatenate([b1_p, _pad_bias(ba, cout_p)], axis=1)
    else:
        w1a, b1a = w1_p, b1_p
    wd9 = _pad2(jnp.transpose(wd_cij, (1, 2, 0)).reshape(9, Cin), 9, cin_p)
    bd_p = _pad_bias(bd, cin_p)
    w2_p, b2_p = _pad2(w2, cin_p, cout_p), _pad_bias(b2, cout_p)
    # ConvFFN3 expansion conv stays a single matmul; the chunk(2,1) boundary is
    # placed at the 128-aligned int_p offset so the in-kernel slice is free.
    wf_full = jnp.concatenate([_pad2(wf[:, :internal], cout_p, int_p),
                               _pad2(wf[:, internal:], cout_p, int_p)], axis=1)
    bf_full = jnp.concatenate([_pad_bias(bf[:internal], int_p),
                               _pad_bias(bf[internal:], int_p)], axis=1)
    wo_p, bo_p = _pad2(wo, int_p, cout_p), _pad_bias(bo, cout_p)

    if use_bf16_matmul:
        w1a, w2_p, wf_full, wo_p = (a.astype(jnp.bfloat16)
                                    for a in (w1a, w2_p, wf_full, wo_p))

    weights = [w1a, b1a, wd9, bd_p, w2_p, b2_p, wf_full, bf_full, wo_p, bo_p]
    meta = dict(Cin=Cin, Cout=Cout, internal=internal, cin_p=cin_p, cout_p=cout_p,
                int_p=int_p, has_adaptor=has_adaptor)
    return weights, meta


# --------------------------------------------------------------------------- #
# Padded-NHWC entry point (use this between chained blocks to avoid the
# per-call NCHW<->NHWC transpose / channel-pad HBM traffic).
# --------------------------------------------------------------------------- #
def depth_conv_block4_nhwc(x, weights, meta, *, w_img=None, tile_h=None,
                           slope_depth_conv=0.01, vmem_limit_bytes=None,
                           single_buffer_weights=True):
    """x: (N, H, W_p, cin_p) f32, W_p % 8 == 0, channels zero-padded to cin_p.
    Returns (N, H, W_p, cout_p) f32 (padded columns/channels hold garbage)."""
    N, H, W_p, cin_p = x.shape
    assert cin_p == meta["cin_p"] and W_p % _SUBLANE == 0
    if w_img is None:
        w_img = W_p
    cout_p, int_p = meta["cout_p"], meta["int_p"]

    if vmem_limit_bytes is None:
        vmem_limit_bytes = _default_vmem_limit()

    # Budget the band height: subtract the (conservatively double-buffered)
    # weight footprint, the bounded FFN transient and a margin for Mosaic
    # internal scratch before converting the rest into band rows.
    weight_bytes = 2 * sum(int(a.size) * a.dtype.itemsize for a in weights)
    if tile_h is None:
        ffn_fixed = 4 * min(1024, H * W_p) * (3 * int_p + cout_p)
        budget = vmem_limit_bytes - weight_bytes - ffn_fixed - (4 << 20)
        per_row = 4 * W_p * (10 * cin_p + 8 * cout_p)
        cap_rows = max(budget // max(per_row, 1), 1)
        tile_h = _pick_tile_h(N, H, cap_rows)
    assert H % tile_h == 0, "tile_h must divide H"
    TH = tile_h
    th_chunk = _pick_ffn_chunk(TH, W_p)

    kernel = functools.partial(
        _dcb4_kernel, TH=TH, W=W_p, w_img=w_img, cin_p=cin_p, cout_p=cout_p,
        int_p=int_p, slope_depth=slope_depth_conv,
        has_adaptor=meta["has_adaptor"], th_chunk=th_chunk)

    def _run(single_buffer):
        def _wspec(a):
            imap = lambda b, t, _nd=a.ndim: (0,) * _nd   # grid-invariant: DMA'd once
            if single_buffer:
                return pl.BlockSpec(a.shape, imap, pipeline_mode=pl.Buffered(1))
            return pl.BlockSpec(a.shape, imap)

        in_specs = [
            # 1-row top halo, TH-row band, 1-row bottom halo (halo rows are
            # clamped at the image border and zero-masked inside the kernel).
            pl.BlockSpec((1, 1, W_p, cin_p),
                         lambda b, t: (b, jnp.maximum(t * TH - 1, 0), 0, 0)),
            pl.BlockSpec((1, TH, W_p, cin_p), lambda b, t: (b, t, 0, 0)),
            pl.BlockSpec((1, 1, W_p, cin_p),
                         lambda b, t: (b, jnp.minimum(t * TH + TH, H - 1), 0, 0)),
        ] + [_wspec(a) for a in weights]

        return pl.pallas_call(
            kernel,
            out_shape=jax.ShapeDtypeStruct((N, H, W_p, cout_p), jnp.float32),
            grid_spec=pltpu.PrefetchScalarGridSpec(
                num_scalar_prefetch=0,
                grid=(N, H // TH),
                in_specs=in_specs,
                out_specs=pl.BlockSpec((1, TH, W_p, cout_p),
                                       lambda b, t: (b, t, 0, 0)),
            ),
            compiler_params=pltpu.CompilerParams(
                dimension_semantics=("parallel", "parallel"),
                vmem_limit_bytes=int(vmem_limit_bytes)),
        )(x, x, x, *weights)

    if single_buffer_weights:
        try:
            return _run(True)
        except Exception:
            pass   # older jax without per-spec pipeline_mode support
    return _run(False)


# --------------------------------------------------------------------------- #
# NCHW convenience wrapper (PyTorch layout)
# --------------------------------------------------------------------------- #
def depth_conv_block4(x_nchw, params, *, slope_depth_conv=0.01, tile_h=None,
                      use_bf16_matmul=True, vmem_limit_bytes=None):
    """DepthConvBlock4 forward.  x_nchw: (N, Cin, H, W) f32 -> (N, Cout, H, W)."""
    weights, meta = prepare_params(params, use_bf16_matmul=use_bf16_matmul)
    N, Cin, H, W = x_nchw.shape
    assert Cin == meta["Cin"]
    cin_p = meta["cin_p"]
    W_p = _round_up(W, _SUBLANE)

    x = jnp.transpose(x_nchw, (0, 2, 3, 1)).astype(jnp.float32)
    x = jnp.pad(x, ((0, 0), (0, 0), (0, W_p - W), (0, cin_p - Cin)))

    out_nhwc = depth_conv_block4_nhwc(
        x, weights, meta, w_img=W, tile_h=tile_h,
        slope_depth_conv=slope_depth_conv, vmem_limit_bytes=vmem_limit_bytes)

    return jnp.transpose(out_nhwc[:, :, :W, :meta["Cout"]], (0, 3, 1, 2))


# --------------------------------------------------------------------------- #
# Pure-JAX reference + synthetic params
# --------------------------------------------------------------------------- #
def reference_nchw(x_nchw, params, *, slope_depth_conv=0.01):
    (w1, b1, wd_cij, bd, w2, b2, wa, ba, wf, bf, wo, bo) = params
    N, Cin, H, W = x_nchw.shape
    Cout = w2.shape[1]
    internal = wo.shape[0]
    x = jnp.transpose(x_nchw, (0, 2, 3, 1))

    h1 = _leaky(jnp.einsum("nhwc,cd->nhwd", x, w1) + b1, slope_depth_conv)
    kern = jnp.transpose(wd_cij, (1, 2, 0))[:, :, None, :]   # (3,3,1,Cin) HWIO
    d = jax.lax.conv_general_dilated(
        h1, kern, (1, 1), "SAME",
        dimension_numbers=("NHWC", "HWIO", "NHWC"),
        feature_group_count=Cin,
    ) + bd
    y = jnp.einsum("nhwc,cd->nhwd", d, w2) + b2
    ident = (jnp.einsum("nhwc,cd->nhwd", x, wa) + ba) if Cin != Cout else x
    t = y + ident
    z = jnp.einsum("nhwc,cd->nhwd", t, wf) + bf
    x1, x2 = z[..., :internal], z[..., internal:]
    o = _leaky(x1, 0.1) + _leaky(x2, 0.01)
    out = t + jnp.einsum("nhwc,cd->nhwd", o, wo) + bo
    return jnp.transpose(out, (0, 3, 1, 2))


def make_params(key, in_ch, out_ch):
    """Deterministic synthetic parameters (matmul layout: weights are (Cin, Cout))."""
    ks = jax.random.split(key, 12)
    s = 0.1
    internal = 2 * out_ch
    w1 = jax.random.normal(ks[0], (in_ch, in_ch), jnp.float32) * s
    b1 = jax.random.normal(ks[1], (in_ch,), jnp.float32) * s
    wd = jax.random.normal(ks[2], (in_ch, 3, 3), jnp.float32) * s     # depthwise (C, kh, kw)
    bd = jax.random.normal(ks[3], (in_ch,), jnp.float32) * s
    w2 = jax.random.normal(ks[4], (in_ch, out_ch), jnp.float32) * s
    b2 = jax.random.normal(ks[5], (out_ch,), jnp.float32) * s
    wa = jax.random.normal(ks[6], (in_ch, out_ch), jnp.float32) * s   # adaptor (used iff in!=out)
    ba = jax.random.normal(ks[7], (out_ch,), jnp.float32) * s
    wf = jax.random.normal(ks[8], (out_ch, 2 * internal), jnp.float32) * s
    bf = jax.random.normal(ks[9], (2 * internal,), jnp.float32) * s
    wo = jax.random.normal(ks[10], (internal, out_ch), jnp.float32) * s
    bo = jax.random.normal(ks[11], (out_ch,), jnp.float32) * s
    return (w1, b1, wd, bd, w2, b2, wa, ba, wf, bf, wo, bo)


if __name__ == "__main__":
    key = jax.random.PRNGKey(0)
    k_x, k_p, k_p2 = jax.random.split(key, 3)

    # Case 1: in_ch != out_ch (adaptor path), explicit spatial tiling, exact f32.
    N, in_ch, out_ch, H, W = 2, 4, 8, 16, 16
    x = jax.random.normal(k_x, (N, in_ch, H, W), jnp.float32)
    params = make_params(k_p, in_ch, out_ch)
    out = jax.block_until_ready(
        depth_conv_block4(x, params, tile_h=8, use_bf16_matmul=False))
    ref = reference_nchw(x, params)
    assert out.shape == (N, out_ch, H, W)
    err = float(jnp.max(jnp.abs(out - ref)))
    assert err < 1e-4, "adaptor-path (f32) mismatch: max abs err = %e" % err

    # Case 2: identity residual path, auto tile, default bf16 MXU operands
    # (f32 accumulation) -> validated at a looser relative tolerance.
    params2 = make_params(k_p2, out_ch, out_ch)
    x2 = jax.random.normal(k_x, (N, out_ch, H, W), jnp.float32)
    out2 = jax.block_until_ready(depth_conv_block4(x2, params2))
    ref2 = reference_nchw(x2, params2)
    rel2 = float(jnp.max(jnp.abs(out2 - ref2)) / (jnp.max(jnp.abs(ref2)) + 1e-6))
    assert rel2 < 5e-2, "identity-path (bf16) mismatch: max rel err = %e" % rel2

    # Case 3: N=1 and W not a multiple of 8 (exercises width padding + the
    # even-grid tile_h heuristic for megacore balance), exact f32.
    x3 = jax.random.normal(k_x, (1, out_ch, H, 12), jnp.float32)
    out3 = jax.block_until_ready(
        depth_conv_block4(x3, params2, use_bf16_matmul=False))
    ref3 = reference_nchw(x3, params2)
    err3 = float(jnp.max(jnp.abs(out3 - ref3)))
    assert err3 < 1e-4, "padded-width (f32) mismatch: max abs err = %e" % err3

    print("KERNEL_OK")
</pallas_src>

<mosaic_0001>
module attributes {stable_mosaic.version = 11 : i64} {
  func.func @_dcb4_kernel(%arg0: i32, %arg1: i32, %arg2: memref<1x1x16x128xf32, #tpu.memory_space<vmem>>, %arg3: memref<1x8x16x128xf32, #tpu.memory_space<vmem>>, %arg4: memref<1x1x16x128xf32, #tpu.memory_space<vmem>>, %arg5: memref<128x256xf32, #tpu.memory_space<vmem>>, %arg6: memref<1x256xf32, #tpu.memory_space<vmem>>, %arg7: memref<9x128xf32, #tpu.memory_space<vmem>>, %arg8: memref<1x128xf32, #tpu.memory_space<vmem>>, %arg9: memref<128x128xf32, #tpu.memory_space<vmem>>, %arg10: memref<1x128xf32, #tpu.memory_space<vmem>>, %arg11: memref<128x256xf32, #tpu.memory_space<vmem>>, %arg12: memref<1x256xf32, #tpu.memory_space<vmem>>, %arg13: memref<128x128xf32, #tpu.memory_space<vmem>>, %arg14: memref<1x128xf32, #tpu.memory_space<vmem>>, %arg15: memref<1x8x16x128xf32, #tpu.memory_space<vmem>>) attributes {dimension_semantics = [#tpu.dimension_semantics<parallel>, #tpu.dimension_semantics<parallel>], iteration_bounds = array<i64: 2, 2>, scalar_prefetch = 0 : i64, scratch_operands = 0 : i64, tpu.core_type = #tpu.core_type<tc>, window_params = [{transform_indices = @transform_0, window_bounds = array<i64: 1, 1, 16, 128>}, {transform_indices = @transform_1, window_bounds = array<i64: 1, 8, 16, 128>}, {transform_indices = @transform_2, window_bounds = array<i64: 1, 1, 16, 128>}, {pipeline_mode = #tpu.pipeline_mode<synchronous>, transform_indices = @transform_3, window_bounds = array<i64: 128, 256>}, {pipeline_mode = #tpu.pipeline_mode<synchronous>, transform_indices = @transform_4, window_bounds = array<i64: 1, 256>}, {pipeline_mode = #tpu.pipeline_mode<synchronous>, transform_indices = @transform_5, window_bounds = array<i64: 9, 128>}, {pipeline_mode = #tpu.pipeline_mode<synchronous>, transform_indices = @transform_6, window_bounds = array<i64: 1, 128>}, {pipeline_mode = #tpu.pipeline_mode<synchronous>, transform_indices = @transform_7, window_bounds = array<i64: 128, 128>}, {pipeline_mode = #tpu.pipeline_mode<synchronous>, transform_indices = @transform_8, window_bounds = array<i64: 1, 128>}, {pipeline_mode = #tpu.pipeline_mode<synchronous>, transform_indices = @transform_9, window_bounds = array<i64: 128, 256>}, {pipeline_mode = #tpu.pipeline_mode<synchronous>, transform_indices = @transform_10, window_bounds = array<i64: 1, 256>}, {pipeline_mode = #tpu.pipeline_mode<synchronous>, transform_indices = @transform_11, window_bounds = array<i64: 128, 128>}, {pipeline_mode = #tpu.pipeline_mode<synchronous>, transform_indices = @transform_12, window_bounds = array<i64: 1, 128>}, {transform_indices = @transform_13, window_bounds = array<i64: 1, 8, 16, 128>}]} {
    %c0 = arith.constant 0 : index
    %c0_0 = arith.constant 0 : index
    %c0_1 = arith.constant 0 : index
    %c0_2 = arith.constant 0 : index
    %0 = vector.load %arg3[%c0, %c0_0, %c0_1, %c0_2] : memref<1x8x16x128xf32, #tpu.memory_space<vmem>>, vector<1x8x16x128xf32>
    %1 = vector.shape_cast %0 : vector<1x8x16x128xf32> to vector<8x16x128xf32>
    %2 = vector.shape_cast %1 : vector<8x16x128xf32> to vector<128x128xf32>
    %c0_3 = arith.constant 0 : index
    %c0_4 = arith.constant 0 : index
    %3 = vector.load %arg5[%c0_3, %c0_4] : memref<128x256xf32, #tpu.memory_space<vmem>>, vector<128x256xf32>
    %cst = arith.constant dense<0.000000e+00> : vector<128x256xf32>
    %4 = tpu.matmul %2, %3, %cst {dimension_numbers = #tpu.dot_dimension_numbers<[1], [0], [0], [1], [0, 0, 1, 1], [], []>} : vector<128x128xf32>, vector<128x256xf32>, vector<128x256xf32> -> vector<128x256xf32>
    %c0_5 = arith.constant 0 : index
    %c0_6 = arith.constant 0 : index
    %5 = vector.load %arg6[%c0_5, %c0_6] : memref<1x256xf32, #tpu.memory_space<vmem>>, vector<1x256xf32>
    %6 = vector.broadcast %5 : vector<1x256xf32> to vector<128x256xf32>
    %7 = arith.addf %4, %6 : vector<128x256xf32>
    %8 = vector.extract_strided_slice %7 {offsets = [0, 0], sizes = [128, 128], strides = [1, 1]} : vector<128x256xf32> to vector<128x128xf32>
    %cst_7 = arith.constant 0.000000e+00 : f32
    %9 = vector.broadcast %cst_7 : f32 to vector<128x128xf32>
    %10 = arith.cmpf oge, %8, %9 : vector<128x128xf32>
    %cst_8 = arith.constant 0.00999999977 : f32
    %11 = vector.broadcast %cst_8 : f32 to vector<128x128xf32>
    %12 = arith.mulf %11, %8 : vector<128x128xf32>
    %13 = arith.select %10, %8, %12 : vector<128x128xi1>, vector<128x128xf32>
    %14 = vector.extract_strided_slice %7 {offsets = [0, 128], sizes = [128, 128], strides = [1, 1]} : vector<128x256xf32> to vector<128x128xf32>
    %c0_i32 = arith.constant 0 : i32
    %15 = arith.cmpi sgt, %arg1, %c0_i32 : i32
    %c0_9 = arith.constant 0 : index
    %c0_10 = arith.constant 0 : index
    %c0_11 = arith.constant 0 : index
    %c0_12 = arith.constant 0 : index
    %16 = vector.load %arg2[%c0_9, %c0_10, %c0_11, %c0_12] : memref<1x1x16x128xf32, #tpu.memory_space<vmem>>, vector<1x1x16x128xf32>
    %17 = vector.shape_cast %16 : vector<1x1x16x128xf32> to vector<16x128xf32>
    %c0_13 = arith.constant 0 : index
    %c0_14 = arith.constant 0 : index
    %18 = vector.load %arg5[%c0_13, %c0_14] : memref<128x256xf32, #tpu.memory_space<vmem>>, vector<128x256xf32>
    %cst_15 = arith.constant dense<0.000000e+00> : vector<16x256xf32>
    %19 = tpu.matmul %17, %18, %cst_15 {dimension_numbers = #tpu.dot_dimension_numbers<[1], [0], [0], [1], [0, 0, 1, 1], [], []>} : vector<16x128xf32>, vector<128x256xf32>, vector<16x256xf32> -> vector<16x256xf32>
    %c0_16 = arith.constant 0 : index
    %c0_17 = arith.constant 0 : index
    %20 = vector.load %arg6[%c0_16, %c0_17] : memref<1x256xf32, #tpu.memory_space<vmem>>, vector<1x256xf32>
    %21 = vector.broadcast %20 : vector<1x256xf32> to vector<16x256xf32>
    %22 = arith.addf %19, %21 : vector<16x256xf32>
    %23 = vector.extract_strided_slice %22 {offsets = [0, 0], sizes = [16, 128], strides = [1, 1]} : vector<16x256xf32> to vector<16x128xf32>
    %cst_18 = arith.constant 0.000000e+00 : f32
    %24 = vector.broadcast %cst_18 : f32 to vector<16x128xf32>
    %25 = arith.cmpf oge, %23, %24 : vector<16x128xf32>
    %cst_19 = arith.constant 0.00999999977 : f32
    %26 = vector.broadcast %cst_19 : f32 to vector<16x128xf32>
    %27 = arith.mulf %26, %23 : vector<16x128xf32>
    %28 = arith.select %25, %23, %27 : vector<16x128xi1>, vector<16x128xf32>
    %cst_20 = arith.constant 0.000000e+00 : f32
    %29 = vector.broadcast %cst_20 : f32 to vector<16x128xf32>
    %30 = arith.select %15, %28, %29 : vector<16x128xf32>
    %c1_i32 = arith.constant 1 : i32
    %31 = arith.cmpi slt, %arg1, %c1_i32 : i32
    %c0_21 = arith.constant 0 : index
    %c0_22 = arith.constant 0 : index
    %c0_23 = arith.constant 0 : index
    %c0_24 = arith.constant 0 : index
    %32 = vector.load %arg4[%c0_21, %c0_22, %c0_23, %c0_24] : memref<1x1x16x128xf32, #tpu.memory_space<vmem>>, vector<1x1x16x128xf32>
    %33 = vector.shape_cast %32 : vector<1x1x16x128xf32> to vector<16x128xf32>
    %c0_25 = arith.constant 0 : index
    %c0_26 = arith.constant 0 : index
    %34 = vector.load %arg5[%c0_25, %c0_26] : memref<128x256xf32, #tpu.memory_space<vmem>>, vector<128x256xf32>
    %cst_27 = arith.constant dense<0.000000e+00> : vector<16x256xf32>
    %35 = tpu.matmul %33, %34, %cst_27 {dimension_numbers = #tpu.dot_dimension_numbers<[1], [0], [0], [1], [0, 0, 1, 1], [], []>} : vector<16x128xf32>, vector<128x256xf32>, vector<16x256xf32> -> vector<16x256xf32>
    %c0_28 = arith.constant 0 : index
    %c0_29 = arith.constant 0 : index
    %36 = vector.load %arg6[%c0_28, %c0_29] : memref<1x256xf32, #tpu.memory_space<vmem>>, vector<1x256xf32>
    %37 = vector.broadcast %36 : vector<1x256xf32> to vector<16x256xf32>
    %38 = arith.addf %35, %37 : vector<16x256xf32>
    %39 = vector.extract_strided_slice %38 {offsets = [0, 0], sizes = [16, 128], strides = [1, 1]} : vector<16x256xf32> to vector<16x128xf32>
    %cst_30 = arith.constant 0.000000e+00 : f32
    %40 = vector.broadcast %cst_30 : f32 to vector<16x128xf32>
    %41 = arith.cmpf oge, %39, %40 : vector<16x128xf32>
    %cst_31 = arith.constant 0.00999999977 : f32
    %42 = vector.broadcast %cst_31 : f32 to vector<16x128xf32>
    %43 = arith.mulf %42, %39 : vector<16x128xf32>
    %44 = arith.select %41, %39, %43 : vector<16x128xi1>, vector<16x128xf32>
    %cst_32 = arith.constant 0.000000e+00 : f32
    %45 = vector.broadcast %cst_32 : f32 to vector<16x128xf32>
    %46 = arith.select %31, %44, %45 : vector<16x128xf32>
    %47 = vector.shape_cast %30 : vector<16x128xf32> to vector<1x16x128xf32>
    %48 = vector.shape_cast %13 : vector<128x128xf32> to vector<8x16x128xf32>
    %49 = vector.shape_cast %46 : vector<16x128xf32> to vector<1x16x128xf32>
    %50 = tpu.concatenate %47, %48, %49 in 0 : vector<1x16x128xf32>, vector<8x16x128xf32>, vector<1x16x128xf32> -> vector<10x16x128xf32>
    %51 = vector.shape_cast %50 : vector<10x16x128xf32> to vector<160x128xf32>
    %52 = tpu.iota {dimensions = array<i32: 0>} : vector<160x1xi32>
    %c16_i32 = arith.constant 16 : i32
    %c0_i32_33 = arith.constant 0 : i32
    %53 = arith.cmpi eq, %c16_i32, %c0_i32_33 : i32
    %c1_i32_34 = arith.constant 1 : i32
    %54 = arith.select %53, %c1_i32_34, %c16_i32 : i32
    %55 = vector.broadcast %54 : i32 to vector<160x1xi32>
    %56 = arith.remsi %52, %55 : vector<160x1xi32>
    %c0_i32_35 = arith.constant 0 : i32
    %57 = vector.broadcast %c0_i32_35 : i32 to vector<160x1xi32>
    %58 = arith.cmpi ne, %56, %57 : vector<160x1xi32>
    %c0_i32_36 = arith.constant 0 : i32
    %59 = vector.broadcast %c0_i32_36 : i32 to vector<160x1xi32>
    %60 = arith.cmpi slt, %56, %59 : vector<160x1xi32>
    %c0_i32_37 = arith.constant 0 : i32
    %61 = arith.cmpi slt, %54, %c0_i32_37 : i32
    %62 = vector.broadcast %61 : i1 to vector<160x1xi1>
    %63 = vector.broadcast %62 : vector<160x1xi1> to vector<160x1xi1>
    %64 = arith.xori %60, %63 : vector<160x1xi1>
    %65 = arith.andi %64, %58 : vector<160x1xi1>
    %66 = vector.broadcast %54 : i32 to vector<160x1xi32>
    %67 = arith.addi %56, %66 : vector<160x1xi32>
    %68 = arith.select %65, %67, %56 : vector<160x1xi1>, vector<160x1xi32>
    %c0_i32_38 = arith.constant 0 : i32
    %69 = vector.broadcast %c0_i32_38 : i32 to vector<160x1xi32>
    %70 = arith.cmpi sgt, %68, %69 : vector<160x1xi32>
    %c1_i32_39 = arith.constant 1 : i32
    %71 = tpu.dynamic_rotate %51 by %c1_i32_39 dim 0 : vector<160x128xf32>, i32 -> vector<160x128xf32>
    %cst_40 = arith.constant 0.000000e+00 : f32
    %72 = vector.shape_cast %70 : vector<160x1xi1> to vector<160x1xi1>
    %73 = vector.broadcast %72 : vector<160x1xi1> to vector<160x128xi1>
    %74 = vector.broadcast %cst_40 : f32 to vector<160x128xf32>
    %75 = arith.select %73, %71, %74 : vector<160x128xi1>, vector<160x128xf32>
    %c15_i32 = arith.constant 15 : i32
    %76 = vector.broadcast %c15_i32 : i32 to vector<160x1xi32>
    %77 = arith.cmpi slt, %68, %76 : vector<160x1xi32>
    %c159_i32 = arith.constant 159 : i32
    %78 = tpu.dynamic_rotate %51 by %c159_i32 dim 0 : vector<160x128xf32>, i32 -> vector<160x128xf32>
    %cst_41 = arith.constant 0.000000e+00 : f32
    %79 = vector.shape_cast %77 : vector<160x1xi1> to vector<160x1xi1>
    %80 = vector.broadcast %79 : vector<160x1xi1> to vector<160x128xi1>
    %81 = vector.broadcast %cst_41 : f32 to vector<160x128xf32>
    %82 = arith.select %80, %78, %81 : vector<160x128xi1>, vector<160x128xf32>
    %83 = vector.shape_cast %75 : vector<160x128xf32> to vector<10x16x128xf32>
    %84 = vector.shape_cast %82 : vector<160x128xf32> to vector<10x16x128xf32>
    %c0_42 = arith.constant 0 : index
    %c0_43 = arith.constant 0 : index
    %85 = vector.load %arg7[%c0_42, %c0_43] : memref<9x128xf32, #tpu.memory_space<vmem>>, vector<9x128xf32>
    %cst_44 = arith.constant 0.000000e+00 : f32
    %86 = vector.broadcast %cst_44 : f32 to vector<8x16x128xf32>
    %87 = vector.extract_strided_slice %83 {offsets = [0, 0, 0], sizes = [8, 16, 128], strides = [1, 1, 1]} : vector<10x16x128xf32> to vector<8x16x128xf32>
    %88 = vector.extract_strided_slice %85 {offsets = [0, 0], sizes = [1, 128], strides = [1, 1]} : vector<9x128xf32> to vector<1x128xf32>
    %89 = vector.shape_cast %88 : vector<1x128xf32> to vector<1x1x128xf32>
    %90 = vector.broadcast %89 : vector<1x1x128xf32> to vector<8x16x128xf32>
    %91 = arith.mulf %87, %90 : vector<8x16x128xf32>
    %92 = arith.addf %86, %91 : vector<8x16x128xf32>
    %93 = vector.extract_strided_slice %50 {offsets = [0, 0, 0], sizes = [8, 16, 128], strides = [1, 1, 1]} : vector<10x16x128xf32> to vector<8x16x128xf32>
    %94 = vector.extract_strided_slice %85 {offsets = [1, 0], sizes = [1, 128], strides = [1, 1]} : vector<9x128xf32> to vector<1x128xf32>
    %95 = vector.shape_cast %94 : vector<1x128xf32> to vector<1x1x128xf32>
    %96 = vector.broadcast %95 : vector<1x1x128xf32> to vector<8x16x128xf32>
    %97 = arith.mulf %93, %96 : vector<8x16x128xf32>
    %98 = arith.addf %92, %97 : vector<8x16x128xf32>
    %99 = vector.extract_strided_slice %84 {offsets = [0, 0, 0], sizes = [8, 16, 128], strides = [1, 1, 1]} : vector<10x16x128xf32> to vector<8x16x128xf32>
    %100 = vector.extract_strided_slice %85 {offsets = [2, 0], sizes = [1, 128], strides = [1, 1]} : vector<9x128xf32> to vector<1x128xf32>
    %101 = vector.shape_cast %100 : vector<1x128xf32> to vector<1x1x128xf32>
    %102 = vector.broadcast %101 : vector<1x1x128xf32> to vector<8x16x128xf32>
    %103 = arith.mulf %99, %102 : vector<8x16x128xf32>
    %104 = arith.addf %98, %103 : vector<8x16x128xf32>
    %105 = vector.extract_strided_slice %83 {offsets = [1, 0, 0], sizes = [8, 16, 128], strides = [1, 1, 1]} : vector<10x16x128xf32> to vector<8x16x128xf32>
    %106 = vector.extract_strided_slice %85 {offsets = [3, 0], sizes = [1, 128], strides = [1, 1]} : vector<9x128xf32> to vector<1x128xf32>
    %107 = vector.shape_cast %106 : vector<1x128xf32> to vector<1x1x128xf32>
    %108 = vector.broadcast %107 : vector<1x1x128xf32> to vector<8x16x128xf32>
    %109 = arith.mulf %105, %108 : vector<8x16x128xf32>
    %110 = arith.addf %104, %109 : vector<8x16x128xf32>
    %111 = vector.extract_strided_slice %50 {offsets = [1, 0, 0], sizes = [8, 16, 128], strides = [1, 1, 1]} : vector<10x16x128xf32> to vector<8x16x128xf32>
    %112 = vector.extract_strided_slice %85 {offsets = [4, 0], sizes = [1, 128], strides = [1, 1]} : vector<9x128xf32> to vector<1x128xf32>
    %113 = vector.shape_cast %112 : vector<1x128xf32> to vector<1x1x128xf32>
    %114 = vector.broadcast %113 : vector<1x1x128xf32> to vector<8x16x128xf32>
    %115 = arith.mulf %111, %114 : vector<8x16x128xf32>
    %116 = arith.addf %110, %115 : vector<8x16x128xf32>
    %117 = vector.extract_strided_slice %84 {offsets = [1, 0, 0], sizes = [8, 16, 128], strides = [1, 1, 1]} : vector<10x16x128xf32> to vector<8x16x128xf32>
    %118 = vector.extract_strided_slice %85 {offsets = [5, 0], sizes = [1, 128], strides = [1, 1]} : vector<9x128xf32> to vector<1x128xf32>
    %119 = vector.shape_cast %118 : vector<1x128xf32> to vector<1x1x128xf32>
    %120 = vector.broadcast %119 : vector<1x1x128xf32> to vector<8x16x128xf32>
    %121 = arith.mulf %117, %120 : vector<8x16x128xf32>
    %122 = arith.addf %116, %121 : vector<8x16x128xf32>
    %123 = vector.extract_strided_slice %83 {offsets = [2, 0, 0], sizes = [8, 16, 128], strides = [1, 1, 1]} : vector<10x16x128xf32> to vector<8x16x128xf32>
    %124 = vector.extract_strided_slice %85 {offsets = [6, 0], sizes = [1, 128], strides = [1, 1]} : vector<9x128xf32> to vector<1x128xf32>
    %125 = vector.shape_cast %124 : vector<1x128xf32> to vector<1x1x128xf32>
    %126 = vector.broadcast %125 : vector<1x1x128xf32> to vector<8x16x128xf32>
    %127 = arith.mulf %123, %126 : vector<8x16x128xf32>
    %128 = arith.addf %122, %127 : vector<8x16x128xf32>
    %129 = vector.extract_strided_slice %50 {offsets = [2, 0, 0], sizes = [8, 16, 128], strides = [1, 1, 1]} : vector<10x16x128xf32> to vector<8x16x128xf32>
    %130 = vector.extract_strided_slice %85 {offsets = [7, 0], sizes = [1, 128], strides = [1, 1]} : vector<9x128xf32> to vector<1x128xf32>
    %131 = vector.shape_cast %130 : vector<1x128xf32> to vector<1x1x128xf32>
    %132 = vector.broadcast %131 : vector<1x1x128xf32> to vector<8x16x128xf32>
    %133 = arith.mulf %129, %132 : vector<8x16x128xf32>
    %134 = arith.addf %128, %133 : vector<8x16x128xf32>
    %135 = vector.extract_strided_slice %84 {offsets = [2, 0, 0], sizes = [8, 16, 128], strides = [1, 1, 1]} : vector<10x16x128xf32> to vector<8x16x128xf32>
    %136 = vector.extract_strided_slice %85 {offsets = [8, 0], sizes = [1, 128], strides = [1, 1]} : vector<9x128xf32> to vector<1x128xf32>
    %137 = vector.shape_cast %136 : vector<1x128xf32> to vector<1x1x128xf32>
    %138 = vector.broadcast %137 : vector<1x1x128xf32> to vector<8x16x128xf32>
    %139 = arith.mulf %135, %138 : vector<8x16x128xf32>
    %140 = arith.addf %134, %139 : vector<8x16x128xf32>
    %c0_45 = arith.constant 0 : index
    %c0_46 = arith.constant 0 : index
    %141 = vector.load %arg8[%c0_45, %c0_46] : memref<1x128xf32, #tpu.memory_space<vmem>>, vector<1x128xf32>
    %142 = vector.shape_cast %141 : vector<1x128xf32> to vector<1x1x128xf32>
    %143 = vector.broadcast %142 : vector<1x1x128xf32> to vector<8x16x128xf32>
    %144 = arith.addf %140, %143 : vector<8x16x128xf32>
    %145 = vector.shape_cast %144 : vector<8x16x128xf32> to vector<128x128xf32>
    %c0_47 = arith.constant 0 : index
    %c0_48 = arith.constant 0 : index
    %146 = vector.load %arg9[%c0_47, %c0_48] : memref<128x128xf32, #tpu.memory_space<vmem>>, vector<128x128xf32>
    %cst_49 = arith.constant dense<0.000000e+00> : vector<128x128xf32>
    %147 = tpu.matmul %145, %146, %cst_49 {dimension_numbers = #tpu.dot_dimension_numbers<[1], [0], [0], [1], [0, 0, 1, 1], [], []>} : vector<128x128xf32>, vector<128x128xf32>, vector<128x128xf32> -> vector<128x128xf32>
    %c0_50 = arith.constant 0 : index
    %c0_51 = arith.constant 0 : index
    %148 = vector.load %arg10[%c0_50, %c0_51] : memref<1x128xf32, #tpu.memory_space<vmem>>, vector<1x128xf32>
    %149 = vector.broadcast %148 : vector<1x128xf32> to vector<128x128xf32>
    %150 = arith.addf %147, %149 : vector<128x128xf32>
    %151 = arith.addf %150, %14 : vector<128x128xf32>
    %c0_52 = arith.constant 0 : index
    %c0_53 = arith.constant 0 : index
    %152 = vector.load %arg11[%c0_52, %c0_53] : memref<128x256xf32, #tpu.memory_space<vmem>>, vector<128x256xf32>
    %cst_54 = arith.constant dense<0.000000e+00> : vector<128x256xf32>
    %153 = tpu.matmul %151, %152, %cst_54 {dimension_numbers = #tpu.dot_dimension_numbers<[1], [0], [0], [1], [0, 0, 1, 1], [], []>} : vector<128x128xf32>, vector<128x256xf32>, vector<128x256xf32> -> vector<128x256xf32>
    %c0_55 = arith.constant 0 : index
    %c0_56 = arith.constant 0 : index
    %154 = vector.load %arg12[%c0_55, %c0_56] : memref<1x256xf32, #tpu.memory_space<vmem>>, vector<1x256xf32>
    %155 = vector.broadcast %154 : vector<1x256xf32> to vector<128x256xf32>
    %156 = arith.addf %153, %155 : vector<128x256xf32>
    %157 = vector.extract_strided_slice %156 {offsets = [0, 0], sizes = [128, 128], strides = [1, 1]} : vector<128x256xf32> to vector<128x128xf32>
    %cst_57 = arith.constant 0.000000e+00 : f32
    %158 = vector.broadcast %cst_57 : f32 to vector<128x128xf32>
    %159 = arith.cmpf oge, %157, %158 : vector<128x128xf32>
    %cst_58 = arith.constant 1.000000e-01 : f32
    %160 = vector.broadcast %cst_58 : f32 to vector<128x128xf32>
    %161 = arith.mulf %160, %157 : vector<128x128xf32>
    %162 = arith.select %159, %157, %161 : vector<128x128xi1>, vector<128x128xf32>
    %163 = vector.extract_strided_slice %156 {offsets = [0, 128], sizes = [128, 128], strides = [1, 1]} : vector<128x256xf32> to vector<128x128xf32>
    %cst_59 = arith.constant 0.000000e+00 : f32
    %164 = vector.broadcast %cst_59 : f32 to vector<128x128xf32>
    %165 = arith.cmpf oge, %163, %164 : vector<128x128xf32>
    %cst_60 = arith.constant 0.00999999977 : f32
    %166 = vector.broadcast %cst_60 : f32 to vector<128x128xf32>
    %167 = arith.mulf %166, %163 : vector<128x128xf32>
    %168 = arith.select %165, %163, %167 : vector<128x128xi1>, vector<128x128xf32>
    %169 = arith.addf %162, %168 : vector<128x128xf32>
    %c0_61 = arith.constant 0 : index
    %c0_62 = arith.constant 0 : index
    %170 = vector.load %arg13[%c0_61, %c0_62] : memref<128x128xf32, #tpu.memory_space<vmem>>, vector<128x128xf32>
    %cst_63 = arith.constant dense<0.000000e+00> : vector<128x128xf32>
    %171 = tpu.matmul %169, %170, %cst_63 {dimension_numbers = #tpu.dot_dimension_numbers<[1], [0], [0], [1], [0, 0, 1, 1], [], []>} : vector<128x128xf32>, vector<128x128xf32>, vector<128x128xf32> -> vector<128x128xf32>
    %c0_64 = arith.constant 0 : index
    %c0_65 = arith.constant 0 : index
    %172 = vector.load %arg14[%c0_64, %c0_65] : memref<1x128xf32, #tpu.memory_space<vmem>>, vector<1x128xf32>
    %173 = vector.broadcast %172 : vector<1x128xf32> to vector<128x128xf32>
    %174 = arith.addf %171, %173 : vector<128x128xf32>
    %175 = arith.addf %151, %174 : vector<128x128xf32>
    %176 = vector.shape_cast %175 : vector<128x128xf32> to vector<8x16x128xf32>
    %c0_66 = arith.constant 0 : index
    %c0_67 = arith.constant 0 : index
    %c0_68 = arith.constant 0 : index
    %c0_69 = arith.constant 0 : index
    %177 = vector.load %arg15[%c0_66, %c0_67, %c0_68, %c0_69] : memref<1x8x16x128xf32, #tpu.memory_space<vmem>>, vector<1x8x16x128xf32>
    %178 = vector.shape_cast %177 : vector<1x8x16x128xf32> to vector<8x16x128xf32>
    %179 = vector.shape_cast %176 : vector<8x16x128xf32> to vector<1x8x16x128xf32>
    tpu.vector_store %arg15[%c0_66, %c0_67, %c0_68, %c0_69], %179 {strides = array<i32>} : memref<1x8x16x128xf32, #tpu.memory_space<vmem>>, vector<1x8x16x128xf32>,
    return
  }
  func.func @transform_0(%arg0: i32, %arg1: i32) -> (i32, i32, i32, i32) {
    %c8_i32 = arith.constant 8 : i32
    %0 = arith.muli %arg1, %c8_i32 : i32
    %c1_i32 = arith.constant 1 : i32
    %1 = arith.subi %0, %c1_i32 : i32
    %c0_i32 = arith.constant 0 : i32
    %2 = arith.maxsi %1, %c0_i32 : i32
    %c0_i32_0 = arith.constant 0 : i32
    %c0_i32_1 = arith.constant 0 : i32
    %c0_i32_2 = arith.constant 0 : i32
    return %arg0, %2, %c0_i32_0, %c0_i32_1 : i32, i32, i32, i32
  }
  func.func @transform_1(%arg0: i32, %arg1: i32) -> (i32, i32, i32, i32) {
    %c0_i32 = arith.constant 0 : i32
    %c0_i32_0 = arith.constant 0 : i32
    %c0_i32_1 = arith.constant 0 : i32
    return %arg0, %arg1, %c0_i32, %c0_i32_0 : i32, i32, i32, i32
  }
  func.func @transform_2(%arg0: i32, %arg1: i32) -> (i32, i32, i32, i32) {
    %c8_i32 = arith.constant 8 : i32
    %0 = arith.muli %arg1, %c8_i32 : i32
    %c8_i32_0 = arith.constant 8 : i32
    %1 = arith.addi %0, %c8_i32_0 : i32
    %c15_i32 = arith.constant 15 : i32
    %2 = arith.minsi %1, %c15_i32 : i32
    %c0_i32 = arith.constant 0 : i32
    %c0_i32_1 = arith.constant 0 : i32
    %c0_i32_2 = arith.constant 0 : i32
    return %arg0, %2, %c0_i32, %c0_i32_1 : i32, i32, i32, i32
  }
  func.func @transform_3(%arg0: i32, %arg1: i32) -> (i32, i32) {
    %c0_i32 = arith.constant 0 : i32
    %c0_i32_0 = arith.constant 0 : i32
    %c0_i32_1 = arith.constant 0 : i32
    return %c0_i32, %c0_i32_0 : i32, i32
  }
  func.func @transform_4(%arg0: i32, %arg1: i32) -> (i32, i32) {
    %c0_i32 = arith.constant 0 : i32
    %c0_i32_0 = arith.constant 0 : i32
    %c0_i32_1 = arith.constant 0 : i32
    return %c0_i32, %c0_i32_0 : i32, i32
  }
  func.func @transform_5(%arg0: i32, %arg1: i32) -> (i32, i32) {
    %c0_i32 = arith.constant 0 : i32
    %c0_i32_0 = arith.constant 0 : i32
    %c0_i32_1 = arith.constant 0 : i32
    return %c0_i32, %c0_i32_0 : i32, i32
  }
  func.func @transform_6(%arg0: i32, %arg1: i32) -> (i32, i32) {
    %c0_i32 = arith.constant 0 : i32
    %c0_i32_0 = arith.constant 0 : i32
    %c0_i32_1 = arith.constant 0 : i32
    return %c0_i32, %c0_i32_0 : i32, i32
  }
  func.func @transform_7(%arg0: i32, %arg1: i32) -> (i32, i32) {
    %c0_i32 = arith.constant 0 : i32
    %c0_i32_0 = arith.constant 0 : i32
    %c0_i32_1 = arith.constant 0 : i32
    return %c0_i32, %c0_i32_0 : i32, i32
  }
  func.func @transform_8(%arg0: i32, %arg1: i32) -> (i32, i32) {
    %c0_i32 = arith.constant 0 : i32
    %c0_i32_0 = arith.constant 0 : i32
    %c0_i32_1 = arith.constant 0 : i32
    return %c0_i32, %c0_i32_0 : i32, i32
  }
  func.func @transform_9(%arg0: i32, %arg1: i32) -> (i32, i32) {
    %c0_i32 = arith.constant 0 : i32
    %c0_i32_0 = arith.constant 0 : i32
    %c0_i32_1 = arith.constant 0 : i32
    return %c0_i32, %c0_i32_0 : i32, i32
  }
  func.func @transform_10(%arg0: i32, %arg1: i32) -> (i32, i32) {
    %c0_i32 = arith.constant 0 : i32
    %c0_i32_0 = arith.constant 0 : i32
    %c0_i32_1 = arith.constant 0 : i32
    return %c0_i32, %c0_i32_0 : i32, i32
  }
  func.func @transform_11(%arg0: i32, %arg1: i32) -> (i32, i32) {
    %c0_i32 = arith.constant 0 : i32
    %c0_i32_0 = arith.constant 0 : i32
    %c0_i32_1 = arith.constant 0 : i32
    return %c0_i32, %c0_i32_0 : i32, i32
  }
  func.func @transform_12(%arg0: i32, %arg1: i32) -> (i32, i32) {
    %c0_i32 = arith.constant 0 : i32
    %c0_i32_0 = arith.constant 0 : i32
    %c0_i32_1 = arith.constant 0 : i32
    return %c0_i32, %c0_i32_0 : i32, i32
  }
  func.func @transform_13(%arg0: i32, %arg1: i32) -> (i32, i32, i32, i32) {
    %c0_i32 = arith.constant 0 : i32
    %c0_i32_0 = arith.constant 0 : i32
    %c0_i32_1 = arith.constant 0 : i32
    return %arg0, %arg1, %c0_i32, %c0_i32_0 : i32, i32, i32, i32
  }
}

module attributes {stable_mosaic.version = 11 : i64} {
  func.func @_dcb4_kernel(%arg0: i32, %arg1: i32, %arg2: memref<1x1x16x128xf32, #tpu.memory_space<vmem>>, %arg3: memref<1x8x16x128xf32, #tpu.memory_space<vmem>>, %arg4: memref<1x1x16x128xf32, #tpu.memory_space<vmem>>, %arg5: memref<128x256xf32, #tpu.memory_space<vmem>>, %arg6: memref<1x256xf32, #tpu.memory_space<vmem>>, %arg7: memref<9x128xf32, #tpu.memory_space<vmem>>, %arg8: memref<1x128xf32, #tpu.memory_space<vmem>>, %arg9: memref<128x128xf32, #tpu.memory_space<vmem>>, %arg10: memref<1x128xf32, #tpu.memory_space<vmem>>, %arg11: memref<128x256xf32, #tpu.memory_space<vmem>>, %arg12: memref<1x256xf32, #tpu.memory_space<vmem>>, %arg13: memref<128x128xf32, #tpu.memory_space<vmem>>, %arg14: memref<1x128xf32, #tpu.memory_space<vmem>>, %arg15: memref<1x8x16x128xf32, #tpu.memory_space<vmem>>) attributes {dimension_semantics = [#tpu.dimension_semantics<parallel>, #tpu.dimension_semantics<parallel>], iteration_bounds = array<i64: 2, 2>, scalar_prefetch = 0 : i64, scratch_operands = 0 : i64, tpu.core_type = #tpu.core_type<tc>, window_params = [{transform_indices = @transform_0, window_bounds = array<i64: 1, 1, 16, 128>}, {transform_indices = @transform_1, window_bounds = array<i64: 1, 8, 16, 128>}, {transform_indices = @transform_2, window_bounds = array<i64: 1, 1, 16, 128>}, {pipeline_mode = #tpu.pipeline_mode<synchronous>, transform_indices = @transform_3, window_bounds = array<i64: 128, 256>}, {pipeline_mode = #tpu.pipeline_mode<synchronous>, transform_indices = @transform_4, window_bounds = array<i64: 1, 256>}, {pipeline_mode = #tpu.pipeline_mode<synchronous>, transform_indices = @transform_5, window_bounds = array<i64: 9, 128>}, {pipeline_mode = #tpu.pipeline_mode<synchronous>, transform_indices = @transform_6, window_bounds = array<i64: 1, 128>}, {pipeline_mode = #tpu.pipeline_mode<synchronous>, transform_indices = @transform_7, window_bounds = array<i64: 128, 128>}, {pipeline_mode = #tpu.pipeline_mode<synchronous>, transform_indices = @transform_8, window_bounds = array<i64: 1, 128>}, {pipeline_mode = #tpu.pipeline_mode<synchronous>, transform_indices = @transform_9, window_bounds = array<i64: 128, 256>}, {pipeline_mode = #tpu.pipeline_mode<synchronous>, transform_indices = @transform_10, window_bounds = array<i64: 1, 256>}, {pipeline_mode = #tpu.pipeline_mode<synchronous>, transform_indices = @transform_11, window_bounds = array<i64: 128, 128>}, {pipeline_mode = #tpu.pipeline_mode<synchronous>, transform_indices = @transform_12, window_bounds = array<i64: 1, 128>}, {transform_indices = @transform_13, window_bounds = array<i64: 1, 8, 16, 128>}]} {
    %c0 = arith.constant 0 : index
    %c0_0 = arith.constant 0 : index
    %c0_1 = arith.constant 0 : index
    %c0_2 = arith.constant 0 : index
    %0 = vector.load %arg3[%c0, %c0_0, %c0_1, %c0_2] : memref<1x8x16x128xf32, #tpu.memory_space<vmem>>, vector<1x8x16x128xf32>
    %1 = vector.shape_cast %0 : vector<1x8x16x128xf32> to vector<8x16x128xf32>
    %2 = vector.shape_cast %1 : vector<8x16x128xf32> to vector<128x128xf32>
    %c0_3 = arith.constant 0 : index
    %c0_4 = arith.constant 0 : index
    %3 = vector.load %arg5[%c0_3, %c0_4] : memref<128x256xf32, #tpu.memory_space<vmem>>, vector<128x256xf32>
    %cst = arith.constant dense<0.000000e+00> : vector<128x256xf32>
    %4 = tpu.matmul %2, %3, %cst {dimension_numbers = #tpu.dot_dimension_numbers<[1], [0], [0], [1], [0, 0, 1, 1], [], []>} : vector<128x128xf32>, vector<128x256xf32>, vector<128x256xf32> -> vector<128x256xf32>
    %c0_5 = arith.constant 0 : index
    %c0_6 = arith.constant 0 : index
    %5 = vector.load %arg6[%c0_5, %c0_6] : memref<1x256xf32, #tpu.memory_space<vmem>>, vector<1x256xf32>
    %6 = vector.broadcast %5 : vector<1x256xf32> to vector<128x256xf32>
    %7 = arith.addf %4, %6 : vector<128x256xf32>
    %8 = vector.extract_strided_slice %7 {offsets = [0, 0], sizes = [128, 128], strides = [1, 1]} : vector<128x256xf32> to vector<128x128xf32>
    %cst_7 = arith.constant 0.000000e+00 : f32
    %9 = vector.broadcast %cst_7 : f32 to vector<128x128xf32>
    %10 = arith.cmpf oge, %8, %9 : vector<128x128xf32>
    %cst_8 = arith.constant 0.00999999977 : f32
    %11 = vector.broadcast %cst_8 : f32 to vector<128x128xf32>
    %12 = arith.mulf %11, %8 : vector<128x128xf32>
    %13 = arith.select %10, %8, %12 : vector<128x128xi1>, vector<128x128xf32>
    %14 = vector.extract_strided_slice %7 {offsets = [0, 128], sizes = [128, 128], strides = [1, 1]} : vector<128x256xf32> to vector<128x128xf32>
    %c0_i32 = arith.constant 0 : i32
    %15 = arith.cmpi sgt, %arg1, %c0_i32 : i32
    %c0_9 = arith.constant 0 : index
    %c0_10 = arith.constant 0 : index
    %c0_11 = arith.constant 0 : index
    %c0_12 = arith.constant 0 : index
    %16 = vector.load %arg2[%c0_9, %c0_10, %c0_11, %c0_12] : memref<1x1x16x128xf32, #tpu.memory_space<vmem>>, vector<1x1x16x128xf32>
    %17 = vector.shape_cast %16 : vector<1x1x16x128xf32> to vector<16x128xf32>
    %c0_13 = arith.constant 0 : index
    %c0_14 = arith.constant 0 : index
    %18 = vector.load %arg5[%c0_13, %c0_14] : memref<128x256xf32, #tpu.memory_space<vmem>>, vector<128x256xf32>
    %cst_15 = arith.constant dense<0.000000e+00> : vector<16x256xf32>
    %19 = tpu.matmul %17, %18, %cst_15 {dimension_numbers = #tpu.dot_dimension_numbers<[1], [0], [0], [1], [0, 0, 1, 1], [], []>} : vector<16x128xf32>, vector<128x256xf32>, vector<16x256xf32> -> vector<16x256xf32>
    %c0_16 = arith.constant 0 : index
    %c0_17 = arith.constant 0 : index
    %20 = vector.load %arg6[%c0_16, %c0_17] : memref<1x256xf32, #tpu.memory_space<vmem>>, vector<1x256xf32>
    %21 = vector.broadcast %20 : vector<1x256xf32> to vector<16x256xf32>
    %22 = arith.addf %19, %21 : vector<16x256xf32>
    %23 = vector.extract_strided_slice %22 {offsets = [0, 0], sizes = [16, 128], strides = [1, 1]} : vector<16x256xf32> to vector<16x128xf32>
    %cst_18 = arith.constant 0.000000e+00 : f32
    %24 = vector.broadcast %cst_18 : f32 to vector<16x128xf32>
    %25 = arith.cmpf oge, %23, %24 : vector<16x128xf32>
    %cst_19 = arith.constant 0.00999999977 : f32
    %26 = vector.broadcast %cst_19 : f32 to vector<16x128xf32>
    %27 = arith.mulf %26, %23 : vector<16x128xf32>
    %28 = arith.select %25, %23, %27 : vector<16x128xi1>, vector<16x128xf32>
    %cst_20 = arith.constant 0.000000e+00 : f32
    %29 = vector.broadcast %cst_20 : f32 to vector<16x128xf32>
    %30 = arith.select %15, %28, %29 : vector<16x128xf32>
    %c1_i32 = arith.constant 1 : i32
    %31 = arith.cmpi slt, %arg1, %c1_i32 : i32
    %c0_21 = arith.constant 0 : index
    %c0_22 = arith.constant 0 : index
    %c0_23 = arith.constant 0 : index
    %c0_24 = arith.constant 0 : index
    %32 = vector.load %arg4[%c0_21, %c0_22, %c0_23, %c0_24] : memref<1x1x16x128xf32, #tpu.memory_space<vmem>>, vector<1x1x16x128xf32>
    %33 = vector.shape_cast %32 : vector<1x1x16x128xf32> to vector<16x128xf32>
    %c0_25 = arith.constant 0 : index
    %c0_26 = arith.constant 0 : index
    %34 = vector.load %arg5[%c0_25, %c0_26] : memref<128x256xf32, #tpu.memory_space<vmem>>, vector<128x256xf32>
    %cst_27 = arith.constant dense<0.000000e+00> : vector<16x256xf32>
    %35 = tpu.matmul %33, %34, %cst_27 {dimension_numbers = #tpu.dot_dimension_numbers<[1], [0], [0], [1], [0, 0, 1, 1], [], []>} : vector<16x128xf32>, vector<128x256xf32>, vector<16x256xf32> -> vector<16x256xf32>
    %c0_28 = arith.constant 0 : index
    %c0_29 = arith.constant 0 : index
    %36 = vector.load %arg6[%c0_28, %c0_29] : memref<1x256xf32, #tpu.memory_space<vmem>>, vector<1x256xf32>
    %37 = vector.broadcast %36 : vector<1x256xf32> to vector<16x256xf32>
    %38 = arith.addf %35, %37 : vector<16x256xf32>
    %39 = vector.extract_strided_slice %38 {offsets = [0, 0], sizes = [16, 128], strides = [1, 1]} : vector<16x256xf32> to vector<16x128xf32>
    %cst_30 = arith.constant 0.000000e+00 : f32
    %40 = vector.broadcast %cst_30 : f32 to vector<16x128xf32>
    %41 = arith.cmpf oge, %39, %40 : vector<16x128xf32>
    %cst_31 = arith.constant 0.00999999977 : f32
    %42 = vector.broadcast %cst_31 : f32 to vector<16x128xf32>
    %43 = arith.mulf %42, %39 : vector<16x128xf32>
    %44 = arith.select %41, %39, %43 : vector<16x128xi1>, vector<16x128xf32>
    %cst_32 = arith.constant 0.000000e+00 : f32
    %45 = vector.broadcast %cst_32 : f32 to vector<16x128xf32>
    %46 = arith.select %31, %44, %45 : vector<16x128xf32>
    %47 = vector.shape_cast %30 : vector<16x128xf32> to vector<1x16x128xf32>
    %48 = vector.shape_cast %13 : vector<128x128xf32> to vector<8x16x128xf32>
    %49 = vector.shape_cast %46 : vector<16x128xf32> to vector<1x16x128xf32>
    %50 = tpu.concatenate %47, %48, %49 in 0 : vector<1x16x128xf32>, vector<8x16x128xf32>, vector<1x16x128xf32> -> vector<10x16x128xf32>
    %51 = vector.shape_cast %50 : vector<10x16x128xf32> to vector<160x128xf32>
    %52 = tpu.iota {dimensions = array<i32: 0>} : vector<160x1xi32>
    %c16_i32 = arith.constant 16 : i32
    %c0_i32_33 = arith.constant 0 : i32
    %53 = arith.cmpi eq, %c16_i32, %c0_i32_33 : i32
    %c1_i32_34 = arith.constant 1 : i32
    %54 = arith.select %53, %c1_i32_34, %c16_i32 : i32
    %55 = vector.broadcast %54 : i32 to vector<160x1xi32>
    %56 = arith.remsi %52, %55 : vector<160x1xi32>
    %c0_i32_35 = arith.constant 0 : i32
    %57 = vector.broadcast %c0_i32_35 : i32 to vector<160x1xi32>
    %58 = arith.cmpi ne, %56, %57 : vector<160x1xi32>
    %c0_i32_36 = arith.constant 0 : i32
    %59 = vector.broadcast %c0_i32_36 : i32 to vector<160x1xi32>
    %60 = arith.cmpi slt, %56, %59 : vector<160x1xi32>
    %c0_i32_37 = arith.constant 0 : i32
    %61 = arith.cmpi slt, %54, %c0_i32_37 : i32
    %62 = vector.broadcast %61 : i1 to vector<160x1xi1>
    %63 = vector.broadcast %62 : vector<160x1xi1> to vector<160x1xi1>
    %64 = arith.xori %60, %63 : vector<160x1xi1>
    %65 = arith.andi %64, %58 : vector<160x1xi1>
    %66 = vector.broadcast %54 : i32 to vector<160x1xi32>
    %67 = arith.addi %56, %66 : vector<160x1xi32>
    %68 = arith.select %65, %67, %56 : vector<160x1xi1>, vector<160x1xi32>
    %c0_i32_38 = arith.constant 0 : i32
    %69 = vector.broadcast %c0_i32_38 : i32 to vector<160x1xi32>
    %70 = arith.cmpi sgt, %68, %69 : vector<160x1xi32>
    %c1_i32_39 = arith.constant 1 : i32
    %71 = tpu.dynamic_rotate %51 by %c1_i32_39 dim 0 : vector<160x128xf32>, i32 -> vector<160x128xf32>
    %cst_40 = arith.constant 0.000000e+00 : f32
    %72 = vector.shape_cast %70 : vector<160x1xi1> to vector<160x1xi1>
    %73 = vector.broadcast %72 : vector<160x1xi1> to vector<160x128xi1>
    %74 = vector.broadcast %cst_40 : f32 to vector<160x128xf32>
    %75 = arith.select %73, %71, %74 : vector<160x128xi1>, vector<160x128xf32>
    %c15_i32 = arith.constant 15 : i32
    %76 = vector.broadcast %c15_i32 : i32 to vector<160x1xi32>
    %77 = arith.cmpi slt, %68, %76 : vector<160x1xi32>
    %c159_i32 = arith.constant 159 : i32
    %78 = tpu.dynamic_rotate %51 by %c159_i32 dim 0 : vector<160x128xf32>, i32 -> vector<160x128xf32>
    %cst_41 = arith.constant 0.000000e+00 : f32
    %79 = vector.shape_cast %77 : vector<160x1xi1> to vector<160x1xi1>
    %80 = vector.broadcast %79 : vector<160x1xi1> to vector<160x128xi1>
    %81 = vector.broadcast %cst_41 : f32 to vector<160x128xf32>
    %82 = arith.select %80, %78, %81 : vector<160x128xi1>, vector<160x128xf32>
    %83 = vector.shape_cast %75 : vector<160x128xf32> to vector<10x16x128xf32>
    %84 = vector.shape_cast %82 : vector<160x128xf32> to vector<10x16x128xf32>
    %c0_42 = arith.constant 0 : index
    %c0_43 = arith.constant 0 : index
    %85 = vector.load %arg7[%c0_42, %c0_43] : memref<9x128xf32, #tpu.memory_space<vmem>>, vector<9x128xf32>
    %cst_44 = arith.constant 0.000000e+00 : f32
    %86 = vector.broadcast %cst_44 : f32 to vector<8x16x128xf32>
    %87 = vector.extract_strided_slice %83 {offsets = [0, 0, 0], sizes = [8, 16, 128], strides = [1, 1, 1]} : vector<10x16x128xf32> to vector<8x16x128xf32>
    %88 = vector.extract_strided_slice %85 {offsets = [0, 0], sizes = [1, 128], strides = [1, 1]} : vector<9x128xf32> to vector<1x128xf32>
    %89 = vector.shape_cast %88 : vector<1x128xf32> to vector<1x1x128xf32>
    %90 = vector.broadcast %89 : vector<1x1x128xf32> to vector<8x16x128xf32>
    %91 = arith.mulf %87, %90 : vector<8x16x128xf32>
    %92 = arith.addf %86, %91 : vector<8x16x128xf32>
    %93 = vector.extract_strided_slice %50 {offsets = [0, 0, 0], sizes = [8, 16, 128], strides = [1, 1, 1]} : vector<10x16x128xf32> to vector<8x16x128xf32>
    %94 = vector.extract_strided_slice %85 {offsets = [1, 0], sizes = [1, 128], strides = [1, 1]} : vector<9x128xf32> to vector<1x128xf32>
    %95 = vector.shape_cast %94 : vector<1x128xf32> to vector<1x1x128xf32>
    %96 = vector.broadcast %95 : vector<1x1x128xf32> to vector<8x16x128xf32>
    %97 = arith.mulf %93, %96 : vector<8x16x128xf32>
    %98 = arith.addf %92, %97 : vector<8x16x128xf32>
    %99 = vector.extract_strided_slice %84 {offsets = [0, 0, 0], sizes = [8, 16, 128], strides = [1, 1, 1]} : vector<10x16x128xf32> to vector<8x16x128xf32>
    %100 = vector.extract_strided_slice %85 {offsets = [2, 0], sizes = [1, 128], strides = [1, 1]} : vector<9x128xf32> to vector<1x128xf32>
    %101 = vector.shape_cast %100 : vector<1x128xf32> to vector<1x1x128xf32>
    %102 = vector.broadcast %101 : vector<1x1x128xf32> to vector<8x16x128xf32>
    %103 = arith.mulf %99, %102 : vector<8x16x128xf32>
    %104 = arith.addf %98, %103 : vector<8x16x128xf32>
    %105 = vector.extract_strided_slice %83 {offsets = [1, 0, 0], sizes = [8, 16, 128], strides = [1, 1, 1]} : vector<10x16x128xf32> to vector<8x16x128xf32>
    %106 = vector.extract_strided_slice %85 {offsets = [3, 0], sizes = [1, 128], strides = [1, 1]} : vector<9x128xf32> to vector<1x128xf32>
    %107 = vector.shape_cast %106 : vector<1x128xf32> to vector<1x1x128xf32>
    %108 = vector.broadcast %107 : vector<1x1x128xf32> to vector<8x16x128xf32>
    %109 = arith.mulf %105, %108 : vector<8x16x128xf32>
    %110 = arith.addf %104, %109 : vector<8x16x128xf32>
    %111 = vector.extract_strided_slice %50 {offsets = [1, 0, 0], sizes = [8, 16, 128], strides = [1, 1, 1]} : vector<10x16x128xf32> to vector<8x16x128xf32>
    %112 = vector.extract_strided_slice %85 {offsets = [4, 0], sizes = [1, 128], strides = [1, 1]} : vector<9x128xf32> to vector<1x128xf32>
    %113 = vector.shape_cast %112 : vector<1x128xf32> to vector<1x1x128xf32>
    %114 = vector.broadcast %113 : vector<1x1x128xf32> to vector<8x16x128xf32>
    %115 = arith.mulf %111, %114 : vector<8x16x128xf32>
    %116 = arith.addf %110, %115 : vector<8x16x128xf32>
    %117 = vector.extract_strided_slice %84 {offsets = [1, 0, 0], sizes = [8, 16, 128], strides = [1, 1, 1]} : vector<10x16x128xf32> to vector<8x16x128xf32>
    %118 = vector.extract_strided_slice %85 {offsets = [5, 0], sizes = [1, 128], strides = [1, 1]} : vector<9x128xf32> to vector<1x128xf32>
    %119 = vector.shape_cast %118 : vector<1x128xf32> to vector<1x1x128xf32>
    %120 = vector.broadcast %119 : vector<1x1x128xf32> to vector<8x16x128xf32>
    %121 = arith.mulf %117, %120 : vector<8x16x128xf32>
    %122 = arith.addf %116, %121 : vector<8x16x128xf32>
    %123 = vector.extract_strided_slice %83 {offsets = [2, 0, 0], sizes = [8, 16, 128], strides = [1, 1, 1]} : vector<10x16x128xf32> to vector<8x16x128xf32>
    %124 = vector.extract_strided_slice %85 {offsets = [6, 0], sizes = [1, 128], strides = [1, 1]} : vector<9x128xf32> to vector<1x128xf32>
    %125 = vector.shape_cast %124 : vector<1x128xf32> to vector<1x1x128xf32>
    %126 = vector.broadcast %125 : vector<1x1x128xf32> to vector<8x16x128xf32>
    %127 = arith.mulf %123, %126 : vector<8x16x128xf32>
    %128 = arith.addf %122, %127 : vector<8x16x128xf32>
    %129 = vector.extract_strided_slice %50 {offsets = [2, 0, 0], sizes = [8, 16, 128], strides = [1, 1, 1]} : vector<10x16x128xf32> to vector<8x16x128xf32>
    %130 = vector.extract_strided_slice %85 {offsets = [7, 0], sizes = [1, 128], strides = [1, 1]} : vector<9x128xf32> to vector<1x128xf32>
    %131 = vector.shape_cast %130 : vector<1x128xf32> to vector<1x1x128xf32>
    %132 = vector.broadcast %131 : vector<1x1x128xf32> to vector<8x16x128xf32>
    %133 = arith.mulf %129, %132 : vector<8x16x128xf32>
    %134 = arith.addf %128, %133 : vector<8x16x128xf32>
    %135 = vector.extract_strided_slice %84 {offsets = [2, 0, 0], sizes = [8, 16, 128], strides = [1, 1, 1]} : vector<10x16x128xf32> to vector<8x16x128xf32>
    %136 = vector.extract_strided_slice %85 {offsets = [8, 0], sizes = [1, 128], strides = [1, 1]} : vector<9x128xf32> to vector<1x128xf32>
    %137 = vector.shape_cast %136 : vector<1x128xf32> to vector<1x1x128xf32>
    %138 = vector.broadcast %137 : vector<1x1x128xf32> to vector<8x16x128xf32>
    %139 = arith.mulf %135, %138 : vector<8x16x128xf32>
    %140 = arith.addf %134, %139 : vector<8x16x128xf32>
    %c0_45 = arith.constant 0 : index
    %c0_46 = arith.constant 0 : index
    %141 = vector.load %arg8[%c0_45, %c0_46] : memref<1x128xf32, #tpu.memory_space<vmem>>, vector<1x128xf32>
    %142 = vector.shape_cast %141 : vector<1x128xf32> to vector<1x1x128xf32>
    %143 = vector.broadcast %142 : vector<1x1x128xf32> to vector<8x16x128xf32>
    %144 = arith.addf %140, %143 : vector<8x16x128xf32>
    %145 = vector.shape_cast %144 : vector<8x16x128xf32> to vector<128x128xf32>
    %c0_47 = arith.constant 0 : index
    %c0_48 = arith.constant 0 : index
    %146 = vector.load %arg9[%c0_47, %c0_48] : memref<128x128xf32, #tpu.memory_space<vmem>>, vector<128x128xf32>
    %cst_49 = arith.constant dense<0.000000e+00> : vector<128x128xf32>
    %147 = tpu.matmul %145, %146, %cst_49 {dimension_numbers = #tpu.dot_dimension_numbers<[1], [0], [0], [1], [0, 0, 1, 1], [], []>} : vector<128x128xf32>, vector<128x128xf32>, vector<128x128xf32> -> vector<128x128xf32>
    %c0_50 = arith.constant 0 : index
    %c0_51 = arith.constant 0 : index
    %148 = vector.load %arg10[%c0_50, %c0_51] : memref<1x128xf32, #tpu.memory_space<vmem>>, vector<1x128xf32>
    %149 = vector.broadcast %148 : vector<1x128xf32> to vector<128x128xf32>
    %150 = arith.addf %147, %149 : vector<128x128xf32>
    %151 = arith.addf %150, %14 : vector<128x128xf32>
    %c0_52 = arith.constant 0 : index
    %c0_53 = arith.constant 0 : index
    %152 = vector.load %arg11[%c0_52, %c0_53] : memref<128x256xf32, #tpu.memory_space<vmem>>, vector<128x256xf32>
    %cst_54 = arith.constant dense<0.000000e+00> : vector<128x256xf32>
    %153 = tpu.matmul %151, %152, %cst_54 {dimension_numbers = #tpu.dot_dimension_numbers<[1], [0], [0], [1], [0, 0, 1, 1], [], []>} : vector<128x128xf32>, vector<128x256xf32>, vector<128x256xf32> -> vector<128x256xf32>
    %c0_55 = arith.constant 0 : index
    %c0_56 = arith.constant 0 : index
    %154 = vector.load %arg12[%c0_55, %c0_56] : memref<1x256xf32, #tpu.memory_space<vmem>>, vector<1x256xf32>
    %155 = vector.broadcast %154 : vector<1x256xf32> to vector<128x256xf32>
    %156 = arith.addf %153, %155 : vector<128x256xf32>
    %157 = vector.extract_strided_slice %156 {offsets = [0, 0], sizes = [128, 128], strides = [1, 1]} : vector<128x256xf32> to vector<128x128xf32>
    %cst_57 = arith.constant 0.000000e+00 : f32
    %158 = vector.broadcast %cst_57 : f32 to vector<128x128xf32>
    %159 = arith.cmpf oge, %157, %158 : vector<128x128xf32>
    %cst_58 = arith.constant 1.000000e-01 : f32
    %160 = vector.broadcast %cst_58 : f32 to vector<128x128xf32>
    %161 = arith.mulf %160, %157 : vector<128x128xf32>
    %162 = arith.select %159, %157, %161 : vector<128x128xi1>, vector<128x128xf32>
    %163 = vector.extract_strided_slice %156 {offsets = [0, 128], sizes = [128, 128], strides = [1, 1]} : vector<128x256xf32> to vector<128x128xf32>
    %cst_59 = arith.constant 0.000000e+00 : f32
    %164 = vector.broadcast %cst_59 : f32 to vector<128x128xf32>
    %165 = arith.cmpf oge, %163, %164 : vector<128x128xf32>
    %cst_60 = arith.constant 0.00999999977 : f32
    %166 = vector.broadcast %cst_60 : f32 to vector<128x128xf32>
    %167 = arith.mulf %166, %163 : vector<128x128xf32>
    %168 = arith.select %165, %163, %167 : vector<128x128xi1>, vector<128x128xf32>
    %169 = arith.addf %162, %168 : vector<128x128xf32>
    %c0_61 = arith.constant 0 : index
    %c0_62 = arith.constant 0 : index
    %170 = vector.load %arg13[%c0_61, %c0_62] : memref<128x128xf32, #tpu.memory_space<vmem>>, vector<128x128xf32>
    %cst_63 = arith.constant dense<0.000000e+00> : vector<128x128xf32>
    %171 = tpu.matmul %169, %170, %cst_63 {dimension_numbers = #tpu.dot_dimension_numbers<[1], [0], [0], [1], [0, 0, 1, 1], [], []>} : vector<128x128xf32>, vector<128x128xf32>, vector<128x128xf32> -> vector<128x128xf32>
    %c0_64 = arith.constant 0 : index
    %c0_65 = arith.constant 0 : index
    %172 = vector.load %arg14[%c0_64, %c0_65] : memref<1x128xf32, #tpu.memory_space<vmem>>, vector<1x128xf32>
    %173 = vector.broadcast %172 : vector<1x128xf32> to vector<128x128xf32>
    %174 = arith.addf %171, %173 : vector<128x128xf32>
    %175 = arith.addf %151, %174 : vector<128x128xf32>
    %176 = vector.shape_cast %175 : vector<128x128xf32> to vector<8x16x128xf32>
    %c0_66 = arith.constant 0 : index
    %c0_67 = arith.constant 0 : index
    %c0_68 = arith.constant 0 : index
    %c0_69 = arith.constant 0 : index
    %177 = vector.load %arg15[%c0_66, %c0_67, %c0_68, %c0_69] : memref<1x8x16x128xf32, #tpu.memory_space<vmem>>, vector<1x8x16x128xf32>
    %178 = vector.shape_cast %177 : vector<1x8x16x128xf32> to vector<8x16x128xf32>
    %179 = vector.shape_cast %176 : vector<8x16x128xf32> to vector<1x8x16x128xf32>
    tpu.vector_store %arg15[%c0_66, %c0_67, %c0_68, %c0_69], %179 {strides = array<i32>} : memref<1x8x16x128xf32, #tpu.memory_space<vmem>>, vector<1x8x16x128xf32>,
    return
  }
  func.func @transform_0(%arg0: i32, %arg1: i32) -> (i32, i32, i32, i32) {
    %c8_i32 = arith.constant 8 : i32
    %0 = arith.muli %arg1, %c8_i32 : i32
    %c1_i32 = arith.constant 1 : i32
    %1 = arith.subi %0, %c1_i32 : i32
    %c0_i32 = arith.constant 0 : i32
    %2 = arith.maxsi %1, %c0_i32 : i32
    %c0_i32_0 = arith.constant 0 : i32
    %c0_i32_1 = arith.constant 0 : i32
    %c0_i32_2 = arith.constant 0 : i32
    return %arg0, %2, %c0_i32_0, %c0_i32_1 : i32, i32, i32, i32
  }
  func.func @transform_1(%arg0: i32, %arg1: i32) -> (i32, i32, i32, i32) {
    %c0_i32 = arith.constant 0 : i32
    %c0_i32_0 = arith.constant 0 : i32
    %c0_i32_1 = arith.constant 0 : i32
    return %arg0, %arg1, %c0_i32, %c0_i32_0 : i32, i32, i32, i32
  }
  func.func @transform_2(%arg0: i32, %arg1: i32) -> (i32, i32, i32, i32) {
    %c8_i32 = arith.constant 8 : i32
    %0 = arith.muli %arg1, %c8_i32 : i32
    %c8_i32_0 = arith.constant 8 : i32
    %1 = arith.addi %0, %c8_i32_0 : i32
    %c15_i32 = arith.constant 15 : i32
    %2 = arith.minsi %1, %c15_i32 : i32
    %c0_i32 = arith.constant 0 : i32
    %c0_i32_1 = arith.constant 0 : i32
    %c0_i32_2 = arith.constant 0 : i32
    return %arg0, %2, %c0_i32, %c0_i32_1 : i32, i32, i32, i32
  }
  func.func @transform_3(%arg0: i32, %arg1: i32) -> (i32, i32) {
    %c0_i32 = arith.constant 0 : i32
    %c0_i32_0 = arith.constant 0 : i32
    %c0_i32_1 = arith.constant 0 : i32
    return %c0_i32, %c0_i32_0 : i32, i32
  }
  func.func @transform_4(%arg0: i32, %arg1: i32) -> (i32, i32) {
    %c0_i32 = arith.constant 0 : i32
    %c0_i32_0 = arith.constant 0 : i32
    %c0_i32_1 = arith.constant 0 : i32
    return %c0_i32, %c0_i32_0 : i32, i32
  }
  func.func @transform_5(%arg0: i32, %arg1: i32) -> (i32, i32) {
    %c0_i32 = arith.constant 0 : i32
    %c0_i32_0 = arith.constant 0 : i32
    %c0_i32_1 = arith.constant 0 : i32
    return %c0_i32, %c0_i32_0 : i32, i32
  }
  func.func @transform_6(%arg0: i32, %arg1: i32) -> (i32, i32) {
    %c0_i32 = arith.constant 0 : i32
    %c0_i32_0 = arith.constant 0 : i32
    %c0_i32_1 = arith.constant 0 : i32
    return %c0_i32, %c0_i32_0 : i32, i32
  }
  func.func @transform_7(%arg0: i32, %arg1: i32) -> (i32, i32) {
    %c0_i32 = arith.constant 0 : i32
    %c0_i32_0 = arith.constant 0 : i32
    %c0_i32_1 = arith.constant 0 : i32
    return %c0_i32, %c0_i32_0 : i32, i32
  }
  func.func @transform_8(%arg0: i32, %arg1: i32) -> (i32, i32) {
    %c0_i32 = arith.constant 0 : i32
    %c0_i32_0 = arith.constant 0 : i32
    %c0_i32_1 = arith.constant 0 : i32
    return %c0_i32, %c0_i32_0 : i32, i32
  }
  func.func @transform_9(%arg0: i32, %arg1: i32) -> (i32, i32) {
    %c0_i32 = arith.constant 0 : i32
    %c0_i32_0 = arith.constant 0 : i32
    %c0_i32_1 = arith.constant 0 : i32
    return %c0_i32, %c0_i32_0 : i32, i32
  }
  func.func @transform_10(%arg0: i32, %arg1: i32) -> (i32, i32) {
    %c0_i32 = arith.constant 0 : i32
    %c0_i32_0 = arith.constant 0 : i32
    %c0_i32_1 = arith.constant 0 : i32
    return %c0_i32, %c0_i32_0 : i32, i32
  }
  func.func @transform_11(%arg0: i32, %arg1: i32) -> (i32, i32) {
    %c0_i32 = arith.constant 0 : i32
    %c0_i32_0 = arith.constant 0 : i32
    %c0_i32_1 = arith.constant 0 : i32
    return %c0_i32, %c0_i32_0 : i32, i32
  }
  func.func @transform_12(%arg0: i32, %arg1: i32) -> (i32, i32) {
    %c0_i32 = arith.constant 0 : i32
    %c0_i32_0 = arith.constant 0 : i32
    %c0_i32_1 = arith.constant 0 : i32
    return %c0_i32, %c0_i32_0 : i32, i32
  }
  func.func @transform_13(%arg0: i32, %arg1: i32) -> (i32, i32, i32, i32) {
    %c0_i32 = arith.constant 0 : i32
    %c0_i32_0 = arith.constant 0 : i32
    %c0_i32_1 = arith.constant 0 : i32
    return %arg0, %arg1, %c0_i32, %c0_i32_0 : i32, i32, i32, i32
  }
}

</mosaic_0001>

<bundles_post_ra>
// kernel: tpu_custom_call.1
= control target key start
LH: loop header
LB: loop body
LE: loop exit
PB: predicated region body
PF: predicated region fallthrough
CT: control target
= control target key end

     0   :  { %s6290_s0 = inlined_call_operand.hbm [shape: f32[2,16,16,128], index: 0, kind: input, shape index: {}]   ;;  %s6291_s1 = inlined_call_operand.hbm [shape: f32[2,16,16,128], index: 1, kind: input, shape index: {}]   ;;  %s6292_s2 = inlined_call_operand.hbm [shape: f32[2,16,16,128], index: 2, kind: input, shape index: {}]   ;;  %s6293_s3 = inlined_call_operand.hbm [shape: f32[128,256], index: 3, kind: input, shape index: {}]   ;;  %s6294_s4 = inlined_call_operand.hbm [shape: f32[1,256], index: 4, kind: input, shape index: {}]   ;;  %s6295_s5 = inlined_call_operand.hbm [shape: f32[9,128], index: 5, kind: input, shape index: {}]   ;;  %s6296_s6 = inlined_call_operand.hbm [shape: f32[1,128], index: 6, kind: input, shape index: {}]   ;;  %s6297_s7 = inlined_call_operand.hbm [shape: f32[128,128], index: 7, kind: input, shape index: {}]   ;;  %s6298_s8 = inlined_call_operand.hbm [shape: f32[1,128], index: 8, kind: input, shape index: {}]   ;;  %s6299_s9 = inlined_call_operand.hbm [shape: f32[128,256], index: 9, kind: input, shape index: {}]   ;;  %s6300_s10 = inlined_call_operand.hbm [shape: f32[1,256], index: 10, kind: input, shape index: {}]   ;;  %s6301_s11 = inlined_call_operand.hbm [shape: f32[128,128], index: 11, kind: input, shape index: {}]   ;;  %s6302_s12 = inlined_call_operand.hbm [shape: f32[1,128], index: 12, kind: input, shape index: {}]   ;;  %s6303_s13 = inlined_call_operand.hbm [shape: f32[2,16,16,128], index: 13, kind: output, shape index: {}]  }
   0x1   :  { %6370 = sst [smem:[#allocation96_spill]] %s6290_s0 }
   0x2   :  { %6371 = sst [smem:[#allocation97_spill]] %s6291_s1 }
   0x3   :  { %6372 = sst [smem:[#allocation98_spill]] %s6292_s2 }
   0x4   :  { %6373 = sst [smem:[#allocation99_spill]] %s6293_s3 }
   0x5   :  { %6374 = sst [smem:[#allocation100_spill]] %s6294_s4 }
   0x6   :  { %6375 = sst [smem:[#allocation101_spill]] %s6295_s5 }
   0x7   :  { %6376 = sst [smem:[#allocation102_spill]] %s6296_s6 }
   0x8   :  { %6377 = sst [smem:[#allocation103_spill]] %s6297_s7 }
   0x9   :  { %6378 = sst [smem:[#allocation104_spill]] %s6298_s8 }
   0xa   :  { %6379 = sst [smem:[#allocation105_spill]] %s6299_s9 }
   0xb   :  { %6380 = sst [smem:[#allocation106_spill]] %s6300_s10 }
   0xc   :  { %6381 = sst [smem:[#allocation107_spill]] %s6301_s11 }
   0xd   :  { %6382 = sst [smem:[#allocation108_spill]] %s6302_s12 }
   0xe   :  { %6383 = sst [smem:[#allocation109_spill]] %s6303_s13 }
   0xf   :  { %18 = vsyncpa [#allocation3], 0 }
  0x10   :  { %20 = vsyncpa [#allocation3 + $0x1], 0 }
  0x11   :  { %21 = vsyncpa [#allocation6], 0 }
  0x12   :  { %23 = vsyncpa [#allocation6 + $0x1], 0 }
  0x13   :  { %24 = vsyncpa [#allocation9], 0 }
  0x14   :  { %25 = vsyncpa [#allocation12], 0 }
  0x15   :  { %26 = vsyncpa [#allocation15], 0 }
  0x16   :  { %27 = vsyncpa [#allocation18], 0 }
  0x17   :  { %28 = vsyncpa [#allocation21], 0 }
  0x18   :  { %29 = vsyncpa [#allocation4], 0 }
  0x19   :  { %31 = vsyncpa [#allocation4 + $0x1], 0  ;;  %s4297_s25 = smov 0   ;;  %s4299_s26 = smov 0  }
  0x1a   :  { %s4301_s27 = smov 0   ;;  %s4303_s28 = smov 0  }
  0x1b   :  { %s4305_s29 = smov 0   ;;  %s4307_s30 = smov 0  }
  0x1c   :  { %s4309_s14 = smov 0   ;;  %s4311_s15 = smov 0  }
  0x1d   :  { %s4313_s16 = smov 0   ;;  %s4315_s17 = smov 0  }
  0x1e   :  { %s4317_s18 = smov 0   ;;  %s4319_s19 = smov 0  }
  0x1f   :  { %s4321_s20 = smov 0   ;;  %s4323_s21 = smov 0  }
  0x20 LB: > { %6384 = sst [smem:[#allocation33_spill]] %s4152_s25  ;;  %s4368_s22 = sadd.s32 4294967295, %s4204_s21   ;;  %s4204_s21 = sphi %s4323_s21, %s37_s21   ;;  %s4200_s20 = sphi %s4321_s20, %s6667_s20   ;;  %s4196_s19 = sphi %s4319_s19, %s6666_s19   ;;  %s4192_s18 = sphi %s4317_s18, %s6674_s18   ;;  %s4188_s17 = sphi %s4315_s17, %s6664_s17   ;;  %s4184_s16 = sphi %s4313_s16, %s6673_s16   ;;  %s4180_s15 = sphi %s4311_s15, %s6662_s15   ;;  %s4176_s14 = sphi %s4309_s14, %s6661_s14   ;;  %s4172_s30 = sphi %s4307_s30, %s6672_s30   ;;  %s4168_s29 = sphi %s4305_s29, %s6671_s29   ;;  %s4164_s28 = sphi %s4303_s28, %s6670_s28   ;;  %s4160_s27 = sphi %s4301_s27, %s6669_s27   ;;  %s4156_s26 = sphi %s4299_s26, %s6660_s26   ;;  %s4152_s25 = sphi %s4297_s25, %s6659_s25  }
  0x21   : > { %6385 = sst [smem:[#allocation34_spill]] %s4156_s26  ;;  %p2991_p0 = scmp.ge.s32.totalorder %s4204_s21, 1 }
  0x22   : > { %6386 = sst [smem:[#allocation35_spill]] %s4160_s27  ;;  %p6311_p1 = scmp.eq.s32.totalorder %s4368_s22, 0 }
  0x23   : > { %6387 = sst [smem:[#allocation36_spill]] %s4164_s28  ;;  %p392_p2 = scmp.lt.s32.totalorder %s4204_s21, 5 }
  0x24   : > { %6388 = sst [smem:[#allocation37_spill]] %s4176_s14  ;;  %s4206_s24 = smov [#allocation8]  }
  0x25   : > { %6389 = sst [smem:[#allocation38_spill]] %s4180_s15  ;;  %p4373_p3 = pnand %p2991_p0, %p392_p2 }
  0x26   : > { %6390 = sst [smem:[#allocation39_spill]] %s4184_s16  ;;  %s404_s13 = sshll.u32 %s4206_s24, 4  ;;  %s405_s13 = int_to_ptr.vmem [resolvable:$true] %s404_s13 }
  0x27   : > { %6391 = sst [smem:[#allocation40_spill]] %s4188_s17  ;;  %p3463_p4 = pneg %p4373_p3 }
  0x28   : > { %6392 = sst [smem:[#allocation41_spill]] %s4192_s18  ;;  %s4207_s17 = smov [#allocation11]  }
  0x29   : > { %6393 = sst [smem:[#allocation42_spill]] %s4196_s19  ;;  %p4381_p5 = pnand %p3463_p4, %p6311_p1 }
  0x2a   : > { %6394 = sst [smem:[#allocation43_spill]] %s4200_s20  ;;  %s428_s2 = sshll.u32 %s4207_s17, 4  ;;  %s4385_s2 = int_to_ptr.vmem [resolvable:$true] %s428_s2 }
  0x2b   : > { %s6395_s23 = scalar_select %p4373_p3, 1, 0 }
  0x2c   : > { %s6397_s18 = scalar_select %p4381_p5, 1, 0 }
  0x2d   : > { %6396 = sst [smem:[#allocation44_spill]] %s6395_s23  ;;  %s6398_s3 = sld [smem:[#allocation99_spill]] }
  0x2e   : > { %p4395_p7 = pneg %p4381_p5 }
  0x33   : > { %s3660_s27 = scalar_lea.hbm %s6398_s3, 4096 }
  0x34   : > { %p3661_p6 = scmp.ne.s32.totalorder %s6398_s3, %s3660_s27  ;;  %p3667_p10 = scmp.lt.u32.totalorder %s3660_s27, %s6398_s3 }
  0x36   : > { %p3663_p8 = pnand %p4395_p7, %p3661_p6 }
  0x38   : > { %p3664_p9 = pneg %p3663_p8 }
  0x3a   : > { %p3669_p11 = pnand %p3667_p10, %p3664_p9 }
  0x3c   : > { %3672 = shalt.err (!%p3669_p11)
}
  0x3d   : > { %s3673_s25 = scalar_lea.vmem %s405_s13, 4096  ;;  %p3681_p2 = scmp.lt.s32.totalorder %s405_s13, %s405_s13 }
  0x3e   : > { %p3674_p12 = scmp.ne.s32.totalorder %s405_s13, %s3673_s25  ;;  %p3682_p4 = scmp.lt.s32.totalorder %s3673_s25, %s3673_s25 }
  0x40   : > { %p3676_p13 = pnand %p3674_p12, %p4395_p7  ;;  %p3683_p1 = por %p3682_p4, %p3681_p2 }
  0x42   : > { %p3677_p0 = pneg %p3676_p13 }
  0x44   : > { %p3684_p3 = pnand %p3683_p1, %p3677_p0 }
  0x46   : > { %3687 = shalt.err (!%p3684_p3)
}
  0x47   : > { %s6317_s0 = smov 256   ;;  %s6318_s26 = smov 16  }
  0x48   : > { %3466 = dma.hbm_to_vmem [thread:$0]  (!%p4381_p5), %s6398_s3, 4096, %s405_s13, [#allocation9], %s6317_s0, %s6317_s0, %s6318_s26  }
  0x49   : > { %s6400_s5 = sld [smem:[#allocation101_spill]] }
  0x4f   : > { %s3688_s15 = scalar_lea.hbm %s6400_s5, 256 }
  0x50   : > { %p3689_p1 = scmp.ne.s32.totalorder %s6400_s5, %s3688_s15  ;;  %p3695_p8 = scmp.lt.u32.totalorder %s3688_s15, %s6400_s5 }
  0x52   : > { %p3691_p3 = pnand %p3689_p1, %p4395_p7 }
  0x54   : > { %p3692_p6 = pneg %p3691_p3 }
  0x56   : > { %p3697_p9 = pnand %p3695_p8, %p3692_p6 }
  0x58   : > { %3700 = shalt.err (!%p3697_p9)
}
  0x59   : > { %s3701_s13 = scalar_lea.vmem %s4385_s2, 256  ;;  %p3709_p13 = scmp.lt.s32.totalorder %s4385_s2, %s4385_s2 }
  0x5a   : > { %p3702_p10 = scmp.ne.s32.totalorder %s4385_s2, %s3701_s13  ;;  %p3710_p0 = scmp.lt.s32.totalorder %s3701_s13, %s3701_s13 }
  0x5c   : > { %p3704_p11 = pnand %p3702_p10, %p4395_p7  ;;  %p3711_p2 = por %p3710_p0, %p3709_p13 }
  0x5e   : > { %p3705_p12 = pneg %p3704_p11 }
  0x60   : > { %p3712_p4 = pnand %p3711_p2, %p3705_p12 }
  0x62   : > { %3715 = shalt.err (!%p3712_p4)
}
  0x63   : > { %s6319_s16 = smov 128   ;;  %s6321_s10 = smov 8  }
  0x64   : > { %3472 = dma.hbm_to_vmem [thread:$0]  (!%p4381_p5), %s6400_s5, 256, %s4385_s2, [#allocation12], %s6319_s16, %s6319_s16, %s6321_s10  }
  0x65   : > { %s4212_s27 = smov [#allocation14]   ;;  %s4213_s23 = smov [#allocation17]  }
  0x66   : > { %s452_s14 = sshll.u32 %s4212_s27, 4  ;;  %s476_s17 = sshll.u32 %s4213_s23, 4  ;;  %s453_s14 = int_to_ptr.vmem [resolvable:$true] %s452_s14  ;;  %s4440_s17 = int_to_ptr.vmem [resolvable:$true] %s476_s17 }
  0x67   : > { %s6401_s7 = sld [smem:[#allocation103_spill]] }
  0x6d   : > { %s3716_s0 = scalar_lea.hbm %s6401_s7, 2048 }
  0x6e   : > { %p3717_p1 = scmp.ne.s32.totalorder %s6401_s7, %s3716_s0  ;;  %p3723_p8 = scmp.lt.u32.totalorder %s3716_s0, %s6401_s7 }
  0x70   : > { %p3719_p3 = pnand %p3717_p1, %p4395_p7 }
  0x72   : > { %p3720_p6 = pneg %p3719_p3 }
  0x74   : > { %p3725_p9 = pnand %p3723_p8, %p3720_p6 }
  0x76   : > { %3728 = shalt.err (!%p3725_p9)
}
  0x77   : > { %s3729_s15 = scalar_lea.vmem %s453_s14, 2048  ;;  %p3737_p13 = scmp.lt.s32.totalorder %s453_s14, %s453_s14 }
  0x78   : > { %p3730_p10 = scmp.ne.s32.totalorder %s453_s14, %s3729_s15  ;;  %p3738_p0 = scmp.lt.s32.totalorder %s3729_s15, %s3729_s15 }
  0x7a   : > { %p3732_p11 = pnand %p3730_p10, %p4395_p7  ;;  %p3739_p2 = por %p3738_p0, %p3737_p13 }
  0x7c   : > { %p3733_p12 = pneg %p3732_p11 }
  0x7e   : > { %p3740_p4 = pnand %p3739_p2, %p3733_p12 }
  0x80   : > { %3743 = shalt.err (!%p3740_p4)
}
  0x81   : > { %3478 = dma.hbm_to_vmem [thread:$0]  (!%p4381_p5), %s6401_s7, 2048, %s453_s14, [#allocation15], %s6319_s16, %s6319_s16, %s6321_s10  }
  0x82   : > { %s6402_s9 = sld [smem:[#allocation105_spill]] }
  0x88   : > { %s3744_s23 = scalar_lea.hbm %s6402_s9, 4096 }
  0x89   : > { %p3745_p1 = scmp.ne.s32.totalorder %s6402_s9, %s3744_s23  ;;  %p3751_p8 = scmp.lt.u32.totalorder %s3744_s23, %s6402_s9 }
  0x8b   : > { %p3747_p3 = pnand %p3745_p1, %p4395_p7 }
  0x8d   : > { %p3748_p6 = pneg %p3747_p3 }
  0x8f   : > { %p3753_p9 = pnand %p3751_p8, %p3748_p6 }
  0x91   : > { %3756 = shalt.err (!%p3753_p9)
}
  0x92   : > { %s3757_s14 = scalar_lea.vmem %s4440_s17, 4096  ;;  %p3765_p13 = scmp.lt.s32.totalorder %s4440_s17, %s4440_s17 }
  0x93   : > { %p3758_p10 = scmp.ne.s32.totalorder %s4440_s17, %s3757_s14  ;;  %p3766_p0 = scmp.lt.s32.totalorder %s3757_s14, %s3757_s14 }
  0x95   : > { %p3760_p11 = pnand %p3758_p10, %p4395_p7  ;;  %p3767_p2 = por %p3766_p0, %p3765_p13 }
  0x97   : > { %p3761_p12 = pneg %p3760_p11 }
  0x99   : > { %p3768_p4 = pnand %p3767_p2, %p3761_p12 }
  0x9b   : > { %3771 = shalt.err (!%p3768_p4)
}
  0x9c   : > { %s6403_s15 = smov 16   ;;  %s6404_s3 = smov 256  }
  0x9d   : > { %3484 = dma.hbm_to_vmem [thread:$0]  (!%p4381_p5), %s6402_s9, 4096, %s4440_s17, [#allocation18], %s6404_s3, %s6404_s3, %s6403_s15  }
  0x9e   : > { %s4214_s27 = smov [#allocation20]   ;;  %s6405_s11 = sld [smem:[#allocation107_spill]] }
  0x9f   : > { %s500_s23 = sshll.u32 %s4214_s27, 4  ;;  %s501_s23 = int_to_ptr.vmem [resolvable:$true] %s500_s23 }
  0xa4   : > { %s3772_s12 = scalar_lea.hbm %s6405_s11, 2048 }
  0xa5   : > { %p3773_p1 = scmp.ne.s32.totalorder %s6405_s11, %s3772_s12  ;;  %p3779_p8 = scmp.lt.u32.totalorder %s3772_s12, %s6405_s11 }
  0xa7   : > { %p3775_p3 = pnand %p3773_p1, %p4395_p7 }
  0xa9   : > { %p3776_p6 = pneg %p3775_p3 }
  0xab   : > { %p3781_p9 = pnand %p3779_p8, %p3776_p6 }
  0xad   : > { %3784 = shalt.err (!%p3781_p9)
}
  0xae   : > { %s3785_s17 = scalar_lea.vmem %s501_s23, 2048  ;;  %p3793_p13 = scmp.lt.s32.totalorder %s501_s23, %s501_s23 }
  0xaf   : > { %p3786_p10 = scmp.ne.s32.totalorder %s501_s23, %s3785_s17  ;;  %p3794_p0 = scmp.lt.s32.totalorder %s3785_s17, %s3785_s17 }
  0xb1   : > { %p3788_p11 = pnand %p3786_p10, %p4395_p7  ;;  %p3795_p2 = por %p3794_p0, %p3793_p13 }
  0xb3   : > { %p3789_p12 = pneg %p3788_p11 }
  0xb5   : > { %p3796_p4 = pnand %p3795_p2, %p3789_p12 }
  0xb7   : > { %3799 = shalt.err (!%p3796_p4)
}
  0xb8   : > { %s6406_s15 = smov 8   ;;  %s6407_s3 = smov 128  }
  0xb9   : > { %3490 = dma.hbm_to_vmem [thread:$0]  (!%p4381_p5), %s6405_s11, 2048, %s501_s23, [#allocation21], %s6407_s3, %s6407_s3, %s6406_s15  }
  0xba   : > { %s2984_s0 = sadd.s32 4294967294, %s4204_s21   ;;  %s46_s26 = sadd.s32 1, %s4196_s19 }
  0xbb   : > { %s49_s27 = sadd.s32 1, %s4200_s20  ;;  %p47_p1 = scmp.ge.s32.totalorder %s46_s26, 2 }
  0xbc   : > { %p6328_p3 = scmp.eq.s32.totalorder %s4204_s21, 0  ;;  %p101_p6 = scmp.ne.s32.totalorder %s4172_s30, %s4168_s29 }
  0xbd   : > { %s6676_s26 = smov (%p47_p1, %s46_s26), 0  ;;  %s6678_s27 = smov (!%p47_p1, %s49_s27), %s4200_s20 }
  0xbe   : > { %6408 = sst [smem:[#allocation45_spill]] %s6676_s26  ;;  %p4526_p8 = por %p101_p6, %p6328_p3 }
  0xbf   : > { %p107_p9 = scmp.ne.s32.totalorder %s4168_s29, %s4164_s28  ;;  %p379_p10 = scmp.eq.s32.totalorder %s4368_s22, 3 }
  0xc0   : > { %p385_p11 = scmp.eq.s32.totalorder %s2984_s0, 3  ;;  %p6327_p12 = scmp.lt.s32.totalorder %s4204_s21, 4 }
  0xc1   : > { %p6410_p13 = scmp.eq.s32.totalorder %s4368_s22, 0  ;;  %p4540_p2 = por %p379_p10, %p101_p6 }
  0xc2   : > { %p4544_p4 = por %p385_p11, %p107_p9  ;;  %s4549_s17 = sshll.u32 %s4200_s20, 5 }
  0xc3   : > { %p4536_p0 = por %p107_p9, %p6410_p13  ;;  %s552_s16 = sand.u32 1, %s4204_s21  }
  0xc4   : > { %s6412_s2 = scalar_select %p4540_p2, 1, 0 }
  0xc5   : > { %s6411_s12 = scalar_select %p4536_p0, 1, 0 }
  0xc6   : > { %6413 = sst [smem:[#allocation46_spill]] %s6412_s2  ;;  %s554_s10 = sand.u32 1, %s4172_s30  }
  0xc7   : > { %s6414_s14 = scalar_select %p4544_p4, 1, 0 }
  0xc8   : > { %s3009_s0 = sshll.u32 %s554_s10, 7  ;;  %s3045_s25 = sshll.u32 %s4196_s19, 4 }
  0xc9   : > { %6415 = sst [smem:[#allocation47_spill]] %s6414_s14  ;;  %s563_s13 = sadd.s32 %s3045_s25, %s4549_s17 }
  0xca   : > { %s556_s5 = scalar_lea.vmem [#allocation5], %s3009_s0  ;;  %s3013_s9 = sshll.u32 %s563_s13, 7 }
  0xcb   : > { %s566_s7 = sshll.u32 %s556_s5, 4  ;;  %s6416_s1 = sld [smem:[#allocation97_spill]]  ;;  %s4555_s7 = int_to_ptr.vmem [resolvable:$true] %s566_s7 }
  0xcc   : > { %p4566_p1 = pnand %p6327_p12, %p4526_p8  ;;  %s4215_s5 = smov [#allocation10]  }
  0xcd   : > { %s4570_s25 = sshll.u32 %s4215_s5, 4  ;;  %s4572_s13 = scalar_lea.sflag [#allocation6], %s552_s16  ;;  %s419_s25 = int_to_ptr.vmem [resolvable:$true] %s4570_s25 }
  0xce   : > { %p3802_p9 = pneg %p4566_p1 }
  0xd1   : > { %s4560_s2 = scalar_lea.hbm %s6416_s1, %s3013_s9  ;;  %s3805_s23 = scalar_lea.hbm %s6416_s1, 8192 }
  0xd2   : > { %s3800_s11 = scalar_lea.hbm %s4560_s2, 2048  ;;  %p3806_p8 = scmp.lt.u32.totalorder %s4560_s2, %s6416_s1 }
  0xd3   : > { %p3801_p6 = scmp.ne.s32.totalorder %s4560_s2, %s3800_s11  ;;  %p3807_p13 = scmp.lt.u32.totalorder %s3805_s23, %s3800_s11 }
  0xd4   : > { %p3809_p3 = scmp.lt.u32.totalorder %s3800_s11, %s4560_s2 }
  0xd5   : > { %p3803_p10 = pnand %p3802_p9, %p3801_p6  ;;  %p3808_p12 = por %p3807_p13, %p3806_p8 }
  0xd7   : > { %p3804_p11 = pneg %p3803_p10  ;;  %p3810_p4 = por %p3809_p3, %p3808_p12 }
  0xd9   : > { %p3811_p2 = pnand %p3810_p4, %p3804_p11 }
  0xdb   : > { %3814 = shalt.err (!%p3811_p2)
}
  0xdc   : > { %s3815_s16 = scalar_lea.vmem %s4555_s7, 2048  ;;  %s4216_s5 = smov [#allocation5]  }
  0xdd   : > { %p3816_p6 = scmp.ne.s32.totalorder %s4555_s7, %s3815_s16  ;;  %s3820_s9 = sshll.u32 %s4216_s5, 4  ;;  %s3821_s9 = int_to_ptr.vmem [resolvable:$false] %s3820_s9 }
  0xde   : > { %s3822_s14 = scalar_lea.vmem %s3821_s9, 4096  ;;  %p3823_p5 = scmp.lt.s32.totalorder %s4555_s7, %s3821_s9 }
  0xdf   : > { %p3818_p10 = pnand %p3816_p6, %p3802_p9  ;;  %p3824_p8 = scmp.lt.s32.totalorder %s3822_s14, %s3815_s16 }
  0xe1   : > { %p3819_p0 = pneg %p3818_p10  ;;  %p3825_p13 = por %p3824_p8, %p3823_p5 }
  0xe3   : > { %p3826_p3 = pnand %p3825_p13, %p3819_p0 }
  0xe5   : > { %3829 = shalt.err (!%p3826_p3)
}
  0xe6   : > { %3500 = dma.hbm_to_vmem [thread:$0]  (!%p4566_p1), %s4560_s2, 2048, %s4555_s7, %s4572_s13, %s6407_s3, %s6407_s3, %s6406_s15  }
  0xe7   : > { %s4217_s11 = smov [#allocation13]   ;;  %s6418_s4 = sld [smem:[#allocation100_spill]] }
  0xe8   : > { %s442_s28 = sshll.u32 %s4217_s11, 4  ;;  %s443_s28 = int_to_ptr.vmem [resolvable:$true] %s442_s28 }
  0xed   : > { %s3830_s16 = scalar_lea.hbm %s6418_s4, 32 }
  0xee   : > { %p3831_p5 = scmp.ne.s32.totalorder %s6418_s4, %s3830_s16  ;;  %p3837_p2 = scmp.lt.u32.totalorder %s3830_s16, %s6418_s4 }
  0xf0   : > { %p3833_p12 = pnand %p3831_p5, %p4395_p7 }
  0xf2   : > { %p3834_p0 = pneg %p3833_p12 }
  0xf4   : > { %p3839_p4 = pnand %p3837_p2, %p3834_p0 }
  0xf6   : > { %3842 = shalt.err (!%p3839_p4)
}
  0xf7   : > { %s3843_s7 = scalar_lea.vmem %s419_s25, 32  ;;  %p3851_p6 = scmp.lt.s32.totalorder %s419_s25, %s419_s25 }
  0xf8   : > { %p3844_p1 = scmp.ne.s32.totalorder %s419_s25, %s3843_s7  ;;  %p3852_p10 = scmp.lt.s32.totalorder %s3843_s7, %s3843_s7 }
  0xfa   : > { %p3846_p9 = pnand %p3844_p1, %p4395_p7  ;;  %p3853_p8 = por %p3852_p10, %p3851_p6 }
  0xfc   : > { %p3847_p11 = pneg %p3846_p9 }
  0xfe   : > { %p3854_p13 = pnand %p3853_p8, %p3847_p11 }
 0x100   : > { %3857 = shalt.err (!%p3854_p13)
}
 0x101   : > { %p6419_p3 = scmp.ne.s32.totalorder %s6397_s18, 0  ;;  %s6420_s6 = sld [smem:[#allocation102_spill]] }
 0x103   : > { %3469 = dma.hbm_to_vmem [thread:$0]  (!%p6419_p3), %s6418_s4, 32, %s419_s25, [#allocation9]  }
 0x107   : > { %s3858_s16 = scalar_lea.hbm %s6420_s6, 16 }
 0x108   : > { %p3859_p5 = scmp.ne.s32.totalorder %s6420_s6, %s3858_s16  ;;  %p3865_p2 = scmp.lt.u32.totalorder %s3858_s16, %s6420_s6 }
 0x10a   : > { %p3861_p12 = pnand %p3859_p5, %p4395_p7 }
 0x10c   : > { %p3862_p0 = pneg %p3861_p12 }
 0x10e   : > { %p3867_p4 = pnand %p3865_p2, %p3862_p0 }
 0x110   : > { %3870 = shalt.err (!%p3867_p4)
}
 0x111   : > { %s3871_s7 = scalar_lea.vmem %s443_s28, 16  ;;  %s3878_s25 = scalar_lea.vmem %s443_s28, 32 }
 0x112   : > { %p3872_p1 = scmp.ne.s32.totalorder %s443_s28, %s3871_s7  ;;  %p3879_p6 = scmp.lt.s32.totalorder %s443_s28, %s443_s28 }
 0x113   : > { %p3880_p10 = scmp.lt.s32.totalorder %s3878_s25, %s3871_s7 }
 0x114   : > { %p3874_p9 = pnand %p3872_p1, %p4395_p7 }
 0x115   : > { %p3881_p8 = por %p3880_p10, %p3879_p6 }
 0x116   : > { %p3875_p11 = pneg %p3874_p9 }
 0x118   : > { %p3882_p13 = pnand %p3881_p8, %p3875_p11 }
 0x11a   : > { %3885 = shalt.err (!%p3882_p13)
}
 0x11b   : > { %3475 = dma.hbm_to_vmem [thread:$0]  (!%p6419_p3), %s6420_s6, 16, %s443_s28, [#allocation12]  }
 0x11c   : > { %s4218_s23 = smov [#allocation16]   ;;  %s4219_s16 = smov [#allocation19]  }
 0x11d   : > { %s466_s0 = sshll.u32 %s4218_s23, 4  ;;  %s490_s5 = sshll.u32 %s4219_s16, 4  ;;  %s467_s0 = int_to_ptr.vmem [resolvable:$true] %s466_s0  ;;  %s491_s5 = int_to_ptr.vmem [resolvable:$true] %s490_s5 }
 0x11e   : > { %s6421_s8 = sld [smem:[#allocation104_spill]] }
 0x124   : > { %s3886_s14 = scalar_lea.hbm %s6421_s8, 16 }
 0x125   : > { %p3887_p5 = scmp.ne.s32.totalorder %s6421_s8, %s3886_s14  ;;  %p3893_p2 = scmp.lt.u32.totalorder %s3886_s14, %s6421_s8 }
 0x127   : > { %p3889_p12 = pnand %p3887_p5, %p4395_p7 }
 0x129   : > { %p3890_p0 = pneg %p3889_p12 }
 0x12b   : > { %p3895_p4 = pnand %p3893_p2, %p3890_p0 }
 0x12d   : > { %3898 = shalt.err (!%p3895_p4)
}
 0x12e   : > { %s3899_s28 = scalar_lea.vmem %s467_s0, 16  ;;  %s3906_s11 = scalar_lea.vmem %s467_s0, 32 }
 0x12f   : > { %p3900_p1 = scmp.ne.s32.totalorder %s467_s0, %s3899_s28  ;;  %p3907_p6 = scmp.lt.s32.totalorder %s467_s0, %s467_s0 }
 0x130   : > { %p3908_p10 = scmp.lt.s32.totalorder %s3906_s11, %s3899_s28 }
 0x131   : > { %p3902_p9 = pnand %p3900_p1, %p4395_p7 }
 0x132   : > { %p3909_p8 = por %p3908_p10, %p3907_p6 }
 0x133   : > { %p3903_p11 = pneg %p3902_p9 }
 0x135   : > { %p3910_p13 = pnand %p3909_p8, %p3903_p11 }
 0x137   : > { %3913 = shalt.err (!%p3910_p13)
}
 0x138   : > { %3481 = dma.hbm_to_vmem [thread:$0]  (!%p6419_p3), %s6421_s8, 16, %s467_s0, [#allocation15]  }
 0x139   : > { %s6422_s10 = sld [smem:[#allocation106_spill]] }
 0x13f   : > { %s3914_s14 = scalar_lea.hbm %s6422_s10, 32 }
 0x140   : > { %p3915_p5 = scmp.ne.s32.totalorder %s6422_s10, %s3914_s14  ;;  %p3921_p2 = scmp.lt.u32.totalorder %s3914_s14, %s6422_s10 }
 0x142   : > { %p3917_p12 = pnand %p3915_p5, %p4395_p7 }
 0x144   : > { %p3918_p0 = pneg %p3917_p12 }
 0x146   : > { %p3923_p4 = pnand %p3921_p2, %p3918_p0 }
 0x148   : > { %3926 = shalt.err (!%p3923_p4)
}
 0x149   : > { %s3927_s11 = scalar_lea.vmem %s491_s5, 32  ;;  %p3935_p6 = scmp.lt.s32.totalorder %s491_s5, %s491_s5 }
 0x14a   : > { %p3928_p1 = scmp.ne.s32.totalorder %s491_s5, %s3927_s11  ;;  %p3936_p10 = scmp.lt.s32.totalorder %s3927_s11, %s3927_s11 }
 0x14c   : > { %p3930_p9 = pnand %p3928_p1, %p4395_p7  ;;  %p3937_p8 = por %p3936_p10, %p3935_p6 }
 0x14e   : > { %p3931_p11 = pneg %p3930_p9 }
 0x150   : > { %p3938_p13 = pnand %p3937_p8, %p3931_p11 }
 0x152   : > { %3941 = shalt.err (!%p3938_p13)
}
 0x153   : > { %3487 = dma.hbm_to_vmem [thread:$0]  (!%p6419_p3), %s6422_s10, 32, %s491_s5, [#allocation18]  }
 0x154   : > { %s4220_s16 = smov [#allocation22]   ;;  %s6423_s7 = sld [smem:[#allocation108_spill]] }
 0x155   : > { %s514_s1 = sshll.u32 %s4220_s16, 4  ;;  %s515_s1 = int_to_ptr.vmem [resolvable:$true] %s514_s1 }
 0x15a   : > { %s3942_s25 = scalar_lea.hbm %s6423_s7, 16 }
 0x15b   : > { %p3943_p5 = scmp.ne.s32.totalorder %s6423_s7, %s3942_s25  ;;  %p3949_p2 = scmp.lt.u32.totalorder %s3942_s25, %s6423_s7 }
 0x15d   : > { %p3945_p12 = pnand %p3943_p5, %p4395_p7 }
 0x15f   : > { %p3946_p0 = pneg %p3945_p12 }
 0x161   : > { %p3951_p4 = pnand %p3949_p2, %p3946_p0 }
 0x163   : > { %3954 = shalt.err (!%p3951_p4)
}
 0x164   : > { %s3955_s5 = scalar_lea.vmem %s515_s1, 16  ;;  %s3962_s0 = scalar_lea.vmem %s515_s1, 32 }
 0x165   : > { %p3956_p1 = scmp.ne.s32.totalorder %s515_s1, %s3955_s5  ;;  %p3963_p6 = scmp.lt.s32.totalorder %s515_s1, %s515_s1 }
 0x166   : > { %p3964_p10 = scmp.lt.s32.totalorder %s3962_s0, %s3955_s5 }
 0x167   : > { %p3958_p9 = pnand %p3956_p1, %p4395_p7 }
 0x168   : > { %p3965_p8 = por %p3964_p10, %p3963_p6 }
 0x169   : > { %p3959_p11 = pneg %p3958_p9 }
 0x16b   : > { %p3966_p13 = pnand %p3965_p8, %p3959_p11 }
 0x16d   : > { %3969 = shalt.err (!%p3966_p13)
}
 0x16e   : > { %s6424_s4 = sld [smem:[#allocation39_spill]]  ;;  %s6425_s24 = sld [smem:[#allocation38_spill]] }
 0x16f   : > { %s6426_s9 = sld [smem:[#allocation37_spill]]  ;;  %p51_p7 = scmp.ge.s32.totalorder %s6678_s27, 2 }
 0x170   : > { %3493 = dma.hbm_to_vmem [thread:$0]  (!%p6419_p3), %s6423_s7, 16, %s515_s1, [#allocation21]  }
 0x171   : > { %s2985_s14 = sshll.u32 %s4196_s19, 3  ;;  %s2987_s18 = sshll.u32 %s6676_s26, 3 }
 0x172   : > { %s2986_s25 = sadd.s32 4294967295, %s2985_s14  ;;  %s6680_s27 = smov (%p51_p7, %s6678_s27), 0 }
 0x173   : > { %6427 = sst [smem:[#allocation48_spill]] %s6680_s27  ;;  %p55_p5 = scmp.gt.s32.totalorder %s2986_s25, 0 }
 0x174   : > { %s2988_s2 = sadd.s32 4294967295, %s2987_s18  ;;  %s4702_s28 = ssub.s32 %s4200_s20, %s6680_s27 }
 0x175   : > { %p59_p12 = scmp.gt.s32.totalorder %s2988_s2, 0  ;;  %s6682_s25 = smov (!%p55_p5, %s2986_s25), 0 }
 0x176   : > { %s66_s1 = sadd.s32 1, %s6424_s4  ;;  %p73_p3 = scmp.ne.s32.totalorder %s6424_s4, %s6425_s24 }
 0x177   : > { %s6684_s2 = smov (!%p59_p12, %s2988_s2), 0  ;;  %p79_p0 = scmp.ne.s32.totalorder %s6425_s24, %s6426_s9 }
 0x178   : > { %s62_s11 = ssub.s32 %s6682_s25, %s6684_s2  ;;  %p6428_p2 = scmp.eq.s32.totalorder %s4204_s21, 0 }
 0x179   : > { %s63_s5 = sor.u32 %s62_s11, %s4702_s28  ;;  %p6430_p9 = scmp.eq.s32.totalorder %s4368_s22, 0 }
 0x17a   : > { %p4712_p4 = por %p6428_p2, %p73_p3  ;;  %p64_p1 = scmp.eq.s32.totalorder %s63_s5, 0 }
 0x17b   : > { %p4718_p11 = por %p6430_p9, %p79_p0  ;;  %s6432_s16 = ssub.s32 %s4196_s19, %s6676_s26 }
 0x17c   : > { %s91_s6 = sor.u32 %s6432_s16, %s4702_s28  ;;  %s4726_s7 = sadd.s32 8, %s2985_s14 }
 0x17d   : > { %s4729_s24 = scalar_select %p64_p1, %s6424_s4, %s66_s1  }
 0x17e   : > { %p92_p6 = scmp.eq.s32.totalorder %s91_s6, 0  ;;  %s4732_s9 = sadd.s32 8, %s2987_s18 }
 0x17f   : > { %6433 = sst [smem:[#allocation49_spill]] %s4729_s24  ;;  %s525_s2 = sand.u32 1, %s6424_s4  }
 0x180   : > { %s6434_s11 = sadd.s32 1, %s4172_s30  ;;  %s3003_s8 = sshll.u32 %s525_s2, 4 }
 0x181   : > { %s4738_s5 = scalar_select %p92_p6, %s4172_s30, %s6434_s11  }
 0x182   : > { %s3006_s10 = sshll.u32 %s6682_s25, 1  ;;  %s529_s27 = scalar_lea.vmem [#allocation2], %s3003_s8 }
 0x183   : > { %s539_s16 = sadd.s32 %s4549_s17, %s3006_s10  ;;  %s542_s26 = sshll.u32 %s529_s27, 4  ;;  %s4747_s26 = int_to_ptr.vmem [resolvable:$true] %s542_s26 }
 0x184   : > { %s3008_s14 = sshll.u32 %s539_s16, 7  ;;  %s6435_s1 = sld [smem:[#allocation96_spill]] }
 0x185   : > { %p6436_p13 = scmp.lt.s32.totalorder %s4204_s21, 4  ;;  %s4757_s8 = scalar_lea.sflag [#allocation3], %s525_s2 }
 0x187   : > { %p4753_p7 = pnand %p6436_p13, %p4712_p4 }
 0x189   : > { %p3972_p12 = pneg %p4753_p7 }
 0x18a   : > { %s4745_s24 = scalar_lea.hbm %s6435_s1, %s3008_s14  ;;  %s3975_s10 = scalar_lea.hbm %s6435_s1, 8192 }
 0x18b   : > { %s3970_s27 = scalar_lea.hbm %s4745_s24, 256  ;;  %p3976_p2 = scmp.lt.u32.totalorder %s4745_s24, %s6435_s1 }
 0x18c   : > { %p3971_p5 = scmp.ne.s32.totalorder %s4745_s24, %s3970_s27  ;;  %p3977_p4 = scmp.lt.u32.totalorder %s3975_s10, %s3970_s27 }
 0x18d   : > { %p3979_p9 = scmp.lt.u32.totalorder %s3970_s27, %s4745_s24 }
 0x18e   : > { %p3973_p3 = pnand %p3972_p12, %p3971_p5  ;;  %p3978_p1 = por %p3977_p4, %p3976_p2 }
 0x190   : > { %p3974_p0 = pneg %p3973_p3  ;;  %p3980_p6 = por %p3979_p9, %p3978_p1 }
 0x192   : > { %p3981_p13 = pnand %p3980_p6, %p3974_p0 }
 0x194   : > { %3984 = shalt.err (!%p3981_p13)
}
 0x195   : > { %s3985_s18 = scalar_lea.vmem %s4747_s26, 256  ;;  %s4221_s0 = smov [#allocation2]  }
 0x196   : > { %p3986_p5 = scmp.ne.s32.totalorder %s4747_s26, %s3985_s18  ;;  %s3990_s2 = sshll.u32 %s4221_s0, 4  ;;  %s3991_s2 = int_to_ptr.vmem [resolvable:$false] %s3990_s2 }
 0x197   : > { %s3992_s11 = scalar_lea.vmem %s3991_s2, 512  ;;  %p3993_p10 = scmp.lt.s32.totalorder %s4747_s26, %s3991_s2 }
 0x198   : > { %p3988_p3 = pnand %p3986_p5, %p3972_p12  ;;  %p3994_p2 = scmp.lt.s32.totalorder %s3992_s11, %s3985_s18 }
 0x19a   : > { %p3989_p8 = pneg %p3988_p3  ;;  %p3995_p4 = por %p3994_p2, %p3993_p10 }
 0x19c   : > { %p3996_p1 = pnand %p3995_p4, %p3989_p8 }
 0x19e   : > { %3999 = shalt.err (!%p3996_p1)
}
 0x19f   : > { %s6438_s16 = sld [smem:[#allocation35_spill]]  ;;  %s6439_s14 = sld [smem:[#allocation34_spill]] }
 0x1a0   : > { %s6440_s27 = sld [smem:[#allocation33_spill]]  ;;  %p6441_p10 = scmp.lt.s32.totalorder %s4726_s7, 15 }
 0x1a1   : > { %3497 = dma.hbm_to_vmem [thread:$0]  (!%p4753_p7), %s4745_s24, 256, %s4747_s26, %s4757_s8, %s6407_s3, %s6407_s3, %s6406_s15  }
 0x1a2   : > { %s6686_s7 = smov (!%p6441_p10, %s4726_s7), 15  ;;  %p6442_p8 = scmp.lt.s32.totalorder %s4732_s9, 15 }
 0x1a3   : > { %p6443_p9 = scmp.eq.s32.totalorder %s4204_s21, 0  ;;  %p6445_p5 = scmp.eq.s32.totalorder %s4368_s22, 0 }
 0x1a4   : > { %s6688_s9 = smov (!%p6442_p8, %s4732_s9), 15  ;;  %s3016_s8 = sshll.u32 %s6686_s7, 1 }
 0x1a5   : > { %s130_s6 = sadd.s32 1, %s6438_s16  ;;  %p137_p12 = scmp.ne.s32.totalorder %s6438_s16, %s6439_s14 }
 0x1a6   : > { %s126_s19 = ssub.s32 %s6686_s7, %s6688_s9  ;;  %p143_p0 = scmp.ne.s32.totalorder %s6439_s14, %s6440_s27 }
 0x1a7   : > { %s127_s20 = sor.u32 %s126_s19, %s4702_s28  ;;  %p4802_p6 = por %p137_p12, %p6443_p9 }
 0x1a8   : > { %p128_p13 = scmp.eq.s32.totalorder %s127_s20, 0  ;;  %p4808_p3 = por %p143_p0, %p6445_p5 }
 0x1a9   : > { %s578_s24 = sand.u32 1, %s6438_s16   ;;  %s590_s4 = sadd.s32 %s3016_s8, %s4549_s17 }
 0x1aa   : > { %s6446_s26 = scalar_select %p4808_p3, 1, 0 }
 0x1ab   : > { %s6690_s16 = smov (!%p128_p13, %s6438_s16), %s130_s6  ;;  %s3014_s9 = sshll.u32 %s578_s24, 4 }
 0x1ac   : > { %s3018_s25 = sshll.u32 %s590_s4, 7  ;;  %s6447_s0 = sld [smem:[#allocation98_spill]] }
 0x1ad   : > { %s580_s11 = scalar_lea.vmem [#allocation7], %s3014_s9  ;;  %p6448_p7 = scmp.lt.s32.totalorder %s4204_s21, 4 }
 0x1ae   : > { %s593_s14 = sshll.u32 %s580_s11, 4  ;;  %s4822_s14 = int_to_ptr.vmem [resolvable:$true] %s593_s14 }
 0x1af   : > { %p4828_p2 = pnand %p6448_p7, %p4802_p6 }
 0x1b1   : > { %p4002_p1 = pneg %p4828_p2 }
 0x1b2   : > { %s4820_s2 = scalar_lea.hbm %s6447_s0, %s3018_s25  ;;  %s4005_s19 = scalar_lea.hbm %s6447_s0, 8192 }
 0x1b3   : > { %s4000_s17 = scalar_lea.hbm %s4820_s2, 256  ;;  %p4006_p12 = scmp.lt.u32.totalorder %s4820_s2, %s6447_s0 }
 0x1b4   : > { %p4001_p4 = scmp.ne.s32.totalorder %s4820_s2, %s4000_s17  ;;  %p4007_p0 = scmp.lt.u32.totalorder %s4005_s19, %s4000_s17 }
 0x1b5   : > { %p4009_p6 = scmp.lt.u32.totalorder %s4000_s17, %s4820_s2 }
 0x1b6   : > { %p4003_p10 = pnand %p4002_p1, %p4001_p4  ;;  %p4008_p9 = por %p4007_p0, %p4006_p12 }
 0x1b8   : > { %p4004_p8 = pneg %p4003_p10  ;;  %p4010_p13 = por %p4009_p6, %p4008_p9 }
 0x1ba   : > { %p4011_p5 = pnand %p4010_p13, %p4004_p8 }
 0x1bc   : > { %4014 = shalt.err (!%p4011_p5)
}
 0x1bd   : > { %s4015_s24 = scalar_lea.vmem %s4822_s14, 256  ;;  %s4222_s8 = smov [#allocation7]  }
 0x1be   : > { %p4016_p7 = scmp.ne.s32.totalorder %s4822_s14, %s4015_s24  ;;  %s4020_s9 = sshll.u32 %s4222_s8, 4  ;;  %s4021_s9 = int_to_ptr.vmem [resolvable:$false] %s4020_s9 }
 0x1bf   : > { %s4022_s4 = scalar_lea.vmem %s4021_s9, 512  ;;  %p4023_p3 = scmp.lt.s32.totalorder %s4822_s14, %s4021_s9 }
 0x1c0   : > { %p4018_p4 = pnand %p4016_p7, %p4002_p1  ;;  %p4024_p12 = scmp.lt.s32.totalorder %s4022_s4, %s4015_s24 }
 0x1c2   : > { %p4019_p10 = pneg %p4018_p4  ;;  %p4025_p0 = por %p4024_p12, %p4023_p3 }
 0x1c4   : > { %p4026_p9 = pnand %p4025_p0, %p4019_p10 }
 0x1c6   : > { %4029 = shalt.err (!%p4026_p9)
}
 0x1c7   : > { %3503 = dma.hbm_to_vmem [thread:$0]  (!%p4828_p2), %s4820_s2, 256, %s4822_s14, %s4572_s13, %s6407_s3, %s6407_s3, %s6406_s15  }
 0x1c8   : > { %s6450_s25 = sld [smem:[#allocation44_spill]] }
 0x1ce   : > { %p6451_p1 = scmp.ne.s32.totalorder %s6450_s25, 0 }
 0x1d0   : > { %605 = sbr.rel (%p6451_p1) target bundleno = 1578 (0x62a), region = 72 }
 0x1d7   : > { %s6452_s28 = sld [smem:[#allocation38_spill]] }
 0x1dd   : > { %s607_s18 = sand.u32 1, %s6452_s28  }
 0x1de   : > { %s4864_s11 = sshll.u32 %s607_s18, 4  ;;  %s608_s17 = scalar_lea.sflag [#allocation3], %s607_s18 }
 0x1df   : > { %s611_s27 = scalar_lea.vmem [#allocation2], %s4864_s11 }
 0x1e0   : > { %4115 = dma.done.wait (%p4718_p11), %s608_s17, 256  }
 0x1e1   : > { %4117 = vsyncadd (%p4718_p11), %s608_s17, 4294967040  ;;  %s616_s15 = sand.u32 1, %s4368_s22   ;;  %s618_s3 = sand.u32 1, %s4168_s29  }
 0x1e2   : > { %s4875_s13 = sshll.u32 %s618_s3, 7  ;;  %s617_s2 = scalar_lea.sflag [#allocation6], %s616_s15 }
 0x1e3   : > { %s4878_s14 = scalar_lea.vmem [#allocation5], %s4875_s13  ;;  %p6453_p3 = scmp.ne.s32.totalorder %s6411_s12, 0 }
 0x1e5   : > { %4119 = dma.done.wait (%p6453_p3), %s617_s2, 2048  }
 0x1e6   : > { %4121 = vsyncadd (%p6453_p3), %s617_s2, 4294965248  ;;  %s6454_s23 = sld [smem:[#allocation34_spill]]  ;;  %p6455_p11 = scmp.ne.s32.totalorder %s6446_s26, 0 }
 0x1ec   : > { %s627_s7 = sand.u32 1, %s6454_s23  }
 0x1ed   : > { %s4885_s6 = sshll.u32 %s627_s7, 4 }
 0x1ee   : > { %s629_s19 = scalar_lea.vmem [#allocation7], %s4885_s6 }
 0x1ef   : > { %4123 = dma.done.wait (%p6455_p11), %s617_s2, 256  }
 0x1f0   : > { %4125 = vsyncadd (%p6455_p11), %s617_s2, 4294967040  ;;  %p6456_p2 = scmp.eq.s32.totalorder %s4368_s22, 0 }
 0x1f2   : > { %4127 = dma.done.wait (%p6456_p2), [#allocation9], 4128   ;;  %p6457_p8 = pmov %p6456_p2 }
 0x1f3   : > { %p6458_p6 = pmov %p6456_p2 }
 0x1f4   : > { %4129 = vsyncadd (%p6457_p8), [#allocation9], 4294963168 }
 0x1f5   : > { %4131 = dma.done.wait (%p6458_p6), [#allocation12], 272   ;;  %p6459_p13 = pmov %p6456_p2 }
 0x1f6   : > { %p6460_p5 = pmov %p6456_p2 }
 0x1f7   : > { %4133 = vsyncadd (%p6459_p13), [#allocation12], 4294967024 }
 0x1f8   : > { %4135 = dma.done.wait (%p6460_p5), [#allocation15], 2064   ;;  %p6461_p7 = pmov %p6456_p2 }
 0x1f9   : > { %p6462_p4 = pmov %p6456_p2 }
 0x1fa   : > { %4137 = vsyncadd (%p6461_p7), [#allocation15], 4294965232 }
 0x1fb   : > { %4139 = dma.done.wait (%p6462_p4), [#allocation18], 4128   ;;  %p6463_p10 = pmov %p6456_p2 }
 0x1fc   : > { %p6464_p12 = pmov %p6456_p2 }
 0x1fd   : > { %4141 = vsyncadd (%p6463_p10), [#allocation18], 4294963168 }
 0x1fe   : > { %4143 = dma.done.wait (%p6464_p12), [#allocation21], 2064   ;;  %p6465_p0 = pmov %p6456_p2 }
 0x1ff   : > { %v6340_v0 = vmov 0.0   ;;  %v749_v1 = vld [vmem:[#allocation8 + $0x8] sm:$0xff]  ;;  %v751_v2 = vld [vmem:[#allocation8 + $0x18] sm:$0xff]  ;;  %v748_v3 = vld [vmem:[#allocation8] sm:$0xff]  ;;  %s6466_s22 = sld [smem:[#allocation40_spill]]  ;;  %s6156_s20 = scalar_lea.vmem [#allocation23], %s4875_s13 }
 0x200   : > { %4145 = vsyncadd (%p6465_p0), [#allocation21], 4294965232  ;;  %856 = vmatprep.mubr.f32.mxu0 %v6340_v0  ;;  %1068 = vmatprep.mubr.f32.mxu1 %v6340_v0  ;;  %v4914_v4 = vpack.c.bf16 %v751_v2, %v749_v1  ;;  %v750_v5 = vld [vmem:[#allocation8 + $0x10] sm:$0xff]  ;;  %v753_v6 = vld [vmem:[#allocation8 + $0x28] sm:$0xff]  ;;  %s6650_s10 = sld [smem:[#allocation41_spill]]  ;;  %s6651_s4 = sld [smem:[#allocation46_spill]] }
 0x201   : > { %v755_v7 = vld [vmem:[#allocation8 + $0x38] sm:$0xff]  ;;  %v4916_v8 = vpack.c.bf16 %v750_v5, %v748_v3  ;;  %v752_v10 = vld [vmem:[#allocation8 + $0x20] sm:$0xff]  ;;  %v754_v11 = vld [vmem:[#allocation8 + $0x30] sm:$0xff]  ;;  %s2749_s25 = sshll.u32 %s6156_s20, 4  ;;  %s6652_s17 = sld [smem:[#allocation109_spill]]  ;;  %s6202_s25 = int_to_ptr.vmem [resolvable:$true] %s2749_s25 }
 0x202   : > { %v4918_v9 = vpack.c.bf16 %v755_v7, %v753_v6  ;;  %v757_v12 = vld [vmem:[#allocation8 + $0x48] sm:$0xff]  ;;  %3224 = vmatprep.subr.bf16.mxu0 %v4914_v4  ;;  %3256 = vmatprep.subr.bf16.mxu1 %v4914_v4  ;;  %v759_v13 = vld [vmem:[#allocation8 + $0x58] sm:$0xff]  ;;  %v4924_v14 = vpack.c.bf16 %v754_v11, %v752_v10  ;;  %v756_v16 = vld [vmem:[#allocation8 + $0x40] sm:$0xff]  ;;  %s6214_s15 = scalar_lea.sflag [#allocation4], %s618_s3  ;;  %s4030_s2 = scalar_lea.vmem %s6202_s25, 2048 }
 0x203   : > { %3226 = vmatpush1.bf16.msra.mxu0 %v4916_v8  ;;  %3258 = vmatpush1.bf16.msra.mxu1 %v4916_v8  ;;  %v4928_v15 = vpack.c.bf16 %v759_v13, %v757_v12  ;;  %v758_v17 = vld [vmem:[#allocation8 + $0x50] sm:$0xff]  ;;  %v761_v18 = vld [vmem:[#allocation8 + $0x68] sm:$0xff]  ;;  %v763_v19 = vld [vmem:[#allocation8 + $0x78] sm:$0xff]  ;;  %p4031_p3 = scmp.ne.s32.totalorder %s6202_s25, %s4030_s2 }
 0x204   : > { %3228 = vmatprep.subr.bf16.mxu0 %v4918_v9  ;;  %3260 = vmatprep.subr.bf16.mxu1 %v4918_v9  ;;  %v4932_v20 = vpack.c.bf16 %v758_v17, %v756_v16  ;;  %v4936_v21 = vpack.c.bf16 %v763_v19, %v761_v18  ;;  %v760_v22 = vld [vmem:[#allocation8 + $0x60] sm:$0xff]  ;;  %v762_v23 = vld [vmem:[#allocation8 + $0x70] sm:$0xff]  ;;  %v765_v24 = vld [vmem:[#allocation8 + $0x88] sm:$0xff] }
 0x205   : > { %v767_v25 = vld [vmem:[#allocation8 + $0x98] sm:$0xff]  ;;  %v4940_v26 = vpack.c.bf16 %v762_v23, %v760_v22  ;;  %v764_v28 = vld [vmem:[#allocation8 + $0x80] sm:$0xff]  ;;  %v766_v29 = vld [vmem:[#allocation8 + $0x90] sm:$0xff]  ;;  %p1001_p9 = scmp.gt.s32.totalorder %s6466_s22, 0  ;;  %p1090_p1 = scmp.lt.s32.totalorder %s6466_s22, 1 }
 0x206   : > { %v4944_v27 = vpack.c.bf16 %v767_v25, %v765_v24  ;;  %v769_v30 = vld [vmem:[#allocation8 + $0xa8] sm:$0xff]  ;;  %v771_v31 = vld [vmem:[#allocation8 + $0xb8] sm:$0xff]  ;;  %v3241_v32 = vpack.c.bf16 %v766_v29, %v764_v28  ;;  %v768_v34 = vld [vmem:[#allocation8 + $0xa0] sm:$0xff]  ;;  %s3046_s24 = sshll.u32 %s6466_s22, 4  ;;  %s3041_s8 = sshll.u32 %s6650_s10, 5 }
 0x207   : > { %3230 = vmatpush1.bf16.msra.mxu0 %v4924_v14  ;;  %3262 = vmatpush1.bf16.msra.mxu1 %v4924_v14  ;;  %v3243_v33 = vpack.c.bf16 %v771_v31, %v769_v30  ;;  %v770_v35 = vld [vmem:[#allocation8 + $0xb0] sm:$0xff]  ;;  %v773_v36 = vld [vmem:[#allocation8 + $0xc8] sm:$0xff]  ;;  %v775_v37 = vld [vmem:[#allocation8 + $0xd8] sm:$0xff]  ;;  %v782_v30 = vlaneseq  ;;  %s1085_s12 = scalar_select %p1001_p9, 1, 0 }
 0x208   : > { %3232 = vmatprep.subr.bf16.mxu0 %v4928_v15  ;;  %3264 = vmatprep.subr.bf16.mxu1 %v4928_v15  ;;  %v3245_v38 = vpack.c.bf16 %v770_v35, %v768_v34  ;;  %v3247_v39 = vpack.c.bf16 %v775_v37, %v773_v36  ;;  %v772_v40 = vld [vmem:[#allocation8 + $0xc0] sm:$0xff]  ;;  %v774_v41 = vld [vmem:[#allocation8 + $0xd0] sm:$0xff]  ;;  %v777_v42 = vld [vmem:[#allocation8 + $0xe8] sm:$0xff]  ;;  %s5083_s26 = scalar_select %p1090_p1, 1, 0 }
 0x209   : > { %v779_v43 = vld [vmem:[#allocation8 + $0xf8] sm:$0xff]  ;;  %v3249_v44 = vpack.c.bf16 %v774_v41, %v772_v40  ;;  %v776_v46 = vld [vmem:[#allocation8 + $0xe0] sm:$0xff]  ;;  %v778_v47 = vld [vmem:[#allocation8 + $0xf0] sm:$0xff]  ;;  %v5003_v31 = vshrl.u32 %v782_v30, 7  ;;  %v1086_v35 = vstv %s1085_s12  ;;  %s2746_s9 = sadd.s32 %s3046_s24, %s3041_s8  ;;  %s6653_s13 = smov %s6652_s17 }
 0x20a   : > { %v3251_v45 = vpack.c.bf16 %v779_v43, %v777_v42  ;;  %v3253_v48 = vpack.c.bf16 %v778_v47, %v776_v46  ;;  %v732_v49 = vld [vmem:[%s4878_s14] sm:$0xff]  ;;  %v733_v51 = vld [vmem:[%s4878_s14 + $0x8] sm:$0xff]  ;;  %v734_v53 = vld [vmem:[%s4878_s14 + $0x10] sm:$0xff]  ;;  %vm5028_vm0 = vcmp.eq.s32.totalorder %v1086_v35, 1  ;;  %s3042_s28 = sshll.u32 %s2746_s9, 7  ;;  %p6654_p11 = scmp.ne.s32.totalorder %s6651_s4, 0 }
 0x20b   : > { %3234 = vmatpush1.bf16.msra.mxu0 %v4932_v20  ;;  %3266 = vmatpush1.bf16.msra.mxu1 %v4932_v20  ;;  %v1002_v50 = vld [vmem:[%s611_s27] sm:$0xff]  ;;  %v1003_v52 = vld [vmem:[%s611_s27 + $0x8] sm:$0xff]  ;;  %v1758_v37 = vsub.s32 2, %v5003_v31  ;;  %v1794_v40 = vsub.s32 3, %v5003_v31  ;;  %v1830_v41 = vsub.s32 4, %v5003_v31  ;;  %v5019_v42 = vadd.s32 24, %v5003_v31  ;;  %s6208_s27 = scalar_lea.hbm %s6652_s17, %s3042_s28 }
 0x20c   : > { %3236 = vmatprep.subr.bf16.mxu0 %v4936_v21  ;;  %3268 = vmatprep.subr.bf16.mxu1 %v4936_v21  ;;  %v735_v54 = vld [vmem:[%s4878_s14 + $0x18] sm:$0xff]  ;;  %v736_v55 = vld [vmem:[%s4878_s14 + $0x20] sm:$0xff]  ;;  %v737_v56 = vld [vmem:[%s4878_s14 + $0x28] sm:$0xff]  ;;  %v5022_v43 = vadd.s32 32, %v5003_v31  ;;  %vm1480_vm2 = vcmp.lt.s32.totalorder %v5003_v31, 1  ;;  %vm1601_vm3 = vcmp.lt.s32.totalorder %v5003_v31, 7  ;;  %p4032_p2 = pnand %p4031_p3, %p6654_p11 }
 0x20d   : > { %v738_v57 = vld [vmem:[%s4878_s14 + $0x30] sm:$0xff]  ;;  %v739_v58 = vld [vmem:[%s4878_s14 + $0x38] sm:$0xff]  ;;  %v740_v59 = vld [vmem:[%s4878_s14 + $0x40] sm:$0xff]  ;;  %v5181_v35 = vadd.s32 104, %v5003_v31 }
 0x20e   : > { %v1091_v60 = vld [vmem:[%s629_s19] sm:$0xff]  ;;  %v741_v61 = vld [vmem:[%s4878_s14 + $0x48] sm:$0xff]  ;;  %v743_v1 = vld [vmem:[%s4878_s14 + $0x58] sm:$0xff]  ;;  %p4033_p8 = pneg %p4032_p2 }
 0x20f   : > { %3238 = vmatpush1.bf16.msra.mxu0 %v4940_v26  ;;  %3270 = vmatpush1.bf16.msra.mxu1 %v4940_v26  ;;  %v1092_v62 = vld [vmem:[%s629_s19 + $0x8] sm:$0xff]  ;;  %v742_v63 = vld [vmem:[%s4878_s14 + $0x50] sm:$0xff]  ;;  %v744_v2 = vld [vmem:[%s4878_s14 + $0x60] sm:$0xff]  ;;  %6484 = vst [vmem:[#allocation57_spill] sm:$0xff] %v5181_v35 }
 0x210   : > { %3240 = vmatprep.subr.bf16.mxu0 %v4944_v27  ;;  %3272 = vmatprep.subr.bf16.mxu1 %v4944_v27  ;;  %v745_v3 = vld [vmem:[%s4878_s14 + $0x68] sm:$0xff]  ;;  %v747_v5 = vld [vmem:[%s4878_s14 + $0x78] sm:$0xff]  ;;  %v780_v34 = vld [vmem:[#allocation10] sm:$0x3] }
 0x211   : > { %v2031_v6 = vld [vmem:[#allocation14] sm:$0xff]  ;;  %v2032_v7 = vld [vmem:[#allocation14 + $0x8] sm:$0xff]  ;;  %v2034_v10 = vld [vmem:[#allocation14 + $0x18] sm:$0xff] }
 0x212   : > { %v2035_v12 = vld [vmem:[#allocation14 + $0x20] sm:$0xff]  ;;  %v2036_v13 = vld [vmem:[#allocation14 + $0x28] sm:$0xff]  ;;  %v2038_v16 = vld [vmem:[#allocation14 + $0x38] sm:$0xff] }
 0x213   : > { %3242 = vmatpush1.bf16.msra.mxu0 %v3241_v32  ;;  %3274 = vmatpush1.bf16.msra.mxu1 %v3241_v32  ;;  %v2039_v18 = vld [vmem:[#allocation14 + $0x40] sm:$0xff]  ;;  %v2040_v19 = vld [vmem:[#allocation14 + $0x48] sm:$0xff]  ;;  %v2042_v22 = vld [vmem:[#allocation14 + $0x58] sm:$0xff] }
 0x214   : > { %3244 = vmatprep.subr.bf16.mxu0 %v3243_v33  ;;  %3276 = vmatprep.subr.bf16.mxu1 %v3243_v33  ;;  %v2043_v24 = vld [vmem:[#allocation14 + $0x60] sm:$0xff]  ;;  %v2044_v25 = vld [vmem:[#allocation14 + $0x68] sm:$0xff]  ;;  %v2046_v28 = vld [vmem:[#allocation14 + $0x78] sm:$0xff] }
 0x215   : > { %v5011_v36 = vld [vmem:[#allocation11] sm:$0xff] }
 0x217   : > { %3246 = vmatpush1.bf16.msra.mxu0 %v3245_v38  ;;  %3278 = vmatpush1.bf16.msra.mxu1 %v3245_v38 }
 0x218   : > { %3248 = vmatprep.subr.bf16.mxu0 %v3247_v39  ;;  %3280 = vmatprep.subr.bf16.mxu1 %v3247_v39 }
 0x21b   : > { %3250 = vmatpush1.bf16.msra.mxu0 %v3249_v44  ;;  %3282 = vmatpush1.bf16.msra.mxu1 %v3249_v44 }
 0x21c   : > { %3252 = vmatprep.subr.bf16.mxu0 %v3251_v45  ;;  %3284 = vmatprep.subr.bf16.mxu1 %v3251_v45 }
 0x21f   : > { %3254 = vmatpush1.bf16.msra.mxu0 %v3253_v48  ;;  %3286 = vmatpush1.bf16.msra.mxu1 %v3253_v48 }
 0x220   : > { %3288 = vmatprep.subr.bf16.mxu1 %v4914_v4  ;;  %v746_v4 = vld [vmem:[%s4878_s14 + $0x70] sm:$0xff]  ;;  %s4224_s14 = smov [#allocation23]  }
 0x221   : > { %s4034_s23 = sshll.u32 %s4224_s14, 4  ;;  %s4035_s23 = int_to_ptr.vmem [resolvable:$false] %s4034_s23 }
 0x222   : > { %857 = vmatmul.mubr.f32.vlgmr.msra.gmra.mrb[0].mxu0 %v732_v49  ;;  %1069 = vmatmul.mubr.f32.vlgmr.msra.gmra.mrb[0].mxu1 %v1002_v50  ;;  %v5041_v49 = vrot.slane %v5011_v36, %v1758_v37  ;;  %v2216_v37 = vld [vmem:[#allocation17 + $0x8] sm:$0xff]  ;;  %s4036_s7 = scalar_lea.vmem %s4035_s23, 4096  ;;  %p4037_p6 = scmp.lt.s32.totalorder %s6202_s25, %s4035_s23 }
 0x223   : > { %3290 = vmatpush1.bf16.msra.mxu1 %v4916_v8  ;;  %862 = vmatprep.mubr.f32.mxu0 %v6340_v0  ;;  %v3319_v8 = vpack.c.bf16 %v2032_v7, %v2031_v6  ;;  %v1938_v7 = vsub.s32 7, %v5003_v31  ;;  %p4038_p13 = scmp.lt.s32.totalorder %s4036_s7, %s4030_s2 }
 0x224   : > { %1073 = vmatprep.mubr.f32.mxu1 %v6340_v0  ;;  %3292 = vmatprep.subr.bf16.mxu1 %v4918_v9  ;;  %v2033_v9 = vld [vmem:[#allocation14 + $0x10] sm:$0xff] }
 0x225   : > { %3320 = vmatprep.subr.bf16.mxu0 %v3319_v8  ;;  %v3323_v11 = vpack.c.bf16 %v2034_v10, %v2033_v9  ;;  %p4039_p5 = por %p4038_p13, %p4037_p6 }
 0x226   : > { %863 = vmatmul.mubr.f32.gmra.mrb[2].mxu0 %v733_v51  ;;  %1074 = vmatmul.mubr.f32.gmra.mrb[2].mxu1 %v1003_v52  ;;  %v5044_v51 = vadd.s32 40, %v5003_v31 }
 0x227   : > { %3294 = vmatpush1.bf16.msra.mxu1 %v4924_v14  ;;  %868 = vmatprep.mubr.f32.mxu0 %v6340_v0  ;;  %v2037_v14 = vld [vmem:[#allocation14 + $0x30] sm:$0xff]  ;;  %p4040_p7 = pnand %p4039_p5, %p4033_p8 }
 0x228   : > { %3296 = vmatprep.subr.bf16.mxu1 %v4928_v15  ;;  %1157 = vmatprep.mubr.f32.mxu1 %v6340_v0  ;;  %v3327_v15 = vpack.c.bf16 %v2036_v13, %v2035_v12  ;;  %v3331_v17 = vpack.c.bf16 %v2038_v16, %v2037_v14  ;;  %v5090_v12 = vadd.s32 72, %v5003_v31 }
 0x229   : > { %3322 = vmatpush3.bf16.msra.mxu0 %v3319_v8  ;;  %v1239_v8 = vand.u32 15, %v5044_v51 }
 0x22a   : > { %869 = vmatmul.mubr.f32.gmra.mrb[4].mxu0 %v734_v53  ;;  %3324 = vmatprep.subr.bf16.mxu0 %v3323_v11  ;;  %v5047_v53 = vrot.slane %v5011_v36, %v1794_v40 }
 0x22b   : > { %3298 = vmatpush1.bf16.msra.mxu1 %v4932_v20  ;;  %874 = vmatprep.mubr.f32.mxu0 %v6340_v0  ;;  %v3335_v20 = vpack.c.bf16 %v2040_v19, %v2039_v18  ;;  %vm5226_vm14 = vcmp.lt.s32.totalorder %v1239_v8, 15 }
 0x22c   : > { %3300 = vmatprep.subr.bf16.mxu1 %v4936_v21  ;;  %v2041_v21 = vld [vmem:[#allocation14 + $0x50] sm:$0xff] }
 0x22d   : > { %3326 = vmatpush3.bf16.msra.mxu0 %v3323_v11  ;;  %v3339_v23 = vpack.c.bf16 %v2042_v22, %v2041_v21  ;;  %v5087_v11 = vadd.s32 56, %v5003_v31 }
 0x22e   : > { %875 = vmatmul.mubr.f32.gmra.mrb[6].mxu0 %v735_v54  ;;  %3328 = vmatprep.subr.bf16.mxu0 %v3327_v15  ;;  %v5050_v54 = vrot.slane %v5011_v36, %v1830_v41 }
 0x22f   : > { %3302 = vmatpush1.bf16.msra.mxu1 %v4940_v26  ;;  %880 = vmatprep.mubr.f32.mxu0 %v6340_v0  ;;  %v3343_v26 = vpack.c.bf16 %v2044_v25, %v2043_v24 }
 0x230   : > { %3304 = vmatprep.subr.bf16.mxu1 %v4944_v27  ;;  %v2045_v27 = vld [vmem:[#allocation14 + $0x70] sm:$0xff] }
 0x231   : > { %3330 = vmatpush3.bf16.msra.mxu0 %v3327_v15  ;;  %v3347_v29 = vpack.c.bf16 %v2046_v28, %v2045_v27 }
 0x232   : > { %881 = vmatmul.mubr.f32.gmra.mrb[8].mxu0 %v736_v55  ;;  %3332 = vmatprep.subr.bf16.mxu0 %v3331_v17  ;;  %v5053_v55 = vadd.s32 48, %v5003_v31 }
 0x233   : > { %3306 = vmatpush1.bf16.msra.mxu1 %v3241_v32  ;;  %886 = vmatprep.mubr.f32.mxu0 %v6340_v0  ;;  %v5006_v32 = vsub.s32 0, %v5003_v31 }
 0x234   : > { %3308 = vmatprep.subr.bf16.mxu1 %v3243_v33  ;;  %v5009_v33 = vsub.s32 1, %v5003_v31  ;;  %v1246_v9 = vand.u32 15, %v5053_v55 }
 0x235   : > { %3334 = vmatpush3.bf16.msra.mxu0 %v3331_v17  ;;  %6467 = vst [vmem:[#allocation50_spill] sm:$0xff] %v5006_v32 }
 0x236   : > { %887 = vmatmul.mubr.f32.gmra.mrb[10].mxu0 %v737_v56  ;;  %3336 = vmatprep.subr.bf16.mxu0 %v3335_v20  ;;  %6468 = vst [vmem:[#allocation51_spill] sm:$0xff] %v5009_v33  ;;  %v5034_v47 = vrot.slane %v5011_v36, %v5009_v33  ;;  %v1225_v56 = vand.u32 15, %v5019_v42  ;;  %vm5214_vm12 = vcmp.gt.s32.totalorder %v1246_v9, 0 }
 0x237   : > { %3310 = vmatpush1.bf16.msra.mxu1 %v3245_v38  ;;  %892 = vmatprep.mubr.f32.mxu0 %v6340_v0  ;;  %v1181_v38 = vadd.s32 8, %v5003_v31 }
 0x238   : > { %3312 = vmatprep.subr.bf16.mxu1 %v3247_v39  ;;  %v1182_v39 = vadd.s32 16, %v5003_v31  ;;  %vm5142_vm10 = vcmp.lt.s32.totalorder %v1225_v56, 15 }
 0x239   : > { %3338 = vmatpush3.bf16.msra.mxu0 %v3335_v20  ;;  %v1211_v50 = vand.u32 15, %v1181_v38  ;;  %v2218_v38 = vld [vmem:[#allocation17 + $0x18] sm:$0xff] }
 0x23a   : > { %893 = vmatmul.mubr.f32.gmra.mrb[12].mxu0 %v738_v57  ;;  %3340 = vmatprep.subr.bf16.mxu0 %v3339_v23  ;;  %v1218_v52 = vand.u32 15, %v1182_v39  ;;  %v1232_v57 = vand.u32 15, %v5022_v43  ;;  %v2215_v39 = vld [vmem:[#allocation17] sm:$0xff] }
 0x23b   : > { %3314 = vmatpush1.bf16.msra.mxu1 %v3249_v44  ;;  %898 = vmatprep.mubr.f32.mxu0 %v6340_v0  ;;  %v1866_v44 = vsub.s32 5, %v5003_v31  ;;  %vm5098_vm6 = vcmp.lt.s32.totalorder %v1211_v50, 15  ;;  %v2217_v50 = vld [vmem:[#allocation17 + $0x10] sm:$0xff] }
 0x23c   : > { %3316 = vmatprep.subr.bf16.mxu1 %v3251_v45  ;;  %v5026_v45 = vrot.slane %v780_v34, %v5006_v32  ;;  %vm5094_vm5 = vcmp.gt.s32.totalorder %v1218_v52, 0  ;;  %v2220_v52 = vld [vmem:[#allocation17 + $0x28] sm:$0xff]  ;;  %vm5136_vm9 = vcmp.gt.s32.totalorder %v1232_v57, 0 }
 0x23d   : > { %3342 = vmatpush3.bf16.msra.mxu0 %v3339_v23 }
 0x23e   : > { %899 = vmatmul.mubr.f32.gmra.mrb[14].mxu0 %v739_v58  ;;  %3344 = vmatprep.subr.bf16.mxu0 %v3343_v26  ;;  %v5059_v58 = vrot.slane %v5011_v36, %v1866_v44  ;;  %v5124_v44 = vrot.slane %v5011_v36, %v1938_v7 }
 0x23f   : > { %3318 = vmatpush1.bf16.msra.mxu1 %v3253_v48  ;;  %904 = vmatprep.mubr.f32.mxu0 %v6340_v0  ;;  %v5038_v48 = vrot.slane %v5011_v36, %v5006_v32 }
 0x241   : > { %3346 = vmatpush3.bf16.msra.mxu0 %v3343_v26 }
 0x242   : > { %905 = vmatmul.mubr.f32.gmra.mrb[16].mxu0 %v740_v59  ;;  %1158 = vmatmul.mubr.f32.vlgmr.msra.gmra.mrb[4].mxu1 %v1091_v60  ;;  %v1902_v59 = vsub.s32 6, %v5003_v31 }
 0x243   : > { %910 = vmatprep.mubr.f32.mxu0 %v6340_v0  ;;  %1162 = vmatprep.mubr.f32.mxu1 %v6340_v0 }
 0x244   : > { %3348 = vmatprep.subr.bf16.mxu0 %v3347_v29  ;;  %v5117_v30 = vrot.slane %v5011_v36, %v1902_v59  ;;  %v2222_v59 = vld [vmem:[#allocation17 + $0x38] sm:$0xff] }
 0x245   : > { %3350 = vmatpush3.bf16.msra.mxu0 %v3347_v29 }
 0x246   : > { %911 = vmatmul.mubr.f32.gmra.mrb[18].mxu0 %v741_v61  ;;  %1163 = vmatmul.mubr.f32.gmra.mrb[6].mxu1 %v1092_v62  ;;  %v5063_v62 = vadd.s32 64, %v5003_v31 }
 0x247   : > { %916 = vmatprep.mubr.f32.mxu0 %v6340_v0  ;;  %2323 = vmatprep.mubr.f32.mxu1 %v6340_v0 }
 0x24a   : > { %917 = vmatmul.mubr.f32.gmra.mrb[20].mxu0 %v742_v63  ;;  %v5066_v63 = vadd.s32 80, %v5003_v31 }
 0x24b   : > { %922 = vmatprep.mubr.f32.mxu0 %v6340_v0 }
 0x24e   : > { %923 = vmatmul.mubr.f32.gmra.mrb[22].mxu0 %v743_v1  ;;  %v5069_v1 = vadd.s32 96, %v5003_v31 }
 0x24f   : > { %928 = vmatprep.mubr.f32.mxu0 %v6340_v0 }
 0x252   : > { %929 = vmatmul.mubr.f32.gmra.mrb[24].mxu0 %v744_v2  ;;  %v5072_v2 = vadd.s32 112, %v5003_v31 }
 0x253   : > { %934 = vmatprep.mubr.f32.mxu0 %v6340_v0 }
 0x256   : > { %935 = vmatmul.mubr.f32.gmra.mrb[26].mxu0 %v745_v3 }
 0x257   : > { %940 = vmatprep.mubr.f32.mxu0 %v6340_v0 }
 0x25a   : > { %941 = vmatmul.mubr.f32.gmra.mrb[28].mxu0 %v746_v4 }
 0x25b   : > { %946 = vmatprep.mubr.f32.mxu0 %v6340_v0 }
 0x25e   : > { %947 = vmatmul.mubr.f32.gmra.mrb[30].mxu0 %v747_v5 }
 0x2f5   : > { %v1070_v60 = vpop.f32.mrb[0].mxu1  ;;  %v858_v61 = vpop.f32.mrb[0].mxu0 }
 0x2f6   : > { %v1071_v3 = vadd.f32 %v1070_v60, %v5026_v45  ;;  %v1072_v4 = vpop.f32.mrb[1].mxu1  ;;  %v859_v5 = vadd.f32 %v858_v61, %v5026_v45  ;;  %v5076_v6 = vpop.f32.mrb[1].mxu0 }
 0x2f7   : > { %6471 = vst [vmem:[#allocation52_spill] sm:$0xff] %v5076_v6  ;;  %v1175_v4 = vstv %s5083_s26 }
 0x2f8   : > { %vm1079_vm1 = vcmp.ge.f32.partialorder %v1071_v3, 0.0  ;;  %v1081_v13 = vmul.f32 0.01, %v1071_v3  ;;  %vm953_vm4 = vcmp.ge.f32.partialorder %v859_v5, 0.0  ;;  %v969_v14 = vmul.f32 0.01, %v859_v5 }
 0x2f9   : > { %v1075_v15 = vpop.f32.mrb[2].mxu1  ;;  %v864_v18 = vpop.f32.mrb[2].mxu0 }
 0x2fa   : > { %v1083_v23 = vsel %vm1079_vm1, %v1071_v3, %v1081_v13  ;;  %v1076_v24 = vadd.f32 %v1075_v15, %v5026_v45  ;;  %v5107_v25 = vsel %vm953_vm4, %v859_v5, %v969_v14  ;;  %v865_v26 = vadd.f32 %v864_v18, %v5026_v45  ;;  %v5110_v27 = vpop.f32.mrb[3].mxu0  ;;  %v1077_v28 = vpop.f32.mrb[3].mxu1 }
 0x2fb   : > { %6476 = vst [vmem:[#allocation53_spill] sm:$0xff] %v5110_v27  ;;  %v5114_v29 = vsel %vm5028_vm0, %v1083_v23, 0.0  ;;  %v1462_v40 = vrot.slane %v5107_v25, 7  ;;  %v1583_v41 = vrot.slane %v5107_v25, 1  ;;  %v1726_v5 = vmul.f32 %v5034_v47, %v5107_v25 }
 0x2fc   : > { %6477 = vst [vmem:[#allocation54_spill] sm:$0xff] %v5114_v29  ;;  %vm1080_vm7 = vcmp.ge.f32.partialorder %v1076_v24, 0.0  ;;  %v1082_v60 = vmul.f32 0.01, %v1076_v24  ;;  %vm954_vm8 = vcmp.ge.f32.partialorder %v865_v26, 0.0  ;;  %v3351_v15 = vpack.c.bf16 %v2218_v38, %v2216_v37 }
 0x2fd   : > { %v970_v61 = vmul.f32 0.01, %v865_v26  ;;  %v870_v3 = vpop.f32.mrb[4].mxu0  ;;  %v3353_v18 = vpack.c.bf16 %v2217_v50, %v2215_v39  ;;  %v6343_v36 = vrot.slane %v5114_v29, 7  ;;  %v6342_v37 = vrot.slane %v5114_v29, 1 }
 0x2fe   : > { %v871_v13 = vadd.f32 %v870_v3, %v5026_v45  ;;  %v5130_v14 = vpop.f32.mrb[5].mxu0  ;;  %v1084_v7 = vsel %vm1080_vm7, %v1076_v24, %v1082_v60  ;;  %v3355_v3 = vpack.c.bf16 %v2222_v59, %v2220_v52  ;;  %3352 = vmatprep.subr.bf16.mxu1 %v3351_v15  ;;  %vm5285_vm1 = vcmp.eq.s32.totalorder %v1175_v4, 1 }
 0x2ff   : > { %6478 = vst [vmem:[#allocation55_spill] sm:$0xff] %v5130_v14  ;;  %v986_v23 = vsel %vm954_vm8, %v865_v26, %v970_v61  ;;  %v1089_v38 = vsel %vm5028_vm0, %v1084_v7, 0.0  ;;  %3354 = vmatpush1.bf16.msra.mxu1 %v3353_v18  ;;  %v6524_v27 = vand.u32 15, %v5072_v2 }
 0x300   : > { %v1463_v24 = vrot.slane %v986_v23, 7  ;;  %v1584_v26 = vrot.slane %v986_v23, 1  ;;  %v1461_v43 = vrot.slane %v1089_v38, 7  ;;  %v1582_v57 = vrot.slane %v1089_v38, 1  ;;  %3356 = vmatprep.subr.bf16.mxu1 %v3355_v3 }
 0x301   : > { %v1725_v39 = vmul.f32 %v5034_v47, %v1089_v38  ;;  %v1727_v50 = vmul.f32 %v5034_v47, %v986_v23  ;;  %v876_v42 = vpop.f32.mrb[6].mxu0  ;;  %vm955_vm11 = vcmp.ge.f32.partialorder %v871_v13, 0.0  ;;  %v971_v46 = vmul.f32 0.01, %v871_v13 }
 0x302   : > { %v1497_v56 = vsel %vm1480_vm2, %v1462_v40, %v1463_v24  ;;  %v5155_v52 = vsel %vm1601_vm3, %v1583_v41, %v1584_v26  ;;  %v5157_v59 = vpop.f32.mrb[7].mxu0  ;;  %v1499_v60 = vsel %vm1480_vm2, %v6343_v36, %v1461_v43  ;;  %v5167_v61 = vsel %vm1601_vm3, %v6342_v37, %v1582_v57 }
 0x303   : > { %6483 = vst [vmem:[#allocation56_spill] sm:$0xff] %v5157_v59  ;;  %v1498_v15 = vsel %vm1480_vm2, %v1461_v43, %v1462_v40  ;;  %v1619_v18 = vsel %vm1601_vm3, %v1582_v57, %v1583_v41  ;;  %v1689_v7 = vmul.f32 %v5038_v48, %v1499_v60  ;;  %v1691_v43 = vmul.f32 %v5038_v48, %v1497_v56 }
 0x304   : > { %v5176_v3 = vsel %vm5094_vm5, %v1498_v15, 0.0  ;;  %v1663_v38 = vsel %vm5098_vm6, %v1619_v18, 0.0  ;;  %v5188_v57 = vadd.s32 88, %v5003_v31  ;;  %v1762_v60 = vmul.f32 %v5041_v49, %v5155_v52 }
 0x305   : > { %v1690_v37 = vmul.f32 %v5038_v48, %v5176_v3  ;;  %v1761_v40 = vmul.f32 %v5041_v49, %v1663_v38  ;;  %v882_v41 = vpop.f32.mrb[8].mxu0  ;;  %v1741_v16 = vadd.f32 %v1725_v39, %v1689_v7  ;;  %v1797_v17 = vmul.f32 %v5047_v53, %v1497_v56 }
 0x306   : > { %v5194_v15 = vsel %vm955_vm11, %v871_v13, %v971_v46  ;;  %v5196_v18 = vpop.f32.mrb[9].mxu0  ;;  %v1743_v22 = vadd.f32 %v1727_v50, %v1691_v43  ;;  %v1833_v20 = vmul.f32 %v5050_v54, %v986_v23  ;;  %v877_v7 = vadd.f32 %v876_v42, %v5026_v45 }
 0x307   : > { %6485 = vst [vmem:[#allocation58_spill] sm:$0xff] %v5196_v18  ;;  %v1742_v34 = vadd.f32 %v1726_v5, %v1690_v37  ;;  %v1464_v38 = vrot.slane %v5194_v15, 7  ;;  %v6344_v21 = vrot.slane %v5194_v15, 1  ;;  %v1777_v36 = vadd.f32 %v1761_v40, %v1741_v16 }
 0x308   : > { %v1728_v39 = vmul.f32 %v5034_v47, %v5194_v15  ;;  %v1834_v37 = vmul.f32 %v5050_v54, %v5194_v15  ;;  %vm956_vm13 = vcmp.ge.f32.partialorder %v877_v7, 0.0  ;;  %v972_v40 = vmul.f32 0.01, %v877_v7 }
 0x309   : > { %v1778_v56 = vadd.f32 %v1762_v60, %v1742_v34  ;;  %v1496_v13 = vsel %vm1480_vm2, %v1463_v24, %v1464_v38  ;;  %v1617_v5 = vsel %vm1601_vm3, %v1584_v26, %v6344_v21  ;;  %v888_v50 = vpop.f32.mrb[10].mxu0  ;;  %v1813_v42 = vadd.f32 %v1797_v17, %v1777_v36 }
 0x30a   : > { %v5220_v34 = vsel %vm5136_vm9, %v1496_v13, 0.0  ;;  %v1665_v24 = vsel %vm5142_vm10, %v1617_v5, 0.0  ;;  %v5230_v55 = vpop.f32.mrb[11].mxu0  ;;  %v883_v51 = vadd.f32 %v882_v41, %v5026_v45  ;;  %v889_v17 = vadd.f32 %v888_v50, %v5026_v45 }
 0x30b   : > { %6490 = vst [vmem:[#allocation59_spill] sm:$0xff] %v5230_v55  ;;  %v1692_v9 = vmul.f32 %v5038_v48, %v5220_v34  ;;  %v1763_v36 = vmul.f32 %v5041_v49, %v1665_v24  ;;  %v1798_v28 = vmul.f32 %v5047_v53, %v5220_v34  ;;  %v1869_v0 = vmul.f32 %v5059_v58, %v1665_v24 }
 0x30c   : > { %v1849_v46 = vadd.f32 %v1833_v20, %v1813_v42  ;;  %v5244_v5 = vsel %vm956_vm13, %v877_v7, %v972_v40  ;;  %vm957_vm15 = vcmp.ge.f32.partialorder %v883_v51, 0.0  ;;  %v973_v10 = vmul.f32 0.01, %v883_v51 }
 0x30d   : > { %v5240_v43 = vadd.f32 %v1728_v39, %v1692_v9  ;;  %v1814_v16 = vadd.f32 %v1798_v28, %v1778_v56  ;;  %v1779_v60 = vadd.f32 %v1763_v36, %v1743_v22  ;;  %v894_v13 = vpop.f32.mrb[12].mxu0  ;;  %v1465_v41 = vrot.slane %v5244_v5, 7 }
 0x30e   : > { %v1885_v21 = vadd.f32 %v1869_v0, %v1849_v46  ;;  %v5246_v24 = vpop.f32.mrb[13].mxu0  ;;  %v6347_v39 = vrot.slane %v5244_v5, 1  ;;  %v1729_v22 = vmul.f32 %v5034_v47, %v5244_v5  ;;  %v1835_v7 = vmul.f32 %v5050_v54, %v5244_v5 }
 0x30f   : > { %6491 = vst [vmem:[#allocation60_spill] sm:$0xff] %v5246_v24  ;;  %v5248_v20 = vadd.f32 %v1834_v37, %v1814_v16  ;;  %v5257_v50 = vsel %vm957_vm15, %v883_v51, %v973_v10  ;;  %v5260_v42 = vadd.s32 128, %v5003_v31  ;;  %v1495_v37 = vsel %vm1480_vm2, %v1464_v38, %v1465_v41 }
 0x310   : > { %v1941_v9 = vmul.f32 %v5124_v44, %v5244_v5  ;;  %v1466_v36 = vrot.slane %v5257_v50, 7  ;;  %v6346_v28 = vrot.slane %v5257_v50, 1  ;;  %v1693_v46 = vmul.f32 %v5038_v48, %v1495_v37 }
 0x311   : > { %6492 = vst [vmem:[#allocation61_spill] sm:$0xff] %v5260_v42  ;;  %v900_v0 = vpop.f32.mrb[14].mxu0  ;;  %v1799_v40 = vmul.f32 %v5047_v53, %v1495_v37  ;;  %v1905_v10 = vmul.f32 %v5117_v30, %v1495_v37  ;;  %vm958_vm0 = vcmp.ge.f32.partialorder %v889_v17, 0.0  ;;  %v1730_v8 = vmul.f32 %v5034_v47, %v5257_v50 }
 0x312   : > { %v5271_v51 = vpop.f32.mrb[15].mxu0  ;;  %v1494_v38 = vsel %vm1480_vm2, %v1465_v41, %v1466_v36  ;;  %v1615_v16 = vsel %vm1601_vm3, %v6347_v39, %v6346_v28  ;;  %v974_v37 = vmul.f32 0.01, %v889_v17  ;;  %v1745_v19 = vadd.f32 %v1729_v22, %v1693_v46 }
 0x313   : > { %6493 = vst [vmem:[#allocation62_spill] sm:$0xff] %v5271_v51  ;;  %v1815_v32 = vadd.f32 %v1799_v40, %v1779_v60  ;;  %v1921_v24 = vadd.f32 %v1905_v10, %v1885_v21  ;;  %v5291_v41 = vsel %vm5214_vm12, %v1494_v38, 0.0  ;;  %v5295_v51 = vsel %vm5226_vm14, %v1615_v16, 0.0 }
 0x314   : > { %v1694_v28 = vmul.f32 %v5038_v48, %v5291_v41  ;;  %v5299_v4 = vsel %vm958_vm0, %v889_v17, %v974_v37  ;;  %v895_v18 = vadd.f32 %v894_v13, %v5026_v45  ;;  %v6496_v22 = vand.u32 15, %v5063_v62 }
 0x315   : > { %v1159_v39 = vpop.f32.mrb[4].mxu1  ;;  %v906_v23 = vpop.f32.mrb[16].mxu0  ;;  %v5308_v60 = vadd.f32 %v1835_v7, %v1815_v32  ;;  %v5310_v26 = vadd.f32 %v1941_v9, %v1921_v24  ;;  %v1765_v46 = vmul.f32 %v5041_v49, %v5295_v51  ;;  %v1467_v62 = vrot.slane %v5299_v4, 7 }
 0x316   : > { %vm5304_vm4 = vcmp.gt.s32.totalorder %v6496_v22, 0  ;;  %v1160_v40 = vadd.f32 %v1159_v39, %v5026_v45  ;;  %v1161_v17 = vpop.f32.mrb[5].mxu1  ;;  %v5315_v10 = vpop.f32.mrb[17].mxu0  ;;  %v5317_v13 = vadd.f32 %v1730_v8, %v1694_v28  ;;  %v5321_v38 = vadd.s32 120, %v5003_v31 }
 0x317   : > { %6499 = vst [vmem:[#allocation63_spill] sm:$0xff] %v5315_v10  ;;  %v1781_v7 = vadd.f32 %v1765_v46, %v1745_v19  ;;  %v5325_v9 = vadd.s32 136, %v5003_v31  ;;  %v6502_v39 = vand.u32 15, %v5003_v31  ;;  %v5335_v8 = vsel %vm1480_vm2, %v1466_v36, %v1467_v62 }
 0x318   : > { %6500 = vst [vmem:[#allocation64_spill] sm:$0xff] %v5321_v38  ;;  %vm1168_vm5 = vcmp.ge.f32.partialorder %v1160_v40, 0.0  ;;  %v1170_v24 = vmul.f32 0.01, %v1160_v40  ;;  %v1731_v28 = vmul.f32 %v5034_v47, %v5299_v4  ;;  %vm959_vm7 = vcmp.ge.f32.partialorder %v895_v18, 0.0 }
 0x319   : > { %6501 = vst [vmem:[#allocation65_spill] sm:$0xff] %v5325_v9  ;;  %v1164_v16 = vpop.f32.mrb[6].mxu1  ;;  %vm5329_vm6 = vcmp.gt.s32.totalorder %v6502_v39, 0  ;;  %v975_v22 = vmul.f32 0.01, %v895_v18  ;;  %v912_v19 = vpop.f32.mrb[18].mxu0  ;;  %v1695_v17 = vmul.f32 %v5038_v48, %v5335_v8  ;;  %v1801_v39 = vmul.f32 %v5047_v53, %v5335_v8 }
 0x31a   : > { %v1165_v46 = vadd.f32 %v1164_v16, %v5026_v45  ;;  %v1166_v32 = vpop.f32.mrb[7].mxu1  ;;  %v5344_v10 = vpop.f32.mrb[19].mxu0  ;;  %v5347_v36 = vadd.s32 152, %v5003_v31  ;;  %v1172_v55 = vsel %vm1168_vm5, %v1160_v40, %v1170_v24  ;;  %v1837_v14 = vmul.f32 %v5050_v54, %v5299_v4 }
 0x31b   : > { %6505 = vst [vmem:[#allocation66_spill] sm:$0xff] %v5344_v10  ;;  %v5352_v59 = vsel %vm959_vm7, %v895_v18, %v975_v22  ;;  %v901_v16 = vadd.f32 %v900_v0, %v5026_v45  ;;  %v5358_v32 = vadd.s32 144, %v5003_v31  ;;  %v5360_v33 = vadd.f32 %v1731_v28, %v1695_v17 }
 0x31c   : > { %6506 = vst [vmem:[#allocation67_spill] sm:$0xff] %v5347_v36  ;;  %vm1169_vm8 = vcmp.ge.f32.partialorder %v1165_v46, 0.0  ;;  %v1171_v10 = vmul.f32 0.01, %v1165_v46  ;;  %v1817_v42 = vadd.f32 %v1801_v39, %v1781_v7  ;;  %v1468_v40 = vrot.slane %v5352_v59, 7 }
 0x31d   : > { %6507 = vst [vmem:[#allocation68_spill] sm:$0xff] %v5358_v32  ;;  %v918_v24 = vpop.f32.mrb[20].mxu0  ;;  %v5365_v18 = vsel %vm5285_vm1, %v1172_v55, 0.0  ;;  %v1732_v0 = vmul.f32 %v5034_v47, %v5352_v59  ;;  %vm960_vm9 = vcmp.ge.f32.partialorder %v901_v16, 0.0  ;;  %v6508_v22 = vand.u32 15, %v5066_v63 }
 0x31e   : > { %v5375_v28 = vpop.f32.mrb[21].mxu0  ;;  %v1173_v17 = vsel %vm1169_vm8, %v1165_v46, %v1171_v10  ;;  %v5378_v39 = vadd.f32 %v1837_v14, %v1817_v42  ;;  %v1492_v55 = vsel %vm1480_vm2, %v1467_v62, %v1468_v40  ;;  %v976_v6 = vmul.f32 0.01, %v901_v16 }
 0x31f   : > { %vm5371_vm10 = vcmp.gt.s32.totalorder %v6508_v22, 0  ;;  %6511 = vst [vmem:[#allocation69_spill] sm:$0xff] %v5375_v28  ;;  %v5384_v9 = vsel %vm5285_vm1, %v1173_v17, 0.0  ;;  %v5388_v63 = vsel %vm5304_vm4, %v1492_v55, 0.0  ;;  %v907_v22 = vadd.f32 %v906_v23, %v5026_v45 }
 0x320   : > { %6512 = vst [vmem:[#allocation70_spill] sm:$0xff] %v5384_v9  ;;  %v1724_v14 = vmul.f32 %v5034_v47, %v5114_v29  ;;  %v6353_v42 = vrot.slane %v5365_v18, 7  ;;  %v1479_v10 = vrot.slane %v5384_v9, 7  ;;  %v1696_v56 = vmul.f32 %v5038_v48, %v5388_v63 }
 0x321   : > { %v924_v62 = vpop.f32.mrb[22].mxu0  ;;  %v5399_v46 = vsel %vm960_vm9, %v901_v16, %v976_v6  ;;  %vm961_vm11 = vcmp.ge.f32.partialorder %v907_v22, 0.0  ;;  %v977_v21 = vmul.f32 0.01, %v907_v22  ;;  %v913_v23 = vadd.f32 %v912_v19, %v5026_v45 }
 0x322   : > { %v5402_v17 = vpop.f32.mrb[23].mxu0  ;;  %v5408_v55 = vsel %vm1480_vm2, %v6353_v42, %v1479_v10  ;;  %v6515_v7 = vrot.slane %v5114_v29, 7  ;;  %v5414_v36 = vadd.f32 %v1732_v0, %v1696_v56  ;;  %v1469_v6 = vrot.slane %v5399_v46, 7 }
 0x323   : > { %6513 = vst [vmem:[#allocation71_spill] sm:$0xff] %v5402_v17  ;;  %6514 = vst [vmem:[#allocation72_spill] sm:$0xff] %v5408_v55  ;;  %v5419_v19 = vmul.f32 %v5041_v49, %v5167_v61  ;;  %v5423_v16 = vmul.f32 %v5050_v54, %v5107_v25  ;;  %v1733_v17 = vmul.f32 %v5034_v47, %v5399_v46  ;;  %vm962_vm12 = vcmp.ge.f32.partialorder %v913_v23, 0.0 }
 0x324   : > { %v1500_v28 = vsel %vm1480_vm2, %v1479_v10, %v6515_v7  ;;  %v5431_v0 = vmul.f32 %v5047_v53, %v5176_v3  ;;  %v5436_v61 = vsel %vm1480_vm2, %v1468_v40, %v1469_v6  ;;  %v5438_v10 = vsel %vm961_vm11, %v907_v22, %v977_v21 }
 0x325   : > { %v1541_v42 = vsel %vm5329_vm6, %v1500_v28, 0.0  ;;  %v930_v25 = vpop.f32.mrb[24].mxu0  ;;  %v5442_v37 = vmul.f32 %v5050_v54, %v5257_v50  ;;  %v1697_v28 = vmul.f32 %v5038_v48, %v5436_v61  ;;  %v1470_v56 = vrot.slane %v5438_v10, 7 }
 0x326   : > { %v1688_v7 = vmul.f32 %v5038_v48, %v1541_v42  ;;  %v6516_v3 = vand.u32 15, %v5069_v1  ;;  %v5453_v40 = vpop.f32.mrb[25].mxu0  ;;  %v978_v29 = vmul.f32 0.01, %v913_v23  ;;  %v1734_v1 = vmul.f32 %v5034_v47, %v5438_v10 }
 0x327   : > { %6519 = vst [vmem:[#allocation73_spill] sm:$0xff] %v5453_v40  ;;  %v5459_v32 = vadd.f32 %v1733_v17, %v1697_v28  ;;  %v1490_v38 = vsel %vm1480_vm2, %v1469_v6, %v1470_v56  ;;  %v5468_v40 = vmul.f32 %v5124_v44, %v5365_v18  ;;  %v925_v17 = vadd.f32 %v924_v62, %v5026_v45 }
 0x328   : > { %vm5449_vm13 = vcmp.gt.s32.totalorder %v6516_v3, 0  ;;  %v5456_v21 = vadd.f32 %v1724_v14, %v1688_v7  ;;  %v919_v3 = vadd.f32 %v918_v24, %v5026_v45  ;;  %v5472_v14 = vsel %vm5371_vm10, %v1490_v38, 0.0 }
 0x329   : > { %6520 = vst [vmem:[#allocation74_spill] sm:$0xff] %v5459_v32  ;;  %6521 = vst [vmem:[#allocation75_spill] sm:$0xff] %v5468_v40  ;;  %v5474_v7 = vsel %vm962_vm12, %v913_v23, %v978_v29  ;;  %v936_v28 = vpop.f32.mrb[26].mxu0  ;;  %v5480_v22 = vmul.f32 %v5050_v54, %v5352_v59  ;;  %v1698_v24 = vmul.f32 %v5038_v48, %v5472_v14  ;;  %vm5487_vm14 = vcmp.gt.s32.totalorder %v6524_v27, 0 }
 0x32a   : > { %6522 = vst [vmem:[#allocation76_spill] sm:$0xff] %v5472_v14  ;;  %v1471_v55 = vrot.slane %v5474_v7, 7  ;;  %v5491_v29 = vpop.f32.mrb[27].mxu0  ;;  %v1735_v62 = vmul.f32 %v5034_v47, %v5474_v7  ;;  %vm963_vm15 = vcmp.ge.f32.partialorder %v919_v3, 0.0  ;;  %v979_v23 = vmul.f32 0.01, %v919_v3 }
 0x32b   : > { %6523 = vst [vmem:[#allocation77_spill] sm:$0xff] %v5480_v22  ;;  %6527 = vst [vmem:[#allocation78_spill] sm:$0xff] %v5491_v29  ;;  %vm964_vm0 = vcmp.ge.f32.partialorder %v925_v17, 0.0  ;;  %v5495_v6 = vadd.f32 %v1734_v1, %v1698_v24  ;;  %v980_v22 = vmul.f32 0.01, %v925_v17  ;;  %v931_v2 = vadd.f32 %v930_v25, %v5026_v45 }
 0x32c   : > { %v5499_v40 = vsel %vm1480_vm2, %v1470_v56, %v1471_v55  ;;  %v5505_v29 = vmul.f32 %v5124_v44, %v5384_v9  ;;  %v5509_v35 = vsel %vm963_vm15, %v919_v3, %v979_v23  ;;  %v5514_v56 = vmul.f32 %v5050_v54, %v5399_v46 }
 0x32d   : > { %6528 = vst [vmem:[#allocation79_spill] sm:$0xff] %v5495_v6  ;;  %6529 = vst [vmem:[#allocation80_spill] sm:$0xff] %v5499_v40  ;;  %v1699_v14 = vmul.f32 %v5038_v48, %v5499_v40  ;;  %v942_v1 = vpop.f32.mrb[28].mxu0  ;;  %v1472_v25 = vrot.slane %v5509_v35, 7  ;;  %v937_v27 = vadd.f32 %v936_v28, %v5026_v45  ;;  %vm965_vm1 = vcmp.ge.f32.partialorder %v931_v2, 0.0 }
 0x32e   : > { %6530 = vst [vmem:[#allocation81_spill] sm:$0xff] %v5505_v29  ;;  %6531 = vst [vmem:[#allocation82_spill] sm:$0xff] %v5514_v56  ;;  %v5518_v6 = vpop.f32.mrb[29].mxu0  ;;  %v5523_v29 = vsel %vm964_vm0, %v925_v17, %v980_v22  ;;  %v981_v3 = vmul.f32 0.01, %v931_v2  ;;  %v1736_v56 = vmul.f32 %v5034_v47, %v5509_v35  ;;  %v5533_v28 = vmul.f32 %v5050_v54, %v5438_v10 }
 0x32f   : > { %6532 = vst [vmem:[#allocation83_spill] sm:$0xff] %v5518_v6  ;;  %v5520_v9 = vadd.f32 %v1735_v62, %v1699_v14  ;;  %v1488_v24 = vsel %vm1480_vm2, %v1471_v55, %v1472_v25  ;;  %v1473_v40 = vrot.slane %v5523_v29, 7  ;;  %v1737_v14 = vmul.f32 %v5034_v47, %v5523_v29 }
 0x330   : > { %6534 = vst [vmem:[#allocation85_spill] sm:$0xff] %v5533_v28  ;;  %v5537_v22 = vsel %vm5449_vm13, %v1488_v24, 0.0  ;;  %v5541_v17 = vsel %vm965_vm1, %v931_v2, %v981_v3  ;;  %vm966_vm4 = vcmp.ge.f32.partialorder %v937_v27, 0.0  ;;  %v5555_v24 = vmul.f32 %v5050_v54, %v5474_v7 }
 0x331   : > { %6533 = vst [vmem:[#allocation84_spill] sm:$0xff] %v5520_v9  ;;  %6535 = vst [vmem:[#allocation86_spill] sm:$0xff] %v5537_v22  ;;  %v948_v62 = vpop.f32.mrb[30].mxu0  ;;  %v1700_v55 = vmul.f32 %v5038_v48, %v5537_v22  ;;  %v5547_v23 = vsel %vm1480_vm2, %v1472_v25, %v1473_v40  ;;  %v1474_v6 = vrot.slane %v5541_v17, 7  ;;  %v982_v3 = vmul.f32 0.01, %v937_v27 }
 0x332   : > { %6536 = vst [vmem:[#allocation87_spill] sm:$0xff] %v5547_v23  ;;  %v5550_v28 = vpop.f32.mrb[31].mxu0  ;;  %6538 = vst [vmem:[#allocation89_spill] sm:$0xff] %v5555_v24  ;;  %v1701_v2 = vmul.f32 %v5038_v48, %v5547_v23  ;;  %v1738_v9 = vmul.f32 %v5034_v47, %v5541_v17 }
 0x333   : > { %6537 = vst [vmem:[#allocation88_spill] sm:$0xff] %v5550_v28  ;;  %v5559_v22 = vadd.f32 %v1736_v56, %v1700_v55  ;;  %v1486_v25 = vsel %vm1480_vm2, %v1473_v40, %v1474_v6  ;;  %v943_v28 = vadd.f32 %v942_v1, %v5026_v45  ;;  %v5573_v23 = vsel %vm966_vm4, %v937_v27, %v982_v3 }
 0x334   : > { %v5567_v32 = vadd.f32 %v1737_v14, %v1701_v2  ;;  %v5571_v24 = vsel %vm5487_vm14, %v1486_v25, 0.0  ;;  %v5577_v56 = vmul.f32 %v5050_v54, %v5509_v35  ;;  %v1475_v1 = vrot.slane %v5573_v23, 7 }
 0x335   : > { %v1702_v55 = vmul.f32 %v5038_v48, %v5571_v24  ;;  %v1739_v14 = vmul.f32 %v5034_v47, %v5573_v23  ;;  %vm967_vm5 = vcmp.ge.f32.partialorder %v943_v28, 0.0  ;;  %v983_v38 = vmul.f32 0.01, %v943_v28 }
 0x336   : > { %6539 = vst [vmem:[#allocation90_spill] sm:$0xff] %v5577_v56  ;;  %v949_v2 = vadd.f32 %v948_v62, %v5026_v45  ;;  %v5590_v3 = vsel %vm1480_vm2, %v1474_v6, %v1475_v1  ;;  %v6540_v25 = vrot.slane %v5244_v5, 1  ;;  %v6541_v40 = vrot.slane %v5194_v15, 1 }
 0x337   : > { %v5586_v27 = vadd.f32 %v1738_v9, %v1702_v55  ;;  %v1776_v47 = vadd.f32 %v5419_v19, %v5456_v21  ;;  %v6542_v56 = vand.u32 15, %v5087_v11  ;;  %v1703_v9 = vmul.f32 %v5038_v48, %v5590_v3 }
 0x338   : > { %v1616_v42 = vsel %vm1601_vm3, %v6541_v40, %v6540_v25  ;;  %v5608_v6 = vsel %vm967_vm5, %v943_v28, %v983_v38  ;;  %vm968_vm7 = vcmp.ge.f32.partialorder %v949_v2, 0.0  ;;  %v984_v5 = vmul.f32 0.01, %v949_v2 }
 0x339   : > { %vm5602_vm6 = vcmp.lt.s32.totalorder %v6542_v56, 15  ;;  %v5612_v62 = vmul.f32 %v5050_v54, %v5523_v29  ;;  %v5617_v11 = vmul.f32 %v5050_v54, %v5541_v17  ;;  %v6368_v19 = vrot.slane %v5608_v6, 7 }
 0x33a   : > { %v5620_v21 = vadd.f32 %v1739_v14, %v1703_v9  ;;  %v5622_v56 = vsel %vm968_vm7, %v949_v2, %v984_v5  ;;  %v1764_v48 = vmul.f32 %v5041_v49, %v1616_v42  ;;  %v1812_v28 = vadd.f32 %v5431_v0, %v1776_v47  ;;  %v5638_v2 = vld [vmem:[#allocation11 + $0x8] ss:$0 sm:$0xff] }
 0x33b   : > { %6545 = vst [vmem:[#allocation91_spill] sm:$0xff] %v5617_v11  ;;  %v5629_v38 = vmul.f32 %v5050_v54, %v5573_v23  ;;  %v5635_v25 = vsel %vm1480_vm2, %v1475_v1, %v6368_v19  ;;  %v6369_v14 = vrot.slane %v5622_v56, 7  ;;  %v1868_v5 = vmul.f32 %v5059_v58, %v5155_v52 }
 0x33c   : > { %v1780_v0 = vadd.f32 %v1764_v48, %v5240_v43  ;;  %v1848_v47 = vadd.f32 %v5423_v16, %v1812_v28  ;;  %v5647_v55 = vmul.f32 %v5050_v54, %v5608_v6  ;;  %v5651_v1 = vmul.f32 %v5124_v44, %v5608_v6 }
 0x33d   : > { %6546 = vst [vmem:[#allocation92_spill] sm:$0xff] %v5629_v38  ;;  %v6549_v19 = vrot.slane %v5365_v18, 7  ;;  %v1870_v16 = vmul.f32 %v5059_v58, %v1616_v42  ;;  %v1904_v52 = vmul.f32 %v5117_v30, %v5220_v34  ;;  %v1977_v28 = vmul.f32 %v5638_v2, %v5295_v51 }
 0x33e   : > { %6547 = vst [vmem:[#allocation93_spill] sm:$0xff] %v5647_v55  ;;  %6548 = vst [vmem:[#allocation94_spill] sm:$0xff] %v5651_v1  ;;  %v1884_v48 = vadd.f32 %v1868_v5, %v1848_v47  ;;  %v6551_v9 = vrot.slane %v5299_v4, 1  ;;  %v6552_v40 = vrot.slane %v5257_v50, 1  ;;  %v6553_v55 = vand.u32 15, %v5090_v12 }
 0x33f   : > { %v5659_v43 = vsel %vm1480_vm2, %v6369_v14, %v6549_v19  ;;  %v1940_v47 = vmul.f32 %v5124_v44, %v5194_v15  ;;  %v1886_v5 = vadd.f32 %v1870_v16, %v5248_v20  ;;  %v1906_v14 = vmul.f32 %v5117_v30, %v5291_v41 }
 0x340   : > { %6550 = vst [vmem:[#allocation95_spill] sm:$0xff] %v5659_v43  ;;  %v1614_v1 = vsel %vm1601_vm3, %v6552_v40, %v6551_v9  ;;  %vm5674_vm8 = vcmp.lt.s32.totalorder %v6553_v55, 15  ;;  %v1920_v43 = vadd.f32 %v1904_v52, %v1884_v48  ;;  %v1993_v38 = vadd.f32 %v1977_v28, %v5310_v26 }
 0x341   : > { %v1766_v34 = vmul.f32 %v5041_v49, %v1614_v1  ;;  %v1942_v12 = vmul.f32 %v5124_v44, %v5257_v50  ;;  %v1978_v40 = vmul.f32 %v5638_v2, %v1614_v1  ;;  %v1922_v9 = vadd.f32 %v1906_v14, %v1886_v5  ;;  %v5705_v5 = vld [vmem:[#allocation13] ss:$0 sm:$0xff] }
 0x342   : > { %v6556_v15 = vrot.slane %v5352_v59, 1  ;;  %v6557_v11 = vrot.slane %v5299_v4, 1  ;;  %v1871_v16 = vmul.f32 %v5059_v58, %v5295_v51  ;;  %v1956_v48 = vadd.f32 %v1940_v47, %v1920_v43 }
 0x343   : > { %v1782_v55 = vadd.f32 %v1766_v34, %v5317_v13  ;;  %v1976_v26 = vmul.f32 %v5638_v2, %v1616_v42  ;;  %v1907_v13 = vmul.f32 %v5117_v30, %v5335_v8  ;;  %v1958_v14 = vadd.f32 %v1942_v12, %v1922_v9  ;;  %v6577_v12 = vld [vmem:[#allocation84_spill] sm:$0xff] }
 0x344   : > { %v1613_v20 = vsel %vm1601_vm3, %v6557_v11, %v6556_v15  ;;  %v1887_v34 = vadd.f32 %v1871_v16, %v5308_v60  ;;  %v1943_v51 = vmul.f32 %v5124_v44, %v5299_v4  ;;  %v6558_v45 = vrot.slane %v5399_v46, 1 }
 0x345   : > { %v1669_v50 = vsel %vm5602_vm6, %v1613_v20, 0.0  ;;  %v1992_v11 = vadd.f32 %v1976_v26, %v1956_v48  ;;  %v6559_v43 = vmov %v6556_v15  ;;  %v6560_v47 = vand.u32 15, %v5188_v57 }
 0x346   : > { %v1767_v52 = vmul.f32 %v5041_v49, %v1669_v50  ;;  %v1873_v28 = vmul.f32 %v5059_v58, %v1669_v50  ;;  %v1979_v42 = vmul.f32 %v5638_v2, %v1669_v50  ;;  %v1612_v8 = vsel %vm1601_vm3, %v6559_v43, %v6558_v45 }
 0x347   : > { %vm5718_vm9 = vcmp.lt.s32.totalorder %v6560_v47, 15  ;;  %v1994_v60 = vadd.f32 %v1978_v40, %v1958_v14  ;;  %v1923_v15 = vadd.f32 %v1907_v13, %v1887_v34  ;;  %v1768_v4 = vmul.f32 %v5041_v49, %v1612_v8 }
 0x348   : > { %v1783_v9 = vadd.f32 %v1767_v52, %v5360_v33  ;;  %v1598_v20 = vrot.slane %v5622_v56, 1  ;;  %v5727_v16 = vmul.f32 %v5050_v54, %v5622_v56  ;;  %v2015_v48 = vadd.f32 %v5705_v5, %v1992_v11 }
 0x349   : > { %v1800_v57 = vmul.f32 %v5047_v53, %v5291_v41  ;;  %v2016_v26 = vadd.f32 %v5705_v5, %v1993_v38  ;;  %v1872_v40 = vmul.f32 %v5059_v58, %v1614_v1  ;;  %v1959_v50 = vadd.f32 %v1943_v51, %v1923_v15  ;;  %v6567_v15 = vld [vmem:[#allocation74_spill] sm:$0xff] }
 0x34a   : > { %v1784_v33 = vadd.f32 %v1768_v4, %v5414_v36  ;;  %3143 = vmatprep.mubr.f32.mxu0 %v2015_v48  ;;  %v2017_v13 = vadd.f32 %v5705_v5, %v1994_v60  ;;  %v6563_v52 = vrot.slane %v5438_v10, 1  ;;  %v6564_v54 = vmov %v6558_v45 }
 0x34b   : > { %v1816_v14 = vadd.f32 %v1800_v57, %v1780_v0  ;;  %v1889_v41 = vadd.f32 %v1873_v28, %v5378_v39  ;;  %3144 = vmatmul.mubr.f32.vlgmr.msra.gmra.mrb[32].mxu0 %v2016_v26  ;;  %v1995_v38 = vadd.f32 %v1979_v42, %v1959_v50  ;;  %v1909_v36 = vmul.f32 %v5117_v30, %v5436_v61  ;;  %v6568_v57 = vld [vmem:[#allocation57_spill] sm:$0xff] }
 0x34c   : > { %v1611_v34 = vsel %vm1601_vm3, %v6564_v54, %v6563_v52  ;;  %v1945_v0 = vmul.f32 %v5124_v44, %v5399_v46  ;;  %3146 = vmatprep.mubr.f32.mxu0 %v2017_v13  ;;  %v1908_v51 = vmul.f32 %v5117_v30, %v5388_v63  ;;  %v6565_v42 = vrot.slane %v5474_v7, 1  ;;  %v6572_v54 = vld [vmem:[#allocation79_spill] sm:$0xff]  ;;  %v6595_v50 = vld [vmem:[#allocation89_spill] sm:$0xff] }
 0x34d   : > { %v1671_v1 = vsel %vm5674_vm8, %v1611_v34, 0.0  ;;  %v1852_v11 = vadd.f32 %v5442_v37, %v1816_v14  ;;  %v2018_v28 = vadd.f32 %v5705_v5, %v1995_v38  ;;  %v1925_v19 = vadd.f32 %v1909_v36, %v1889_v41  ;;  %v6573_v34 = vld [vmem:[#allocation76_spill] sm:$0xff] }
 0x34e   : > { %v1769_v45 = vmul.f32 %v5041_v49, %v1671_v1  ;;  %v1981_v39 = vmul.f32 %v5638_v2, %v1671_v1  ;;  %v6566_v43 = vmov %v6563_v52  ;;  %v1802_v37 = vmul.f32 %v5047_v53, %v5388_v63 }
 0x34f   : > { %v1610_v46 = vsel %vm1601_vm3, %v6566_v43, %v6565_v42  ;;  %v1888_v47 = vadd.f32 %v1872_v40, %v1852_v11  ;;  %v1944_v60 = vmul.f32 %v5124_v44, %v5352_v59  ;;  %v6569_v26 = vand.u32 15, %v6568_v57  ;;  %3147 = vmatmul.mubr.f32.gmra.mrb[34].mxu0 %v2018_v28  ;;  %v6576_v28 = vld [vmem:[#allocation77_spill] sm:$0xff] }
 0x350   : > { %v1785_v4 = vadd.f32 %v1769_v45, %v6567_v15  ;;  %v1770_v48 = vmul.f32 %v5041_v49, %v1610_v46  ;;  %v1874_v13 = vmul.f32 %v5059_v58, %v1612_v8  ;;  %v1980_v14 = vmul.f32 %v5638_v2, %v1612_v8 }
 0x351   : > { %vm5769_vm10 = vcmp.lt.s32.totalorder %v6569_v26, 15  ;;  %v1961_v63 = vadd.f32 %v1945_v0, %v1925_v19  ;;  %v1818_v40 = vadd.f32 %v1802_v37, %v1782_v55  ;;  %v1924_v52 = vadd.f32 %v1908_v51, %v1888_v47  ;;  %v6578_v26 = vld [vmem:[#allocation80_spill] sm:$0xff] }
 0x352   : > { %v5776_v59 = vadd.f32 %v1770_v48, %v6572_v54  ;;  %v1910_v41 = vmul.f32 %v5117_v30, %v6573_v34  ;;  %v6574_v38 = vrot.slane %v5509_v35, 1  ;;  %v6575_v36 = vmov %v6565_v42 }
 0x353   : > { %v1997_v45 = vadd.f32 %v1981_v39, %v1961_v63  ;;  %v1854_v42 = vadd.f32 %v6576_v28, %v1818_v40  ;;  %v1803_v8 = vmul.f32 %v5047_v53, %v5436_v61  ;;  %v1960_v0 = vadd.f32 %v1944_v60, %v1924_v52  ;;  %v6581_v40 = vld [vmem:[#allocation82_spill] sm:$0xff] }
 0x354   : > { %v1609_v11 = vsel %vm1601_vm3, %v6575_v36, %v6574_v38  ;;  %v1875_v51 = vmul.f32 %v5059_v58, %v1671_v1  ;;  %v1876_v19 = vmul.f32 %v5059_v58, %v1610_v46  ;;  %v1946_v47 = vmul.f32 %v5124_v44, %v5438_v10  ;;  %v6582_v36 = vld [vmem:[#allocation64_spill] sm:$0xff] }
 0x355   : > { %v1673_v55 = vsel %vm5718_vm9, %v1609_v11, 0.0  ;;  %v1890_v37 = vadd.f32 %v1874_v13, %v1854_v42  ;;  %v1982_v39 = vmul.f32 %v5638_v2, %v1610_v46  ;;  %v1819_v15 = vadd.f32 %v1803_v8, %v1783_v9 }
 0x356   : > { %v1771_v43 = vmul.f32 %v5041_v49, %v1673_v55  ;;  %v1996_v48 = vadd.f32 %v1980_v14, %v1960_v0  ;;  %v1911_v61 = vmul.f32 %v5117_v30, %v6578_v26  ;;  %v6579_v1 = vrot.slane %v5523_v29, 1  ;;  %v6586_v0 = vld [vmem:[#allocation86_spill] sm:$0xff] }
 0x357   : > { %v6580_v60 = vmov %v6574_v38  ;;  %v1926_v63 = vadd.f32 %v1910_v41, %v1890_v37  ;;  %v1855_v10 = vadd.f32 %v6581_v40, %v1819_v15  ;;  %v1804_v9 = vmul.f32 %v5047_v53, %v6573_v34 }
 0x358   : > { %v5798_v57 = vadd.f32 %v1771_v43, %v6577_v12  ;;  %v1608_v13 = vsel %vm1601_vm3, %v6580_v60, %v6579_v1  ;;  %v2019_v14 = vadd.f32 %v5705_v5, %v1996_v48  ;;  %v2020_v52 = vadd.f32 %v5705_v5, %v1997_v45  ;;  %v6593_v12 = vld [vmem:[#allocation85_spill] sm:$0xff] }
 0x359   : > { %v1772_v46 = vmul.f32 %v5041_v49, %v1608_v13  ;;  %v1877_v54 = vmul.f32 %v5059_v58, %v1673_v55  ;;  %v1947_v38 = vmul.f32 %v5124_v44, %v5474_v7  ;;  %v6583_v11 = vand.u32 15, %v6582_v36 }
 0x35a   : > { %v1962_v28 = vadd.f32 %v1946_v47, %v1926_v63  ;;  %v1891_v42 = vadd.f32 %v1875_v51, %v1855_v10  ;;  %v1820_v34 = vadd.f32 %v1804_v9, %v1784_v33  ;;  %3149 = vmatprep.mubr.f32.mxu0 %v2019_v14  ;;  %v1983_v45 = vmul.f32 %v5638_v2, %v1673_v55  ;;  %v6589_v47 = vld [vmem:[#allocation61_spill] sm:$0xff] }
 0x35b   : > { %vm5819_vm11 = vcmp.lt.s32.totalorder %v6583_v11, 15  ;;  %v5824_v8 = vadd.f32 %v1772_v46, %v5559_v22  ;;  %v1912_v43 = vmul.f32 %v5117_v30, %v6586_v0  ;;  %v6587_v7 = vrot.slane %v5541_v17, 1  ;;  %3150 = vmatmul.mubr.f32.gmra.mrb[36].mxu0 %v2020_v52  ;;  %v6594_v52 = vld [vmem:[#allocation87_spill] sm:$0xff] }
 0x35c   : > { %v6588_v37 = vmov %v6579_v1  ;;  %v1805_v51 = vmul.f32 %v5047_v53, %v6578_v26  ;;  %v6590_v22 = vand.u32 15, %v6589_v47  ;;  %v1998_v55 = vadd.f32 %v1982_v39, %v1962_v28 }
 0x35d   : > { %v1607_v15 = vsel %vm1601_vm3, %v6588_v37, %v6587_v7  ;;  %v1927_v48 = vadd.f32 %v1911_v61, %v1891_v42  ;;  %v1856_v1 = vadd.f32 %v6593_v12, %v1820_v34  ;;  %v1878_v63 = vmul.f32 %v5059_v58, %v1608_v13 }
 0x35e   : > { %vm5839_vm12 = vcmp.gt.s32.totalorder %v6590_v22, 0  ;;  %v1675_v60 = vsel %vm5769_vm10, %v1607_v15, 0.0  ;;  %v1948_v40 = vmul.f32 %v5124_v44, %v5509_v35  ;;  %v1821_v10 = vadd.f32 %v1805_v51, %v1785_v4 }
 0x35f   : > { %v1773_v26 = vmul.f32 %v5041_v49, %v1675_v60  ;;  %v2021_v46 = vadd.f32 %v5705_v5, %v1998_v55  ;;  %v1963_v9 = vadd.f32 %v1947_v38, %v1927_v48  ;;  %v1892_v14 = vadd.f32 %v1876_v19, %v1856_v1  ;;  %v6601_v48 = vld [vmem:[#allocation65_spill] sm:$0xff] }
 0x360   : > { %v1913_v39 = vmul.f32 %v5117_v30, %v6594_v52  ;;  %v1857_v36 = vadd.f32 %v6595_v50, %v1821_v10  ;;  %v6596_v11 = vrot.slane %v5573_v23, 1  ;;  %v6597_v28 = vmov %v6587_v7 }
 0x361   : > { %v5854_v61 = vadd.f32 %v1773_v26, %v5567_v32  ;;  %v1806_v4 = vmul.f32 %v5047_v53, %v6586_v0  ;;  %3152 = vmatprep.mubr.f32.mxu0 %v2021_v46  ;;  %v1999_v19 = vadd.f32 %v1983_v45, %v1963_v9  ;;  %v1928_v38 = vadd.f32 %v1912_v43, %v1892_v14  ;;  %v6605_v46 = vld [vmem:[#allocation68_spill] sm:$0xff] }
 0x362   : > { %v1606_v35 = vsel %vm1601_vm3, %v6597_v28, %v6596_v11  ;;  %v1984_v42 = vmul.f32 %v5638_v2, %v1608_v13  ;;  %v1893_v34 = vadd.f32 %v1877_v54, %v1857_v36  ;;  %v1949_v7 = vmul.f32 %v5124_v44, %v5523_v29  ;;  %v6598_v13 = vld [vmem:[#allocation90_spill] sm:$0xff] }
 0x363   : > { %v1774_v32 = vmul.f32 %v5041_v49, %v1606_v35  ;;  %v1985_v37 = vmul.f32 %v5638_v2, %v1675_v60  ;;  %v1822_v15 = vadd.f32 %v1806_v4, %v5776_v59  ;;  %v2022_v51 = vadd.f32 %v5705_v5, %v1999_v19 }
 0x364   : > { %v1964_v47 = vadd.f32 %v1948_v40, %v1928_v38  ;;  %v1914_v45 = vmul.f32 %v5117_v30, %v5571_v24  ;;  %v1929_v43 = vadd.f32 %v1913_v39, %v1893_v34  ;;  %v6599_v54 = vrot.slane %v5608_v6, 1 }
 0x365   : > { %v1790_v0 = vadd.f32 %v1774_v32, %v5586_v27  ;;  %v1858_v22 = vadd.f32 %v6598_v13, %v1822_v15  ;;  %v6600_v55 = vmov %v6596_v11  ;;  %v1807_v59 = vmul.f32 %v5047_v53, %v6594_v52  ;;  %3153 = vmatmul.mubr.f32.gmra.mrb[38].mxu0 %v2022_v51  ;;  %v6613_v51 = vld [vmem:[#allocation67_spill] sm:$0xff]  ;;  %v2219_v27 = vld [vmem:[#allocation17 + $0x20] sm:$0xff] }
 0x366   : > { %v1605_v29 = vsel %vm1601_vm3, %v6600_v55, %v6599_v54  ;;  %v6602_v12 = vand.u32 15, %v6601_v48  ;;  %v2000_v1 = vadd.f32 %v1984_v42, %v1964_v47  ;;  %v1879_v40 = vmul.f32 %v5059_v58, %v1675_v60 }
 0x367   : > { %v1950_v26 = vmul.f32 %v5124_v44, %v5541_v17  ;;  %v1677_v10 = vsel %vm5819_vm11, %v1605_v29, 0.0  ;;  %v6606_v9 = vand.u32 15, %v6605_v46  ;;  %v1965_v52 = vadd.f32 %v1949_v7, %v1929_v43 }
 0x368   : > { %vm5886_vm13 = vcmp.lt.s32.totalorder %v6602_v12, 15  ;;  %v1894_v39 = vadd.f32 %v1878_v63, %v1858_v22  ;;  %v1775_v50 = vmul.f32 %v5041_v49, %v1677_v10  ;;  %v1823_v36 = vadd.f32 %v1807_v59, %v5798_v57  ;;  %v6617_v22 = vld [vmem:[#allocation91_spill] sm:$0xff] }
 0x369   : > { %vm5897_vm14 = vcmp.gt.s32.totalorder %v6606_v9, 0  ;;  %v2023_v60 = vadd.f32 %v5705_v5, %v2000_v1  ;;  %v1986_v11 = vmul.f32 %v5638_v2, %v1606_v35  ;;  %v1915_v17 = vmul.f32 %v5117_v30, %v5590_v3 }
 0x36a   : > { %v1557_v41 = vsel %vm5839_vm12, %v5635_v25, 0.0  ;;  %v2001_v28 = vadd.f32 %v1985_v37, %v1965_v52  ;;  %v1930_v4 = vadd.f32 %v1914_v45, %v1894_v39  ;;  %v1791_v19 = vadd.f32 %v1775_v50, %v5620_v21  ;;  %v6621_v39 = vld [vmem:[#allocation92_spill] sm:$0xff] }
 0x36b   : > { %v1859_v63 = vadd.f32 %v5612_v62, %v1823_v36  ;;  %3155 = vmatprep.mubr.f32.mxu0 %v2023_v60  ;;  %v1880_v49 = vmul.f32 %v5059_v58, %v1606_v35  ;;  %v1951_v57 = vmul.f32 %v5124_v44, %v5573_v23  ;;  %v6609_v38 = vmov %v6599_v54  ;;  %v6622_v60 = vld [vmem:[#allocation95_spill] sm:$0xff] }
 0x36c   : > { %v1604_v33 = vsel %vm1601_vm3, %v6609_v38, %v1598_v20  ;;  %v1808_v25 = vmul.f32 %v5047_v53, %v5571_v24  ;;  %v2024_v21 = vadd.f32 %v5705_v5, %v2001_v28  ;;  %v1966_v42 = vadd.f32 %v1950_v26, %v1930_v4  ;;  %v6624_v28 = vld [vmem:[#allocation54_spill] sm:$0xff]  ;;  %v2226_v38 = vld [vmem:[#allocation17 + $0x58] sm:$0xff] }
 0x36d   : > { %v1881_v62 = vmul.f32 %v5059_v58, %v1677_v10  ;;  %v1895_v32 = vadd.f32 %v1879_v40, %v1859_v63  ;;  %v1810_v35 = vmul.f32 %v5047_v53, %v1557_v41  ;;  %v6610_v34 = vrot.slane %v5622_v56, 7 }
 0x36e   : > { %v1824_v23 = vadd.f32 %v1808_v25, %v5824_v8  ;;  %v6611_v7 = vrot.slane %v5608_v6, 7  ;;  %v6612_v15 = vrot.slane %v5365_v18, 1  ;;  %v6614_v47 = vand.u32 15, %v6613_v51  ;;  %3156 = vmatmul.mubr.f32.gmra.mrb[40].mxu0 %v2024_v21 }
 0x36f   : > { %v2002_v8 = vadd.f32 %v1986_v11, %v1966_v42  ;;  %v1931_v43 = vadd.f32 %v1915_v17, %v1895_v32  ;;  %v1987_v6 = vmul.f32 %v5638_v2, %v1677_v10  ;;  %v1809_v13 = vmul.f32 %v5047_v53, %v5590_v3  ;;  %v6618_v3 = vld [vmem:[#allocation70_spill] sm:$0xff]  ;;  %v6623_v17 = vld [vmem:[#allocation93_spill] sm:$0xff] }
 0x370   : > { %v1483_v37 = vsel %vm1480_vm2, %v6611_v7, %v6610_v34  ;;  %v1603_v24 = vsel %vm1601_vm3, %v1598_v20, %v6612_v15  ;;  %vm5941_vm15 = vcmp.lt.s32.totalorder %v6614_v47, 15  ;;  %v1860_v54 = vadd.f32 %v6617_v22, %v1824_v23  ;;  %v6627_v42 = vld [vmem:[#allocation94_spill] sm:$0xff]  ;;  %v6628_v47 = vld [vmem:[#allocation72_spill] sm:$0xff] }
 0x371   : > { %v1882_v55 = vmul.f32 %v5059_v58, %v1604_v33  ;;  %v1916_v20 = vmul.f32 %v5117_v30, %v1557_v41  ;;  %v1811_v29 = vmul.f32 %v5047_v53, %v1483_v37  ;;  %v2025_v59 = vadd.f32 %v5705_v5, %v2002_v8  ;;  %v2223_v34 = vld [vmem:[#allocation17 + $0x40] sm:$0xff] }
 0x372   : > { %v1967_v48 = vadd.f32 %v1951_v57, %v1931_v43  ;;  %v1988_v12 = vmul.f32 %v5638_v2, %v1604_v33  ;;  %v1825_v1 = vadd.f32 %v1809_v13, %v5854_v61  ;;  %v1896_v40 = vadd.f32 %v1880_v49, %v1860_v54  ;;  %v2221_v49 = vld [vmem:[#allocation17 + $0x30] sm:$0xff]  ;;  %v2224_v57 = vld [vmem:[#allocation17 + $0x48] sm:$0xff] }
 0x373   : > { %v1679_v26 = vsel %vm5886_vm13, %v1603_v24, 0.0  ;;  %v6619_v10 = vrot.slane %v6618_v3, 1  ;;  %v6620_v46 = vmov %v6612_v15  ;;  %v1826_v52 = vadd.f32 %v1810_v35, %v1790_v0  ;;  %3158 = vmatprep.mubr.f32.mxu0 %v2025_v59  ;;  %v2230_v24 = vld [vmem:[#allocation17 + $0x78] sm:$0xff]  ;;  %v6629_v54 = vld [vmem:[#allocation75_spill] sm:$0xff]  ;;  %v2227_v59 = vld [vmem:[#allocation17 + $0x60] sm:$0xff] }
 0x374   : > { %v2003_v53 = vadd.f32 %v1987_v6, %v1967_v48  ;;  %v1861_v50 = vadd.f32 %v6621_v39, %v1825_v1  ;;  %v1917_v36 = vmul.f32 %v5117_v30, %v1483_v37  ;;  %v1559_v61 = vsel %vm5897_vm14, %v6622_v60, 0.0  ;;  %v2229_v48 = vld [vmem:[#allocation17 + $0x70] sm:$0xff]  ;;  %v2232_v1 = vld [vmem:[#allocation17 + $0x88] sm:$0xff]  ;;  %v2231_v39 = vld [vmem:[#allocation17 + $0x80] sm:$0xff] }
 0x375   : > { %v1602_v9 = vsel %vm1601_vm3, %v6620_v46, %v6619_v10  ;;  %v1932_v11 = vadd.f32 %v1916_v20, %v1896_v40  ;;  %v1862_v41 = vadd.f32 %v6623_v17, %v1826_v52  ;;  %v6625_v18 = vrot.slane %v6624_v28, 1  ;;  %v2238_v60 = vld [vmem:[#allocation17 + $0xb8] sm:$0xff]  ;;  %v2237_v17 = vld [vmem:[#allocation17 + $0xb0] sm:$0xff] }
 0x376   : > { %v6626_v4 = vmov %v6619_v10  ;;  %v1827_v63 = vadd.f32 %v1811_v29, %v1791_v19  ;;  %v1953_v33 = vmul.f32 %v5124_v44, %v5622_v56  ;;  %v2026_v14 = vadd.f32 %v5705_v5, %v2003_v53  ;;  %v2225_v19 = vld [vmem:[#allocation17 + $0x50] sm:$0xff]  ;;  %v2228_v56 = vld [vmem:[#allocation17 + $0x68] sm:$0xff]  ;;  %v2242_v28 = vld [vmem:[#allocation17 + $0xd8] sm:$0xff] }
 0x377   : > { %v1621_v0 = vsel %vm1601_vm3, %v6626_v4, %v6625_v18  ;;  %v1883_v25 = vmul.f32 %v5059_v58, %v1679_v26  ;;  %v1897_v21 = vadd.f32 %v1881_v62, %v1861_v50  ;;  %v1968_v32 = vadd.f32 %v6627_v42, %v1932_v11  ;;  %v2233_v50 = vld [vmem:[#allocation17 + $0x90] sm:$0xff]  ;;  %v2235_v11 = vld [vmem:[#allocation17 + $0xa0] sm:$0xff] }
 0x378   : > { %v1898_v35 = vadd.f32 %v1882_v55, %v1862_v41  ;;  %v1918_v23 = vmul.f32 %v5117_v30, %v1559_v61  ;;  %v1863_v31 = vadd.f32 %v5727_v16, %v1827_v63  ;;  %3159 = vmatmul.mubr.f32.gmra.mrb[42].mxu0 %v2026_v14  ;;  %v1989_v37 = vmul.f32 %v5638_v2, %v1679_v26  ;;  %v6630_v26 = vld [vmem:[#allocation81_spill] sm:$0xff]  ;;  %v2240_v41 = vld [vmem:[#allocation17 + $0xc8] sm:$0xff]  ;;  %v2241_v63 = vld [vmem:[#allocation17 + $0xd0] sm:$0xff] }
 0x379   : > { %v1933_v7 = vadd.f32 %v1917_v36, %v1897_v21  ;;  %v3357_v15 = vpack.c.bf16 %v2221_v49, %v2219_v27  ;;  %v3359_v44 = vpack.c.bf16 %v2226_v38, %v2224_v57  ;;  %v2004_v51 = vadd.f32 %v1988_v12, %v1968_v32  ;;  %v2236_v36 = vld [vmem:[#allocation17 + $0xa8] sm:$0xff]  ;;  %v2246_v57 = vld [vmem:[#allocation17 + $0xf8] sm:$0xff]  ;;  %v2243_v38 = vld [vmem:[#allocation17 + $0xe0] sm:$0xff] }
 0x37a   : > { %v1934_v58 = vadd.f32 %v1918_v23, %v1898_v35  ;;  %v1899_v62 = vadd.f32 %v1883_v25, %v1863_v31  ;;  %v1919_v8 = vmul.f32 %v5117_v30, %v6628_v47  ;;  %v1990_v6 = vmul.f32 %v5638_v2, %v1602_v9  ;;  %v2234_v30 = vld [vmem:[#allocation17 + $0x98] sm:$0xff]  ;;  %v2245_v14 = vld [vmem:[#allocation17 + $0xf0] sm:$0xff]  ;;  %v2532_v21 = vld [vmem:[#allocation20] sm:$0xff] }
 0x37b   : > { %v1969_v43 = vadd.f32 %v1953_v33, %v1933_v7  ;;  %v1681_v16 = vsel %vm5941_vm15, %v1621_v0, 0.0  ;;  %3358 = vmatpush1.bf16.msra.mxu1 %v3357_v15  ;;  %v3361_v13 = vpack.c.bf16 %v2225_v19, %v2223_v34  ;;  %v2027_v22 = vadd.f32 %v5705_v5, %v2004_v51  ;;  %v2239_v0 = vld [vmem:[#allocation17 + $0xc0] sm:$0xff]  ;;  %v2533_v42 = vld [vmem:[#allocation20 + $0x8] sm:$0xff]  ;;  %v2534_v32 = vld [vmem:[#allocation20 + $0x10] sm:$0xff] }
 0x37c   : > { %v1970_v55 = vadd.f32 %v6629_v54, %v1934_v58  ;;  %v1935_v20 = vadd.f32 %v1919_v8, %v1899_v62  ;;  %3360 = vmatprep.subr.bf16.mxu1 %v3359_v44  ;;  %v3363_v29 = vpack.c.bf16 %v2230_v24, %v2228_v56  ;;  %v1991_v45 = vmul.f32 %v5638_v2, %v1681_v16  ;;  %v2535_v23 = vld [vmem:[#allocation20 + $0x18] sm:$0xff]  ;;  %v2536_v34 = vld [vmem:[#allocation20 + $0x20] sm:$0xff]  ;;  %v2537_v19 = vld [vmem:[#allocation20 + $0x28] sm:$0xff] }
 0x37d   : > { %v2005_v12 = vadd.f32 %v1989_v37, %v1969_v43  ;;  %3161 = vmatprep.mubr.f32.mxu0 %v2027_v22  ;;  %v3365_v46 = vpack.c.bf16 %v2229_v48, %v2227_v59  ;;  %v3367_v53 = vpack.c.bf16 %v2234_v30, %v2232_v1  ;;  %v3369_v27 = vpack.c.bf16 %v2233_v50, %v2231_v39  ;;  %v2538_v37 = vld [vmem:[#allocation20 + $0x30] sm:$0xff]  ;;  %v2539_v15 = vld [vmem:[#allocation20 + $0x38] sm:$0xff]  ;;  %v2540_v56 = vld [vmem:[#allocation20 + $0x40] sm:$0xff] }
 0x37e   : > { %v2006_v40 = vadd.f32 %v1990_v6, %v1970_v55  ;;  %v1971_v3 = vadd.f32 %v6630_v26, %v1935_v20  ;;  %v3371_v2 = vpack.c.bf16 %v2238_v60, %v2236_v36  ;;  %v3373_v18 = vpack.c.bf16 %v2237_v17, %v2235_v11  ;;  %v2541_v24 = vld [vmem:[#allocation20 + $0x48] sm:$0xff]  ;;  %v5998_v8 = vld [vmem:[#allocation16] ss:$0 sm:$0xff]  ;;  %v6633_v54 = vld [vmem:[#allocation52_spill] sm:$0xff] }
 0x37f   : > { %v2028_v10 = vadd.f32 %v5705_v5, %v2005_v12  ;;  %3362 = vmatpush1.bf16.msra.mxu1 %v3361_v13  ;;  %v3375_v4 = vpack.c.bf16 %v2242_v28, %v2240_v41  ;;  %v3377_v49 = vpack.c.bf16 %v2241_v63, %v2239_v0  ;;  %v3381_v25 = vpack.c.bf16 %v2245_v14, %v2243_v38  ;;  %v3659_v58 = vld [vmem:[#allocation10] sm:$0x3]  ;;  %v6631_v62 = vld [vmem:[#allocation51_spill] sm:$0xff]  ;;  %v6632_v6 = vld [vmem:[#allocation53_spill] sm:$0xff] }
 0x380   : > { %v2029_v9 = vadd.f32 %v5705_v5, %v2006_v40  ;;  %v2007_v52 = vadd.f32 %v1991_v45, %v1971_v3  ;;  %3364 = vmatprep.subr.bf16.mxu1 %v3363_v29  ;;  %v3383_v35 = vpack.c.bf16 %v2533_v42, %v2532_v21  ;;  %v3387_v31 = vpack.c.bf16 %v2535_v23, %v2534_v32  ;;  %v6634_v12 = vld [vmem:[#allocation56_spill] sm:$0xff]  ;;  %v6635_v26 = vld [vmem:[#allocation55_spill] sm:$0xff]  ;;  %v6638_v60 = vld [vmem:[#allocation58_spill] sm:$0xff] }
 0x381   : > { %3162 = vmatmul.mubr.f32.gmra.mrb[44].mxu0 %v2028_v10  ;;  %v3391_v7 = vpack.c.bf16 %v2537_v19, %v2536_v34  ;;  %v3395_v44 = vpack.c.bf16 %v2539_v15, %v2538_v37  ;;  %v3399_v51 = vpack.c.bf16 %v2541_v24, %v2540_v56  ;;  %v5996_v47 = vrot.slane %v3659_v58, %v6631_v62  ;;  %v6639_v41 = vld [vmem:[#allocation62_spill] sm:$0xff]  ;;  %v6640_v0 = vld [vmem:[#allocation60_spill] sm:$0xff]  ;;  %v6642_v42 = vld [vmem:[#allocation63_spill] sm:$0xff] }
 0x382   : > { %3164 = vmatprep.mubr.f32.mxu0 %v2029_v9  ;;  %v2030_v61 = vadd.f32 %v5705_v5, %v2007_v52  ;;  %v2244_v5 = vld [vmem:[#allocation17 + $0xe8] sm:$0xff]  ;;  %3384 = vmatprep.subr.bf16.mxu0 %v3383_v35 }
 0x383   : > { %3366 = vmatpush1.bf16.msra.mxu1 %v3365_v46  ;;  %v3379_v33 = vpack.c.bf16 %v2246_v57, %v2244_v5  ;;  %3386 = vmatpush3.bf16.msra.mxu0 %v3383_v35  ;;  %v867_v16 = vadd.f32 %v6632_v6, %v5996_v47  ;;  %v861_v55 = vadd.f32 %v6633_v54, %v5996_v47  ;;  %v6636_v46 = vmov 0.0   ;;  %v6643_v19 = vld [vmem:[#allocation71_spill] sm:$0xff]  ;;  %v6645_v6 = vld [vmem:[#allocation78_spill] sm:$0xff]  ;;  %v6646_v54 = vld [vmem:[#allocation73_spill] sm:$0xff] }
 0x384   : > { %3368 = vmatprep.subr.bf16.mxu1 %v3367_v53  ;;  %3388 = vmatprep.subr.bf16.mxu0 %v3387_v31  ;;  %v879_v1 = vadd.f32 %v6634_v12, %v5996_v47  ;;  %v873_v3 = vadd.f32 %v6635_v26, %v5996_v47  ;;  %v6637_v53 = vld [vmem:[#allocation59_spill] sm:$0xff]  ;;  %v903_v28 = vadd.f32 %v6639_v41, %v5996_v47  ;;  %v2547_v41 = vld [vmem:[#allocation20 + $0x78] sm:$0xff] }
 0x385   : > { %3165 = vmatmul.mubr.f32.gmra.mrb[46].mxu0 %v2030_v61  ;;  %v891_v39 = vadd.f32 %v6637_v53, %v5996_v47  ;;  %v885_v61 = vadd.f32 %v6638_v60, %v5996_v47  ;;  %v897_v63 = vadd.f32 %v6640_v0, %v5996_v47  ;;  %v909_v32 = vadd.f32 %v6642_v42, %v5996_v47  ;;  %v2544_v60 = vld [vmem:[#allocation20 + $0x60] sm:$0xff] }
 0x387   : > { %3370 = vmatpush1.bf16.msra.mxu1 %v3369_v27  ;;  %3390 = vmatpush3.bf16.msra.mxu0 %v3387_v31 }
 0x388   : > { %3372 = vmatprep.subr.bf16.mxu1 %v3371_v2  ;;  %3392 = vmatprep.subr.bf16.mxu0 %v3391_v7 }
 0x38b   : > { %3374 = vmatpush1.bf16.msra.mxu1 %v3373_v18  ;;  %3394 = vmatpush3.bf16.msra.mxu0 %v3391_v7  ;;  %v927_v7 = vadd.f32 %v6643_v19, %v5996_v47 }
 0x38c   : > { %3376 = vmatprep.subr.bf16.mxu1 %v3375_v4  ;;  %3396 = vmatprep.subr.bf16.mxu0 %v3395_v44 }
 0x38f   : > { %3378 = vmatpush1.bf16.msra.mxu1 %v3377_v49  ;;  %3398 = vmatpush3.bf16.msra.mxu0 %v3395_v44  ;;  %v6644_v44 = vld [vmem:[#allocation69_spill] sm:$0xff] }
 0x390   : > { %3380 = vmatprep.subr.bf16.mxu1 %v3379_v33  ;;  %3400 = vmatprep.subr.bf16.mxu0 %v3399_v51  ;;  %v6641_v33 = vld [vmem:[#allocation66_spill] sm:$0xff]  ;;  %v921_v56 = vadd.f32 %v6644_v44, %v5996_v47 }
 0x391   : > { %v915_v14 = vadd.f32 %v6641_v33, %v5996_v47 }
 0x393   : > { %3382 = vmatpush1.bf16.msra.mxu1 %v3381_v25  ;;  %3402 = vmatpush3.bf16.msra.mxu0 %v3399_v51 }
 0x41e   : > { %v3145_v43 = vpop.f32.mrb[32].mxu0 }
 0x41f   : > { %v2126_v13 = vadd.f32 %v3145_v43, %v5998_v8  ;;  %v2120_v22 = vpop.f32.mrb[33].mxu0 }
 0x420   : > { %v2121_v20 = vadd.f32 %v5998_v8, %v2120_v22 }
 0x421   : > { %v6006_v29 = vadd.f32 %v2126_v13, %v867_v16  ;;  %v939_v16 = vadd.f32 %v6645_v6, %v5996_v47 }
 0x422   : > { %v6008_v59 = vadd.f32 %v2121_v20, %v861_v55  ;;  %v3148_v48 = vpop.f32.mrb[34].mxu0  ;;  %v933_v55 = vadd.f32 %v6646_v54, %v5996_v47 }
 0x423   : > { %v2136_v30 = vadd.f32 %v3148_v48, %v5998_v8  ;;  %v2130_v40 = vpop.f32.mrb[35].mxu0 }
 0x424   : > { %v2131_v45 = vadd.f32 %v5998_v8, %v2130_v40  ;;  %2324 = vmatmul.mubr.f32.vlgmr.msra.gmra.mrb[8].mxu1 %v6008_v59 }
 0x425   : > { %v6017_v10 = vadd.f32 %v2136_v30, %v879_v1  ;;  %2329 = vmatprep.mubr.f32.mxu1 %v6636_v46  ;;  %v6647_v30 = vld [vmem:[#allocation88_spill] sm:$0xff] }
 0x426   : > { %v6020_v9 = vadd.f32 %v2131_v45, %v873_v3  ;;  %v951_v40 = vadd.f32 %v6647_v30, %v5996_v47  ;;  %v6648_v45 = vld [vmem:[#allocation83_spill] sm:$0xff] }
 0x428   : > { %2330 = vmatmul.mubr.f32.gmra.mrb[10].mxu1 %v6006_v29 }
 0x429   : > { %2335 = vmatprep.mubr.f32.mxu1 %v6636_v46 }
 0x42c   : > { %2336 = vmatmul.mubr.f32.gmra.mrb[12].mxu1 %v6020_v9 }
 0x42d   : > { %2341 = vmatprep.mubr.f32.mxu1 %v6636_v46 }
 0x42e   : > { %v3151_v52 = vpop.f32.mrb[36].mxu0 }
 0x42f   : > { %v2146_v50 = vadd.f32 %v3151_v52, %v5998_v8  ;;  %v2140_v36 = vpop.f32.mrb[37].mxu0  ;;  %v945_v52 = vadd.f32 %v6648_v45, %v5996_v47  ;;  %v2542_v47 = vld [vmem:[#allocation20 + $0x50] sm:$0xff] }
 0x430   : > { %v2141_v27 = vadd.f32 %v5998_v8, %v2140_v36  ;;  %2342 = vmatmul.mubr.f32.gmra.mrb[14].mxu1 %v6017_v10 }
 0x431   : > { %v6032_v2 = vadd.f32 %v2146_v50, %v891_v39  ;;  %2347 = vmatprep.mubr.f32.mxu1 %v6636_v46 }
 0x432   : > { %v6034_v11 = vadd.f32 %v2141_v27, %v885_v61  ;;  %v2545_v61 = vld [vmem:[#allocation20 + $0x68] sm:$0xff] }
 0x433   : > { %v3407_v27 = vpack.c.bf16 %v2545_v61, %v2544_v60 }
 0x434   : > { %2348 = vmatmul.mubr.f32.gmra.mrb[16].mxu1 %v6034_v11 }
 0x435   : > { %2353 = vmatprep.mubr.f32.mxu1 %v6636_v46 }
 0x438   : > { %v3154_v17 = vpop.f32.mrb[38].mxu0  ;;  %2354 = vmatmul.mubr.f32.gmra.mrb[18].mxu1 %v6032_v2 }
 0x439   : > { %v2156_v18 = vadd.f32 %v3154_v17, %v5998_v8  ;;  %v2150_v4 = vpop.f32.mrb[39].mxu0  ;;  %2359 = vmatprep.mubr.f32.mxu1 %v6636_v46  ;;  %v2546_v17 = vld [vmem:[#allocation20 + $0x70] sm:$0xff] }
 0x43a   : > { %v2151_v49 = vadd.f32 %v5998_v8, %v2150_v4  ;;  %v6649_v4 = vld [vmem:[#allocation50_spill] sm:$0xff] }
 0x43b   : > { %v6046_v5 = vadd.f32 %v2156_v18, %v903_v28  ;;  %v3411_v28 = vpack.c.bf16 %v2547_v41, %v2546_v17  ;;  %v2247_v18 = vld [vmem:[#allocation19] sm:$0x3] }
 0x43c   : > { %v6048_v57 = vadd.f32 %v2151_v49, %v897_v63  ;;  %v6115_v0 = vrot.slane %v2247_v18, %v6631_v62 }
 0x43e   : > { %2360 = vmatmul.mubr.f32.gmra.mrb[20].mxu1 %v6048_v57 }
 0x43f   : > { %2365 = vmatprep.mubr.f32.mxu1 %v6636_v46 }
 0x441   : > { %v3157_v38 = vpop.f32.mrb[40].mxu0 }
 0x442   : > { %v2166_v25 = vadd.f32 %v3157_v38, %v5998_v8  ;;  %v2160_v21 = vpop.f32.mrb[41].mxu0  ;;  %2366 = vmatmul.mubr.f32.gmra.mrb[22].mxu1 %v6046_v5 }
 0x443   : > { %v2161_v35 = vadd.f32 %v5998_v8, %v2160_v21  ;;  %2371 = vmatprep.mubr.f32.mxu1 %v6636_v46 }
 0x444   : > { %v6060_v23 = vadd.f32 %v2166_v25, %v915_v14 }
 0x445   : > { %v6062_v31 = vadd.f32 %v2161_v35, %v909_v32 }
 0x447   : > { %2372 = vmatmul.mubr.f32.gmra.mrb[24].mxu1 %v6062_v31 }
 0x448   : > { %2377 = vmatprep.mubr.f32.mxu1 %v6636_v46 }
 0x44b   : > { %v3160_v34 = vpop.f32.mrb[42].mxu0  ;;  %2378 = vmatmul.mubr.f32.gmra.mrb[26].mxu1 %v6060_v23 }
 0x44c   : > { %v2176_v37 = vadd.f32 %v3160_v34, %v5998_v8  ;;  %v2170_v15 = vpop.f32.mrb[43].mxu0  ;;  %2383 = vmatprep.mubr.f32.mxu1 %v6636_v46 }
 0x44d   : > { %v2171_v24 = vadd.f32 %v5998_v8, %v2170_v15 }
 0x44e   : > { %v6074_v51 = vadd.f32 %v2176_v37, %v927_v7 }
 0x44f   : > { %v6076_v58 = vadd.f32 %v2171_v24, %v921_v56 }
 0x451   : > { %2384 = vmatmul.mubr.f32.gmra.mrb[28].mxu1 %v6076_v58 }
 0x452   : > { %2389 = vmatprep.mubr.f32.mxu1 %v6636_v46 }
 0x454   : > { %v3163_v43 = vpop.f32.mrb[44].mxu0 }
 0x455   : > { %v2186_v13 = vadd.f32 %v3163_v43, %v5998_v8  ;;  %v2180_v22 = vpop.f32.mrb[45].mxu0  ;;  %2390 = vmatmul.mubr.f32.gmra.mrb[30].mxu1 %v6074_v51 }
 0x456   : > { %v2181_v20 = vadd.f32 %v5998_v8, %v2180_v22  ;;  %2395 = vmatprep.mubr.f32.mxu1 %v6636_v46 }
 0x457   : > { %v6088_v48 = vadd.f32 %v2186_v13, %v939_v16 }
 0x458   : > { %v6090_v12 = vadd.f32 %v2181_v20, %v933_v55  ;;  %v3166_v1 = vpop.f32.mrb[46].mxu0 }
 0x459   : > { %v2196_v26 = vadd.f32 %v3166_v1, %v5998_v8  ;;  %v2190_v3 = vpop.f32.mrb[47].mxu0 }
 0x45a   : > { %v2191_v53 = vadd.f32 %v5998_v8, %v2190_v3  ;;  %2396 = vmatmul.mubr.f32.gmra.mrb[32].mxu1 %v6090_v12  ;;  %v2543_v8 = vld [vmem:[#allocation20 + $0x58] sm:$0xff] }
 0x45b   : > { %v6100_v39 = vadd.f32 %v2196_v26, %v951_v40  ;;  %2401 = vmatprep.mubr.f32.mxu1 %v6636_v46  ;;  %v3403_v36 = vpack.c.bf16 %v2543_v8, %v2542_v47 }
 0x45c   : > { %v6102_v50 = vadd.f32 %v2191_v53, %v945_v52 }
 0x45d   : > { %3404 = vmatprep.subr.bf16.mxu0 %v3403_v36 }
 0x45e   : > { %2402 = vmatmul.mubr.f32.gmra.mrb[34].mxu1 %v6088_v48  ;;  %3406 = vmatpush3.bf16.msra.mxu0 %v3403_v36 }
 0x45f   : > { %2407 = vmatprep.mubr.f32.mxu1 %v6636_v46  ;;  %3408 = vmatprep.subr.bf16.mxu0 %v3407_v27 }
 0x462   : > { %2408 = vmatmul.mubr.f32.gmra.mrb[36].mxu1 %v6102_v50  ;;  %3410 = vmatpush3.bf16.msra.mxu0 %v3407_v27 }
 0x463   : > { %2413 = vmatprep.mubr.f32.mxu1 %v6636_v46  ;;  %3412 = vmatprep.subr.bf16.mxu0 %v3411_v28  ;;  %v6112_v46 = vrot.slane %v2247_v18, %v6649_v4 }
 0x466   : > { %2414 = vmatmul.mubr.f32.gmra.mrb[38].mxu1 %v6100_v39  ;;  %3414 = vmatpush3.bf16.msra.mxu0 %v3411_v28 }
 0x4f7   : > { %v2325_v63 = vpop.f32.mrb[8].mxu1 }
 0x4f8   : > { %v2326_v49 = vadd.f32 %v2325_v63, %v6112_v46  ;;  %v2327_v38 = vpop.f32.mrb[9].mxu1 }
 0x4f9   : > { %v2328_v33 = vadd.f32 %v2327_v38, %v6115_v0 }
 0x4fa   : > { %vm2420_vm2 = vcmp.ge.f32.partialorder %v2326_v49, 0.0  ;;  %v2436_v14 = vmul.f32 0.1, %v2326_v49 }
 0x4fb   : > { %vm2468_vm3 = vcmp.ge.f32.partialorder %v2328_v33, 0.0  ;;  %v2484_v25 = vmul.f32 0.01, %v2328_v33  ;;  %v2331_v21 = vpop.f32.mrb[10].mxu1 }
 0x4fc   : > { %v2332_v42 = vadd.f32 %v2331_v21, %v6112_v46  ;;  %v2333_v32 = vpop.f32.mrb[11].mxu1  ;;  %v2452_v35 = vsel %vm2420_vm2, %v2326_v49, %v2436_v14 }
 0x4fd   : > { %v2334_v34 = vadd.f32 %v2333_v32, %v6115_v0  ;;  %v2500_v19 = vsel %vm2468_vm3, %v2328_v33, %v2484_v25 }
 0x4fe   : > { %vm2421_vm0 = vcmp.ge.f32.partialorder %v2332_v42, 0.0  ;;  %v2437_v62 = vmul.f32 0.1, %v2332_v42  ;;  %v2516_v7 = vadd.f32 %v2500_v19, %v2452_v35 }
 0x4ff   : > { %vm2469_vm1 = vcmp.ge.f32.partialorder %v2334_v34, 0.0  ;;  %v2485_v37 = vmul.f32 0.01, %v2334_v34  ;;  %v2337_v15 = vpop.f32.mrb[12].mxu1 }
 0x500   : > { %v2453_v44 = vsel %vm2421_vm0, %v2332_v42, %v2437_v62  ;;  %v2338_v56 = vadd.f32 %v2337_v15, %v6112_v46  ;;  %v2339_v24 = vpop.f32.mrb[13].mxu1  ;;  %3199 = vmatprep.mubr.f32.mxu0 %v2516_v7 }
 0x501   : > { %v2501_v43 = vsel %vm2469_vm1, %v2334_v34, %v2485_v37  ;;  %v2340_v6 = vadd.f32 %v2339_v24, %v6115_v0 }
 0x502   : > { %v2517_v16 = vadd.f32 %v2501_v43, %v2453_v44  ;;  %vm2422_vm4 = vcmp.ge.f32.partialorder %v2338_v56, 0.0  ;;  %v2438_v13 = vmul.f32 0.1, %v2338_v56 }
 0x503   : > { %vm2470_vm5 = vcmp.ge.f32.partialorder %v2340_v6, 0.0  ;;  %v2486_v22 = vmul.f32 0.01, %v2340_v6  ;;  %v2343_v54 = vpop.f32.mrb[14].mxu1 }
 0x504   : > { %v2344_v55 = vadd.f32 %v2343_v54, %v6112_v46  ;;  %v2345_v20 = vpop.f32.mrb[15].mxu1  ;;  %3200 = vmatmul.mubr.f32.vlgmr.msra.gmra.mrb[48].mxu0 %v2517_v16  ;;  %v2454_v1 = vsel %vm2422_vm4, %v2338_v56, %v2438_v13 }
 0x505   : > { %v2346_v30 = vadd.f32 %v2345_v20, %v6115_v0  ;;  %v2502_v40 = vsel %vm2470_vm5, %v2340_v6, %v2486_v22 }
 0x506   : > { %vm2423_vm6 = vcmp.ge.f32.partialorder %v2344_v55, 0.0  ;;  %v2439_v26 = vmul.f32 0.1, %v2344_v55  ;;  %v2518_v3 = vadd.f32 %v2502_v40, %v2454_v1 }
 0x507   : > { %vm2471_vm7 = vcmp.ge.f32.partialorder %v2346_v30, 0.0  ;;  %v2487_v45 = vmul.f32 0.01, %v2346_v30  ;;  %v2349_v52 = vpop.f32.mrb[16].mxu1 }
 0x508   : > { %v2350_v53 = vadd.f32 %v2349_v52, %v6112_v46  ;;  %v2351_v47 = vpop.f32.mrb[17].mxu1  ;;  %3202 = vmatprep.mubr.f32.mxu0 %v2518_v3  ;;  %v2455_v8 = vsel %vm2423_vm6, %v2344_v55, %v2439_v26 }
 0x509   : > { %v2352_v36 = vadd.f32 %v2351_v47, %v6115_v0  ;;  %v2503_v60 = vsel %vm2471_vm7, %v2346_v30, %v2487_v45 }
 0x50a   : > { %vm2424_vm8 = vcmp.ge.f32.partialorder %v2350_v53, 0.0  ;;  %v2440_v61 = vmul.f32 0.1, %v2350_v53  ;;  %v2519_v27 = vadd.f32 %v2503_v60, %v2455_v8 }
 0x50b   : > { %vm2472_vm9 = vcmp.ge.f32.partialorder %v2352_v36, 0.0  ;;  %v2488_v17 = vmul.f32 0.01, %v2352_v36  ;;  %v2355_v41 = vpop.f32.mrb[18].mxu1 }
 0x50c   : > { %v2356_v28 = vadd.f32 %v2355_v41, %v6112_v46  ;;  %v2357_v18 = vpop.f32.mrb[19].mxu1  ;;  %3203 = vmatmul.mubr.f32.gmra.mrb[50].mxu0 %v2519_v27  ;;  %v2456_v4 = vsel %vm2424_vm8, %v2350_v53, %v2440_v61 }
 0x50d   : > { %v2358_v63 = vadd.f32 %v2357_v18, %v6115_v0  ;;  %v2504_v49 = vsel %vm2472_vm9, %v2352_v36, %v2488_v17 }
 0x50e   : > { %vm2425_vm10 = vcmp.ge.f32.partialorder %v2356_v28, 0.0  ;;  %v2441_v38 = vmul.f32 0.1, %v2356_v28  ;;  %v2520_v33 = vadd.f32 %v2504_v49, %v2456_v4 }
 0x50f   : > { %vm2473_vm11 = vcmp.ge.f32.partialorder %v2358_v63, 0.0  ;;  %v2489_v14 = vmul.f32 0.01, %v2358_v63 }
 0x510   : > { %3205 = vmatprep.mubr.f32.mxu0 %v2520_v33  ;;  %v2457_v32 = vsel %vm2425_vm10, %v2356_v28, %v2441_v38 }
 0x511   : > { %v2361_v25 = vpop.f32.mrb[20].mxu1  ;;  %v2505_v34 = vsel %vm2473_vm11, %v2358_v63, %v2489_v14 }
 0x512   : > { %v2362_v21 = vadd.f32 %v2361_v25, %v6112_v46  ;;  %v2363_v42 = vpop.f32.mrb[21].mxu1  ;;  %v2521_v62 = vadd.f32 %v2505_v34, %v2457_v32 }
 0x513   : > { %v2364_v35 = vadd.f32 %v2363_v42, %v6115_v0 }
 0x514   : > { %vm2426_vm12 = vcmp.ge.f32.partialorder %v2362_v21, 0.0  ;;  %v2442_v19 = vmul.f32 0.1, %v2362_v21  ;;  %3206 = vmatmul.mubr.f32.gmra.mrb[52].mxu0 %v2521_v62 }
 0x515   : > { %vm2474_vm13 = vcmp.ge.f32.partialorder %v2364_v35, 0.0  ;;  %v2490_v7 = vmul.f32 0.01, %v2364_v35  ;;  %v2367_v37 = vpop.f32.mrb[22].mxu1 }
 0x516   : > { %v2368_v15 = vadd.f32 %v2367_v37, %v6112_v46  ;;  %v2369_v44 = vpop.f32.mrb[23].mxu1  ;;  %v2458_v56 = vsel %vm2426_vm12, %v2362_v21, %v2442_v19 }
 0x517   : > { %v2370_v24 = vadd.f32 %v2369_v44, %v6115_v0  ;;  %v2506_v43 = vsel %vm2474_vm13, %v2364_v35, %v2490_v7 }
 0x518   : > { %vm2427_vm14 = vcmp.ge.f32.partialorder %v2368_v15, 0.0  ;;  %v2443_v6 = vmul.f32 0.1, %v2368_v15  ;;  %v2522_v16 = vadd.f32 %v2506_v43, %v2458_v56 }
 0x519   : > { %vm2475_vm15 = vcmp.ge.f32.partialorder %v2370_v24, 0.0  ;;  %v2491_v13 = vmul.f32 0.01, %v2370_v24 }
 0x51a   : > { %v2373_v22 = vpop.f32.mrb[24].mxu1  ;;  %3208 = vmatprep.mubr.f32.mxu0 %v2522_v16  ;;  %v2459_v20 = vsel %vm2427_vm14, %v2368_v15, %v2443_v6 }
 0x51b   : > { %v2374_v54 = vadd.f32 %v2373_v22, %v6112_v46  ;;  %v2375_v55 = vpop.f32.mrb[25].mxu1  ;;  %v2507_v30 = vsel %vm2475_vm15, %v2370_v24, %v2491_v13 }
 0x51c   : > { %v2376_v1 = vadd.f32 %v2375_v55, %v6115_v0  ;;  %v2523_v26 = vadd.f32 %v2507_v30, %v2459_v20 }
 0x51d   : > { %vm2428_vm2 = vcmp.ge.f32.partialorder %v2374_v54, 0.0  ;;  %v2444_v40 = vmul.f32 0.1, %v2374_v54 }
 0x51e   : > { %vm2476_vm3 = vcmp.ge.f32.partialorder %v2376_v1, 0.0  ;;  %v2492_v3 = vmul.f32 0.01, %v2376_v1  ;;  %v2379_v45 = vpop.f32.mrb[26].mxu1  ;;  %3209 = vmatmul.mubr.f32.gmra.mrb[54].mxu0 %v2523_v26 }
 0x51f   : > { %v2380_v52 = vadd.f32 %v2379_v45, %v6112_v46  ;;  %v2381_v53 = vpop.f32.mrb[27].mxu1  ;;  %v2460_v47 = vsel %vm2428_vm2, %v2374_v54, %v2444_v40 }
 0x520   : > { %v2382_v8 = vadd.f32 %v2381_v53, %v6115_v0  ;;  %v2508_v36 = vsel %vm2476_vm3, %v2376_v1, %v2492_v3 }
 0x521   : > { %vm2429_vm0 = vcmp.ge.f32.partialorder %v2380_v52, 0.0  ;;  %v2445_v60 = vmul.f32 0.1, %v2380_v52  ;;  %v2524_v61 = vadd.f32 %v2508_v36, %v2460_v47 }
 0x522   : > { %vm2477_vm1 = vcmp.ge.f32.partialorder %v2382_v8, 0.0  ;;  %v2493_v27 = vmul.f32 0.01, %v2382_v8 }
 0x523   : > { %3211 = vmatprep.mubr.f32.mxu0 %v2524_v61  ;;  %v2461_v18 = vsel %vm2429_vm0, %v2380_v52, %v2445_v60 }
 0x524   : > { %v2385_v17 = vpop.f32.mrb[28].mxu1  ;;  %v2509_v63 = vsel %vm2477_vm1, %v2382_v8, %v2493_v27 }
 0x525   : > { %v2386_v41 = vadd.f32 %v2385_v17, %v6112_v46  ;;  %v2387_v28 = vpop.f32.mrb[29].mxu1  ;;  %v2525_v38 = vadd.f32 %v2509_v63, %v2461_v18 }
 0x526   : > { %v2388_v4 = vadd.f32 %v2387_v28, %v6115_v0 }
 0x527   : > { %vm2430_vm4 = vcmp.ge.f32.partialorder %v2386_v41, 0.0  ;;  %v2446_v49 = vmul.f32 0.1, %v2386_v41  ;;  %3212 = vmatmul.mubr.f32.gmra.mrb[56].mxu0 %v2525_v38 }
 0x528   : > { %vm2478_vm5 = vcmp.ge.f32.partialorder %v2388_v4, 0.0  ;;  %v2494_v33 = vmul.f32 0.01, %v2388_v4  ;;  %v2391_v14 = vpop.f32.mrb[30].mxu1 }
 0x529   : > { %v2392_v25 = vadd.f32 %v2391_v14, %v6112_v46  ;;  %v2393_v21 = vpop.f32.mrb[31].mxu1  ;;  %v2462_v42 = vsel %vm2430_vm4, %v2386_v41, %v2446_v49 }
 0x52a   : > { %v2394_v32 = vadd.f32 %v2393_v21, %v6115_v0  ;;  %v2510_v35 = vsel %vm2478_vm5, %v2388_v4, %v2494_v33  ;;  %v6149_v21 = vld [vmem:[#allocation22] ss:$0 sm:$0xff] }
 0x52b   : > { %vm2431_vm6 = vcmp.ge.f32.partialorder %v2392_v25, 0.0  ;;  %v2447_v34 = vmul.f32 0.1, %v2392_v25  ;;  %v2526_v19 = vadd.f32 %v2510_v35, %v2462_v42 }
 0x52c   : > { %vm2479_vm7 = vcmp.ge.f32.partialorder %v2394_v32, 0.0  ;;  %v2495_v62 = vmul.f32 0.01, %v2394_v32 }
 0x52d   : > { %v2397_v7 = vpop.f32.mrb[32].mxu1  ;;  %3214 = vmatprep.mubr.f32.mxu0 %v2526_v19  ;;  %v2463_v44 = vsel %vm2431_vm6, %v2392_v25, %v2447_v34 }
 0x52e   : > { %v2398_v37 = vadd.f32 %v2397_v7, %v6112_v46  ;;  %v2399_v15 = vpop.f32.mrb[33].mxu1  ;;  %v2511_v24 = vsel %vm2479_vm7, %v2394_v32, %v2495_v62 }
 0x52f   : > { %v2400_v56 = vadd.f32 %v2399_v15, %v6115_v0  ;;  %v2527_v6 = vadd.f32 %v2511_v24, %v2463_v44 }
 0x530   : > { %vm2432_vm8 = vcmp.ge.f32.partialorder %v2398_v37, 0.0  ;;  %v2448_v43 = vmul.f32 0.1, %v2398_v37 }
 0x531   : > { %vm2480_vm9 = vcmp.ge.f32.partialorder %v2400_v56, 0.0  ;;  %v2496_v16 = vmul.f32 0.01, %v2400_v56  ;;  %v2403_v13 = vpop.f32.mrb[34].mxu1  ;;  %3215 = vmatmul.mubr.f32.gmra.mrb[58].mxu0 %v2527_v6 }
 0x532   : > { %v2404_v22 = vadd.f32 %v2403_v13, %v6112_v46  ;;  %v2405_v54 = vpop.f32.mrb[35].mxu1  ;;  %v2464_v55 = vsel %vm2432_vm8, %v2398_v37, %v2448_v43 }
 0x533   : > { %v2406_v20 = vadd.f32 %v2405_v54, %v6115_v0  ;;  %v2512_v1 = vsel %vm2480_vm9, %v2400_v56, %v2496_v16 }
 0x534   : > { %vm2433_vm10 = vcmp.ge.f32.partialorder %v2404_v22, 0.0  ;;  %v2449_v30 = vmul.f32 0.1, %v2404_v22  ;;  %v2528_v40 = vadd.f32 %v2512_v1, %v2464_v55 }
 0x535   : > { %vm2481_vm11 = vcmp.ge.f32.partialorder %v2406_v20, 0.0  ;;  %v2497_v26 = vmul.f32 0.01, %v2406_v20  ;;  %v2409_v3 = vpop.f32.mrb[36].mxu1 }
 0x536   : > { %v2410_v45 = vadd.f32 %v2409_v3, %v6112_v46  ;;  %v2411_v52 = vpop.f32.mrb[37].mxu1  ;;  %3217 = vmatprep.mubr.f32.mxu0 %v2528_v40  ;;  %v2465_v53 = vsel %vm2433_vm10, %v2404_v22, %v2449_v30 }
 0x537   : > { %v2412_v47 = vadd.f32 %v2411_v52, %v6115_v0  ;;  %v2513_v8 = vsel %vm2481_vm11, %v2406_v20, %v2497_v26 }
 0x538   : > { %vm2434_vm12 = vcmp.ge.f32.partialorder %v2410_v45, 0.0  ;;  %v2450_v36 = vmul.f32 0.1, %v2410_v45  ;;  %v2529_v60 = vadd.f32 %v2513_v8, %v2465_v53 }
 0x539   : > { %vm2482_vm13 = vcmp.ge.f32.partialorder %v2412_v47, 0.0  ;;  %v2498_v61 = vmul.f32 0.01, %v2412_v47  ;;  %v2415_v27 = vpop.f32.mrb[38].mxu1 }
 0x53a   : > { %v2416_v17 = vadd.f32 %v2415_v27, %v6112_v46  ;;  %v2417_v41 = vpop.f32.mrb[39].mxu1  ;;  %3218 = vmatmul.mubr.f32.gmra.mrb[60].mxu0 %v2529_v60  ;;  %v2466_v28 = vsel %vm2434_vm12, %v2410_v45, %v2450_v36 }
 0x53b   : > { %v2418_v18 = vadd.f32 %v2417_v41, %v6115_v0  ;;  %v2514_v4 = vsel %vm2482_vm13, %v2412_v47, %v2498_v61 }
 0x53c   : > { %vm2435_vm14 = vcmp.ge.f32.partialorder %v2416_v17, 0.0  ;;  %v2451_v63 = vmul.f32 0.1, %v2416_v17  ;;  %v2530_v49 = vadd.f32 %v2514_v4, %v2466_v28 }
 0x53d   : > { %vm2483_vm15 = vcmp.ge.f32.partialorder %v2418_v18, 0.0  ;;  %v2499_v38 = vmul.f32 0.01, %v2418_v18 }
 0x53e   : > { %3220 = vmatprep.mubr.f32.mxu0 %v2530_v49  ;;  %v2467_v33 = vsel %vm2435_vm14, %v2416_v17, %v2451_v63 }
 0x53f   : > { %v2515_v14 = vsel %vm2483_vm15, %v2418_v18, %v2499_v38 }
 0x540   : > { %v2531_v25 = vadd.f32 %v2515_v14, %v2467_v33 }
 0x542   : > { %3221 = vmatmul.mubr.f32.gmra.mrb[62].mxu0 %v2531_v25 }
 0x5d7   : > { %v3201_v46 = vpop.f32.mrb[48].mxu0 }
 0x5d8   : > { %v2627_v42 = vadd.f32 %v3201_v46, %v6149_v21  ;;  %v2621_v32 = vpop.f32.mrb[49].mxu0 }
 0x5d9   : > { %v2622_v0 = vadd.f32 %v6149_v21, %v2621_v32 }
 0x5da   : > { %v2701_v35 = vadd.f32 %v2627_v42, %v6006_v29 }
 0x5db   : > { %v2700_v34 = vadd.f32 %v2622_v0, %v6008_v59 }
 0x5dc   : > { %2717 = vst [vmem:[%s6156_s20 + $0x8] sm:$0xff] %v2701_v35 }
 0x5dd   : > { %2716 = vst [vmem:[%s6156_s20] sm:$0xff] %v2700_v34 }
 0x5df   : > { %v3204_v19 = vpop.f32.mrb[50].mxu0 }
 0x5e0   : > { %v2637_v62 = vadd.f32 %v3204_v19, %v6149_v21  ;;  %v2631_v7 = vpop.f32.mrb[51].mxu0 }
 0x5e1   : > { %v2632_v37 = vadd.f32 %v6149_v21, %v2631_v7 }
 0x5e2   : > { %v2703_v29 = vadd.f32 %v2637_v62, %v6017_v10 }
 0x5e3   : > { %v2702_v59 = vadd.f32 %v2632_v37, %v6020_v9 }
 0x5e4   : > { %2719 = vst [vmem:[%s6156_s20 + $0x18] sm:$0xff] %v2703_v29 }
 0x5e5   : > { %2718 = vst [vmem:[%s6156_s20 + $0x10] sm:$0xff] %v2702_v59 }
 0x5e7   : > { %v3207_v15 = vpop.f32.mrb[52].mxu0 }
 0x5e8   : > { %v2647_v44 = vadd.f32 %v3207_v15, %v6149_v21  ;;  %v2641_v56 = vpop.f32.mrb[53].mxu0 }
 0x5e9   : > { %v2642_v24 = vadd.f32 %v6149_v21, %v2641_v56 }
 0x5ea   : > { %v2705_v43 = vadd.f32 %v2647_v44, %v6032_v2 }
 0x5eb   : > { %v2704_v6 = vadd.f32 %v2642_v24, %v6034_v11 }
 0x5ec   : > { %2721 = vst [vmem:[%s6156_s20 + $0x28] sm:$0xff] %v2705_v43 }
 0x5ed   : > { %2720 = vst [vmem:[%s6156_s20 + $0x20] sm:$0xff] %v2704_v6 }
 0x5f1   : > { %v3210_v10 = vpop.f32.mrb[54].mxu0 }
 0x5f2   : > { %v2657_v9 = vadd.f32 %v3210_v10, %v6149_v21  ;;  %v2651_v16 = vpop.f32.mrb[55].mxu0 }
 0x5f3   : > { %v2652_v13 = vadd.f32 %v6149_v21, %v2651_v16 }
 0x5f4   : > { %v2707_v22 = vadd.f32 %v2657_v9, %v6046_v5 }
 0x5f5   : > { %v2706_v54 = vadd.f32 %v2652_v13, %v6048_v57 }
 0x5f6   : > { %2723 = vst [vmem:[%s6156_s20 + $0x38] sm:$0xff] %v2707_v22 }
 0x5f7   : > { %2722 = vst [vmem:[%s6156_s20 + $0x30] sm:$0xff] %v2706_v54 }
 0x5fa   : > { %v3213_v2 = vpop.f32.mrb[56].mxu0 }
 0x5fb   : > { %v2667_v11 = vadd.f32 %v3213_v2, %v6149_v21  ;;  %v2661_v55 = vpop.f32.mrb[57].mxu0 }
 0x5fc   : > { %v2662_v20 = vadd.f32 %v6149_v21, %v2661_v55 }
 0x5fd   : > { %v2709_v1 = vadd.f32 %v2667_v11, %v6060_v23 }
 0x5fe   : > { %v2708_v30 = vadd.f32 %v2662_v20, %v6062_v31 }
 0x5ff   : > { %2725 = vst [vmem:[%s6156_s20 + $0x48] sm:$0xff] %v2709_v1 }
 0x600   : > { %2724 = vst [vmem:[%s6156_s20 + $0x40] sm:$0xff] %v2708_v30 }
 0x604   : > { %v3216_v5 = vpop.f32.mrb[58].mxu0 }
 0x605   : > { %v2677_v57 = vadd.f32 %v3216_v5, %v6149_v21  ;;  %v2671_v40 = vpop.f32.mrb[59].mxu0 }
 0x606   : > { %v2672_v26 = vadd.f32 %v6149_v21, %v2671_v40 }
 0x607   : > { %v2711_v3 = vadd.f32 %v2677_v57, %v6074_v51 }
 0x608   : > { %v2710_v45 = vadd.f32 %v2672_v26, %v6076_v58 }
 0x609   : > { %2727 = vst [vmem:[%s6156_s20 + $0x58] sm:$0xff] %v2711_v3 }
 0x60a   : > { %2726 = vst [vmem:[%s6156_s20 + $0x50] sm:$0xff] %v2710_v45 }
 0x60d   : > { %v3219_v23 = vpop.f32.mrb[60].mxu0 }
 0x60e   : > { %v2687_v31 = vadd.f32 %v3219_v23, %v6149_v21  ;;  %v2681_v52 = vpop.f32.mrb[61].mxu0 }
 0x60f   : > { %v2682_v53 = vadd.f32 %v6149_v21, %v2681_v52 }
 0x610   : > { %v2713_v47 = vadd.f32 %v2687_v31, %v6088_v48 }
 0x611   : > { %v2712_v8 = vadd.f32 %v2682_v53, %v6090_v12 }
 0x612   : > { %2729 = vst [vmem:[%s6156_s20 + $0x68] sm:$0xff] %v2713_v47 }
 0x613   : > { %2728 = vst [vmem:[%s6156_s20 + $0x60] sm:$0xff] %v2712_v8 }
 0x615   : > { %v3222_v51 = vpop.f32.mrb[62].mxu0 }
 0x616   : > { %v2697_v58 = vadd.f32 %v3222_v51, %v6149_v21  ;;  %v2691_v36 = vpop.f32.mrb[63].mxu0 }
 0x617   : > { %v2692_v60 = vadd.f32 %v6149_v21, %v2691_v36 }
 0x618   : > { %v2715_v48 = vadd.f32 %v2697_v58, %v6100_v39 }
 0x619   : > { %v2714_v12 = vadd.f32 %v2692_v60, %v6102_v50 }
 0x61a   : > { %2731 = vst [vmem:[%s6156_s20 + $0x78] sm:$0xff] %v2715_v48 }
 0x61b   : > { %2730 = vst [vmem:[%s6156_s20 + $0x70] sm:$0xff] %v2714_v12 }
 0x61c   : > { %4043 = shalt.err (!%p4040_p7)
}
 0x61d   : > { %s4044_s3 = scalar_lea.hbm %s6208_s27, 2048  ;;  %s4048_s22 = scalar_lea.hbm %s6653_s13, 8192 }
 0x61e   : > { %p4045_p4 = scmp.ne.s32.totalorder %s6208_s27, %s4044_s3  ;;  %p4049_p0 = scmp.lt.u32.totalorder %s6208_s27, %s6653_s13 }
 0x61f   : > { %p4050_p9 = scmp.lt.u32.totalorder %s4048_s22, %s4044_s3  ;;  %p4052_p3 = scmp.lt.u32.totalorder %s4044_s3, %s6208_s27 }
 0x620   : > { %p4046_p10 = pnand %p4045_p4, %p6654_p11 }
 0x621   : > { %p4051_p1 = por %p4050_p9, %p4049_p0 }
 0x622   : > { %p4047_p12 = pneg %p4046_p10 }
 0x623   : > { %p4053_p2 = por %p4052_p3, %p4051_p1 }
 0x625   : > { %p4054_p8 = pnand %p4053_p2, %p4047_p12 }
 0x627   : > { %4057 = shalt.err (!%p4054_p8)
}
 0x628   : > { %s4225_s20 = smov 128   ;;  %s4226_s10 = smov 8  }
 0x629   : > { %3461 = dma.vmem_to_hbm [thread:$0]  (%p6654_p11), %s6202_s25, 2048, %s6208_s27, %s6214_s15, %s4225_s20, %s4225_s20, %s4226_s10  }
 0x62a PF: > { %s6655_s24 = sld [smem:[#allocation36_spill]]  ;;  %s6656_s8 = sld [smem:[#allocation47_spill]] }
 0x62b   : > { %p3529_p6 = scmp.ge.s32.totalorder %s4204_s21, 2 }
 0x630   : > { %s2764_s9 = sand.u32 1, %s6655_s24   ;;  %p6657_p13 = scmp.ne.s32.totalorder %s6656_s8, 0 }
 0x631   : > { %s2765_s28 = scalar_lea.sflag [#allocation4], %s2764_s9 }
 0x632   : > { %p3505_p5 = pnand %p3529_p6, %p6657_p13 }
 0x634   : > { %4147 = dma.done.wait (!%p3505_p5), %s2765_s28, 2048  }
 0x635   : > { %4149 = vsyncadd (!%p3505_p5), %s2765_s28, 4294965248  ;;  %s37_s21 = sadd.s32 1, %s4204_s21   ;;  %s6659_s25 = sld [smem:[#allocation34_spill]] }
 0x636   : > { %p6243_p7 = scmp.ge.s32.totalorder %s37_s21, 6   ;;  %s6660_s26 = sld [smem:[#allocation35_spill]] }
 0x637   : > { %s6661_s14 = sld [smem:[#allocation38_spill]]  ;;  %s6662_s15 = sld [smem:[#allocation39_spill]] }
 0x638   : > { %s6663_s4 = sld [smem:[#allocation49_spill]]  ;;  %s6664_s17 = sld [smem:[#allocation42_spill]] }
 0x639   : > { %s6665_s11 = sld [smem:[#allocation43_spill]]  ;;  %s6666_s19 = sld [smem:[#allocation45_spill]] }
 0x63a   : > { %s6667_s20 = sld [smem:[#allocation48_spill]]  ;;  %s6669_s27 = smov %s6690_s16 }
 0x63b   : > { %s6670_s28 = smov %s4168_s29  ;;  %s6671_s29 = smov %s4172_s30 }
 0x63c   : > { %s6672_s30 = smov %s4738_s5  ;;  %36 = sbr.rel (!%p6243_p7) target bundleno = 32 (0x20), region = 181 }
 0x63e   : > { %s6673_s16 = smov %s6663_s4 }
 0x63f   : > { %s6674_s18 = smov %s6665_s11 }
 0x643   :  { %2770 = vsyncpa [#allocation3], 1 }
 0x644   :  { %2772 = vsyncpa [#allocation3 + $0x1], 1 }
 0x645   :  { %2773 = vsyncpa [#allocation6], 1 }
 0x646   :  { %2775 = vsyncpa [#allocation6 + $0x1], 1 }
 0x647   :  { %2776 = vsyncpa [#allocation9], 1 }
 0x648   :  { %2777 = vsyncpa [#allocation12], 1 }
 0x649   :  { %2778 = vsyncpa [#allocation15], 1 }
 0x64a   :  { %2779 = vsyncpa [#allocation18], 1 }
 0x64b   :  { %2780 = vsyncpa [#allocation21], 1 }
 0x64c   :  { %2781 = vsyncpa [#allocation4], 1 }
 0x64d   :  { %2783 = vsyncpa [#allocation4 + $0x1], 1 }

// kernel: tpu_custom_call.1
= control target key start
LH: loop header
LB: loop body
LE: loop exit
PB: predicated region body
PF: predicated region fallthrough
CT: control target
= control target key end

     0   :  { %s6290_s0 = inlined_call_operand.hbm [shape: f32[2,16,16,128], index: 0, kind: input, shape index: {}]   ;;  %s6291_s1 = inlined_call_operand.hbm [shape: f32[2,16,16,128], index: 1, kind: input, shape index: {}]   ;;  %s6292_s2 = inlined_call_operand.hbm [shape: f32[2,16,16,128], index: 2, kind: input, shape index: {}]   ;;  %s6293_s3 = inlined_call_operand.hbm [shape: f32[128,256], index: 3, kind: input, shape index: {}]   ;;  %s6294_s4 = inlined_call_operand.hbm [shape: f32[1,256], index: 4, kind: input, shape index: {}]   ;;  %s6295_s5 = inlined_call_operand.hbm [shape: f32[9,128], index: 5, kind: input, shape index: {}]   ;;  %s6296_s6 = inlined_call_operand.hbm [shape: f32[1,128], index: 6, kind: input, shape index: {}]   ;;  %s6297_s7 = inlined_call_operand.hbm [shape: f32[128,128], index: 7, kind: input, shape index: {}]   ;;  %s6298_s8 = inlined_call_operand.hbm [shape: f32[1,128], index: 8, kind: input, shape index: {}]   ;;  %s6299_s9 = inlined_call_operand.hbm [shape: f32[128,256], index: 9, kind: input, shape index: {}]   ;;  %s6300_s10 = inlined_call_operand.hbm [shape: f32[1,256], index: 10, kind: input, shape index: {}]   ;;  %s6301_s11 = inlined_call_operand.hbm [shape: f32[128,128], index: 11, kind: input, shape index: {}]   ;;  %s6302_s12 = inlined_call_operand.hbm [shape: f32[1,128], index: 12, kind: input, shape index: {}]   ;;  %s6303_s13 = inlined_call_operand.hbm [shape: f32[2,16,16,128], index: 13, kind: output, shape index: {}]  }
   0x1   :  { %6370 = sst [smem:[#allocation96_spill]] %s6290_s0 }
   0x2   :  { %6371 = sst [smem:[#allocation97_spill]] %s6291_s1 }
   0x3   :  { %6372 = sst [smem:[#allocation98_spill]] %s6292_s2 }
   0x4   :  { %6373 = sst [smem:[#allocation99_spill]] %s6293_s3 }
   0x5   :  { %6374 = sst [smem:[#allocation100_spill]] %s6294_s4 }
   0x6   :  { %6375 = sst [smem:[#allocation101_spill]] %s6295_s5 }
   0x7   :  { %6376 = sst [smem:[#allocation102_spill]] %s6296_s6 }
   0x8   :  { %6377 = sst [smem:[#allocation103_spill]] %s6297_s7 }
   0x9   :  { %6378 = sst [smem:[#allocation104_spill]] %s6298_s8 }
   0xa   :  { %6379 = sst [smem:[#allocation105_spill]] %s6299_s9 }
   0xb   :  { %6380 = sst [smem:[#allocation106_spill]] %s6300_s10 }
   0xc   :  { %6381 = sst [smem:[#allocation107_spill]] %s6301_s11 }
   0xd   :  { %6382 = sst [smem:[#allocation108_spill]] %s6302_s12 }
   0xe   :  { %6383 = sst [smem:[#allocation109_spill]] %s6303_s13 }
   0xf   :  { %18 = vsyncpa [#allocation3], 0 }
  0x10   :  { %20 = vsyncpa [#allocation3 + $0x1], 0 }
  0x11   :  { %21 = vsyncpa [#allocation6], 0 }
  0x12   :  { %23 = vsyncpa [#allocation6 + $0x1], 0 }
  0x13   :  { %24 = vsyncpa [#allocation9], 0 }
  0x14   :  { %25 = vsyncpa [#allocation12], 0 }
  0x15   :  { %26 = vsyncpa [#allocation15], 0 }
  0x16   :  { %27 = vsyncpa [#allocation18], 0 }
  0x17   :  { %28 = vsyncpa [#allocation21], 0 }
  0x18   :  { %29 = vsyncpa [#allocation4], 0 }
  0x19   :  { %31 = vsyncpa [#allocation4 + $0x1], 0  ;;  %s4297_s25 = smov 0   ;;  %s4299_s26 = smov 0  }
  0x1a   :  { %s4301_s27 = smov 0   ;;  %s4303_s28 = smov 0  }
  0x1b   :  { %s4305_s29 = smov 0   ;;  %s4307_s30 = smov 0  }
  0x1c   :  { %s4309_s14 = smov 0   ;;  %s4311_s15 = smov 0  }
  0x1d   :  { %s4313_s16 = smov 0   ;;  %s4315_s17 = smov 0  }
  0x1e   :  { %s4317_s18 = smov 0   ;;  %s4319_s19 = smov 0  }
  0x1f   :  { %s4321_s20 = smov 0   ;;  %s4323_s21 = smov 0  }
  0x20 LB: > { %6384 = sst [smem:[#allocation33_spill]] %s4152_s25  ;;  %s4368_s22 = sadd.s32 4294967295, %s4204_s21   ;;  %s4204_s21 = sphi %s4323_s21, %s37_s21   ;;  %s4200_s20 = sphi %s4321_s20, %s6667_s20   ;;  %s4196_s19 = sphi %s4319_s19, %s6666_s19   ;;  %s4192_s18 = sphi %s4317_s18, %s6674_s18   ;;  %s4188_s17 = sphi %s4315_s17, %s6664_s17   ;;  %s4184_s16 = sphi %s4313_s16, %s6673_s16   ;;  %s4180_s15 = sphi %s4311_s15, %s6662_s15   ;;  %s4176_s14 = sphi %s4309_s14, %s6661_s14   ;;  %s4172_s30 = sphi %s4307_s30, %s6672_s30   ;;  %s4168_s29 = sphi %s4305_s29, %s6671_s29   ;;  %s4164_s28 = sphi %s4303_s28, %s6670_s28   ;;  %s4160_s27 = sphi %s4301_s27, %s6669_s27   ;;  %s4156_s26 = sphi %s4299_s26, %s6660_s26   ;;  %s4152_s25 = sphi %s4297_s25, %s6659_s25  }
  0x21   : > { %6385 = sst [smem:[#allocation34_spill]] %s4156_s26  ;;  %p2991_p0 = scmp.ge.s32.totalorder %s4204_s21, 1 }
  0x22   : > { %6386 = sst [smem:[#allocation35_spill]] %s4160_s27  ;;  %p6311_p1 = scmp.eq.s32.totalorder %s4368_s22, 0 }
  0x23   : > { %6387 = sst [smem:[#allocation36_spill]] %s4164_s28  ;;  %p392_p2 = scmp.lt.s32.totalorder %s4204_s21, 5 }
  0x24   : > { %6388 = sst [smem:[#allocation37_spill]] %s4176_s14  ;;  %s4206_s24 = smov [#allocation8]  }
  0x25   : > { %6389 = sst [smem:[#allocation38_spill]] %s4180_s15  ;;  %p4373_p3 = pnand %p2991_p0, %p392_p2 }
  0x26   : > { %6390 = sst [smem:[#allocation39_spill]] %s4184_s16  ;;  %s404_s13 = sshll.u32 %s4206_s24, 4  ;;  %s405_s13 = int_to_ptr.vmem [resolvable:$true] %s404_s13 }
  0x27   : > { %6391 = sst [smem:[#allocation40_spill]] %s4188_s17  ;;  %p3463_p4 = pneg %p4373_p3 }
  0x28   : > { %6392 = sst [smem:[#allocation41_spill]] %s4192_s18  ;;  %s4207_s17 = smov [#allocation11]  }
  0x29   : > { %6393 = sst [smem:[#allocation42_spill]] %s4196_s19  ;;  %p4381_p5 = pnand %p3463_p4, %p6311_p1 }
  0x2a   : > { %6394 = sst [smem:[#allocation43_spill]] %s4200_s20  ;;  %s428_s2 = sshll.u32 %s4207_s17, 4  ;;  %s4385_s2 = int_to_ptr.vmem [resolvable:$true] %s428_s2 }
  0x2b   : > { %s6395_s23 = scalar_select %p4373_p3, 1, 0 }
  0x2c   : > { %s6397_s18 = scalar_select %p4381_p5, 1, 0 }
  0x2d   : > { %6396 = sst [smem:[#allocation44_spill]] %s6395_s23  ;;  %s6398_s3 = sld [smem:[#allocation99_spill]] }
  0x2e   : > { %p4395_p7 = pneg %p4381_p5 }
  0x33   : > { %s3660_s27 = scalar_lea.hbm %s6398_s3, 4096 }
  0x34   : > { %p3661_p6 = scmp.ne.s32.totalorder %s6398_s3, %s3660_s27  ;;  %p3667_p10 = scmp.lt.u32.totalorder %s3660_s27, %s6398_s3 }
  0x36   : > { %p3663_p8 = pnand %p4395_p7, %p3661_p6 }
  0x38   : > { %p3664_p9 = pneg %p3663_p8 }
  0x3a   : > { %p3669_p11 = pnand %p3667_p10, %p3664_p9 }
  0x3c   : > { %3672 = shalt.err (!%p3669_p11)
}
  0x3d   : > { %s3673_s25 = scalar_lea.vmem %s405_s13, 4096  ;;  %p3681_p2 = scmp.lt.s32.totalorder %s405_s13, %s405_s13 }
  0x3e   : > { %p3674_p12 = scmp.ne.s32.totalorder %s405_s13, %s3673_s25  ;;  %p3682_p4 = scmp.lt.s32.totalorder %s3673_s25, %s3673_s25 }
  0x40   : > { %p3676_p13 = pnand %p3674_p12, %p4395_p7  ;;  %p3683_p1 = por %p3682_p4, %p3681_p2 }
  0x42   : > { %p3677_p0 = pneg %p3676_p13 }
  0x44   : > { %p3684_p3 = pnand %p3683_p1, %p3677_p0 }
  0x46   : > { %3687 = shalt.err (!%p3684_p3)
}
  0x47   : > { %s6317_s0 = smov 256   ;;  %s6318_s26 = smov 16  }
  0x48   : > { %3466 = dma.hbm_to_vmem [thread:$0]  (!%p4381_p5), %s6398_s3, 4096, %s405_s13, [#allocation9], %s6317_s0, %s6317_s0, %s6318_s26  }
  0x49   : > { %s6400_s5 = sld [smem:[#allocation101_spill]] }
  0x4f   : > { %s3688_s15 = scalar_lea.hbm %s6400_s5, 256 }
  0x50   : > { %p3689_p1 = scmp.ne.s32.totalorder %s6400_s5, %s3688_s15  ;;  %p3695_p8 = scmp.lt.u32.totalorder %s3688_s15, %s6400_s5 }
  0x52   : > { %p3691_p3 = pnand %p3689_p1, %p4395_p7 }
  0x54   : > { %p3692_p6 = pneg %p3691_p3 }
  0x56   : > { %p3697_p9 = pnand %p3695_p8, %p3692_p6 }
  0x58   : > { %3700 = shalt.err (!%p3697_p9)
}
  0x59   : > { %s3701_s13 = scalar_lea.vmem %s4385_s2, 256  ;;  %p3709_p13 = scmp.lt.s32.totalorder %s4385_s2, %s4385_s2 }
  0x5a   : > { %p3702_p10 = scmp.ne.s32.totalorder %s4385_s2, %s3701_s13  ;;  %p3710_p0 = scmp.lt.s32.totalorder %s3701_s13, %s3701_s13 }
  0x5c   : > { %p3704_p11 = pnand %p3702_p10, %p4395_p7  ;;  %p3711_p2 = por %p3710_p0, %p3709_p13 }
  0x5e   : > { %p3705_p12 = pneg %p3704_p11 }
  0x60   : > { %p3712_p4 = pnand %p3711_p2, %p3705_p12 }
  0x62   : > { %3715 = shalt.err (!%p3712_p4)
}
  0x63   : > { %s6319_s16 = smov 128   ;;  %s6321_s10 = smov 8  }
  0x64   : > { %3472 = dma.hbm_to_vmem [thread:$0]  (!%p4381_p5), %s6400_s5, 256, %s4385_s2, [#allocation12], %s6319_s16, %s6319_s16, %s6321_s10  }
  0x65   : > { %s4212_s27 = smov [#allocation14]   ;;  %s4213_s23 = smov [#allocation17]  }
  0x66   : > { %s452_s14 = sshll.u32 %s4212_s27, 4  ;;  %s476_s17 = sshll.u32 %s4213_s23, 4  ;;  %s453_s14 = int_to_ptr.vmem [resolvable:$true] %s452_s14  ;;  %s4440_s17 = int_to_ptr.vmem [resolvable:$true] %s476_s17 }
  0x67   : > { %s6401_s7 = sld [smem:[#allocation103_spill]] }
  0x6d   : > { %s3716_s0 = scalar_lea.hbm %s6401_s7, 2048 }
  0x6e   : > { %p3717_p1 = scmp.ne.s32.totalorder %s6401_s7, %s3716_s0  ;;  %p3723_p8 = scmp.lt.u32.totalorder %s3716_s0, %s6401_s7 }
  0x70   : > { %p3719_p3 = pnand %p3717_p1, %p4395_p7 }
  0x72   : > { %p3720_p6 = pneg %p3719_p3 }
  0x74   : > { %p3725_p9 = pnand %p3723_p8, %p3720_p6 }
  0x76   : > { %3728 = shalt.err (!%p3725_p9)
}
  0x77   : > { %s3729_s15 = scalar_lea.vmem %s453_s14, 2048  ;;  %p3737_p13 = scmp.lt.s32.totalorder %s453_s14, %s453_s14 }
  0x78   : > { %p3730_p10 = scmp.ne.s32.totalorder %s453_s14, %s3729_s15  ;;  %p3738_p0 = scmp.lt.s32.totalorder %s3729_s15, %s3729_s15 }
  0x7a   : > { %p3732_p11 = pnand %p3730_p10, %p4395_p7  ;;  %p3739_p2 = por %p3738_p0, %p3737_p13 }
  0x7c   : > { %p3733_p12 = pneg %p3732_p11 }
  0x7e   : > { %p3740_p4 = pnand %p3739_p2, %p3733_p12 }
  0x80   : > { %3743 = shalt.err (!%p3740_p4)
}
  0x81   : > { %3478 = dma.hbm_to_vmem [thread:$0]  (!%p4381_p5), %s6401_s7, 2048, %s453_s14, [#allocation15], %s6319_s16, %s6319_s16, %s6321_s10  }
  0x82   : > { %s6402_s9 = sld [smem:[#allocation105_spill]] }
  0x88   : > { %s3744_s23 = scalar_lea.hbm %s6402_s9, 4096 }
  0x89   : > { %p3745_p1 = scmp.ne.s32.totalorder %s6402_s9, %s3744_s23  ;;  %p3751_p8 = scmp.lt.u32.totalorder %s3744_s23, %s6402_s9 }
  0x8b   : > { %p3747_p3 = pnand %p3745_p1, %p4395_p7 }
  0x8d   : > { %p3748_p6 = pneg %p3747_p3 }
  0x8f   : > { %p3753_p9 = pnand %p3751_p8, %p3748_p6 }
  0x91   : > { %3756 = shalt.err (!%p3753_p9)
}
  0x92   : > { %s3757_s14 = scalar_lea.vmem %s4440_s17, 4096  ;;  %p3765_p13 = scmp.lt.s32.totalorder %s4440_s17, %s4440_s17 }
  0x93   : > { %p3758_p10 = scmp.ne.s32.totalorder %s4440_s17, %s3757_s14  ;;  %p3766_p0 = scmp.lt.s32.totalorder %s3757_s14, %s3757_s14 }
  0x95   : > { %p3760_p11 = pnand %p3758_p10, %p4395_p7  ;;  %p3767_p2 = por %p3766_p0, %p3765_p13 }
  0x97   : > { %p3761_p12 = pneg %p3760_p11 }
  0x99   : > { %p3768_p4 = pnand %p3767_p2, %p3761_p12 }
  0x9b   : > { %3771 = shalt.err (!%p3768_p4)
}
  0x9c   : > { %s6403_s15 = smov 16   ;;  %s6404_s3 = smov 256  }
  0x9d   : > { %3484 = dma.hbm_to_vmem [thread:$0]  (!%p4381_p5), %s6402_s9, 4096, %s4440_s17, [#allocation18], %s6404_s3, %s6404_s3, %s6403_s15  }
  0x9e   : > { %s4214_s27 = smov [#allocation20]   ;;  %s6405_s11 = sld [smem:[#allocation107_spill]] }
  0x9f   : > { %s500_s23 = sshll.u32 %s4214_s27, 4  ;;  %s501_s23 = int_to_ptr.vmem [resolvable:$true] %s500_s23 }
  0xa4   : > { %s3772_s12 = scalar_lea.hbm %s6405_s11, 2048 }
  0xa5   : > { %p3773_p1 = scmp.ne.s32.totalorder %s6405_s11, %s3772_s12  ;;  %p3779_p8 = scmp.lt.u32.totalorder %s3772_s12, %s6405_s11 }
  0xa7   : > { %p3775_p3 = pnand %p3773_p1, %p4395_p7 }
  0xa9   : > { %p3776_p6 = pneg %p3775_p3 }
  0xab   : > { %p3781_p9 = pnand %p3779_p8, %p3776_p6 }
  0xad   : > { %3784 = shalt.err (!%p3781_p9)
}
  0xae   : > { %s3785_s17 = scalar_lea.vmem %s501_s23, 2048  ;;  %p3793_p13 = scmp.lt.s32.totalorder %s501_s23, %s501_s23 }
  0xaf   : > { %p3786_p10 = scmp.ne.s32.totalorder %s501_s23, %s3785_s17  ;;  %p3794_p0 = scmp.lt.s32.totalorder %s3785_s17, %s3785_s17 }
  0xb1   : > { %p3788_p11 = pnand %p3786_p10, %p4395_p7  ;;  %p3795_p2 = por %p3794_p0, %p3793_p13 }
  0xb3   : > { %p3789_p12 = pneg %p3788_p11 }
  0xb5   : > { %p3796_p4 = pnand %p3795_p2, %p3789_p12 }
  0xb7   : > { %3799 = shalt.err (!%p3796_p4)
}
  0xb8   : > { %s6406_s15 = smov 8   ;;  %s6407_s3 = smov 128  }
  0xb9   : > { %3490 = dma.hbm_to_vmem [thread:$0]  (!%p4381_p5), %s6405_s11, 2048, %s501_s23, [#allocation21], %s6407_s3, %s6407_s3, %s6406_s15  }
  0xba   : > { %s2984_s0 = sadd.s32 4294967294, %s4204_s21   ;;  %s46_s26 = sadd.s32 1, %s4196_s19 }
  0xbb   : > { %s49_s27 = sadd.s32 1, %s4200_s20  ;;  %p47_p1 = scmp.ge.s32.totalorder %s46_s26, 2 }
  0xbc   : > { %p6328_p3 = scmp.eq.s32.totalorder %s4204_s21, 0  ;;  %p101_p6 = scmp.ne.s32.totalorder %s4172_s30, %s4168_s29 }
  0xbd   : > { %s6676_s26 = smov (%p47_p1, %s46_s26), 0  ;;  %s6678_s27 = smov (!%p47_p1, %s49_s27), %s4200_s20 }
  0xbe   : > { %6408 = sst [smem:[#allocation45_spill]] %s6676_s26  ;;  %p4526_p8 = por %p101_p6, %p6328_p3 }
  0xbf   : > { %p107_p9 = scmp.ne.s32.totalorder %s4168_s29, %s4164_s28  ;;  %p379_p10 = scmp.eq.s32.totalorder %s4368_s22, 3 }
  0xc0   : > { %p385_p11 = scmp.eq.s32.totalorder %s2984_s0, 3  ;;  %p6327_p12 = scmp.lt.s32.totalorder %s4204_s21, 4 }
  0xc1   : > { %p6410_p13 = scmp.eq.s32.totalorder %s4368_s22, 0  ;;  %p4540_p2 = por %p379_p10, %p101_p6 }
  0xc2   : > { %p4544_p4 = por %p385_p11, %p107_p9  ;;  %s4549_s17 = sshll.u32 %s4200_s20, 5 }
  0xc3   : > { %p4536_p0 = por %p107_p9, %p6410_p13  ;;  %s552_s16 = sand.u32 1, %s4204_s21  }
  0xc4   : > { %s6412_s2 = scalar_select %p4540_p2, 1, 0 }
  0xc5   : > { %s6411_s12 = scalar_select %p4536_p0, 1, 0 }
  0xc6   : > { %6413 = sst [smem:[#allocation46_spill]] %s6412_s2  ;;  %s554_s10 = sand.u32 1, %s4172_s30  }
  0xc7   : > { %s6414_s14 = scalar_select %p4544_p4, 1, 0 }
  0xc8   : > { %s3009_s0 = sshll.u32 %s554_s10, 7  ;;  %s3045_s25 = sshll.u32 %s4196_s19, 4 }
  0xc9   : > { %6415 = sst [smem:[#allocation47_spill]] %s6414_s14  ;;  %s563_s13 = sadd.s32 %s3045_s25, %s4549_s17 }
  0xca   : > { %s556_s5 = scalar_lea.vmem [#allocation5], %s3009_s0  ;;  %s3013_s9 = sshll.u32 %s563_s13, 7 }
  0xcb   : > { %s566_s7 = sshll.u32 %s556_s5, 4  ;;  %s6416_s1 = sld [smem:[#allocation97_spill]]  ;;  %s4555_s7 = int_to_ptr.vmem [resolvable:$true] %s566_s7 }
  0xcc   : > { %p4566_p1 = pnand %p6327_p12, %p4526_p8  ;;  %s4215_s5 = smov [#allocation10]  }
  0xcd   : > { %s4570_s25 = sshll.u32 %s4215_s5, 4  ;;  %s4572_s13 = scalar_lea.sflag [#allocation6], %s552_s16  ;;  %s419_s25 = int_to_ptr.vmem [resolvable:$true] %s4570_s25 }
  0xce   : > { %p3802_p9 = pneg %p4566_p1 }
  0xd1   : > { %s4560_s2 = scalar_lea.hbm %s6416_s1, %s3013_s9  ;;  %s3805_s23 = scalar_lea.hbm %s6416_s1, 8192 }
  0xd2   : > { %s3800_s11 = scalar_lea.hbm %s4560_s2, 2048  ;;  %p3806_p8 = scmp.lt.u32.totalorder %s4560_s2, %s6416_s1 }
  0xd3   : > { %p3801_p6 = scmp.ne.s32.totalorder %s4560_s2, %s3800_s11  ;;  %p3807_p13 = scmp.lt.u32.totalorder %s3805_s23, %s3800_s11 }
  0xd4   : > { %p3809_p3 = scmp.lt.u32.totalorder %s3800_s11, %s4560_s2 }
  0xd5   : > { %p3803_p10 = pnand %p3802_p9, %p3801_p6  ;;  %p3808_p12 = por %p3807_p13, %p3806_p8 }
  0xd7   : > { %p3804_p11 = pneg %p3803_p10  ;;  %p3810_p4 = por %p3809_p3, %p3808_p12 }
  0xd9   : > { %p3811_p2 = pnand %p3810_p4, %p3804_p11 }
  0xdb   : > { %3814 = shalt.err (!%p3811_p2)
}
  0xdc   : > { %s3815_s16 = scalar_lea.vmem %s4555_s7, 2048  ;;  %s4216_s5 = smov [#allocation5]  }
  0xdd   : > { %p3816_p6 = scmp.ne.s32.totalorder %s4555_s7, %s3815_s16  ;;  %s3820_s9 = sshll.u32 %s4216_s5, 4  ;;  %s3821_s9 = int_to_ptr.vmem [resolvable:$false] %s3820_s9 }
  0xde   : > { %s3822_s14 = scalar_lea.vmem %s3821_s9, 4096  ;;  %p3823_p5 = scmp.lt.s32.totalorder %s4555_s7, %s3821_s9 }
  0xdf   : > { %p3818_p10 = pnand %p3816_p6, %p3802_p9  ;;  %p3824_p8 = scmp.lt.s32.totalorder %s3822_s14, %s3815_s16 }
  0xe1   : > { %p3819_p0 = pneg %p3818_p10  ;;  %p3825_p13 = por %p3824_p8, %p3823_p5 }
  0xe3   : > { %p3826_p3 = pnand %p3825_p13, %p3819_p0 }
  0xe5   : > { %3829 = shalt.err (!%p3826_p3)
}
  0xe6   : > { %3500 = dma.hbm_to_vmem [thread:$0]  (!%p4566_p1), %s4560_s2, 2048, %s4555_s7, %s4572_s13, %s6407_s3, %s6407_s3, %s6406_s15  }
  0xe7   : > { %s4217_s11 = smov [#allocation13]   ;;  %s6418_s4 = sld [smem:[#allocation100_spill]] }
  0xe8   : > { %s442_s28 = sshll.u32 %s4217_s11, 4  ;;  %s443_s28 = int_to_ptr.vmem [resolvable:$true] %s442_s28 }
  0xed   : > { %s3830_s16 = scalar_lea.hbm %s6418_s4, 32 }
  0xee   : > { %p3831_p5 = scmp.ne.s32.totalorder %s6418_s4, %s3830_s16  ;;  %p3837_p2 = scmp.lt.u32.totalorder %s3830_s16, %s6418_s4 }
  0xf0   : > { %p3833_p12 = pnand %p3831_p5, %p4395_p7 }
  0xf2   : > { %p3834_p0 = pneg %p3833_p12 }
  0xf4   : > { %p3839_p4 = pnand %p3837_p2, %p3834_p0 }
  0xf6   : > { %3842 = shalt.err (!%p3839_p4)
}
  0xf7   : > { %s3843_s7 = scalar_lea.vmem %s419_s25, 32  ;;  %p3851_p6 = scmp.lt.s32.totalorder %s419_s25, %s419_s25 }
  0xf8   : > { %p3844_p1 = scmp.ne.s32.totalorder %s419_s25, %s3843_s7  ;;  %p3852_p10 = scmp.lt.s32.totalorder %s3843_s7, %s3843_s7 }
  0xfa   : > { %p3846_p9 = pnand %p3844_p1, %p4395_p7  ;;  %p3853_p8 = por %p3852_p10, %p3851_p6 }
  0xfc   : > { %p3847_p11 = pneg %p3846_p9 }
  0xfe   : > { %p3854_p13 = pnand %p3853_p8, %p3847_p11 }
 0x100   : > { %3857 = shalt.err (!%p3854_p13)
}
 0x101   : > { %p6419_p3 = scmp.ne.s32.totalorder %s6397_s18, 0  ;;  %s6420_s6 = sld [smem:[#allocation102_spill]] }
 0x103   : > { %3469 = dma.hbm_to_vmem [thread:$0]  (!%p6419_p3), %s6418_s4, 32, %s419_s25, [#allocation9]  }
 0x107   : > { %s3858_s16 = scalar_lea.hbm %s6420_s6, 16 }
 0x108   : > { %p3859_p5 = scmp.ne.s32.totalorder %s6420_s6, %s3858_s16  ;;  %p3865_p2 = scmp.lt.u32.totalorder %s3858_s16, %s6420_s6 }
 0x10a   : > { %p3861_p12 = pnand %p3859_p5, %p4395_p7 }
 0x10c   : > { %p3862_p0 = pneg %p3861_p12 }
 0x10e   : > { %p3867_p4 = pnand %p3865_p2, %p3862_p0 }
 0x110   : > { %3870 = shalt.err (!%p3867_p4)
}
 0x111   : > { %s3871_s7 = scalar_lea.vmem %s443_s28, 16  ;;  %s3878_s25 = scalar_lea.vmem %s443_s28, 32 }
 0x112   : > { %p3872_p1 = scmp.ne.s32.totalorder %s443_s28, %s3871_s7  ;;  %p3879_p6 = scmp.lt.s32.totalorder %s443_s28, %s443_s28 }
 0x113   : > { %p3880_p10 = scmp.lt.s32.totalorder %s3878_s25, %s3871_s7 }
 0x114   : > { %p3874_p9 = pnand %p3872_p1, %p4395_p7 }
 0x115   : > { %p3881_p8 = por %p3880_p10, %p3879_p6 }
 0x116   : > { %p3875_p11 = pneg %p3874_p9 }
 0x118   : > { %p3882_p13 = pnand %p3881_p8, %p3875_p11 }
 0x11a   : > { %3885 = shalt.err (!%p3882_p13)
}
 0x11b   : > { %3475 = dma.hbm_to_vmem [thread:$0]  (!%p6419_p3), %s6420_s6, 16, %s443_s28, [#allocation12]  }
 0x11c   : > { %s4218_s23 = smov [#allocation16]   ;;  %s4219_s16 = smov [#allocation19]  }
 0x11d   : > { %s466_s0 = sshll.u32 %s4218_s23, 4  ;;  %s490_s5 = sshll.u32 %s4219_s16, 4  ;;  %s467_s0 = int_to_ptr.vmem [resolvable:$true] %s466_s0  ;;  %s491_s5 = int_to_ptr.vmem [resolvable:$true] %s490_s5 }
 0x11e   : > { %s6421_s8 = sld [smem:[#allocation104_spill]] }
 0x124   : > { %s3886_s14 = scalar_lea.hbm %s6421_s8, 16 }
 0x125   : > { %p3887_p5 = scmp.ne.s32.totalorder %s6421_s8, %s3886_s14  ;;  %p3893_p2 = scmp.lt.u32.totalorder %s3886_s14, %s6421_s8 }
 0x127   : > { %p3889_p12 = pnand %p3887_p5, %p4395_p7 }
 0x129   : > { %p3890_p0 = pneg %p3889_p12 }
 0x12b   : > { %p3895_p4 = pnand %p3893_p2, %p3890_p0 }
 0x12d   : > { %3898 = shalt.err (!%p3895_p4)
}
 0x12e   : > { %s3899_s28 = scalar_lea.vmem %s467_s0, 16  ;;  %s3906_s11 = scalar_lea.vmem %s467_s0, 32 }
 0x12f   : > { %p3900_p1 = scmp.ne.s32.totalorder %s467_s0, %s3899_s28  ;;  %p3907_p6 = scmp.lt.s32.totalorder %s467_s0, %s467_s0 }
 0x130   : > { %p3908_p10 = scmp.lt.s32.totalorder %s3906_s11, %s3899_s28 }
 0x131   : > { %p3902_p9 = pnand %p3900_p1, %p4395_p7 }
 0x132   : > { %p3909_p8 = por %p3908_p10, %p3907_p6 }
 0x133   : > { %p3903_p11 = pneg %p3902_p9 }
 0x135   : > { %p3910_p13 = pnand %p3909_p8, %p3903_p11 }
 0x137   : > { %3913 = shalt.err (!%p3910_p13)
}
 0x138   : > { %3481 = dma.hbm_to_vmem [thread:$0]  (!%p6419_p3), %s6421_s8, 16, %s467_s0, [#allocation15]  }
 0x139   : > { %s6422_s10 = sld [smem:[#allocation106_spill]] }
 0x13f   : > { %s3914_s14 = scalar_lea.hbm %s6422_s10, 32 }
 0x140   : > { %p3915_p5 = scmp.ne.s32.totalorder %s6422_s10, %s3914_s14  ;;  %p3921_p2 = scmp.lt.u32.totalorder %s3914_s14, %s6422_s10 }
 0x142   : > { %p3917_p12 = pnand %p3915_p5, %p4395_p7 }
 0x144   : > { %p3918_p0 = pneg %p3917_p12 }
 0x146   : > { %p3923_p4 = pnand %p3921_p2, %p3918_p0 }
 0x148   : > { %3926 = shalt.err (!%p3923_p4)
}
 0x149   : > { %s3927_s11 = scalar_lea.vmem %s491_s5, 32  ;;  %p3935_p6 = scmp.lt.s32.totalorder %s491_s5, %s491_s5 }
 0x14a   : > { %p3928_p1 = scmp.ne.s32.totalorder %s491_s5, %s3927_s11  ;;  %p3936_p10 = scmp.lt.s32.totalorder %s3927_s11, %s3927_s11 }
 0x14c   : > { %p3930_p9 = pnand %p3928_p1, %p4395_p7  ;;  %p3937_p8 = por %p3936_p10, %p3935_p6 }
 0x14e   : > { %p3931_p11 = pneg %p3930_p9 }
 0x150   : > { %p3938_p13 = pnand %p3937_p8, %p3931_p11 }
 0x152   : > { %3941 = shalt.err (!%p3938_p13)
}
 0x153   : > { %3487 = dma.hbm_to_vmem [thread:$0]  (!%p6419_p3), %s6422_s10, 32, %s491_s5, [#allocation18]  }
 0x154   : > { %s4220_s16 = smov [#allocation22]   ;;  %s6423_s7 = sld [smem:[#allocation108_spill]] }
 0x155   : > { %s514_s1 = sshll.u32 %s4220_s16, 4  ;;  %s515_s1 = int_to_ptr.vmem [resolvable:$true] %s514_s1 }
 0x15a   : > { %s3942_s25 = scalar_lea.hbm %s6423_s7, 16 }
 0x15b   : > { %p3943_p5 = scmp.ne.s32.totalorder %s6423_s7, %s3942_s25  ;;  %p3949_p2 = scmp.lt.u32.totalorder %s3942_s25, %s6423_s7 }
 0x15d   : > { %p3945_p12 = pnand %p3943_p5, %p4395_p7 }
 0x15f   : > { %p3946_p0 = pneg %p3945_p12 }
 0x161   : > { %p3951_p4 = pnand %p3949_p2, %p3946_p0 }
 0x163   : > { %3954 = shalt.err (!%p3951_p4)
}
 0x164   : > { %s3955_s5 = scalar_lea.vmem %s515_s1, 16  ;;  %s3962_s0 = scalar_lea.vmem %s515_s1, 32 }
 0x165   : > { %p3956_p1 = scmp.ne.s32.totalorder %s515_s1, %s3955_s5  ;;  %p3963_p6 = scmp.lt.s32.totalorder %s515_s1, %s515_s1 }
 0x166   : > { %p3964_p10 = scmp.lt.s32.totalorder %s3962_s0, %s3955_s5 }
 0x167   : > { %p3958_p9 = pnand %p3956_p1, %p4395_p7 }
 0x168   : > { %p3965_p8 = por %p3964_p10, %p3963_p6 }
 0x169   : > { %p3959_p11 = pneg %p3958_p9 }
 0x16b   : > { %p3966_p13 = pnand %p3965_p8, %p3959_p11 }
 0x16d   : > { %3969 = shalt.err (!%p3966_p13)
}
 0x16e   : > { %s6424_s4 = sld [smem:[#allocation39_spill]]  ;;  %s6425_s24 = sld [smem:[#allocation38_spill]] }
 0x16f   : > { %s6426_s9 = sld [smem:[#allocation37_spill]]  ;;  %p51_p7 = scmp.ge.s32.totalorder %s6678_s27, 2 }
 0x170   : > { %3493 = dma.hbm_to_vmem [thread:$0]  (!%p6419_p3), %s6423_s7, 16, %s515_s1, [#allocation21]  }
 0x171   : > { %s2985_s14 = sshll.u32 %s4196_s19, 3  ;;  %s2987_s18 = sshll.u32 %s6676_s26, 3 }
 0x172   : > { %s2986_s25 = sadd.s32 4294967295, %s2985_s14  ;;  %s6680_s27 = smov (%p51_p7, %s6678_s27), 0 }
 0x173   : > { %6427 = sst [smem:[#allocation48_spill]] %s6680_s27  ;;  %p55_p5 = scmp.gt.s32.totalorder %s2986_s25, 0 }
 0x174   : > { %s2988_s2 = sadd.s32 4294967295, %s2987_s18  ;;  %s4702_s28 = ssub.s32 %s4200_s20, %s6680_s27 }
 0x175   : > { %p59_p12 = scmp.gt.s32.totalorder %s2988_s2, 0  ;;  %s6682_s25 = smov (!%p55_p5, %s2986_s25), 0 }
 0x176   : > { %s66_s1 = sadd.s32 1, %s6424_s4  ;;  %p73_p3 = scmp.ne.s32.totalorder %s6424_s4, %s6425_s24 }
 0x177   : > { %s6684_s2 = smov (!%p59_p12, %s2988_s2), 0  ;;  %p79_p0 = scmp.ne.s32.totalorder %s6425_s24, %s6426_s9 }
 0x178   : > { %s62_s11 = ssub.s32 %s6682_s25, %s6684_s2  ;;  %p6428_p2 = scmp.eq.s32.totalorder %s4204_s21, 0 }
 0x179   : > { %s63_s5 = sor.u32 %s62_s11, %s4702_s28  ;;  %p6430_p9 = scmp.eq.s32.totalorder %s4368_s22, 0 }
 0x17a   : > { %p4712_p4 = por %p6428_p2, %p73_p3  ;;  %p64_p1 = scmp.eq.s32.totalorder %s63_s5, 0 }
 0x17b   : > { %p4718_p11 = por %p6430_p9, %p79_p0  ;;  %s6432_s16 = ssub.s32 %s4196_s19, %s6676_s26 }
 0x17c   : > { %s91_s6 = sor.u32 %s6432_s16, %s4702_s28  ;;  %s4726_s7 = sadd.s32 8, %s2985_s14 }
 0x17d   : > { %s4729_s24 = scalar_select %p64_p1, %s6424_s4, %s66_s1  }
 0x17e   : > { %p92_p6 = scmp.eq.s32.totalorder %s91_s6, 0  ;;  %s4732_s9 = sadd.s32 8, %s2987_s18 }
 0x17f   : > { %6433 = sst [smem:[#allocation49_spill]] %s4729_s24  ;;  %s525_s2 = sand.u32 1, %s6424_s4  }
 0x180   : > { %s6434_s11 = sadd.s32 1, %s4172_s30  ;;  %s3003_s8 = sshll.u32 %s525_s2, 4 }
 0x181   : > { %s4738_s5 = scalar_select %p92_p6, %s4172_s30, %s6434_s11  }
 0x182   : > { %s3006_s10 = sshll.u32 %s6682_s25, 1  ;;  %s529_s27 = scalar_lea.vmem [#allocation2], %s3003_s8 }
 0x183   : > { %s539_s16 = sadd.s32 %s4549_s17, %s3006_s10  ;;  %s542_s26 = sshll.u32 %s529_s27, 4  ;;  %s4747_s26 = int_to_ptr.vmem [resolvable:$true] %s542_s26 }
 0x184   : > { %s3008_s14 = sshll.u32 %s539_s16, 7  ;;  %s6435_s1 = sld [smem:[#allocation96_spill]] }
 0x185   : > { %p6436_p13 = scmp.lt.s32.totalorder %s4204_s21, 4  ;;  %s4757_s8 = scalar_lea.sflag [#allocation3], %s525_s2 }
 0x187   : > { %p4753_p7 = pnand %p6436_p13, %p4712_p4 }
 0x189   : > { %p3972_p12 = pneg %p4753_p7 }
 0x18a   : > { %s4745_s24 = scalar_lea.hbm %s6435_s1, %s3008_s14  ;;  %s3975_s10 = scalar_lea.hbm %s6435_s1, 8192 }
 0x18b   : > { %s3970_s27 = scalar_lea.hbm %s4745_s24, 256  ;;  %p3976_p2 = scmp.lt.u32.totalorder %s4745_s24, %s6435_s1 }
 0x18c   : > { %p3971_p5 = scmp.ne.s32.totalorder %s4745_s24, %s3970_s27  ;;  %p3977_p4 = scmp.lt.u32.totalorder %s3975_s10, %s3970_s27 }
 0x18d   : > { %p3979_p9 = scmp.lt.u32.totalorder %s3970_s27, %s4745_s24 }
 0x18e   : > { %p3973_p3 = pnand %p3972_p12, %p3971_p5  ;;  %p3978_p1 = por %p3977_p4, %p3976_p2 }
 0x190   : > { %p3974_p0 = pneg %p3973_p3  ;;  %p3980_p6 = por %p3979_p9, %p3978_p1 }
 0x192   : > { %p3981_p13 = pnand %p3980_p6, %p3974_p0 }
 0x194   : > { %3984 = shalt.err (!%p3981_p13)
}
 0x195   : > { %s3985_s18 = scalar_lea.vmem %s4747_s26, 256  ;;  %s4221_s0 = smov [#allocation2]  }
 0x196   : > { %p3986_p5 = scmp.ne.s32.totalorder %s4747_s26, %s3985_s18  ;;  %s3990_s2 = sshll.u32 %s4221_s0, 4  ;;  %s3991_s2 = int_to_ptr.vmem [resolvable:$false] %s3990_s2 }
 0x197   : > { %s3992_s11 = scalar_lea.vmem %s3991_s2, 512  ;;  %p3993_p10 = scmp.lt.s32.totalorder %s4747_s26, %s3991_s2 }
 0x198   : > { %p3988_p3 = pnand %p3986_p5, %p3972_p12  ;;  %p3994_p2 = scmp.lt.s32.totalorder %s3992_s11, %s3985_s18 }
 0x19a   : > { %p3989_p8 = pneg %p3988_p3  ;;  %p3995_p4 = por %p3994_p2, %p3993_p10 }
 0x19c   : > { %p3996_p1 = pnand %p3995_p4, %p3989_p8 }
 0x19e   : > { %3999 = shalt.err (!%p3996_p1)
}
 0x19f   : > { %s6438_s16 = sld [smem:[#allocation35_spill]]  ;;  %s6439_s14 = sld [smem:[#allocation34_spill]] }
 0x1a0   : > { %s6440_s27 = sld [smem:[#allocation33_spill]]  ;;  %p6441_p10 = scmp.lt.s32.totalorder %s4726_s7, 15 }
 0x1a1   : > { %3497 = dma.hbm_to_vmem [thread:$0]  (!%p4753_p7), %s4745_s24, 256, %s4747_s26, %s4757_s8, %s6407_s3, %s6407_s3, %s6406_s15  }
 0x1a2   : > { %s6686_s7 = smov (!%p6441_p10, %s4726_s7), 15  ;;  %p6442_p8 = scmp.lt.s32.totalorder %s4732_s9, 15 }
 0x1a3   : > { %p6443_p9 = scmp.eq.s32.totalorder %s4204_s21, 0  ;;  %p6445_p5 = scmp.eq.s32.totalorder %s4368_s22, 0 }
 0x1a4   : > { %s6688_s9 = smov (!%p6442_p8, %s4732_s9), 15  ;;  %s3016_s8 = sshll.u32 %s6686_s7, 1 }
 0x1a5   : > { %s130_s6 = sadd.s32 1, %s6438_s16  ;;  %p137_p12 = scmp.ne.s32.totalorder %s6438_s16, %s6439_s14 }
 0x1a6   : > { %s126_s19 = ssub.s32 %s6686_s7, %s6688_s9  ;;  %p143_p0 = scmp.ne.s32.totalorder %s6439_s14, %s6440_s27 }
 0x1a7   : > { %s127_s20 = sor.u32 %s126_s19, %s4702_s28  ;;  %p4802_p6 = por %p137_p12, %p6443_p9 }
 0x1a8   : > { %p128_p13 = scmp.eq.s32.totalorder %s127_s20, 0  ;;  %p4808_p3 = por %p143_p0, %p6445_p5 }
 0x1a9   : > { %s578_s24 = sand.u32 1, %s6438_s16   ;;  %s590_s4 = sadd.s32 %s3016_s8, %s4549_s17 }
 0x1aa   : > { %s6446_s26 = scalar_select %p4808_p3, 1, 0 }
 0x1ab   : > { %s6690_s16 = smov (!%p128_p13, %s6438_s16), %s130_s6  ;;  %s3014_s9 = sshll.u32 %s578_s24, 4 }
 0x1ac   : > { %s3018_s25 = sshll.u32 %s590_s4, 7  ;;  %s6447_s0 = sld [smem:[#allocation98_spill]] }
 0x1ad   : > { %s580_s11 = scalar_lea.vmem [#allocation7], %s3014_s9  ;;  %p6448_p7 = scmp.lt.s32.totalorder %s4204_s21, 4 }
 0x1ae   : > { %s593_s14 = sshll.u32 %s580_s11, 4  ;;  %s4822_s14 = int_to_ptr.vmem [resolvable:$true] %s593_s14 }
 0x1af   : > { %p4828_p2 = pnand %p6448_p7, %p4802_p6 }
 0x1b1   : > { %p4002_p1 = pneg %p4828_p2 }
 0x1b2   : > { %s4820_s2 = scalar_lea.hbm %s6447_s0, %s3018_s25  ;;  %s4005_s19 = scalar_lea.hbm %s6447_s0, 8192 }
 0x1b3   : > { %s4000_s17 = scalar_lea.hbm %s4820_s2, 256  ;;  %p4006_p12 = scmp.lt.u32.totalorder %s4820_s2, %s6447_s0 }
 0x1b4   : > { %p4001_p4 = scmp.ne.s32.totalorder %s4820_s2, %s4000_s17  ;;  %p4007_p0 = scmp.lt.u32.totalorder %s4005_s19, %s4000_s17 }
 0x1b5   : > { %p4009_p6 = scmp.lt.u32.totalorder %s4000_s17, %s4820_s2 }
 0x1b6   : > { %p4003_p10 = pnand %p4002_p1, %p4001_p4  ;;  %p4008_p9 = por %p4007_p0, %p4006_p12 }
 0x1b8   : > { %p4004_p8 = pneg %p4003_p10  ;;  %p4010_p13 = por %p4009_p6, %p4008_p9 }
 0x1ba   : > { %p4011_p5 = pnand %p4010_p13, %p4004_p8 }
 0x1bc   : > { %4014 = shalt.err (!%p4011_p5)
}
 0x1bd   : > { %s4015_s24 = scalar_lea.vmem %s4822_s14, 256  ;;  %s4222_s8 = smov [#allocation7]  }
 0x1be   : > { %p4016_p7 = scmp.ne.s32.totalorder %s4822_s14, %s4015_s24  ;;  %s4020_s9 = sshll.u32 %s4222_s8, 4  ;;  %s4021_s9 = int_to_ptr.vmem [resolvable:$false] %s4020_s9 }
 0x1bf   : > { %s4022_s4 = scalar_lea.vmem %s4021_s9, 512  ;;  %p4023_p3 = scmp.lt.s32.totalorder %s4822_s14, %s4021_s9 }
 0x1c0   : > { %p4018_p4 = pnand %p4016_p7, %p4002_p1  ;;  %p4024_p12 = scmp.lt.s32.totalorder %s4022_s4, %s4015_s24 }
 0x1c2   : > { %p4019_p10 = pneg %p4018_p4  ;;  %p4025_p0 = por %p4024_p12, %p4023_p3 }
 0x1c4   : > { %p4026_p9 = pnand %p4025_p0, %p4019_p10 }
 0x1c6   : > { %4029 = shalt.err (!%p4026_p9)
}
 0x1c7   : > { %3503 = dma.hbm_to_vmem [thread:$0]  (!%p4828_p2), %s4820_s2, 256, %s4822_s14, %s4572_s13, %s6407_s3, %s6407_s3, %s6406_s15  }
 0x1c8   : > { %s6450_s25 = sld [smem:[#allocation44_spill]] }
 0x1ce   : > { %p6451_p1 = scmp.ne.s32.totalorder %s6450_s25, 0 }
 0x1d0   : > { %605 = sbr.rel (%p6451_p1) target bundleno = 1578 (0x62a), region = 72 }
 0x1d7   : > { %s6452_s28 = sld [smem:[#allocation38_spill]] }
 0x1dd   : > { %s607_s18 = sand.u32 1, %s6452_s28  }
 0x1de   : > { %s4864_s11 = sshll.u32 %s607_s18, 4  ;;  %s608_s17 = scalar_lea.sflag [#allocation3], %s607_s18 }
 0x1df   : > { %s611_s27 = scalar_lea.vmem [#allocation2], %s4864_s11 }
 0x1e0   : > { %4115 = dma.done.wait (%p4718_p11), %s608_s17, 256  }
 0x1e1   : > { %4117 = vsyncadd (%p4718_p11), %s608_s17, 4294967040  ;;  %s616_s15 = sand.u32 1, %s4368_s22   ;;  %s618_s3 = sand.u32 1, %s4168_s29  }
 0x1e2   : > { %s4875_s13 = sshll.u32 %s618_s3, 7  ;;  %s617_s2 = scalar_lea.sflag [#allocation6], %s616_s15 }
 0x1e3   : > { %s4878_s14 = scalar_lea.vmem [#allocation5], %s4875_s13  ;;  %p6453_p3 = scmp.ne.s32.totalorder %s6411_s12, 0 }
 0x1e5   : > { %4119 = dma.done.wait (%p6453_p3), %s617_s2, 2048  }
 0x1e6   : > { %4121 = vsyncadd (%p6453_p3), %s617_s2, 4294965248  ;;  %s6454_s23 = sld [smem:[#allocation34_spill]]  ;;  %p6455_p11 = scmp.ne.s32.totalorder %s6446_s26, 0 }
 0x1ec   : > { %s627_s7 = sand.u32 1, %s6454_s23  }
 0x1ed   : > { %s4885_s6 = sshll.u32 %s627_s7, 4 }
 0x1ee   : > { %s629_s19 = scalar_lea.vmem [#allocation7], %s4885_s6 }
 0x1ef   : > { %4123 = dma.done.wait (%p6455_p11), %s617_s2, 256  }
 0x1f0   : > { %4125 = vsyncadd (%p6455_p11), %s617_s2, 4294967040  ;;  %p6456_p2 = scmp.eq.s32.totalorder %s4368_s22, 0 }
 0x1f2   : > { %4127 = dma.done.wait (%p6456_p2), [#allocation9], 4128   ;;  %p6457_p8 = pmov %p6456_p2 }
 0x1f3   : > { %p6458_p6 = pmov %p6456_p2 }
 0x1f4   : > { %4129 = vsyncadd (%p6457_p8), [#allocation9], 4294963168 }
 0x1f5   : > { %4131 = dma.done.wait (%p6458_p6), [#allocation12], 272   ;;  %p6459_p13 = pmov %p6456_p2 }
 0x1f6   : > { %p6460_p5 = pmov %p6456_p2 }
 0x1f7   : > { %4133 = vsyncadd (%p6459_p13), [#allocation12], 4294967024 }
 0x1f8   : > { %4135 = dma.done.wait (%p6460_p5), [#allocation15], 2064   ;;  %p6461_p7 = pmov %p6456_p2 }
 0x1f9   : > { %p6462_p4 = pmov %p6456_p2 }
 0x1fa   : > { %4137 = vsyncadd (%p6461_p7), [#allocation15], 4294965232 }
 0x1fb   : > { %4139 = dma.done.wait (%p6462_p4), [#allocation18], 4128   ;;  %p6463_p10 = pmov %p6456_p2 }
 0x1fc   : > { %p6464_p12 = pmov %p6456_p2 }
 0x1fd   : > { %4141 = vsyncadd (%p6463_p10), [#allocation18], 4294963168 }
 0x1fe   : > { %4143 = dma.done.wait (%p6464_p12), [#allocation21], 2064   ;;  %p6465_p0 = pmov %p6456_p2 }
 0x1ff   : > { %v6340_v0 = vmov 0.0   ;;  %v749_v1 = vld [vmem:[#allocation8 + $0x8] sm:$0xff]  ;;  %v751_v2 = vld [vmem:[#allocation8 + $0x18] sm:$0xff]  ;;  %v748_v3 = vld [vmem:[#allocation8] sm:$0xff]  ;;  %s6466_s22 = sld [smem:[#allocation40_spill]]  ;;  %s6156_s20 = scalar_lea.vmem [#allocation23], %s4875_s13 }
 0x200   : > { %4145 = vsyncadd (%p6465_p0), [#allocation21], 4294965232  ;;  %856 = vmatprep.mubr.f32.mxu0 %v6340_v0  ;;  %1068 = vmatprep.mubr.f32.mxu1 %v6340_v0  ;;  %v4914_v4 = vpack.c.bf16 %v751_v2, %v749_v1  ;;  %v750_v5 = vld [vmem:[#allocation8 + $0x10] sm:$0xff]  ;;  %v753_v6 = vld [vmem:[#allocation8 + $0x28] sm:$0xff]  ;;  %s6650_s10 = sld [smem:[#allocation41_spill]]  ;;  %s6651_s4 = sld [smem:[#allocation46_spill]] }
 0x201   : > { %v755_v7 = vld [vmem:[#allocation8 + $0x38] sm:$0xff]  ;;  %v4916_v8 = vpack.c.bf16 %v750_v5, %v748_v3  ;;  %v752_v10 = vld [vmem:[#allocation8 + $0x20] sm:$0xff]  ;;  %v754_v11 = vld [vmem:[#allocation8 + $0x30] sm:$0xff]  ;;  %s2749_s25 = sshll.u32 %s6156_s20, 4  ;;  %s6652_s17 = sld [smem:[#allocation109_spill]]  ;;  %s6202_s25 = int_to_ptr.vmem [resolvable:$true] %s2749_s25 }
 0x202   : > { %v4918_v9 = vpack.c.bf16 %v755_v7, %v753_v6  ;;  %v757_v12 = vld [vmem:[#allocation8 + $0x48] sm:$0xff]  ;;  %3224 = vmatprep.subr.bf16.mxu0 %v4914_v4  ;;  %3256 = vmatprep.subr.bf16.mxu1 %v4914_v4  ;;  %v759_v13 = vld [vmem:[#allocation8 + $0x58] sm:$0xff]  ;;  %v4924_v14 = vpack.c.bf16 %v754_v11, %v752_v10  ;;  %v756_v16 = vld [vmem:[#allocation8 + $0x40] sm:$0xff]  ;;  %s6214_s15 = scalar_lea.sflag [#allocation4], %s618_s3  ;;  %s4030_s2 = scalar_lea.vmem %s6202_s25, 2048 }
 0x203   : > { %3226 = vmatpush1.bf16.msra.mxu0 %v4916_v8  ;;  %3258 = vmatpush1.bf16.msra.mxu1 %v4916_v8  ;;  %v4928_v15 = vpack.c.bf16 %v759_v13, %v757_v12  ;;  %v758_v17 = vld [vmem:[#allocation8 + $0x50] sm:$0xff]  ;;  %v761_v18 = vld [vmem:[#allocation8 + $0x68] sm:$0xff]  ;;  %v763_v19 = vld [vmem:[#allocation8 + $0x78] sm:$0xff]  ;;  %p4031_p3 = scmp.ne.s32.totalorder %s6202_s25, %s4030_s2 }
 0x204   : > { %3228 = vmatprep.subr.bf16.mxu0 %v4918_v9  ;;  %3260 = vmatprep.subr.bf16.mxu1 %v4918_v9  ;;  %v4932_v20 = vpack.c.bf16 %v758_v17, %v756_v16  ;;  %v4936_v21 = vpack.c.bf16 %v763_v19, %v761_v18  ;;  %v760_v22 = vld [vmem:[#allocation8 + $0x60] sm:$0xff]  ;;  %v762_v23 = vld [vmem:[#allocation8 + $0x70] sm:$0xff]  ;;  %v765_v24 = vld [vmem:[#allocation8 + $0x88] sm:$0xff] }
 0x205   : > { %v767_v25 = vld [vmem:[#allocation8 + $0x98] sm:$0xff]  ;;  %v4940_v26 = vpack.c.bf16 %v762_v23, %v760_v22  ;;  %v764_v28 = vld [vmem:[#allocation8 + $0x80] sm:$0xff]  ;;  %v766_v29 = vld [vmem:[#allocation8 + $0x90] sm:$0xff]  ;;  %p1001_p9 = scmp.gt.s32.totalorder %s6466_s22, 0  ;;  %p1090_p1 = scmp.lt.s32.totalorder %s6466_s22, 1 }
 0x206   : > { %v4944_v27 = vpack.c.bf16 %v767_v25, %v765_v24  ;;  %v769_v30 = vld [vmem:[#allocation8 + $0xa8] sm:$0xff]  ;;  %v771_v31 = vld [vmem:[#allocation8 + $0xb8] sm:$0xff]  ;;  %v3241_v32 = vpack.c.bf16 %v766_v29, %v764_v28  ;;  %v768_v34 = vld [vmem:[#allocation8 + $0xa0] sm:$0xff]  ;;  %s3046_s24 = sshll.u32 %s6466_s22, 4  ;;  %s3041_s8 = sshll.u32 %s6650_s10, 5 }
 0x207   : > { %3230 = vmatpush1.bf16.msra.mxu0 %v4924_v14  ;;  %3262 = vmatpush1.bf16.msra.mxu1 %v4924_v14  ;;  %v3243_v33 = vpack.c.bf16 %v771_v31, %v769_v30  ;;  %v770_v35 = vld [vmem:[#allocation8 + $0xb0] sm:$0xff]  ;;  %v773_v36 = vld [vmem:[#allocation8 + $0xc8] sm:$0xff]  ;;  %v775_v37 = vld [vmem:[#allocation8 + $0xd8] sm:$0xff]  ;;  %v782_v30 = vlaneseq  ;;  %s1085_s12 = scalar_select %p1001_p9, 1, 0 }
 0x208   : > { %3232 = vmatprep.subr.bf16.mxu0 %v4928_v15  ;;  %3264 = vmatprep.subr.bf16.mxu1 %v4928_v15  ;;  %v3245_v38 = vpack.c.bf16 %v770_v35, %v768_v34  ;;  %v3247_v39 = vpack.c.bf16 %v775_v37, %v773_v36  ;;  %v772_v40 = vld [vmem:[#allocation8 + $0xc0] sm:$0xff]  ;;  %v774_v41 = vld [vmem:[#allocation8 + $0xd0] sm:$0xff]  ;;  %v777_v42 = vld [vmem:[#allocation8 + $0xe8] sm:$0xff]  ;;  %s5083_s26 = scalar_select %p1090_p1, 1, 0 }
 0x209   : > { %v779_v43 = vld [vmem:[#allocation8 + $0xf8] sm:$0xff]  ;;  %v3249_v44 = vpack.c.bf16 %v774_v41, %v772_v40  ;;  %v776_v46 = vld [vmem:[#allocation8 + $0xe0] sm:$0xff]  ;;  %v778_v47 = vld [vmem:[#allocation8 + $0xf0] sm:$0xff]  ;;  %v5003_v31 = vshrl.u32 %v782_v30, 7  ;;  %v1086_v35 = vstv %s1085_s12  ;;  %s2746_s9 = sadd.s32 %s3046_s24, %s3041_s8  ;;  %s6653_s13 = smov %s6652_s17 }
 0x20a   : > { %v3251_v45 = vpack.c.bf16 %v779_v43, %v777_v42  ;;  %v3253_v48 = vpack.c.bf16 %v778_v47, %v776_v46  ;;  %v732_v49 = vld [vmem:[%s4878_s14] sm:$0xff]  ;;  %v733_v51 = vld [vmem:[%s4878_s14 + $0x8] sm:$0xff]  ;;  %v734_v53 = vld [vmem:[%s4878_s14 + $0x10] sm:$0xff]  ;;  %vm5028_vm0 = vcmp.eq.s32.totalorder %v1086_v35, 1  ;;  %s3042_s28 = sshll.u32 %s2746_s9, 7  ;;  %p6654_p11 = scmp.ne.s32.totalorder %s6651_s4, 0 }
 0x20b   : > { %3234 = vmatpush1.bf16.msra.mxu0 %v4932_v20  ;;  %3266 = vmatpush1.bf16.msra.mxu1 %v4932_v20  ;;  %v1002_v50 = vld [vmem:[%s611_s27] sm:$0xff]  ;;  %v1003_v52 = vld [vmem:[%s611_s27 + $0x8] sm:$0xff]  ;;  %v1758_v37 = vsub.s32 2, %v5003_v31  ;;  %v1794_v40 = vsub.s32 3, %v5003_v31  ;;  %v1830_v41 = vsub.s32 4, %v5003_v31  ;;  %v5019_v42 = vadd.s32 24, %v5003_v31  ;;  %s6208_s27 = scalar_lea.hbm %s6652_s17, %s3042_s28 }
 0x20c   : > { %3236 = vmatprep.subr.bf16.mxu0 %v4936_v21  ;;  %3268 = vmatprep.subr.bf16.mxu1 %v4936_v21  ;;  %v735_v54 = vld [vmem:[%s4878_s14 + $0x18] sm:$0xff]  ;;  %v736_v55 = vld [vmem:[%s4878_s14 + $0x20] sm:$0xff]  ;;  %v737_v56 = vld [vmem:[%s4878_s14 + $0x28] sm:$0xff]  ;;  %v5022_v43 = vadd.s32 32, %v5003_v31  ;;  %vm1480_vm2 = vcmp.lt.s32.totalorder %v5003_v31, 1  ;;  %vm1601_vm3 = vcmp.lt.s32.totalorder %v5003_v31, 7  ;;  %p4032_p2 = pnand %p4031_p3, %p6654_p11 }
 0x20d   : > { %v738_v57 = vld [vmem:[%s4878_s14 + $0x30] sm:$0xff]  ;;  %v739_v58 = vld [vmem:[%s4878_s14 + $0x38] sm:$0xff]  ;;  %v740_v59 = vld [vmem:[%s4878_s14 + $0x40] sm:$0xff]  ;;  %v5181_v35 = vadd.s32 104, %v5003_v31 }
 0x20e   : > { %v1091_v60 = vld [vmem:[%s629_s19] sm:$0xff]  ;;  %v741_v61 = vld [vmem:[%s4878_s14 + $0x48] sm:$0xff]  ;;  %v743_v1 = vld [vmem:[%s4878_s14 + $0x58] sm:$0xff]  ;;  %p4033_p8 = pneg %p4032_p2 }
 0x20f   : > { %3238 = vmatpush1.bf16.msra.mxu0 %v4940_v26  ;;  %3270 = vmatpush1.bf16.msra.mxu1 %v4940_v26  ;;  %v1092_v62 = vld [vmem:[%s629_s19 + $0x8] sm:$0xff]  ;;  %v742_v63 = vld [vmem:[%s4878_s14 + $0x50] sm:$0xff]  ;;  %v744_v2 = vld [vmem:[%s4878_s14 + $0x60] sm:$0xff]  ;;  %6484 = vst [vmem:[#allocation57_spill] sm:$0xff] %v5181_v35 }
 0x210   : > { %3240 = vmatprep.subr.bf16.mxu0 %v4944_v27  ;;  %3272 = vmatprep.subr.bf16.mxu1 %v4944_v27  ;;  %v745_v3 = vld [vmem:[%s4878_s14 + $0x68] sm:$0xff]  ;;  %v747_v5 = vld [vmem:[%s4878_s14 + $0x78] sm:$0xff]  ;;  %v780_v34 = vld [vmem:[#allocation10] sm:$0x3] }
 0x211   : > { %v2031_v6 = vld [vmem:[#allocation14] sm:$0xff]  ;;  %v2032_v7 = vld [vmem:[#allocation14 + $0x8] sm:$0xff]  ;;  %v2034_v10 = vld [vmem:[#allocation14 + $0x18] sm:$0xff] }
 0x212   : > { %v2035_v12 = vld [vmem:[#allocation14 + $0x20] sm:$0xff]  ;;  %v2036_v13 = vld [vmem:[#allocation14 + $0x28] sm:$0xff]  ;;  %v2038_v16 = vld [vmem:[#allocation14 + $0x38] sm:$0xff] }
 0x213   : > { %3242 = vmatpush1.bf16.msra.mxu0 %v3241_v32  ;;  %3274 = vmatpush1.bf16.msra.mxu1 %v3241_v32  ;;  %v2039_v18 = vld [vmem:[#allocation14 + $0x40] sm:$0xff]  ;;  %v2040_v19 = vld [vmem:[#allocation14 + $0x48] sm:$0xff]  ;;  %v2042_v22 = vld [vmem:[#allocation14 + $0x58] sm:$0xff] }
 0x214   : > { %3244 = vmatprep.subr.bf16.mxu0 %v3243_v33  ;;  %3276 = vmatprep.subr.bf16.mxu1 %v3243_v33  ;;  %v2043_v24 = vld [vmem:[#allocation14 + $0x60] sm:$0xff]  ;;  %v2044_v25 = vld [vmem:[#allocation14 + $0x68] sm:$0xff]  ;;  %v2046_v28 = vld [vmem:[#allocation14 + $0x78] sm:$0xff] }
 0x215   : > { %v5011_v36 = vld [vmem:[#allocation11] sm:$0xff] }
 0x217   : > { %3246 = vmatpush1.bf16.msra.mxu0 %v3245_v38  ;;  %3278 = vmatpush1.bf16.msra.mxu1 %v3245_v38 }
 0x218   : > { %3248 = vmatprep.subr.bf16.mxu0 %v3247_v39  ;;  %3280 = vmatprep.subr.bf16.mxu1 %v3247_v39 }
 0x21b   : > { %3250 = vmatpush1.bf16.msra.mxu0 %v3249_v44  ;;  %3282 = vmatpush1.bf16.msra.mxu1 %v3249_v44 }
 0x21c   : > { %3252 = vmatprep.subr.bf16.mxu0 %v3251_v45  ;;  %3284 = vmatprep.subr.bf16.mxu1 %v3251_v45 }
 0x21f   : > { %3254 = vmatpush1.bf16.msra.mxu0 %v3253_v48  ;;  %3286 = vmatpush1.bf16.msra.mxu1 %v3253_v48 }
 0x220   : > { %3288 = vmatprep.subr.bf16.mxu1 %v4914_v4  ;;  %v746_v4 = vld [vmem:[%s4878_s14 + $0x70] sm:$0xff]  ;;  %s4224_s14 = smov [#allocation23]  }
 0x221   : > { %s4034_s23 = sshll.u32 %s4224_s14, 4  ;;  %s4035_s23 = int_to_ptr.vmem [resolvable:$false] %s4034_s23 }
 0x222   : > { %857 = vmatmul.mubr.f32.vlgmr.msra.gmra.mrb[0].mxu0 %v732_v49  ;;  %1069 = vmatmul.mubr.f32.vlgmr.msra.gmra.mrb[0].mxu1 %v1002_v50  ;;  %v5041_v49 = vrot.slane %v5011_v36, %v1758_v37  ;;  %v2216_v37 = vld [vmem:[#allocation17 + $0x8] sm:$0xff]  ;;  %s4036_s7 = scalar_lea.vmem %s4035_s23, 4096  ;;  %p4037_p6 = scmp.lt.s32.totalorder %s6202_s25, %s4035_s23 }
 0x223   : > { %3290 = vmatpush1.bf16.msra.mxu1 %v4916_v8  ;;  %862 = vmatprep.mubr.f32.mxu0 %v6340_v0  ;;  %v3319_v8 = vpack.c.bf16 %v2032_v7, %v2031_v6  ;;  %v1938_v7 = vsub.s32 7, %v5003_v31  ;;  %p4038_p13 = scmp.lt.s32.totalorder %s4036_s7, %s4030_s2 }
 0x224   : > { %1073 = vmatprep.mubr.f32.mxu1 %v6340_v0  ;;  %3292 = vmatprep.subr.bf16.mxu1 %v4918_v9  ;;  %v2033_v9 = vld [vmem:[#allocation14 + $0x10] sm:$0xff] }
 0x225   : > { %3320 = vmatprep.subr.bf16.mxu0 %v3319_v8  ;;  %v3323_v11 = vpack.c.bf16 %v2034_v10, %v2033_v9  ;;  %p4039_p5 = por %p4038_p13, %p4037_p6 }
 0x226   : > { %863 = vmatmul.mubr.f32.gmra.mrb[2].mxu0 %v733_v51  ;;  %1074 = vmatmul.mubr.f32.gmra.mrb[2].mxu1 %v1003_v52  ;;  %v5044_v51 = vadd.s32 40, %v5003_v31 }
 0x227   : > { %3294 = vmatpush1.bf16.msra.mxu1 %v4924_v14  ;;  %868 = vmatprep.mubr.f32.mxu0 %v6340_v0  ;;  %v2037_v14 = vld [vmem:[#allocation14 + $0x30] sm:$0xff]  ;;  %p4040_p7 = pnand %p4039_p5, %p4033_p8 }
 0x228   : > { %3296 = vmatprep.subr.bf16.mxu1 %v4928_v15  ;;  %1157 = vmatprep.mubr.f32.mxu1 %v6340_v0  ;;  %v3327_v15 = vpack.c.bf16 %v2036_v13, %v2035_v12  ;;  %v3331_v17 = vpack.c.bf16 %v2038_v16, %v2037_v14  ;;  %v5090_v12 = vadd.s32 72, %v5003_v31 }
 0x229   : > { %3322 = vmatpush3.bf16.msra.mxu0 %v3319_v8  ;;  %v1239_v8 = vand.u32 15, %v5044_v51 }
 0x22a   : > { %869 = vmatmul.mubr.f32.gmra.mrb[4].mxu0 %v734_v53  ;;  %3324 = vmatprep.subr.bf16.mxu0 %v3323_v11  ;;  %v5047_v53 = vrot.slane %v5011_v36, %v1794_v40 }
 0x22b   : > { %3298 = vmatpush1.bf16.msra.mxu1 %v4932_v20  ;;  %874 = vmatprep.mubr.f32.mxu0 %v6340_v0  ;;  %v3335_v20 = vpack.c.bf16 %v2040_v19, %v2039_v18  ;;  %vm5226_vm14 = vcmp.lt.s32.totalorder %v1239_v8, 15 }
 0x22c   : > { %3300 = vmatprep.subr.bf16.mxu1 %v4936_v21  ;;  %v2041_v21 = vld [vmem:[#allocation14 + $0x50] sm:$0xff] }
 0x22d   : > { %3326 = vmatpush3.bf16.msra.mxu0 %v3323_v11  ;;  %v3339_v23 = vpack.c.bf16 %v2042_v22, %v2041_v21  ;;  %v5087_v11 = vadd.s32 56, %v5003_v31 }
 0x22e   : > { %875 = vmatmul.mubr.f32.gmra.mrb[6].mxu0 %v735_v54  ;;  %3328 = vmatprep.subr.bf16.mxu0 %v3327_v15  ;;  %v5050_v54 = vrot.slane %v5011_v36, %v1830_v41 }
 0x22f   : > { %3302 = vmatpush1.bf16.msra.mxu1 %v4940_v26  ;;  %880 = vmatprep.mubr.f32.mxu0 %v6340_v0  ;;  %v3343_v26 = vpack.c.bf16 %v2044_v25, %v2043_v24 }
 0x230   : > { %3304 = vmatprep.subr.bf16.mxu1 %v4944_v27  ;;  %v2045_v27 = vld [vmem:[#allocation14 + $0x70] sm:$0xff] }
 0x231   : > { %3330 = vmatpush3.bf16.msra.mxu0 %v3327_v15  ;;  %v3347_v29 = vpack.c.bf16 %v2046_v28, %v2045_v27 }
 0x232   : > { %881 = vmatmul.mubr.f32.gmra.mrb[8].mxu0 %v736_v55  ;;  %3332 = vmatprep.subr.bf16.mxu0 %v3331_v17  ;;  %v5053_v55 = vadd.s32 48, %v5003_v31 }
 0x233   : > { %3306 = vmatpush1.bf16.msra.mxu1 %v3241_v32  ;;  %886 = vmatprep.mubr.f32.mxu0 %v6340_v0  ;;  %v5006_v32 = vsub.s32 0, %v5003_v31 }
 0x234   : > { %3308 = vmatprep.subr.bf16.mxu1 %v3243_v33  ;;  %v5009_v33 = vsub.s32 1, %v5003_v31  ;;  %v1246_v9 = vand.u32 15, %v5053_v55 }
 0x235   : > { %3334 = vmatpush3.bf16.msra.mxu0 %v3331_v17  ;;  %6467 = vst [vmem:[#allocation50_spill] sm:$0xff] %v5006_v32 }
 0x236   : > { %887 = vmatmul.mubr.f32.gmra.mrb[10].mxu0 %v737_v56  ;;  %3336 = vmatprep.subr.bf16.mxu0 %v3335_v20  ;;  %6468 = vst [vmem:[#allocation51_spill] sm:$0xff] %v5009_v33  ;;  %v5034_v47 = vrot.slane %v5011_v36, %v5009_v33  ;;  %v1225_v56 = vand.u32 15, %v5019_v42  ;;  %vm5214_vm12 = vcmp.gt.s32.totalorder %v1246_v9, 0 }
 0x237   : > { %3310 = vmatpush1.bf16.msra.mxu1 %v3245_v38  ;;  %892 = vmatprep.mubr.f32.mxu0 %v6340_v0  ;;  %v1181_v38 = vadd.s32 8, %v5003_v31 }
 0x238   : > { %3312 = vmatprep.subr.bf16.mxu1 %v3247_v39  ;;  %v1182_v39 = vadd.s32 16, %v5003_v31  ;;  %vm5142_vm10 = vcmp.lt.s32.totalorder %v1225_v56, 15 }
 0x239   : > { %3338 = vmatpush3.bf16.msra.mxu0 %v3335_v20  ;;  %v1211_v50 = vand.u32 15, %v1181_v38  ;;  %v2218_v38 = vld [vmem:[#allocation17 + $0x18] sm:$0xff] }
 0x23a   : > { %893 = vmatmul.mubr.f32.gmra.mrb[12].mxu0 %v738_v57  ;;  %3340 = vmatprep.subr.bf16.mxu0 %v3339_v23  ;;  %v1218_v52 = vand.u32 15, %v1182_v39  ;;  %v1232_v57 = vand.u32 15, %v5022_v43  ;;  %v2215_v39 = vld [vmem:[#allocation17] sm:$0xff] }
 0x23b   : > { %3314 = vmatpush1.bf16.msra.mxu1 %v3249_v44  ;;  %898 = vmatprep.mubr.f32.mxu0 %v6340_v0  ;;  %v1866_v44 = vsub.s32 5, %v5003_v31  ;;  %vm5098_vm6 = vcmp.lt.s32.totalorder %v1211_v50, 15  ;;  %v2217_v50 = vld [vmem:[#allocation17 + $0x10] sm:$0xff] }
 0x23c   : > { %3316 = vmatprep.subr.bf16.mxu1 %v3251_v45  ;;  %v5026_v45 = vrot.slane %v780_v34, %v5006_v32  ;;  %vm5094_vm5 = vcmp.gt.s32.totalorder %v1218_v52, 0  ;;  %v2220_v52 = vld [vmem:[#allocation17 + $0x28] sm:$0xff]  ;;  %vm5136_vm9 = vcmp.gt.s32.totalorder %v1232_v57, 0 }
 0x23d   : > { %3342 = vmatpush3.bf16.msra.mxu0 %v3339_v23 }
 0x23e   : > { %899 = vmatmul.mubr.f32.gmra.mrb[14].mxu0 %v739_v58  ;;  %3344 = vmatprep.subr.bf16.mxu0 %v3343_v26  ;;  %v5059_v58 = vrot.slane %v5011_v36, %v1866_v44  ;;  %v5124_v44 = vrot.slane %v5011_v36, %v1938_v7 }
 0x23f   : > { %3318 = vmatpush1.bf16.msra.mxu1 %v3253_v48  ;;  %904 = vmatprep.mubr.f32.mxu0 %v6340_v0  ;;  %v5038_v48 = vrot.slane %v5011_v36, %v5006_v32 }
 0x241   : > { %3346 = vmatpush3.bf16.msra.mxu0 %v3343_v26 }
 0x242   : > { %905 = vmatmul.mubr.f32.gmra.mrb[16].mxu0 %v740_v59  ;;  %1158 = vmatmul.mubr.f32.vlgmr.msra.gmra.mrb[4].mxu1 %v1091_v60  ;;  %v1902_v59 = vsub.s32 6, %v5003_v31 }
 0x243   : > { %910 = vmatprep.mubr.f32.mxu0 %v6340_v0  ;;  %1162 = vmatprep.mubr.f32.mxu1 %v6340_v0 }
 0x244   : > { %3348 = vmatprep.subr.bf16.mxu0 %v3347_v29  ;;  %v5117_v30 = vrot.slane %v5011_v36, %v1902_v59  ;;  %v2222_v59 = vld [vmem:[#allocation17 + $0x38] sm:$0xff] }
 0x245   : > { %3350 = vmatpush3.bf16.msra.mxu0 %v3347_v29 }
 0x246   : > { %911 = vmatmul.mubr.f32.gmra.mrb[18].mxu0 %v741_v61  ;;  %1163 = vmatmul.mubr.f32.gmra.mrb[6].mxu1 %v1092_v62  ;;  %v5063_v62 = vadd.s32 64, %v5003_v31 }
 0x247   : > { %916 = vmatprep.mubr.f32.mxu0 %v6340_v0  ;;  %2323 = vmatprep.mubr.f32.mxu1 %v6340_v0 }
 0x24a   : > { %917 = vmatmul.mubr.f32.gmra.mrb[20].mxu0 %v742_v63  ;;  %v5066_v63 = vadd.s32 80, %v5003_v31 }
 0x24b   : > { %922 = vmatprep.mubr.f32.mxu0 %v6340_v0 }
 0x24e   : > { %923 = vmatmul.mubr.f32.gmra.mrb[22].mxu0 %v743_v1  ;;  %v5069_v1 = vadd.s32 96, %v5003_v31 }
 0x24f   : > { %928 = vmatprep.mubr.f32.mxu0 %v6340_v0 }
 0x252   : > { %929 = vmatmul.mubr.f32.gmra.mrb[24].mxu0 %v744_v2  ;;  %v5072_v2 = vadd.s32 112, %v5003_v31 }
 0x253   : > { %934 = vmatprep.mubr.f32.mxu0 %v6340_v0 }
 0x256   : > { %935 = vmatmul.mubr.f32.gmra.mrb[26].mxu0 %v745_v3 }
 0x257   : > { %940 = vmatprep.mubr.f32.mxu0 %v6340_v0 }
 0x25a   : > { %941 = vmatmul.mubr.f32.gmra.mrb[28].mxu0 %v746_v4 }
 0x25b   : > { %946 = vmatprep.mubr.f32.mxu0 %v6340_v0 }
 0x25e   : > { %947 = vmatmul.mubr.f32.gmra.mrb[30].mxu0 %v747_v5 }
 0x2f5   : > { %v1070_v60 = vpop.f32.mrb[0].mxu1  ;;  %v858_v61 = vpop.f32.mrb[0].mxu0 }
 0x2f6   : > { %v1071_v3 = vadd.f32 %v1070_v60, %v5026_v45  ;;  %v1072_v4 = vpop.f32.mrb[1].mxu1  ;;  %v859_v5 = vadd.f32 %v858_v61, %v5026_v45  ;;  %v5076_v6 = vpop.f32.mrb[1].mxu0 }
 0x2f7   : > { %6471 = vst [vmem:[#allocation52_spill] sm:$0xff] %v5076_v6  ;;  %v1175_v4 = vstv %s5083_s26 }
 0x2f8   : > { %vm1079_vm1 = vcmp.ge.f32.partialorder %v1071_v3, 0.0  ;;  %v1081_v13 = vmul.f32 0.01, %v1071_v3  ;;  %vm953_vm4 = vcmp.ge.f32.partialorder %v859_v5, 0.0  ;;  %v969_v14 = vmul.f32 0.01, %v859_v5 }
 0x2f9   : > { %v1075_v15 = vpop.f32.mrb[2].mxu1  ;;  %v864_v18 = vpop.f32.mrb[2].mxu0 }
 0x2fa   : > { %v1083_v23 = vsel %vm1079_vm1, %v1071_v3, %v1081_v13  ;;  %v1076_v24 = vadd.f32 %v1075_v15, %v5026_v45  ;;  %v5107_v25 = vsel %vm953_vm4, %v859_v5, %v969_v14  ;;  %v865_v26 = vadd.f32 %v864_v18, %v5026_v45  ;;  %v5110_v27 = vpop.f32.mrb[3].mxu0  ;;  %v1077_v28 = vpop.f32.mrb[3].mxu1 }
 0x2fb   : > { %6476 = vst [vmem:[#allocation53_spill] sm:$0xff] %v5110_v27  ;;  %v5114_v29 = vsel %vm5028_vm0, %v1083_v23, 0.0  ;;  %v1462_v40 = vrot.slane %v5107_v25, 7  ;;  %v1583_v41 = vrot.slane %v5107_v25, 1  ;;  %v1726_v5 = vmul.f32 %v5034_v47, %v5107_v25 }
 0x2fc   : > { %6477 = vst [vmem:[#allocation54_spill] sm:$0xff] %v5114_v29  ;;  %vm1080_vm7 = vcmp.ge.f32.partialorder %v1076_v24, 0.0  ;;  %v1082_v60 = vmul.f32 0.01, %v1076_v24  ;;  %vm954_vm8 = vcmp.ge.f32.partialorder %v865_v26, 0.0  ;;  %v3351_v15 = vpack.c.bf16 %v2218_v38, %v2216_v37 }
 0x2fd   : > { %v970_v61 = vmul.f32 0.01, %v865_v26  ;;  %v870_v3 = vpop.f32.mrb[4].mxu0  ;;  %v3353_v18 = vpack.c.bf16 %v2217_v50, %v2215_v39  ;;  %v6343_v36 = vrot.slane %v5114_v29, 7  ;;  %v6342_v37 = vrot.slane %v5114_v29, 1 }
 0x2fe   : > { %v871_v13 = vadd.f32 %v870_v3, %v5026_v45  ;;  %v5130_v14 = vpop.f32.mrb[5].mxu0  ;;  %v1084_v7 = vsel %vm1080_vm7, %v1076_v24, %v1082_v60  ;;  %v3355_v3 = vpack.c.bf16 %v2222_v59, %v2220_v52  ;;  %3352 = vmatprep.subr.bf16.mxu1 %v3351_v15  ;;  %vm5285_vm1 = vcmp.eq.s32.totalorder %v1175_v4, 1 }
 0x2ff   : > { %6478 = vst [vmem:[#allocation55_spill] sm:$0xff] %v5130_v14  ;;  %v986_v23 = vsel %vm954_vm8, %v865_v26, %v970_v61  ;;  %v1089_v38 = vsel %vm5028_vm0, %v1084_v7, 0.0  ;;  %3354 = vmatpush1.bf16.msra.mxu1 %v3353_v18  ;;  %v6524_v27 = vand.u32 15, %v5072_v2 }
 0x300   : > { %v1463_v24 = vrot.slane %v986_v23, 7  ;;  %v1584_v26 = vrot.slane %v986_v23, 1  ;;  %v1461_v43 = vrot.slane %v1089_v38, 7  ;;  %v1582_v57 = vrot.slane %v1089_v38, 1  ;;  %3356 = vmatprep.subr.bf16.mxu1 %v3355_v3 }
 0x301   : > { %v1725_v39 = vmul.f32 %v5034_v47, %v1089_v38  ;;  %v1727_v50 = vmul.f32 %v5034_v47, %v986_v23  ;;  %v876_v42 = vpop.f32.mrb[6].mxu0  ;;  %vm955_vm11 = vcmp.ge.f32.partialorder %v871_v13, 0.0  ;;  %v971_v46 = vmul.f32 0.01, %v871_v13 }
 0x302   : > { %v1497_v56 = vsel %vm1480_vm2, %v1462_v40, %v1463_v24  ;;  %v5155_v52 = vsel %vm1601_vm3, %v1583_v41, %v1584_v26  ;;  %v5157_v59 = vpop.f32.mrb[7].mxu0  ;;  %v1499_v60 = vsel %vm1480_vm2, %v6343_v36, %v1461_v43  ;;  %v5167_v61 = vsel %vm1601_vm3, %v6342_v37, %v1582_v57 }
 0x303   : > { %6483 = vst [vmem:[#allocation56_spill] sm:$0xff] %v5157_v59  ;;  %v1498_v15 = vsel %vm1480_vm2, %v1461_v43, %v1462_v40  ;;  %v1619_v18 = vsel %vm1601_vm3, %v1582_v57, %v1583_v41  ;;  %v1689_v7 = vmul.f32 %v5038_v48, %v1499_v60  ;;  %v1691_v43 = vmul.f32 %v5038_v48, %v1497_v56 }
 0x304   : > { %v5176_v3 = vsel %vm5094_vm5, %v1498_v15, 0.0  ;;  %v1663_v38 = vsel %vm5098_vm6, %v1619_v18, 0.0  ;;  %v5188_v57 = vadd.s32 88, %v5003_v31  ;;  %v1762_v60 = vmul.f32 %v5041_v49, %v5155_v52 }
 0x305   : > { %v1690_v37 = vmul.f32 %v5038_v48, %v5176_v3  ;;  %v1761_v40 = vmul.f32 %v5041_v49, %v1663_v38  ;;  %v882_v41 = vpop.f32.mrb[8].mxu0  ;;  %v1741_v16 = vadd.f32 %v1725_v39, %v1689_v7  ;;  %v1797_v17 = vmul.f32 %v5047_v53, %v1497_v56 }
 0x306   : > { %v5194_v15 = vsel %vm955_vm11, %v871_v13, %v971_v46  ;;  %v5196_v18 = vpop.f32.mrb[9].mxu0  ;;  %v1743_v22 = vadd.f32 %v1727_v50, %v1691_v43  ;;  %v1833_v20 = vmul.f32 %v5050_v54, %v986_v23  ;;  %v877_v7 = vadd.f32 %v876_v42, %v5026_v45 }
 0x307   : > { %6485 = vst [vmem:[#allocation58_spill] sm:$0xff] %v5196_v18  ;;  %v1742_v34 = vadd.f32 %v1726_v5, %v1690_v37  ;;  %v1464_v38 = vrot.slane %v5194_v15, 7  ;;  %v6344_v21 = vrot.slane %v5194_v15, 1  ;;  %v1777_v36 = vadd.f32 %v1761_v40, %v1741_v16 }
 0x308   : > { %v1728_v39 = vmul.f32 %v5034_v47, %v5194_v15  ;;  %v1834_v37 = vmul.f32 %v5050_v54, %v5194_v15  ;;  %vm956_vm13 = vcmp.ge.f32.partialorder %v877_v7, 0.0  ;;  %v972_v40 = vmul.f32 0.01, %v877_v7 }
 0x309   : > { %v1778_v56 = vadd.f32 %v1762_v60, %v1742_v34  ;;  %v1496_v13 = vsel %vm1480_vm2, %v1463_v24, %v1464_v38  ;;  %v1617_v5 = vsel %vm1601_vm3, %v1584_v26, %v6344_v21  ;;  %v888_v50 = vpop.f32.mrb[10].mxu0  ;;  %v1813_v42 = vadd.f32 %v1797_v17, %v1777_v36 }
 0x30a   : > { %v5220_v34 = vsel %vm5136_vm9, %v1496_v13, 0.0  ;;  %v1665_v24 = vsel %vm5142_vm10, %v1617_v5, 0.0  ;;  %v5230_v55 = vpop.f32.mrb[11].mxu0  ;;  %v883_v51 = vadd.f32 %v882_v41, %v5026_v45  ;;  %v889_v17 = vadd.f32 %v888_v50, %v5026_v45 }
 0x30b   : > { %6490 = vst [vmem:[#allocation59_spill] sm:$0xff] %v5230_v55  ;;  %v1692_v9 = vmul.f32 %v5038_v48, %v5220_v34  ;;  %v1763_v36 = vmul.f32 %v5041_v49, %v1665_v24  ;;  %v1798_v28 = vmul.f32 %v5047_v53, %v5220_v34  ;;  %v1869_v0 = vmul.f32 %v5059_v58, %v1665_v24 }
 0x30c   : > { %v1849_v46 = vadd.f32 %v1833_v20, %v1813_v42  ;;  %v5244_v5 = vsel %vm956_vm13, %v877_v7, %v972_v40  ;;  %vm957_vm15 = vcmp.ge.f32.partialorder %v883_v51, 0.0  ;;  %v973_v10 = vmul.f32 0.01, %v883_v51 }
 0x30d   : > { %v5240_v43 = vadd.f32 %v1728_v39, %v1692_v9  ;;  %v1814_v16 = vadd.f32 %v1798_v28, %v1778_v56  ;;  %v1779_v60 = vadd.f32 %v1763_v36, %v1743_v22  ;;  %v894_v13 = vpop.f32.mrb[12].mxu0  ;;  %v1465_v41 = vrot.slane %v5244_v5, 7 }
 0x30e   : > { %v1885_v21 = vadd.f32 %v1869_v0, %v1849_v46  ;;  %v5246_v24 = vpop.f32.mrb[13].mxu0  ;;  %v6347_v39 = vrot.slane %v5244_v5, 1  ;;  %v1729_v22 = vmul.f32 %v5034_v47, %v5244_v5  ;;  %v1835_v7 = vmul.f32 %v5050_v54, %v5244_v5 }
 0x30f   : > { %6491 = vst [vmem:[#allocation60_spill] sm:$0xff] %v5246_v24  ;;  %v5248_v20 = vadd.f32 %v1834_v37, %v1814_v16  ;;  %v5257_v50 = vsel %vm957_vm15, %v883_v51, %v973_v10  ;;  %v5260_v42 = vadd.s32 128, %v5003_v31  ;;  %v1495_v37 = vsel %vm1480_vm2, %v1464_v38, %v1465_v41 }
 0x310   : > { %v1941_v9 = vmul.f32 %v5124_v44, %v5244_v5  ;;  %v1466_v36 = vrot.slane %v5257_v50, 7  ;;  %v6346_v28 = vrot.slane %v5257_v50, 1  ;;  %v1693_v46 = vmul.f32 %v5038_v48, %v1495_v37 }
 0x311   : > { %6492 = vst [vmem:[#allocation61_spill] sm:$0xff] %v5260_v42  ;;  %v900_v0 = vpop.f32.mrb[14].mxu0  ;;  %v1799_v40 = vmul.f32 %v5047_v53, %v1495_v37  ;;  %v1905_v10 = vmul.f32 %v5117_v30, %v1495_v37  ;;  %vm958_vm0 = vcmp.ge.f32.partialorder %v889_v17, 0.0  ;;  %v1730_v8 = vmul.f32 %v5034_v47, %v5257_v50 }
 0x312   : > { %v5271_v51 = vpop.f32.mrb[15].mxu0  ;;  %v1494_v38 = vsel %vm1480_vm2, %v1465_v41, %v1466_v36  ;;  %v1615_v16 = vsel %vm1601_vm3, %v6347_v39, %v6346_v28  ;;  %v974_v37 = vmul.f32 0.01, %v889_v17  ;;  %v1745_v19 = vadd.f32 %v1729_v22, %v1693_v46 }
 0x313   : > { %6493 = vst [vmem:[#allocation62_spill] sm:$0xff] %v5271_v51  ;;  %v1815_v32 = vadd.f32 %v1799_v40, %v1779_v60  ;;  %v1921_v24 = vadd.f32 %v1905_v10, %v1885_v21  ;;  %v5291_v41 = vsel %vm5214_vm12, %v1494_v38, 0.0  ;;  %v5295_v51 = vsel %vm5226_vm14, %v1615_v16, 0.0 }
 0x314   : > { %v1694_v28 = vmul.f32 %v5038_v48, %v5291_v41  ;;  %v5299_v4 = vsel %vm958_vm0, %v889_v17, %v974_v37  ;;  %v895_v18 = vadd.f32 %v894_v13, %v5026_v45  ;;  %v6496_v22 = vand.u32 15, %v5063_v62 }
 0x315   : > { %v1159_v39 = vpop.f32.mrb[4].mxu1  ;;  %v906_v23 = vpop.f32.mrb[16].mxu0  ;;  %v5308_v60 = vadd.f32 %v1835_v7, %v1815_v32  ;;  %v5310_v26 = vadd.f32 %v1941_v9, %v1921_v24  ;;  %v1765_v46 = vmul.f32 %v5041_v49, %v5295_v51  ;;  %v1467_v62 = vrot.slane %v5299_v4, 7 }
 0x316   : > { %vm5304_vm4 = vcmp.gt.s32.totalorder %v6496_v22, 0  ;;  %v1160_v40 = vadd.f32 %v1159_v39, %v5026_v45  ;;  %v1161_v17 = vpop.f32.mrb[5].mxu1  ;;  %v5315_v10 = vpop.f32.mrb[17].mxu0  ;;  %v5317_v13 = vadd.f32 %v1730_v8, %v1694_v28  ;;  %v5321_v38 = vadd.s32 120, %v5003_v31 }
 0x317   : > { %6499 = vst [vmem:[#allocation63_spill] sm:$0xff] %v5315_v10  ;;  %v1781_v7 = vadd.f32 %v1765_v46, %v1745_v19  ;;  %v5325_v9 = vadd.s32 136, %v5003_v31  ;;  %v6502_v39 = vand.u32 15, %v5003_v31  ;;  %v5335_v8 = vsel %vm1480_vm2, %v1466_v36, %v1467_v62 }
 0x318   : > { %6500 = vst [vmem:[#allocation64_spill] sm:$0xff] %v5321_v38  ;;  %vm1168_vm5 = vcmp.ge.f32.partialorder %v1160_v40, 0.0  ;;  %v1170_v24 = vmul.f32 0.01, %v1160_v40  ;;  %v1731_v28 = vmul.f32 %v5034_v47, %v5299_v4  ;;  %vm959_vm7 = vcmp.ge.f32.partialorder %v895_v18, 0.0 }
 0x319   : > { %6501 = vst [vmem:[#allocation65_spill] sm:$0xff] %v5325_v9  ;;  %v1164_v16 = vpop.f32.mrb[6].mxu1  ;;  %vm5329_vm6 = vcmp.gt.s32.totalorder %v6502_v39, 0  ;;  %v975_v22 = vmul.f32 0.01, %v895_v18  ;;  %v912_v19 = vpop.f32.mrb[18].mxu0  ;;  %v1695_v17 = vmul.f32 %v5038_v48, %v5335_v8  ;;  %v1801_v39 = vmul.f32 %v5047_v53, %v5335_v8 }
 0x31a   : > { %v1165_v46 = vadd.f32 %v1164_v16, %v5026_v45  ;;  %v1166_v32 = vpop.f32.mrb[7].mxu1  ;;  %v5344_v10 = vpop.f32.mrb[19].mxu0  ;;  %v5347_v36 = vadd.s32 152, %v5003_v31  ;;  %v1172_v55 = vsel %vm1168_vm5, %v1160_v40, %v1170_v24  ;;  %v1837_v14 = vmul.f32 %v5050_v54, %v5299_v4 }
 0x31b   : > { %6505 = vst [vmem:[#allocation66_spill] sm:$0xff] %v5344_v10  ;;  %v5352_v59 = vsel %vm959_vm7, %v895_v18, %v975_v22  ;;  %v901_v16 = vadd.f32 %v900_v0, %v5026_v45  ;;  %v5358_v32 = vadd.s32 144, %v5003_v31  ;;  %v5360_v33 = vadd.f32 %v1731_v28, %v1695_v17 }
 0x31c   : > { %6506 = vst [vmem:[#allocation67_spill] sm:$0xff] %v5347_v36  ;;  %vm1169_vm8 = vcmp.ge.f32.partialorder %v1165_v46, 0.0  ;;  %v1171_v10 = vmul.f32 0.01, %v1165_v46  ;;  %v1817_v42 = vadd.f32 %v1801_v39, %v1781_v7  ;;  %v1468_v40 = vrot.slane %v5352_v59, 7 }
 0x31d   : > { %6507 = vst [vmem:[#allocation68_spill] sm:$0xff] %v5358_v32  ;;  %v918_v24 = vpop.f32.mrb[20].mxu0  ;;  %v5365_v18 = vsel %vm5285_vm1, %v1172_v55, 0.0  ;;  %v1732_v0 = vmul.f32 %v5034_v47, %v5352_v59  ;;  %vm960_vm9 = vcmp.ge.f32.partialorder %v901_v16, 0.0  ;;  %v6508_v22 = vand.u32 15, %v5066_v63 }
 0x31e   : > { %v5375_v28 = vpop.f32.mrb[21].mxu0  ;;  %v1173_v17 = vsel %vm1169_vm8, %v1165_v46, %v1171_v10  ;;  %v5378_v39 = vadd.f32 %v1837_v14, %v1817_v42  ;;  %v1492_v55 = vsel %vm1480_vm2, %v1467_v62, %v1468_v40  ;;  %v976_v6 = vmul.f32 0.01, %v901_v16 }
 0x31f   : > { %vm5371_vm10 = vcmp.gt.s32.totalorder %v6508_v22, 0  ;;  %6511 = vst [vmem:[#allocation69_spill] sm:$0xff] %v5375_v28  ;;  %v5384_v9 = vsel %vm5285_vm1, %v1173_v17, 0.0  ;;  %v5388_v63 = vsel %vm5304_vm4, %v1492_v55, 0.0  ;;  %v907_v22 = vadd.f32 %v906_v23, %v5026_v45 }
 0x320   : > { %6512 = vst [vmem:[#allocation70_spill] sm:$0xff] %v5384_v9  ;;  %v1724_v14 = vmul.f32 %v5034_v47, %v5114_v29  ;;  %v6353_v42 = vrot.slane %v5365_v18, 7  ;;  %v1479_v10 = vrot.slane %v5384_v9, 7  ;;  %v1696_v56 = vmul.f32 %v5038_v48, %v5388_v63 }
 0x321   : > { %v924_v62 = vpop.f32.mrb[22].mxu0  ;;  %v5399_v46 = vsel %vm960_vm9, %v901_v16, %v976_v6  ;;  %vm961_vm11 = vcmp.ge.f32.partialorder %v907_v22, 0.0  ;;  %v977_v21 = vmul.f32 0.01, %v907_v22  ;;  %v913_v23 = vadd.f32 %v912_v19, %v5026_v45 }
 0x322   : > { %v5402_v17 = vpop.f32.mrb[23].mxu0  ;;  %v5408_v55 = vsel %vm1480_vm2, %v6353_v42, %v1479_v10  ;;  %v6515_v7 = vrot.slane %v5114_v29, 7  ;;  %v5414_v36 = vadd.f32 %v1732_v0, %v1696_v56  ;;  %v1469_v6 = vrot.slane %v5399_v46, 7 }
 0x323   : > { %6513 = vst [vmem:[#allocation71_spill] sm:$0xff] %v5402_v17  ;;  %6514 = vst [vmem:[#allocation72_spill] sm:$0xff] %v5408_v55  ;;  %v5419_v19 = vmul.f32 %v5041_v49, %v5167_v61  ;;  %v5423_v16 = vmul.f32 %v5050_v54, %v5107_v25  ;;  %v1733_v17 = vmul.f32 %v5034_v47, %v5399_v46  ;;  %vm962_vm12 = vcmp.ge.f32.partialorder %v913_v23, 0.0 }
 0x324   : > { %v1500_v28 = vsel %vm1480_vm2, %v1479_v10, %v6515_v7  ;;  %v5431_v0 = vmul.f32 %v5047_v53, %v5176_v3  ;;  %v5436_v61 = vsel %vm1480_vm2, %v1468_v40, %v1469_v6  ;;  %v5438_v10 = vsel %vm961_vm11, %v907_v22, %v977_v21 }
 0x325   : > { %v1541_v42 = vsel %vm5329_vm6, %v1500_v28, 0.0  ;;  %v930_v25 = vpop.f32.mrb[24].mxu0  ;;  %v5442_v37 = vmul.f32 %v5050_v54, %v5257_v50  ;;  %v1697_v28 = vmul.f32 %v5038_v48, %v5436_v61  ;;  %v1470_v56 = vrot.slane %v5438_v10, 7 }
 0x326   : > { %v1688_v7 = vmul.f32 %v5038_v48, %v1541_v42  ;;  %v6516_v3 = vand.u32 15, %v5069_v1  ;;  %v5453_v40 = vpop.f32.mrb[25].mxu0  ;;  %v978_v29 = vmul.f32 0.01, %v913_v23  ;;  %v1734_v1 = vmul.f32 %v5034_v47, %v5438_v10 }
 0x327   : > { %6519 = vst [vmem:[#allocation73_spill] sm:$0xff] %v5453_v40  ;;  %v5459_v32 = vadd.f32 %v1733_v17, %v1697_v28  ;;  %v1490_v38 = vsel %vm1480_vm2, %v1469_v6, %v1470_v56  ;;  %v5468_v40 = vmul.f32 %v5124_v44, %v5365_v18  ;;  %v925_v17 = vadd.f32 %v924_v62, %v5026_v45 }
 0x328   : > { %vm5449_vm13 = vcmp.gt.s32.totalorder %v6516_v3, 0  ;;  %v5456_v21 = vadd.f32 %v1724_v14, %v1688_v7  ;;  %v919_v3 = vadd.f32 %v918_v24, %v5026_v45  ;;  %v5472_v14 = vsel %vm5371_vm10, %v1490_v38, 0.0 }
 0x329   : > { %6520 = vst [vmem:[#allocation74_spill] sm:$0xff] %v5459_v32  ;;  %6521 = vst [vmem:[#allocation75_spill] sm:$0xff] %v5468_v40  ;;  %v5474_v7 = vsel %vm962_vm12, %v913_v23, %v978_v29  ;;  %v936_v28 = vpop.f32.mrb[26].mxu0  ;;  %v5480_v22 = vmul.f32 %v5050_v54, %v5352_v59  ;;  %v1698_v24 = vmul.f32 %v5038_v48, %v5472_v14  ;;  %vm5487_vm14 = vcmp.gt.s32.totalorder %v6524_v27, 0 }
 0x32a   : > { %6522 = vst [vmem:[#allocation76_spill] sm:$0xff] %v5472_v14  ;;  %v1471_v55 = vrot.slane %v5474_v7, 7  ;;  %v5491_v29 = vpop.f32.mrb[27].mxu0  ;;  %v1735_v62 = vmul.f32 %v5034_v47, %v5474_v7  ;;  %vm963_vm15 = vcmp.ge.f32.partialorder %v919_v3, 0.0  ;;  %v979_v23 = vmul.f32 0.01, %v919_v3 }
 0x32b   : > { %6523 = vst [vmem:[#allocation77_spill] sm:$0xff] %v5480_v22  ;;  %6527 = vst [vmem:[#allocation78_spill] sm:$0xff] %v5491_v29  ;;  %vm964_vm0 = vcmp.ge.f32.partialorder %v925_v17, 0.0  ;;  %v5495_v6 = vadd.f32 %v1734_v1, %v1698_v24  ;;  %v980_v22 = vmul.f32 0.01, %v925_v17  ;;  %v931_v2 = vadd.f32 %v930_v25, %v5026_v45 }
 0x32c   : > { %v5499_v40 = vsel %vm1480_vm2, %v1470_v56, %v1471_v55  ;;  %v5505_v29 = vmul.f32 %v5124_v44, %v5384_v9  ;;  %v5509_v35 = vsel %vm963_vm15, %v919_v3, %v979_v23  ;;  %v5514_v56 = vmul.f32 %v5050_v54, %v5399_v46 }
 0x32d   : > { %6528 = vst [vmem:[#allocation79_spill] sm:$0xff] %v5495_v6  ;;  %6529 = vst [vmem:[#allocation80_spill] sm:$0xff] %v5499_v40  ;;  %v1699_v14 = vmul.f32 %v5038_v48, %v5499_v40  ;;  %v942_v1 = vpop.f32.mrb[28].mxu0  ;;  %v1472_v25 = vrot.slane %v5509_v35, 7  ;;  %v937_v27 = vadd.f32 %v936_v28, %v5026_v45  ;;  %vm965_vm1 = vcmp.ge.f32.partialorder %v931_v2, 0.0 }
 0x32e   : > { %6530 = vst [vmem:[#allocation81_spill] sm:$0xff] %v5505_v29  ;;  %6531 = vst [vmem:[#allocation82_spill] sm:$0xff] %v5514_v56  ;;  %v5518_v6 = vpop.f32.mrb[29].mxu0  ;;  %v5523_v29 = vsel %vm964_vm0, %v925_v17, %v980_v22  ;;  %v981_v3 = vmul.f32 0.01, %v931_v2  ;;  %v1736_v56 = vmul.f32 %v5034_v47, %v5509_v35  ;;  %v5533_v28 = vmul.f32 %v5050_v54, %v5438_v10 }
 0x32f   : > { %6532 = vst [vmem:[#allocation83_spill] sm:$0xff] %v5518_v6  ;;  %v5520_v9 = vadd.f32 %v1735_v62, %v1699_v14  ;;  %v1488_v24 = vsel %vm1480_vm2, %v1471_v55, %v1472_v25  ;;  %v1473_v40 = vrot.slane %v5523_v29, 7  ;;  %v1737_v14 = vmul.f32 %v5034_v47, %v5523_v29 }
 0x330   : > { %6534 = vst [vmem:[#allocation85_spill] sm:$0xff] %v5533_v28  ;;  %v5537_v22 = vsel %vm5449_vm13, %v1488_v24, 0.0  ;;  %v5541_v17 = vsel %vm965_vm1, %v931_v2, %v981_v3  ;;  %vm966_vm4 = vcmp.ge.f32.partialorder %v937_v27, 0.0  ;;  %v5555_v24 = vmul.f32 %v5050_v54, %v5474_v7 }
 0x331   : > { %6533 = vst [vmem:[#allocation84_spill] sm:$0xff] %v5520_v9  ;;  %6535 = vst [vmem:[#allocation86_spill] sm:$0xff] %v5537_v22  ;;  %v948_v62 = vpop.f32.mrb[30].mxu0  ;;  %v1700_v55 = vmul.f32 %v5038_v48, %v5537_v22  ;;  %v5547_v23 = vsel %vm1480_vm2, %v1472_v25, %v1473_v40  ;;  %v1474_v6 = vrot.slane %v5541_v17, 7  ;;  %v982_v3 = vmul.f32 0.01, %v937_v27 }
 0x332   : > { %6536 = vst [vmem:[#allocation87_spill] sm:$0xff] %v5547_v23  ;;  %v5550_v28 = vpop.f32.mrb[31].mxu0  ;;  %6538 = vst [vmem:[#allocation89_spill] sm:$0xff] %v5555_v24  ;;  %v1701_v2 = vmul.f32 %v5038_v48, %v5547_v23  ;;  %v1738_v9 = vmul.f32 %v5034_v47, %v5541_v17 }
 0x333   : > { %6537 = vst [vmem:[#allocation88_spill] sm:$0xff] %v5550_v28  ;;  %v5559_v22 = vadd.f32 %v1736_v56, %v1700_v55  ;;  %v1486_v25 = vsel %vm1480_vm2, %v1473_v40, %v1474_v6  ;;  %v943_v28 = vadd.f32 %v942_v1, %v5026_v45  ;;  %v5573_v23 = vsel %vm966_vm4, %v937_v27, %v982_v3 }
 0x334   : > { %v5567_v32 = vadd.f32 %v1737_v14, %v1701_v2  ;;  %v5571_v24 = vsel %vm5487_vm14, %v1486_v25, 0.0  ;;  %v5577_v56 = vmul.f32 %v5050_v54, %v5509_v35  ;;  %v1475_v1 = vrot.slane %v5573_v23, 7 }
 0x335   : > { %v1702_v55 = vmul.f32 %v5038_v48, %v5571_v24  ;;  %v1739_v14 = vmul.f32 %v5034_v47, %v5573_v23  ;;  %vm967_vm5 = vcmp.ge.f32.partialorder %v943_v28, 0.0  ;;  %v983_v38 = vmul.f32 0.01, %v943_v28 }
 0x336   : > { %6539 = vst [vmem:[#allocation90_spill] sm:$0xff] %v5577_v56  ;;  %v949_v2 = vadd.f32 %v948_v62, %v5026_v45  ;;  %v5590_v3 = vsel %vm1480_vm2, %v1474_v6, %v1475_v1  ;;  %v6540_v25 = vrot.slane %v5244_v5, 1  ;;  %v6541_v40 = vrot.slane %v5194_v15, 1 }
 0x337   : > { %v5586_v27 = vadd.f32 %v1738_v9, %v1702_v55  ;;  %v1776_v47 = vadd.f32 %v5419_v19, %v5456_v21  ;;  %v6542_v56 = vand.u32 15, %v5087_v11  ;;  %v1703_v9 = vmul.f32 %v5038_v48, %v5590_v3 }
 0x338   : > { %v1616_v42 = vsel %vm1601_vm3, %v6541_v40, %v6540_v25  ;;  %v5608_v6 = vsel %vm967_vm5, %v943_v28, %v983_v38  ;;  %vm968_vm7 = vcmp.ge.f32.partialorder %v949_v2, 0.0  ;;  %v984_v5 = vmul.f32 0.01, %v949_v2 }
 0x339   : > { %vm5602_vm6 = vcmp.lt.s32.totalorder %v6542_v56, 15  ;;  %v5612_v62 = vmul.f32 %v5050_v54, %v5523_v29  ;;  %v5617_v11 = vmul.f32 %v5050_v54, %v5541_v17  ;;  %v6368_v19 = vrot.slane %v5608_v6, 7 }
 0x33a   : > { %v5620_v21 = vadd.f32 %v1739_v14, %v1703_v9  ;;  %v5622_v56 = vsel %vm968_vm7, %v949_v2, %v984_v5  ;;  %v1764_v48 = vmul.f32 %v5041_v49, %v1616_v42  ;;  %v1812_v28 = vadd.f32 %v5431_v0, %v1776_v47  ;;  %v5638_v2 = vld [vmem:[#allocation11 + $0x8] ss:$0 sm:$0xff] }
 0x33b   : > { %6545 = vst [vmem:[#allocation91_spill] sm:$0xff] %v5617_v11  ;;  %v5629_v38 = vmul.f32 %v5050_v54, %v5573_v23  ;;  %v5635_v25 = vsel %vm1480_vm2, %v1475_v1, %v6368_v19  ;;  %v6369_v14 = vrot.slane %v5622_v56, 7  ;;  %v1868_v5 = vmul.f32 %v5059_v58, %v5155_v52 }
 0x33c   : > { %v1780_v0 = vadd.f32 %v1764_v48, %v5240_v43  ;;  %v1848_v47 = vadd.f32 %v5423_v16, %v1812_v28  ;;  %v5647_v55 = vmul.f32 %v5050_v54, %v5608_v6  ;;  %v5651_v1 = vmul.f32 %v5124_v44, %v5608_v6 }
 0x33d   : > { %6546 = vst [vmem:[#allocation92_spill] sm:$0xff] %v5629_v38  ;;  %v6549_v19 = vrot.slane %v5365_v18, 7  ;;  %v1870_v16 = vmul.f32 %v5059_v58, %v1616_v42  ;;  %v1904_v52 = vmul.f32 %v5117_v30, %v5220_v34  ;;  %v1977_v28 = vmul.f32 %v5638_v2, %v5295_v51 }
 0x33e   : > { %6547 = vst [vmem:[#allocation93_spill] sm:$0xff] %v5647_v55  ;;  %6548 = vst [vmem:[#allocation94_spill] sm:$0xff] %v5651_v1  ;;  %v1884_v48 = vadd.f32 %v1868_v5, %v1848_v47  ;;  %v6551_v9 = vrot.slane %v5299_v4, 1  ;;  %v6552_v40 = vrot.slane %v5257_v50, 1  ;;  %v6553_v55 = vand.u32 15, %v5090_v12 }
 0x33f   : > { %v5659_v43 = vsel %vm1480_vm2, %v6369_v14, %v6549_v19  ;;  %v1940_v47 = vmul.f32 %v5124_v44, %v5194_v15  ;;  %v1886_v5 = vadd.f32 %v1870_v16, %v5248_v20  ;;  %v1906_v14 = vmul.f32 %v5117_v30, %v5291_v41 }
 0x340   : > { %6550 = vst [vmem:[#allocation95_spill] sm:$0xff] %v5659_v43  ;;  %v1614_v1 = vsel %vm1601_vm3, %v6552_v40, %v6551_v9  ;;  %vm5674_vm8 = vcmp.lt.s32.totalorder %v6553_v55, 15  ;;  %v1920_v43 = vadd.f32 %v1904_v52, %v1884_v48  ;;  %v1993_v38 = vadd.f32 %v1977_v28, %v5310_v26 }
 0x341   : > { %v1766_v34 = vmul.f32 %v5041_v49, %v1614_v1  ;;  %v1942_v12 = vmul.f32 %v5124_v44, %v5257_v50  ;;  %v1978_v40 = vmul.f32 %v5638_v2, %v1614_v1  ;;  %v1922_v9 = vadd.f32 %v1906_v14, %v1886_v5  ;;  %v5705_v5 = vld [vmem:[#allocation13] ss:$0 sm:$0xff] }
 0x342   : > { %v6556_v15 = vrot.slane %v5352_v59, 1  ;;  %v6557_v11 = vrot.slane %v5299_v4, 1  ;;  %v1871_v16 = vmul.f32 %v5059_v58, %v5295_v51  ;;  %v1956_v48 = vadd.f32 %v1940_v47, %v1920_v43 }
 0x343   : > { %v1782_v55 = vadd.f32 %v1766_v34, %v5317_v13  ;;  %v1976_v26 = vmul.f32 %v5638_v2, %v1616_v42  ;;  %v1907_v13 = vmul.f32 %v5117_v30, %v5335_v8  ;;  %v1958_v14 = vadd.f32 %v1942_v12, %v1922_v9  ;;  %v6577_v12 = vld [vmem:[#allocation84_spill] sm:$0xff] }
 0x344   : > { %v1613_v20 = vsel %vm1601_vm3, %v6557_v11, %v6556_v15  ;;  %v1887_v34 = vadd.f32 %v1871_v16, %v5308_v60  ;;  %v1943_v51 = vmul.f32 %v5124_v44, %v5299_v4  ;;  %v6558_v45 = vrot.slane %v5399_v46, 1 }
 0x345   : > { %v1669_v50 = vsel %vm5602_vm6, %v1613_v20, 0.0  ;;  %v1992_v11 = vadd.f32 %v1976_v26, %v1956_v48  ;;  %v6559_v43 = vmov %v6556_v15  ;;  %v6560_v47 = vand.u32 15, %v5188_v57 }
 0x346   : > { %v1767_v52 = vmul.f32 %v5041_v49, %v1669_v50  ;;  %v1873_v28 = vmul.f32 %v5059_v58, %v1669_v50  ;;  %v1979_v42 = vmul.f32 %v5638_v2, %v1669_v50  ;;  %v1612_v8 = vsel %vm1601_vm3, %v6559_v43, %v6558_v45 }
 0x347   : > { %vm5718_vm9 = vcmp.lt.s32.totalorder %v6560_v47, 15  ;;  %v1994_v60 = vadd.f32 %v1978_v40, %v1958_v14  ;;  %v1923_v15 = vadd.f32 %v1907_v13, %v1887_v34  ;;  %v1768_v4 = vmul.f32 %v5041_v49, %v1612_v8 }
 0x348   : > { %v1783_v9 = vadd.f32 %v1767_v52, %v5360_v33  ;;  %v1598_v20 = vrot.slane %v5622_v56, 1  ;;  %v5727_v16 = vmul.f32 %v5050_v54, %v5622_v56  ;;  %v2015_v48 = vadd.f32 %v5705_v5, %v1992_v11 }
 0x349   : > { %v1800_v57 = vmul.f32 %v5047_v53, %v5291_v41  ;;  %v2016_v26 = vadd.f32 %v5705_v5, %v1993_v38  ;;  %v1872_v40 = vmul.f32 %v5059_v58, %v1614_v1  ;;  %v1959_v50 = vadd.f32 %v1943_v51, %v1923_v15  ;;  %v6567_v15 = vld [vmem:[#allocation74_spill] sm:$0xff] }
 0x34a   : > { %v1784_v33 = vadd.f32 %v1768_v4, %v5414_v36  ;;  %3143 = vmatprep.mubr.f32.mxu0 %v2015_v48  ;;  %v2017_v13 = vadd.f32 %v5705_v5, %v1994_v60  ;;  %v6563_v52 = vrot.slane %v5438_v10, 1  ;;  %v6564_v54 = vmov %v6558_v45 }
 0x34b   : > { %v1816_v14 = vadd.f32 %v1800_v57, %v1780_v0  ;;  %v1889_v41 = vadd.f32 %v1873_v28, %v5378_v39  ;;  %3144 = vmatmul.mubr.f32.vlgmr.msra.gmra.mrb[32].mxu0 %v2016_v26  ;;  %v1995_v38 = vadd.f32 %v1979_v42, %v1959_v50  ;;  %v1909_v36 = vmul.f32 %v5117_v30, %v5436_v61  ;;  %v6568_v57 = vld [vmem:[#allocation57_spill] sm:$0xff] }
 0x34c   : > { %v1611_v34 = vsel %vm1601_vm3, %v6564_v54, %v6563_v52  ;;  %v1945_v0 = vmul.f32 %v5124_v44, %v5399_v46  ;;  %3146 = vmatprep.mubr.f32.mxu0 %v2017_v13  ;;  %v1908_v51 = vmul.f32 %v5117_v30, %v5388_v63  ;;  %v6565_v42 = vrot.slane %v5474_v7, 1  ;;  %v6572_v54 = vld [vmem:[#allocation79_spill] sm:$0xff]  ;;  %v6595_v50 = vld [vmem:[#allocation89_spill] sm:$0xff] }
 0x34d   : > { %v1671_v1 = vsel %vm5674_vm8, %v1611_v34, 0.0  ;;  %v1852_v11 = vadd.f32 %v5442_v37, %v1816_v14  ;;  %v2018_v28 = vadd.f32 %v5705_v5, %v1995_v38  ;;  %v1925_v19 = vadd.f32 %v1909_v36, %v1889_v41  ;;  %v6573_v34 = vld [vmem:[#allocation76_spill] sm:$0xff] }
 0x34e   : > { %v1769_v45 = vmul.f32 %v5041_v49, %v1671_v1  ;;  %v1981_v39 = vmul.f32 %v5638_v2, %v1671_v1  ;;  %v6566_v43 = vmov %v6563_v52  ;;  %v1802_v37 = vmul.f32 %v5047_v53, %v5388_v63 }
 0x34f   : > { %v1610_v46 = vsel %vm1601_vm3, %v6566_v43, %v6565_v42  ;;  %v1888_v47 = vadd.f32 %v1872_v40, %v1852_v11  ;;  %v1944_v60 = vmul.f32 %v5124_v44, %v5352_v59  ;;  %v6569_v26 = vand.u32 15, %v6568_v57  ;;  %3147 = vmatmul.mubr.f32.gmra.mrb[34].mxu0 %v2018_v28  ;;  %v6576_v28 = vld [vmem:[#allocation77_spill] sm:$0xff] }
 0x350   : > { %v1785_v4 = vadd.f32 %v1769_v45, %v6567_v15  ;;  %v1770_v48 = vmul.f32 %v5041_v49, %v1610_v46  ;;  %v1874_v13 = vmul.f32 %v5059_v58, %v1612_v8  ;;  %v1980_v14 = vmul.f32 %v5638_v2, %v1612_v8 }
 0x351   : > { %vm5769_vm10 = vcmp.lt.s32.totalorder %v6569_v26, 15  ;;  %v1961_v63 = vadd.f32 %v1945_v0, %v1925_v19  ;;  %v1818_v40 = vadd.f32 %v1802_v37, %v1782_v55  ;;  %v1924_v52 = vadd.f32 %v1908_v51, %v1888_v47  ;;  %v6578_v26 = vld [vmem:[#allocation80_spill] sm:$0xff] }
 0x352   : > { %v5776_v59 = vadd.f32 %v1770_v48, %v6572_v54  ;;  %v1910_v41 = vmul.f32 %v5117_v30, %v6573_v34  ;;  %v6574_v38 = vrot.slane %v5509_v35, 1  ;;  %v6575_v36 = vmov %v6565_v42 }
 0x353   : > { %v1997_v45 = vadd.f32 %v1981_v39, %v1961_v63  ;;  %v1854_v42 = vadd.f32 %v6576_v28, %v1818_v40  ;;  %v1803_v8 = vmul.f32 %v5047_v53, %v5436_v61  ;;  %v1960_v0 = vadd.f32 %v1944_v60, %v1924_v52  ;;  %v6581_v40 = vld [vmem:[#allocation82_spill] sm:$0xff] }
 0x354   : > { %v1609_v11 = vsel %vm1601_vm3, %v6575_v36, %v6574_v38  ;;  %v1875_v51 = vmul.f32 %v5059_v58, %v1671_v1  ;;  %v1876_v19 = vmul.f32 %v5059_v58, %v1610_v46  ;;  %v1946_v47 = vmul.f32 %v5124_v44, %v5438_v10  ;;  %v6582_v36 = vld [vmem:[#allocation64_spill] sm:$0xff] }
 0x355   : > { %v1673_v55 = vsel %vm5718_vm9, %v1609_v11, 0.0  ;;  %v1890_v37 = vadd.f32 %v1874_v13, %v1854_v42  ;;  %v1982_v39 = vmul.f32 %v5638_v2, %v1610_v46  ;;  %v1819_v15 = vadd.f32 %v1803_v8, %v1783_v9 }
 0x356   : > { %v1771_v43 = vmul.f32 %v5041_v49, %v1673_v55  ;;  %v1996_v48 = vadd.f32 %v1980_v14, %v1960_v0  ;;  %v1911_v61 = vmul.f32 %v5117_v30, %v6578_v26  ;;  %v6579_v1 = vrot.slane %v5523_v29, 1  ;;  %v6586_v0 = vld [vmem:[#allocation86_spill] sm:$0xff] }
 0x357   : > { %v6580_v60 = vmov %v6574_v38  ;;  %v1926_v63 = vadd.f32 %v1910_v41, %v1890_v37  ;;  %v1855_v10 = vadd.f32 %v6581_v40, %v1819_v15  ;;  %v1804_v9 = vmul.f32 %v5047_v53, %v6573_v34 }
 0x358   : > { %v5798_v57 = vadd.f32 %v1771_v43, %v6577_v12  ;;  %v1608_v13 = vsel %vm1601_vm3, %v6580_v60, %v6579_v1  ;;  %v2019_v14 = vadd.f32 %v5705_v5, %v1996_v48  ;;  %v2020_v52 = vadd.f32 %v5705_v5, %v1997_v45  ;;  %v6593_v12 = vld [vmem:[#allocation85_spill] sm:$0xff] }
 0x359   : > { %v1772_v46 = vmul.f32 %v5041_v49, %v1608_v13  ;;  %v1877_v54 = vmul.f32 %v5059_v58, %v1673_v55  ;;  %v1947_v38 = vmul.f32 %v5124_v44, %v5474_v7  ;;  %v6583_v11 = vand.u32 15, %v6582_v36 }
 0x35a   : > { %v1962_v28 = vadd.f32 %v1946_v47, %v1926_v63  ;;  %v1891_v42 = vadd.f32 %v1875_v51, %v1855_v10  ;;  %v1820_v34 = vadd.f32 %v1804_v9, %v1784_v33  ;;  %3149 = vmatprep.mubr.f32.mxu0 %v2019_v14  ;;  %v1983_v45 = vmul.f32 %v5638_v2, %v1673_v55  ;;  %v6589_v47 = vld [vmem:[#allocation61_spill] sm:$0xff] }
 0x35b   : > { %vm5819_vm11 = vcmp.lt.s32.totalorder %v6583_v11, 15  ;;  %v5824_v8 = vadd.f32 %v1772_v46, %v5559_v22  ;;  %v1912_v43 = vmul.f32 %v5117_v30, %v6586_v0  ;;  %v6587_v7 = vrot.slane %v5541_v17, 1  ;;  %3150 = vmatmul.mubr.f32.gmra.mrb[36].mxu0 %v2020_v52  ;;  %v6594_v52 = vld [vmem:[#allocation87_spill] sm:$0xff] }
 0x35c   : > { %v6588_v37 = vmov %v6579_v1  ;;  %v1805_v51 = vmul.f32 %v5047_v53, %v6578_v26  ;;  %v6590_v22 = vand.u32 15, %v6589_v47  ;;  %v1998_v55 = vadd.f32 %v1982_v39, %v1962_v28 }
 0x35d   : > { %v1607_v15 = vsel %vm1601_vm3, %v6588_v37, %v6587_v7  ;;  %v1927_v48 = vadd.f32 %v1911_v61, %v1891_v42  ;;  %v1856_v1 = vadd.f32 %v6593_v12, %v1820_v34  ;;  %v1878_v63 = vmul.f32 %v5059_v58, %v1608_v13 }
 0x35e   : > { %vm5839_vm12 = vcmp.gt.s32.totalorder %v6590_v22, 0  ;;  %v1675_v60 = vsel %vm5769_vm10, %v1607_v15, 0.0  ;;  %v1948_v40 = vmul.f32 %v5124_v44, %v5509_v35  ;;  %v1821_v10 = vadd.f32 %v1805_v51, %v1785_v4 }
 0x35f   : > { %v1773_v26 = vmul.f32 %v5041_v49, %v1675_v60  ;;  %v2021_v46 = vadd.f32 %v5705_v5, %v1998_v55  ;;  %v1963_v9 = vadd.f32 %v1947_v38, %v1927_v48  ;;  %v1892_v14 = vadd.f32 %v1876_v19, %v1856_v1  ;;  %v6601_v48 = vld [vmem:[#allocation65_spill] sm:$0xff] }
 0x360   : > { %v1913_v39 = vmul.f32 %v5117_v30, %v6594_v52  ;;  %v1857_v36 = vadd.f32 %v6595_v50, %v1821_v10  ;;  %v6596_v11 = vrot.slane %v5573_v23, 1  ;;  %v6597_v28 = vmov %v6587_v7 }
 0x361   : > { %v5854_v61 = vadd.f32 %v1773_v26, %v5567_v32  ;;  %v1806_v4 = vmul.f32 %v5047_v53, %v6586_v0  ;;  %3152 = vmatprep.mubr.f32.mxu0 %v2021_v46  ;;  %v1999_v19 = vadd.f32 %v1983_v45, %v1963_v9  ;;  %v1928_v38 = vadd.f32 %v1912_v43, %v1892_v14  ;;  %v6605_v46 = vld [vmem:[#allocation68_spill] sm:$0xff] }
 0x362   : > { %v1606_v35 = vsel %vm1601_vm3, %v6597_v28, %v6596_v11  ;;  %v1984_v42 = vmul.f32 %v5638_v2, %v1608_v13  ;;  %v1893_v34 = vadd.f32 %v1877_v54, %v1857_v36  ;;  %v1949_v7 = vmul.f32 %v5124_v44, %v5523_v29  ;;  %v6598_v13 = vld [vmem:[#allocation90_spill] sm:$0xff] }
 0x363   : > { %v1774_v32 = vmul.f32 %v5041_v49, %v1606_v35  ;;  %v1985_v37 = vmul.f32 %v5638_v2, %v1675_v60  ;;  %v1822_v15 = vadd.f32 %v1806_v4, %v5776_v59  ;;  %v2022_v51 = vadd.f32 %v5705_v5, %v1999_v19 }
 0x364   : > { %v1964_v47 = vadd.f32 %v1948_v40, %v1928_v38  ;;  %v1914_v45 = vmul.f32 %v5117_v30, %v5571_v24  ;;  %v1929_v43 = vadd.f32 %v1913_v39, %v1893_v34  ;;  %v6599_v54 = vrot.slane %v5608_v6, 1 }
 0x365   : > { %v1790_v0 = vadd.f32 %v1774_v32, %v5586_v27  ;;  %v1858_v22 = vadd.f32 %v6598_v13, %v1822_v15  ;;  %v6600_v55 = vmov %v6596_v11  ;;  %v1807_v59 = vmul.f32 %v5047_v53, %v6594_v52  ;;  %3153 = vmatmul.mubr.f32.gmra.mrb[38].mxu0 %v2022_v51  ;;  %v6613_v51 = vld [vmem:[#allocation67_spill] sm:$0xff]  ;;  %v2219_v27 = vld [vmem:[#allocation17 + $0x20] sm:$0xff] }
 0x366   : > { %v1605_v29 = vsel %vm1601_vm3, %v6600_v55, %v6599_v54  ;;  %v6602_v12 = vand.u32 15, %v6601_v48  ;;  %v2000_v1 = vadd.f32 %v1984_v42, %v1964_v47  ;;  %v1879_v40 = vmul.f32 %v5059_v58, %v1675_v60 }
 0x367   : > { %v1950_v26 = vmul.f32 %v5124_v44, %v5541_v17  ;;  %v1677_v10 = vsel %vm5819_vm11, %v1605_v29, 0.0  ;;  %v6606_v9 = vand.u32 15, %v6605_v46  ;;  %v1965_v52 = vadd.f32 %v1949_v7, %v1929_v43 }
 0x368   : > { %vm5886_vm13 = vcmp.lt.s32.totalorder %v6602_v12, 15  ;;  %v1894_v39 = vadd.f32 %v1878_v63, %v1858_v22  ;;  %v1775_v50 = vmul.f32 %v5041_v49, %v1677_v10  ;;  %v1823_v36 = vadd.f32 %v1807_v59, %v5798_v57  ;;  %v6617_v22 = vld [vmem:[#allocation91_spill] sm:$0xff] }
 0x369   : > { %vm5897_vm14 = vcmp.gt.s32.totalorder %v6606_v9, 0  ;;  %v2023_v60 = vadd.f32 %v5705_v5, %v2000_v1  ;;  %v1986_v11 = vmul.f32 %v5638_v2, %v1606_v35  ;;  %v1915_v17 = vmul.f32 %v5117_v30, %v5590_v3 }
 0x36a   : > { %v1557_v41 = vsel %vm5839_vm12, %v5635_v25, 0.0  ;;  %v2001_v28 = vadd.f32 %v1985_v37, %v1965_v52  ;;  %v1930_v4 = vadd.f32 %v1914_v45, %v1894_v39  ;;  %v1791_v19 = vadd.f32 %v1775_v50, %v5620_v21  ;;  %v6621_v39 = vld [vmem:[#allocation92_spill] sm:$0xff] }
 0x36b   : > { %v1859_v63 = vadd.f32 %v5612_v62, %v1823_v36  ;;  %3155 = vmatprep.mubr.f32.mxu0 %v2023_v60  ;;  %v1880_v49 = vmul.f32 %v5059_v58, %v1606_v35  ;;  %v1951_v57 = vmul.f32 %v5124_v44, %v5573_v23  ;;  %v6609_v38 = vmov %v6599_v54  ;;  %v6622_v60 = vld [vmem:[#allocation95_spill] sm:$0xff] }
 0x36c   : > { %v1604_v33 = vsel %vm1601_vm3, %v6609_v38, %v1598_v20  ;;  %v1808_v25 = vmul.f32 %v5047_v53, %v5571_v24  ;;  %v2024_v21 = vadd.f32 %v5705_v5, %v2001_v28  ;;  %v1966_v42 = vadd.f32 %v1950_v26, %v1930_v4  ;;  %v6624_v28 = vld [vmem:[#allocation54_spill] sm:$0xff]  ;;  %v2226_v38 = vld [vmem:[#allocation17 + $0x58] sm:$0xff] }
 0x36d   : > { %v1881_v62 = vmul.f32 %v5059_v58, %v1677_v10  ;;  %v1895_v32 = vadd.f32 %v1879_v40, %v1859_v63  ;;  %v1810_v35 = vmul.f32 %v5047_v53, %v1557_v41  ;;  %v6610_v34 = vrot.slane %v5622_v56, 7 }
 0x36e   : > { %v1824_v23 = vadd.f32 %v1808_v25, %v5824_v8  ;;  %v6611_v7 = vrot.slane %v5608_v6, 7  ;;  %v6612_v15 = vrot.slane %v5365_v18, 1  ;;  %v6614_v47 = vand.u32 15, %v6613_v51  ;;  %3156 = vmatmul.mubr.f32.gmra.mrb[40].mxu0 %v2024_v21 }
 0x36f   : > { %v2002_v8 = vadd.f32 %v1986_v11, %v1966_v42  ;;  %v1931_v43 = vadd.f32 %v1915_v17, %v1895_v32  ;;  %v1987_v6 = vmul.f32 %v5638_v2, %v1677_v10  ;;  %v1809_v13 = vmul.f32 %v5047_v53, %v5590_v3  ;;  %v6618_v3 = vld [vmem:[#allocation70_spill] sm:$0xff]  ;;  %v6623_v17 = vld [vmem:[#allocation93_spill] sm:$0xff] }
 0x370   : > { %v1483_v37 = vsel %vm1480_vm2, %v6611_v7, %v6610_v34  ;;  %v1603_v24 = vsel %vm1601_vm3, %v1598_v20, %v6612_v15  ;;  %vm5941_vm15 = vcmp.lt.s32.totalorder %v6614_v47, 15  ;;  %v1860_v54 = vadd.f32 %v6617_v22, %v1824_v23  ;;  %v6627_v42 = vld [vmem:[#allocation94_spill] sm:$0xff]  ;;  %v6628_v47 = vld [vmem:[#allocation72_spill] sm:$0xff] }
 0x371   : > { %v1882_v55 = vmul.f32 %v5059_v58, %v1604_v33  ;;  %v1916_v20 = vmul.f32 %v5117_v30, %v1557_v41  ;;  %v1811_v29 = vmul.f32 %v5047_v53, %v1483_v37  ;;  %v2025_v59 = vadd.f32 %v5705_v5, %v2002_v8  ;;  %v2223_v34 = vld [vmem:[#allocation17 + $0x40] sm:$0xff] }
 0x372   : > { %v1967_v48 = vadd.f32 %v1951_v57, %v1931_v43  ;;  %v1988_v12 = vmul.f32 %v5638_v2, %v1604_v33  ;;  %v1825_v1 = vadd.f32 %v1809_v13, %v5854_v61  ;;  %v1896_v40 = vadd.f32 %v1880_v49, %v1860_v54  ;;  %v2221_v49 = vld [vmem:[#allocation17 + $0x30] sm:$0xff]  ;;  %v2224_v57 = vld [vmem:[#allocation17 + $0x48] sm:$0xff] }
 0x373   : > { %v1679_v26 = vsel %vm5886_vm13, %v1603_v24, 0.0  ;;  %v6619_v10 = vrot.slane %v6618_v3, 1  ;;  %v6620_v46 = vmov %v6612_v15  ;;  %v1826_v52 = vadd.f32 %v1810_v35, %v1790_v0  ;;  %3158 = vmatprep.mubr.f32.mxu0 %v2025_v59  ;;  %v2230_v24 = vld [vmem:[#allocation17 + $0x78] sm:$0xff]  ;;  %v6629_v54 = vld [vmem:[#allocation75_spill] sm:$0xff]  ;;  %v2227_v59 = vld [vmem:[#allocation17 + $0x60] sm:$0xff] }
 0x374   : > { %v2003_v53 = vadd.f32 %v1987_v6, %v1967_v48  ;;  %v1861_v50 = vadd.f32 %v6621_v39, %v1825_v1  ;;  %v1917_v36 = vmul.f32 %v5117_v30, %v1483_v37  ;;  %v1559_v61 = vsel %vm5897_vm14, %v6622_v60, 0.0  ;;  %v2229_v48 = vld [vmem:[#allocation17 + $0x70] sm:$0xff]  ;;  %v2232_v1 = vld [vmem:[#allocation17 + $0x88] sm:$0xff]  ;;  %v2231_v39 = vld [vmem:[#allocation17 + $0x80] sm:$0xff] }
 0x375   : > { %v1602_v9 = vsel %vm1601_vm3, %v6620_v46, %v6619_v10  ;;  %v1932_v11 = vadd.f32 %v1916_v20, %v1896_v40  ;;  %v1862_v41 = vadd.f32 %v6623_v17, %v1826_v52  ;;  %v6625_v18 = vrot.slane %v6624_v28, 1  ;;  %v2238_v60 = vld [vmem:[#allocation17 + $0xb8] sm:$0xff]  ;;  %v2237_v17 = vld [vmem:[#allocation17 + $0xb0] sm:$0xff] }
 0x376   : > { %v6626_v4 = vmov %v6619_v10  ;;  %v1827_v63 = vadd.f32 %v1811_v29, %v1791_v19  ;;  %v1953_v33 = vmul.f32 %v5124_v44, %v5622_v56  ;;  %v2026_v14 = vadd.f32 %v5705_v5, %v2003_v53  ;;  %v2225_v19 = vld [vmem:[#allocation17 + $0x50] sm:$0xff]  ;;  %v2228_v56 = vld [vmem:[#allocation17 + $0x68] sm:$0xff]  ;;  %v2242_v28 = vld [vmem:[#allocation17 + $0xd8] sm:$0xff] }
 0x377   : > { %v1621_v0 = vsel %vm1601_vm3, %v6626_v4, %v6625_v18  ;;  %v1883_v25 = vmul.f32 %v5059_v58, %v1679_v26  ;;  %v1897_v21 = vadd.f32 %v1881_v62, %v1861_v50  ;;  %v1968_v32 = vadd.f32 %v6627_v42, %v1932_v11  ;;  %v2233_v50 = vld [vmem:[#allocation17 + $0x90] sm:$0xff]  ;;  %v2235_v11 = vld [vmem:[#allocation17 + $0xa0] sm:$0xff] }
 0x378   : > { %v1898_v35 = vadd.f32 %v1882_v55, %v1862_v41  ;;  %v1918_v23 = vmul.f32 %v5117_v30, %v1559_v61  ;;  %v1863_v31 = vadd.f32 %v5727_v16, %v1827_v63  ;;  %3159 = vmatmul.mubr.f32.gmra.mrb[42].mxu0 %v2026_v14  ;;  %v1989_v37 = vmul.f32 %v5638_v2, %v1679_v26  ;;  %v6630_v26 = vld [vmem:[#allocation81_spill] sm:$0xff]  ;;  %v2240_v41 = vld [vmem:[#allocation17 + $0xc8] sm:$0xff]  ;;  %v2241_v63 = vld [vmem:[#allocation17 + $0xd0] sm:$0xff] }
 0x379   : > { %v1933_v7 = vadd.f32 %v1917_v36, %v1897_v21  ;;  %v3357_v15 = vpack.c.bf16 %v2221_v49, %v2219_v27  ;;  %v3359_v44 = vpack.c.bf16 %v2226_v38, %v2224_v57  ;;  %v2004_v51 = vadd.f32 %v1988_v12, %v1968_v32  ;;  %v2236_v36 = vld [vmem:[#allocation17 + $0xa8] sm:$0xff]  ;;  %v2246_v57 = vld [vmem:[#allocation17 + $0xf8] sm:$0xff]  ;;  %v2243_v38 = vld [vmem:[#allocation17 + $0xe0] sm:$0xff] }
 0x37a   : > { %v1934_v58 = vadd.f32 %v1918_v23, %v1898_v35  ;;  %v1899_v62 = vadd.f32 %v1883_v25, %v1863_v31  ;;  %v1919_v8 = vmul.f32 %v5117_v30, %v6628_v47  ;;  %v1990_v6 = vmul.f32 %v5638_v2, %v1602_v9  ;;  %v2234_v30 = vld [vmem:[#allocation17 + $0x98] sm:$0xff]  ;;  %v2245_v14 = vld [vmem:[#allocation17 + $0xf0] sm:$0xff]  ;;  %v2532_v21 = vld [vmem:[#allocation20] sm:$0xff] }
 0x37b   : > { %v1969_v43 = vadd.f32 %v1953_v33, %v1933_v7  ;;  %v1681_v16 = vsel %vm5941_vm15, %v1621_v0, 0.0  ;;  %3358 = vmatpush1.bf16.msra.mxu1 %v3357_v15  ;;  %v3361_v13 = vpack.c.bf16 %v2225_v19, %v2223_v34  ;;  %v2027_v22 = vadd.f32 %v5705_v5, %v2004_v51  ;;  %v2239_v0 = vld [vmem:[#allocation17 + $0xc0] sm:$0xff]  ;;  %v2533_v42 = vld [vmem:[#allocation20 + $0x8] sm:$0xff]  ;;  %v2534_v32 = vld [vmem:[#allocation20 + $0x10] sm:$0xff] }
 0x37c   : > { %v1970_v55 = vadd.f32 %v6629_v54, %v1934_v58  ;;  %v1935_v20 = vadd.f32 %v1919_v8, %v1899_v62  ;;  %3360 = vmatprep.subr.bf16.mxu1 %v3359_v44  ;;  %v3363_v29 = vpack.c.bf16 %v2230_v24, %v2228_v56  ;;  %v1991_v45 = vmul.f32 %v5638_v2, %v1681_v16  ;;  %v2535_v23 = vld [vmem:[#allocation20 + $0x18] sm:$0xff]  ;;  %v2536_v34 = vld [vmem:[#allocation20 + $0x20] sm:$0xff]  ;;  %v2537_v19 = vld [vmem:[#allocation20 + $0x28] sm:$0xff] }
 0x37d   : > { %v2005_v12 = vadd.f32 %v1989_v37, %v1969_v43  ;;  %3161 = vmatprep.mubr.f32.mxu0 %v2027_v22  ;;  %v3365_v46 = vpack.c.bf16 %v2229_v48, %v2227_v59  ;;  %v3367_v53 = vpack.c.bf16 %v2234_v30, %v2232_v1  ;;  %v3369_v27 = vpack.c.bf16 %v2233_v50, %v2231_v39  ;;  %v2538_v37 = vld [vmem:[#allocation20 + $0x30] sm:$0xff]  ;;  %v2539_v15 = vld [vmem:[#allocation20 + $0x38] sm:$0xff]  ;;  %v2540_v56 = vld [vmem:[#allocation20 + $0x40] sm:$0xff] }
 0x37e   : > { %v2006_v40 = vadd.f32 %v1990_v6, %v1970_v55  ;;  %v1971_v3 = vadd.f32 %v6630_v26, %v1935_v20  ;;  %v3371_v2 = vpack.c.bf16 %v2238_v60, %v2236_v36  ;;  %v3373_v18 = vpack.c.bf16 %v2237_v17, %v2235_v11  ;;  %v2541_v24 = vld [vmem:[#allocation20 + $0x48] sm:$0xff]  ;;  %v5998_v8 = vld [vmem:[#allocation16] ss:$0 sm:$0xff]  ;;  %v6633_v54 = vld [vmem:[#allocation52_spill] sm:$0xff] }
 0x37f   : > { %v2028_v10 = vadd.f32 %v5705_v5, %v2005_v12  ;;  %3362 = vmatpush1.bf16.msra.mxu1 %v3361_v13  ;;  %v3375_v4 = vpack.c.bf16 %v2242_v28, %v2240_v41  ;;  %v3377_v49 = vpack.c.bf16 %v2241_v63, %v2239_v0  ;;  %v3381_v25 = vpack.c.bf16 %v2245_v14, %v2243_v38  ;;  %v3659_v58 = vld [vmem:[#allocation10] sm:$0x3]  ;;  %v6631_v62 = vld [vmem:[#allocation51_spill] sm:$0xff]  ;;  %v6632_v6 = vld [vmem:[#allocation53_spill] sm:$0xff] }
 0x380   : > { %v2029_v9 = vadd.f32 %v5705_v5, %v2006_v40  ;;  %v2007_v52 = vadd.f32 %v1991_v45, %v1971_v3  ;;  %3364 = vmatprep.subr.bf16.mxu1 %v3363_v29  ;;  %v3383_v35 = vpack.c.bf16 %v2533_v42, %v2532_v21  ;;  %v3387_v31 = vpack.c.bf16 %v2535_v23, %v2534_v32  ;;  %v6634_v12 = vld [vmem:[#allocation56_spill] sm:$0xff]  ;;  %v6635_v26 = vld [vmem:[#allocation55_spill] sm:$0xff]  ;;  %v6638_v60 = vld [vmem:[#allocation58_spill] sm:$0xff] }
 0x381   : > { %3162 = vmatmul.mubr.f32.gmra.mrb[44].mxu0 %v2028_v10  ;;  %v3391_v7 = vpack.c.bf16 %v2537_v19, %v2536_v34  ;;  %v3395_v44 = vpack.c.bf16 %v2539_v15, %v2538_v37  ;;  %v3399_v51 = vpack.c.bf16 %v2541_v24, %v2540_v56  ;;  %v5996_v47 = vrot.slane %v3659_v58, %v6631_v62  ;;  %v6639_v41 = vld [vmem:[#allocation62_spill] sm:$0xff]  ;;  %v6640_v0 = vld [vmem:[#allocation60_spill] sm:$0xff]  ;;  %v6642_v42 = vld [vmem:[#allocation63_spill] sm:$0xff] }
 0x382   : > { %3164 = vmatprep.mubr.f32.mxu0 %v2029_v9  ;;  %v2030_v61 = vadd.f32 %v5705_v5, %v2007_v52  ;;  %v2244_v5 = vld [vmem:[#allocation17 + $0xe8] sm:$0xff]  ;;  %3384 = vmatprep.subr.bf16.mxu0 %v3383_v35 }
 0x383   : > { %3366 = vmatpush1.bf16.msra.mxu1 %v3365_v46  ;;  %v3379_v33 = vpack.c.bf16 %v2246_v57, %v2244_v5  ;;  %3386 = vmatpush3.bf16.msra.mxu0 %v3383_v35  ;;  %v867_v16 = vadd.f32 %v6632_v6, %v5996_v47  ;;  %v861_v55 = vadd.f32 %v6633_v54, %v5996_v47  ;;  %v6636_v46 = vmov 0.0   ;;  %v6643_v19 = vld [vmem:[#allocation71_spill] sm:$0xff]  ;;  %v6645_v6 = vld [vmem:[#allocation78_spill] sm:$0xff]  ;;  %v6646_v54 = vld [vmem:[#allocation73_spill] sm:$0xff] }
 0x384   : > { %3368 = vmatprep.subr.bf16.mxu1 %v3367_v53  ;;  %3388 = vmatprep.subr.bf16.mxu0 %v3387_v31  ;;  %v879_v1 = vadd.f32 %v6634_v12, %v5996_v47  ;;  %v873_v3 = vadd.f32 %v6635_v26, %v5996_v47  ;;  %v6637_v53 = vld [vmem:[#allocation59_spill] sm:$0xff]  ;;  %v903_v28 = vadd.f32 %v6639_v41, %v5996_v47  ;;  %v2547_v41 = vld [vmem:[#allocation20 + $0x78] sm:$0xff] }
 0x385   : > { %3165 = vmatmul.mubr.f32.gmra.mrb[46].mxu0 %v2030_v61  ;;  %v891_v39 = vadd.f32 %v6637_v53, %v5996_v47  ;;  %v885_v61 = vadd.f32 %v6638_v60, %v5996_v47  ;;  %v897_v63 = vadd.f32 %v6640_v0, %v5996_v47  ;;  %v909_v32 = vadd.f32 %v6642_v42, %v5996_v47  ;;  %v2544_v60 = vld [vmem:[#allocation20 + $0x60] sm:$0xff] }
 0x387   : > { %3370 = vmatpush1.bf16.msra.mxu1 %v3369_v27  ;;  %3390 = vmatpush3.bf16.msra.mxu0 %v3387_v31 }
 0x388   : > { %3372 = vmatprep.subr.bf16.mxu1 %v3371_v2  ;;  %3392 = vmatprep.subr.bf16.mxu0 %v3391_v7 }
 0x38b   : > { %3374 = vmatpush1.bf16.msra.mxu1 %v3373_v18  ;;  %3394 = vmatpush3.bf16.msra.mxu0 %v3391_v7  ;;  %v927_v7 = vadd.f32 %v6643_v19, %v5996_v47 }
 0x38c   : > { %3376 = vmatprep.subr.bf16.mxu1 %v3375_v4  ;;  %3396 = vmatprep.subr.bf16.mxu0 %v3395_v44 }
 0x38f   : > { %3378 = vmatpush1.bf16.msra.mxu1 %v3377_v49  ;;  %3398 = vmatpush3.bf16.msra.mxu0 %v3395_v44  ;;  %v6644_v44 = vld [vmem:[#allocation69_spill] sm:$0xff] }
 0x390   : > { %3380 = vmatprep.subr.bf16.mxu1 %v3379_v33  ;;  %3400 = vmatprep.subr.bf16.mxu0 %v3399_v51  ;;  %v6641_v33 = vld [vmem:[#allocation66_spill] sm:$0xff]  ;;  %v921_v56 = vadd.f32 %v6644_v44, %v5996_v47 }
 0x391   : > { %v915_v14 = vadd.f32 %v6641_v33, %v5996_v47 }
 0x393   : > { %3382 = vmatpush1.bf16.msra.mxu1 %v3381_v25  ;;  %3402 = vmatpush3.bf16.msra.mxu0 %v3399_v51 }
 0x41e   : > { %v3145_v43 = vpop.f32.mrb[32].mxu0 }
 0x41f   : > { %v2126_v13 = vadd.f32 %v3145_v43, %v5998_v8  ;;  %v2120_v22 = vpop.f32.mrb[33].mxu0 }
 0x420   : > { %v2121_v20 = vadd.f32 %v5998_v8, %v2120_v22 }
 0x421   : > { %v6006_v29 = vadd.f32 %v2126_v13, %v867_v16  ;;  %v939_v16 = vadd.f32 %v6645_v6, %v5996_v47 }
 0x422   : > { %v6008_v59 = vadd.f32 %v2121_v20, %v861_v55  ;;  %v3148_v48 = vpop.f32.mrb[34].mxu0  ;;  %v933_v55 = vadd.f32 %v6646_v54, %v5996_v47 }
 0x423   : > { %v2136_v30 = vadd.f32 %v3148_v48, %v5998_v8  ;;  %v2130_v40 = vpop.f32.mrb[35].mxu0 }
 0x424   : > { %v2131_v45 = vadd.f32 %v5998_v8, %v2130_v40  ;;  %2324 = vmatmul.mubr.f32.vlgmr.msra.gmra.mrb[8].mxu1 %v6008_v59 }
 0x425   : > { %v6017_v10 = vadd.f32 %v2136_v30, %v879_v1  ;;  %2329 = vmatprep.mubr.f32.mxu1 %v6636_v46  ;;  %v6647_v30 = vld [vmem:[#allocation88_spill] sm:$0xff] }
 0x426   : > { %v6020_v9 = vadd.f32 %v2131_v45, %v873_v3  ;;  %v951_v40 = vadd.f32 %v6647_v30, %v5996_v47  ;;  %v6648_v45 = vld [vmem:[#allocation83_spill] sm:$0xff] }
 0x428   : > { %2330 = vmatmul.mubr.f32.gmra.mrb[10].mxu1 %v6006_v29 }
 0x429   : > { %2335 = vmatprep.mubr.f32.mxu1 %v6636_v46 }
 0x42c   : > { %2336 = vmatmul.mubr.f32.gmra.mrb[12].mxu1 %v6020_v9 }
 0x42d   : > { %2341 = vmatprep.mubr.f32.mxu1 %v6636_v46 }
 0x42e   : > { %v3151_v52 = vpop.f32.mrb[36].mxu0 }
 0x42f   : > { %v2146_v50 = vadd.f32 %v3151_v52, %v5998_v8  ;;  %v2140_v36 = vpop.f32.mrb[37].mxu0  ;;  %v945_v52 = vadd.f32 %v6648_v45, %v5996_v47  ;;  %v2542_v47 = vld [vmem:[#allocation20 + $0x50] sm:$0xff] }
 0x430   : > { %v2141_v27 = vadd.f32 %v5998_v8, %v2140_v36  ;;  %2342 = vmatmul.mubr.f32.gmra.mrb[14].mxu1 %v6017_v10 }
 0x431   : > { %v6032_v2 = vadd.f32 %v2146_v50, %v891_v39  ;;  %2347 = vmatprep.mubr.f32.mxu1 %v6636_v46 }
 0x432   : > { %v6034_v11 = vadd.f32 %v2141_v27, %v885_v61  ;;  %v2545_v61 = vld [vmem:[#allocation20 + $0x68] sm:$0xff] }
 0x433   : > { %v3407_v27 = vpack.c.bf16 %v2545_v61, %v2544_v60 }
 0x434   : > { %2348 = vmatmul.mubr.f32.gmra.mrb[16].mxu1 %v6034_v11 }
 0x435   : > { %2353 = vmatprep.mubr.f32.mxu1 %v6636_v46 }
 0x438   : > { %v3154_v17 = vpop.f32.mrb[38].mxu0  ;;  %2354 = vmatmul.mubr.f32.gmra.mrb[18].mxu1 %v6032_v2 }
 0x439   : > { %v2156_v18 = vadd.f32 %v3154_v17, %v5998_v8  ;;  %v2150_v4 = vpop.f32.mrb[39].mxu0  ;;  %2359 = vmatprep.mubr.f32.mxu1 %v6636_v46  ;;  %v2546_v17 = vld [vmem:[#allocation20 + $0x70] sm:$0xff] }
 0x43a   : > { %v2151_v49 = vadd.f32 %v5998_v8, %v2150_v4  ;;  %v6649_v4 = vld [vmem:[#allocation50_spill] sm:$0xff] }
 0x43b   : > { %v6046_v5 = vadd.f32 %v2156_v18, %v903_v28  ;;  %v3411_v28 = vpack.c.bf16 %v2547_v41, %v2546_v17  ;;  %v2247_v18 = vld [vmem:[#allocation19] sm:$0x3] }
 0x43c   : > { %v6048_v57 = vadd.f32 %v2151_v49, %v897_v63  ;;  %v6115_v0 = vrot.slane %v2247_v18, %v6631_v62 }
 0x43e   : > { %2360 = vmatmul.mubr.f32.gmra.mrb[20].mxu1 %v6048_v57 }
 0x43f   : > { %2365 = vmatprep.mubr.f32.mxu1 %v6636_v46 }
 0x441   : > { %v3157_v38 = vpop.f32.mrb[40].mxu0 }
 0x442   : > { %v2166_v25 = vadd.f32 %v3157_v38, %v5998_v8  ;;  %v2160_v21 = vpop.f32.mrb[41].mxu0  ;;  %2366 = vmatmul.mubr.f32.gmra.mrb[22].mxu1 %v6046_v5 }
 0x443   : > { %v2161_v35 = vadd.f32 %v5998_v8, %v2160_v21  ;;  %2371 = vmatprep.mubr.f32.mxu1 %v6636_v46 }
 0x444   : > { %v6060_v23 = vadd.f32 %v2166_v25, %v915_v14 }
 0x445   : > { %v6062_v31 = vadd.f32 %v2161_v35, %v909_v32 }
 0x447   : > { %2372 = vmatmul.mubr.f32.gmra.mrb[24].mxu1 %v6062_v31 }
 0x448   : > { %2377 = vmatprep.mubr.f32.mxu1 %v6636_v46 }
 0x44b   : > { %v3160_v34 = vpop.f32.mrb[42].mxu0  ;;  %2378 = vmatmul.mubr.f32.gmra.mrb[26].mxu1 %v6060_v23 }
 0x44c   : > { %v2176_v37 = vadd.f32 %v3160_v34, %v5998_v8  ;;  %v2170_v15 = vpop.f32.mrb[43].mxu0  ;;  %2383 = vmatprep.mubr.f32.mxu1 %v6636_v46 }
 0x44d   : > { %v2171_v24 = vadd.f32 %v5998_v8, %v2170_v15 }
 0x44e   : > { %v6074_v51 = vadd.f32 %v2176_v37, %v927_v7 }
 0x44f   : > { %v6076_v58 = vadd.f32 %v2171_v24, %v921_v56 }
 0x451   : > { %2384 = vmatmul.mubr.f32.gmra.mrb[28].mxu1 %v6076_v58 }
 0x452   : > { %2389 = vmatprep.mubr.f32.mxu1 %v6636_v46 }
 0x454   : > { %v3163_v43 = vpop.f32.mrb[44].mxu0 }
 0x455   : > { %v2186_v13 = vadd.f32 %v3163_v43, %v5998_v8  ;;  %v2180_v22 = vpop.f32.mrb[45].mxu0  ;;  %2390 = vmatmul.mubr.f32.gmra.mrb[30].mxu1 %v6074_v51 }
 0x456   : > { %v2181_v20 = vadd.f32 %v5998_v8, %v2180_v22  ;;  %2395 = vmatprep.mubr.f32.mxu1 %v6636_v46 }
 0x457   : > { %v6088_v48 = vadd.f32 %v2186_v13, %v939_v16 }
 0x458   : > { %v6090_v12 = vadd.f32 %v2181_v20, %v933_v55  ;;  %v3166_v1 = vpop.f32.mrb[46].mxu0 }
 0x459   : > { %v2196_v26 = vadd.f32 %v3166_v1, %v5998_v8  ;;  %v2190_v3 = vpop.f32.mrb[47].mxu0 }
 0x45a   : > { %v2191_v53 = vadd.f32 %v5998_v8, %v2190_v3  ;;  %2396 = vmatmul.mubr.f32.gmra.mrb[32].mxu1 %v6090_v12  ;;  %v2543_v8 = vld [vmem:[#allocation20 + $0x58] sm:$0xff] }
 0x45b   : > { %v6100_v39 = vadd.f32 %v2196_v26, %v951_v40  ;;  %2401 = vmatprep.mubr.f32.mxu1 %v6636_v46  ;;  %v3403_v36 = vpack.c.bf16 %v2543_v8, %v2542_v47 }
 0x45c   : > { %v6102_v50 = vadd.f32 %v2191_v53, %v945_v52 }
 0x45d   : > { %3404 = vmatprep.subr.bf16.mxu0 %v3403_v36 }
 0x45e   : > { %2402 = vmatmul.mubr.f32.gmra.mrb[34].mxu1 %v6088_v48  ;;  %3406 = vmatpush3.bf16.msra.mxu0 %v3403_v36 }
 0x45f   : > { %2407 = vmatprep.mubr.f32.mxu1 %v6636_v46  ;;  %3408 = vmatprep.subr.bf16.mxu0 %v3407_v27 }
 0x462   : > { %2408 = vmatmul.mubr.f32.gmra.mrb[36].mxu1 %v6102_v50  ;;  %3410 = vmatpush3.bf16.msra.mxu0 %v3407_v27 }
 0x463   : > { %2413 = vmatprep.mubr.f32.mxu1 %v6636_v46  ;;  %3412 = vmatprep.subr.bf16.mxu0 %v3411_v28  ;;  %v6112_v46 = vrot.slane %v2247_v18, %v6649_v4 }
 0x466   : > { %2414 = vmatmul.mubr.f32.gmra.mrb[38].mxu1 %v6100_v39  ;;  %3414 = vmatpush3.bf16.msra.mxu0 %v3411_v28 }
 0x4f7   : > { %v2325_v63 = vpop.f32.mrb[8].mxu1 }
 0x4f8   : > { %v2326_v49 = vadd.f32 %v2325_v63, %v6112_v46  ;;  %v2327_v38 = vpop.f32.mrb[9].mxu1 }
 0x4f9   : > { %v2328_v33 = vadd.f32 %v2327_v38, %v6115_v0 }
 0x4fa   : > { %vm2420_vm2 = vcmp.ge.f32.partialorder %v2326_v49, 0.0  ;;  %v2436_v14 = vmul.f32 0.1, %v2326_v49 }
 0x4fb   : > { %vm2468_vm3 = vcmp.ge.f32.partialorder %v2328_v33, 0.0  ;;  %v2484_v25 = vmul.f32 0.01, %v2328_v33  ;;  %v2331_v21 = vpop.f32.mrb[10].mxu1 }
 0x4fc   : > { %v2332_v42 = vadd.f32 %v2331_v21, %v6112_v46  ;;  %v2333_v32 = vpop.f32.mrb[11].mxu1  ;;  %v2452_v35 = vsel %vm2420_vm2, %v2326_v49, %v2436_v14 }
 0x4fd   : > { %v2334_v34 = vadd.f32 %v2333_v32, %v6115_v0  ;;  %v2500_v19 = vsel %vm2468_vm3, %v2328_v33, %v2484_v25 }
 0x4fe   : > { %vm2421_vm0 = vcmp.ge.f32.partialorder %v2332_v42, 0.0  ;;  %v2437_v62 = vmul.f32 0.1, %v2332_v42  ;;  %v2516_v7 = vadd.f32 %v2500_v19, %v2452_v35 }
 0x4ff   : > { %vm2469_vm1 = vcmp.ge.f32.partialorder %v2334_v34, 0.0  ;;  %v2485_v37 = vmul.f32 0.01, %v2334_v34  ;;  %v2337_v15 = vpop.f32.mrb[12].mxu1 }
 0x500   : > { %v2453_v44 = vsel %vm2421_vm0, %v2332_v42, %v2437_v62  ;;  %v2338_v56 = vadd.f32 %v2337_v15, %v6112_v46  ;;  %v2339_v24 = vpop.f32.mrb[13].mxu1  ;;  %3199 = vmatprep.mubr.f32.mxu0 %v2516_v7 }
 0x501   : > { %v2501_v43 = vsel %vm2469_vm1, %v2334_v34, %v2485_v37  ;;  %v2340_v6 = vadd.f32 %v2339_v24, %v6115_v0 }
 0x502   : > { %v2517_v16 = vadd.f32 %v2501_v43, %v2453_v44  ;;  %vm2422_vm4 = vcmp.ge.f32.partialorder %v2338_v56, 0.0  ;;  %v2438_v13 = vmul.f32 0.1, %v2338_v56 }
 0x503   : > { %vm2470_vm5 = vcmp.ge.f32.partialorder %v2340_v6, 0.0  ;;  %v2486_v22 = vmul.f32 0.01, %v2340_v6  ;;  %v2343_v54 = vpop.f32.mrb[14].mxu1 }
 0x504   : > { %v2344_v55 = vadd.f32 %v2343_v54, %v6112_v46  ;;  %v2345_v20 = vpop.f32.mrb[15].mxu1  ;;  %3200 = vmatmul.mubr.f32.vlgmr.msra.gmra.mrb[48].mxu0 %v2517_v16  ;;  %v2454_v1 = vsel %vm2422_vm4, %v2338_v56, %v2438_v13 }
 0x505   : > { %v2346_v30 = vadd.f32 %v2345_v20, %v6115_v0  ;;  %v2502_v40 = vsel %vm2470_vm5, %v2340_v6, %v2486_v22 }
 0x506   : > { %vm2423_vm6 = vcmp.ge.f32.partialorder %v2344_v55, 0.0  ;;  %v2439_v26 = vmul.f32 0.1, %v2344_v55  ;;  %v2518_v3 = vadd.f32 %v2502_v40, %v2454_v1 }
 0x507   : > { %vm2471_vm7 = vcmp.ge.f32.partialorder %v2346_v30, 0.0  ;;  %v2487_v45 = vmul.f32 0.01, %v2346_v30  ;;  %v2349_v52 = vpop.f32.mrb[16].mxu1 }
 0x508   : > { %v2350_v53 = vadd.f32 %v2349_v52, %v6112_v46  ;;  %v2351_v47 = vpop.f32.mrb[17].mxu1  ;;  %3202 = vmatprep.mubr.f32.mxu0 %v2518_v3  ;;  %v2455_v8 = vsel %vm2423_vm6, %v2344_v55, %v2439_v26 }
 0x509   : > { %v2352_v36 = vadd.f32 %v2351_v47, %v6115_v0  ;;  %v2503_v60 = vsel %vm2471_vm7, %v2346_v30, %v2487_v45 }
 0x50a   : > { %vm2424_vm8 = vcmp.ge.f32.partialorder %v2350_v53, 0.0  ;;  %v2440_v61 = vmul.f32 0.1, %v2350_v53  ;;  %v2519_v27 = vadd.f32 %v2503_v60, %v2455_v8 }
 0x50b   : > { %vm2472_vm9 = vcmp.ge.f32.partialorder %v2352_v36, 0.0  ;;  %v2488_v17 = vmul.f32 0.01, %v2352_v36  ;;  %v2355_v41 = vpop.f32.mrb[18].mxu1 }
 0x50c   : > { %v2356_v28 = vadd.f32 %v2355_v41, %v6112_v46  ;;  %v2357_v18 = vpop.f32.mrb[19].mxu1  ;;  %3203 = vmatmul.mubr.f32.gmra.mrb[50].mxu0 %v2519_v27  ;;  %v2456_v4 = vsel %vm2424_vm8, %v2350_v53, %v2440_v61 }
 0x50d   : > { %v2358_v63 = vadd.f32 %v2357_v18, %v6115_v0  ;;  %v2504_v49 = vsel %vm2472_vm9, %v2352_v36, %v2488_v17 }
 0x50e   : > { %vm2425_vm10 = vcmp.ge.f32.partialorder %v2356_v28, 0.0  ;;  %v2441_v38 = vmul.f32 0.1, %v2356_v28  ;;  %v2520_v33 = vadd.f32 %v2504_v49, %v2456_v4 }
 0x50f   : > { %vm2473_vm11 = vcmp.ge.f32.partialorder %v2358_v63, 0.0  ;;  %v2489_v14 = vmul.f32 0.01, %v2358_v63 }
 0x510   : > { %3205 = vmatprep.mubr.f32.mxu0 %v2520_v33  ;;  %v2457_v32 = vsel %vm2425_vm10, %v2356_v28, %v2441_v38 }
 0x511   : > { %v2361_v25 = vpop.f32.mrb[20].mxu1  ;;  %v2505_v34 = vsel %vm2473_vm11, %v2358_v63, %v2489_v14 }
 0x512   : > { %v2362_v21 = vadd.f32 %v2361_v25, %v6112_v46  ;;  %v2363_v42 = vpop.f32.mrb[21].mxu1  ;;  %v2521_v62 = vadd.f32 %v2505_v34, %v2457_v32 }
 0x513   : > { %v2364_v35 = vadd.f32 %v2363_v42, %v6115_v0 }
 0x514   : > { %vm2426_vm12 = vcmp.ge.f32.partialorder %v2362_v21, 0.0  ;;  %v2442_v19 = vmul.f32 0.1, %v2362_v21  ;;  %3206 = vmatmul.mubr.f32.gmra.mrb[52].mxu0 %v2521_v62 }
 0x515   : > { %vm2474_vm13 = vcmp.ge.f32.partialorder %v2364_v35, 0.0  ;;  %v2490_v7 = vmul.f32 0.01, %v2364_v35  ;;  %v2367_v37 = vpop.f32.mrb[22].mxu1 }
 0x516   : > { %v2368_v15 = vadd.f32 %v2367_v37, %v6112_v46  ;;  %v2369_v44 = vpop.f32.mrb[23].mxu1  ;;  %v2458_v56 = vsel %vm2426_vm12, %v2362_v21, %v2442_v19 }
 0x517   : > { %v2370_v24 = vadd.f32 %v2369_v44, %v6115_v0  ;;  %v2506_v43 = vsel %vm2474_vm13, %v2364_v35, %v2490_v7 }
 0x518   : > { %vm2427_vm14 = vcmp.ge.f32.partialorder %v2368_v15, 0.0  ;;  %v2443_v6 = vmul.f32 0.1, %v2368_v15  ;;  %v2522_v16 = vadd.f32 %v2506_v43, %v2458_v56 }
 0x519   : > { %vm2475_vm15 = vcmp.ge.f32.partialorder %v2370_v24, 0.0  ;;  %v2491_v13 = vmul.f32 0.01, %v2370_v24 }
 0x51a   : > { %v2373_v22 = vpop.f32.mrb[24].mxu1  ;;  %3208 = vmatprep.mubr.f32.mxu0 %v2522_v16  ;;  %v2459_v20 = vsel %vm2427_vm14, %v2368_v15, %v2443_v6 }
 0x51b   : > { %v2374_v54 = vadd.f32 %v2373_v22, %v6112_v46  ;;  %v2375_v55 = vpop.f32.mrb[25].mxu1  ;;  %v2507_v30 = vsel %vm2475_vm15, %v2370_v24, %v2491_v13 }
 0x51c   : > { %v2376_v1 = vadd.f32 %v2375_v55, %v6115_v0  ;;  %v2523_v26 = vadd.f32 %v2507_v30, %v2459_v20 }
 0x51d   : > { %vm2428_vm2 = vcmp.ge.f32.partialorder %v2374_v54, 0.0  ;;  %v2444_v40 = vmul.f32 0.1, %v2374_v54 }
 0x51e   : > { %vm2476_vm3 = vcmp.ge.f32.partialorder %v2376_v1, 0.0  ;;  %v2492_v3 = vmul.f32 0.01, %v2376_v1  ;;  %v2379_v45 = vpop.f32.mrb[26].mxu1  ;;  %3209 = vmatmul.mubr.f32.gmra.mrb[54].mxu0 %v2523_v26 }
 0x51f   : > { %v2380_v52 = vadd.f32 %v2379_v45, %v6112_v46  ;;  %v2381_v53 = vpop.f32.mrb[27].mxu1  ;;  %v2460_v47 = vsel %vm2428_vm2, %v2374_v54, %v2444_v40 }
 0x520   : > { %v2382_v8 = vadd.f32 %v2381_v53, %v6115_v0  ;;  %v2508_v36 = vsel %vm2476_vm3, %v2376_v1, %v2492_v3 }
 0x521   : > { %vm2429_vm0 = vcmp.ge.f32.partialorder %v2380_v52, 0.0  ;;  %v2445_v60 = vmul.f32 0.1, %v2380_v52  ;;  %v2524_v61 = vadd.f32 %v2508_v36, %v2460_v47 }
 0x522   : > { %vm2477_vm1 = vcmp.ge.f32.partialorder %v2382_v8, 0.0  ;;  %v2493_v27 = vmul.f32 0.01, %v2382_v8 }
 0x523   : > { %3211 = vmatprep.mubr.f32.mxu0 %v2524_v61  ;;  %v2461_v18 = vsel %vm2429_vm0, %v2380_v52, %v2445_v60 }
 0x524   : > { %v2385_v17 = vpop.f32.mrb[28].mxu1  ;;  %v2509_v63 = vsel %vm2477_vm1, %v2382_v8, %v2493_v27 }
 0x525   : > { %v2386_v41 = vadd.f32 %v2385_v17, %v6112_v46  ;;  %v2387_v28 = vpop.f32.mrb[29].mxu1  ;;  %v2525_v38 = vadd.f32 %v2509_v63, %v2461_v18 }
 0x526   : > { %v2388_v4 = vadd.f32 %v2387_v28, %v6115_v0 }
 0x527   : > { %vm2430_vm4 = vcmp.ge.f32.partialorder %v2386_v41, 0.0  ;;  %v2446_v49 = vmul.f32 0.1, %v2386_v41  ;;  %3212 = vmatmul.mubr.f32.gmra.mrb[56].mxu0 %v2525_v38 }
 0x528   : > { %vm2478_vm5 = vcmp.ge.f32.partialorder %v2388_v4, 0.0  ;;  %v2494_v33 = vmul.f32 0.01, %v2388_v4  ;;  %v2391_v14 = vpop.f32.mrb[30].mxu1 }
 0x529   : > { %v2392_v25 = vadd.f32 %v2391_v14, %v6112_v46  ;;  %v2393_v21 = vpop.f32.mrb[31].mxu1  ;;  %v2462_v42 = vsel %vm2430_vm4, %v2386_v41, %v2446_v49 }
 0x52a   : > { %v2394_v32 = vadd.f32 %v2393_v21, %v6115_v0  ;;  %v2510_v35 = vsel %vm2478_vm5, %v2388_v4, %v2494_v33  ;;  %v6149_v21 = vld [vmem:[#allocation22] ss:$0 sm:$0xff] }
 0x52b   : > { %vm2431_vm6 = vcmp.ge.f32.partialorder %v2392_v25, 0.0  ;;  %v2447_v34 = vmul.f32 0.1, %v2392_v25  ;;  %v2526_v19 = vadd.f32 %v2510_v35, %v2462_v42 }
 0x52c   : > { %vm2479_vm7 = vcmp.ge.f32.partialorder %v2394_v32, 0.0  ;;  %v2495_v62 = vmul.f32 0.01, %v2394_v32 }
 0x52d   : > { %v2397_v7 = vpop.f32.mrb[32].mxu1  ;;  %3214 = vmatprep.mubr.f32.mxu0 %v2526_v19  ;;  %v2463_v44 = vsel %vm2431_vm6, %v2392_v25, %v2447_v34 }
 0x52e   : > { %v2398_v37 = vadd.f32 %v2397_v7, %v6112_v46  ;;  %v2399_v15 = vpop.f32.mrb[33].mxu1  ;;  %v2511_v24 = vsel %vm2479_vm7, %v2394_v32, %v2495_v62 }
 0x52f   : > { %v2400_v56 = vadd.f32 %v2399_v15, %v6115_v0  ;;  %v2527_v6 = vadd.f32 %v2511_v24, %v2463_v44 }
 0x530   : > { %vm2432_vm8 = vcmp.ge.f32.partialorder %v2398_v37, 0.0  ;;  %v2448_v43 = vmul.f32 0.1, %v2398_v37 }
 0x531   : > { %vm2480_vm9 = vcmp.ge.f32.partialorder %v2400_v56, 0.0  ;;  %v2496_v16 = vmul.f32 0.01, %v2400_v56  ;;  %v2403_v13 = vpop.f32.mrb[34].mxu1  ;;  %3215 = vmatmul.mubr.f32.gmra.mrb[58].mxu0 %v2527_v6 }
 0x532   : > { %v2404_v22 = vadd.f32 %v2403_v13, %v6112_v46  ;;  %v2405_v54 = vpop.f32.mrb[35].mxu1  ;;  %v2464_v55 = vsel %vm2432_vm8, %v2398_v37, %v2448_v43 }
 0x533   : > { %v2406_v20 = vadd.f32 %v2405_v54, %v6115_v0  ;;  %v2512_v1 = vsel %vm2480_vm9, %v2400_v56, %v2496_v16 }
 0x534   : > { %vm2433_vm10 = vcmp.ge.f32.partialorder %v2404_v22, 0.0  ;;  %v2449_v30 = vmul.f32 0.1, %v2404_v22  ;;  %v2528_v40 = vadd.f32 %v2512_v1, %v2464_v55 }
 0x535   : > { %vm2481_vm11 = vcmp.ge.f32.partialorder %v2406_v20, 0.0  ;;  %v2497_v26 = vmul.f32 0.01, %v2406_v20  ;;  %v2409_v3 = vpop.f32.mrb[36].mxu1 }
 0x536   : > { %v2410_v45 = vadd.f32 %v2409_v3, %v6112_v46  ;;  %v2411_v52 = vpop.f32.mrb[37].mxu1  ;;  %3217 = vmatprep.mubr.f32.mxu0 %v2528_v40  ;;  %v2465_v53 = vsel %vm2433_vm10, %v2404_v22, %v2449_v30 }
 0x537   : > { %v2412_v47 = vadd.f32 %v2411_v52, %v6115_v0  ;;  %v2513_v8 = vsel %vm2481_vm11, %v2406_v20, %v2497_v26 }
 0x538   : > { %vm2434_vm12 = vcmp.ge.f32.partialorder %v2410_v45, 0.0  ;;  %v2450_v36 = vmul.f32 0.1, %v2410_v45  ;;  %v2529_v60 = vadd.f32 %v2513_v8, %v2465_v53 }
 0x539   : > { %vm2482_vm13 = vcmp.ge.f32.partialorder %v2412_v47, 0.0  ;;  %v2498_v61 = vmul.f32 0.01, %v2412_v47  ;;  %v2415_v27 = vpop.f32.mrb[38].mxu1 }
 0x53a   : > { %v2416_v17 = vadd.f32 %v2415_v27, %v6112_v46  ;;  %v2417_v41 = vpop.f32.mrb[39].mxu1  ;;  %3218 = vmatmul.mubr.f32.gmra.mrb[60].mxu0 %v2529_v60  ;;  %v2466_v28 = vsel %vm2434_vm12, %v2410_v45, %v2450_v36 }
 0x53b   : > { %v2418_v18 = vadd.f32 %v2417_v41, %v6115_v0  ;;  %v2514_v4 = vsel %vm2482_vm13, %v2412_v47, %v2498_v61 }
 0x53c   : > { %vm2435_vm14 = vcmp.ge.f32.partialorder %v2416_v17, 0.0  ;;  %v2451_v63 = vmul.f32 0.1, %v2416_v17  ;;  %v2530_v49 = vadd.f32 %v2514_v4, %v2466_v28 }
 0x53d   : > { %vm2483_vm15 = vcmp.ge.f32.partialorder %v2418_v18, 0.0  ;;  %v2499_v38 = vmul.f32 0.01, %v2418_v18 }
 0x53e   : > { %3220 = vmatprep.mubr.f32.mxu0 %v2530_v49  ;;  %v2467_v33 = vsel %vm2435_vm14, %v2416_v17, %v2451_v63 }
 0x53f   : > { %v2515_v14 = vsel %vm2483_vm15, %v2418_v18, %v2499_v38 }
 0x540   : > { %v2531_v25 = vadd.f32 %v2515_v14, %v2467_v33 }
 0x542   : > { %3221 = vmatmul.mubr.f32.gmra.mrb[62].mxu0 %v2531_v25 }
 0x5d7   : > { %v3201_v46 = vpop.f32.mrb[48].mxu0 }
 0x5d8   : > { %v2627_v42 = vadd.f32 %v3201_v46, %v6149_v21  ;;  %v2621_v32 = vpop.f32.mrb[49].mxu0 }
 0x5d9   : > { %v2622_v0 = vadd.f32 %v6149_v21, %v2621_v32 }
 0x5da   : > { %v2701_v35 = vadd.f32 %v2627_v42, %v6006_v29 }
 0x5db   : > { %v2700_v34 = vadd.f32 %v2622_v0, %v6008_v59 }
 0x5dc   : > { %2717 = vst [vmem:[%s6156_s20 + $0x8] sm:$0xff] %v2701_v35 }
 0x5dd   : > { %2716 = vst [vmem:[%s6156_s20] sm:$0xff] %v2700_v34 }
 0x5df   : > { %v3204_v19 = vpop.f32.mrb[50].mxu0 }
 0x5e0   : > { %v2637_v62 = vadd.f32 %v3204_v19, %v6149_v21  ;;  %v2631_v7 = vpop.f32.mrb[51].mxu0 }
 0x5e1   : > { %v2632_v37 = vadd.f32 %v6149_v21, %v2631_v7 }
 0x5e2   : > { %v2703_v29 = vadd.f32 %v2637_v62, %v6017_v10 }
 0x5e3   : > { %v2702_v59 = vadd.f32 %v2632_v37, %v6020_v9 }
 0x5e4   : > { %2719 = vst [vmem:[%s6156_s20 + $0x18] sm:$0xff] %v2703_v29 }
 0x5e5   : > { %2718 = vst [vmem:[%s6156_s20 + $0x10] sm:$0xff] %v2702_v59 }
 0x5e7   : > { %v3207_v15 = vpop.f32.mrb[52].mxu0 }
 0x5e8   : > { %v2647_v44 = vadd.f32 %v3207_v15, %v6149_v21  ;;  %v2641_v56 = vpop.f32.mrb[53].mxu0 }
 0x5e9   : > { %v2642_v24 = vadd.f32 %v6149_v21, %v2641_v56 }
 0x5ea   : > { %v2705_v43 = vadd.f32 %v2647_v44, %v6032_v2 }
 0x5eb   : > { %v2704_v6 = vadd.f32 %v2642_v24, %v6034_v11 }
 0x5ec   : > { %2721 = vst [vmem:[%s6156_s20 + $0x28] sm:$0xff] %v2705_v43 }
 0x5ed   : > { %2720 = vst [vmem:[%s6156_s20 + $0x20] sm:$0xff] %v2704_v6 }
 0x5f1   : > { %v3210_v10 = vpop.f32.mrb[54].mxu0 }
 0x5f2   : > { %v2657_v9 = vadd.f32 %v3210_v10, %v6149_v21  ;;  %v2651_v16 = vpop.f32.mrb[55].mxu0 }
 0x5f3   : > { %v2652_v13 = vadd.f32 %v6149_v21, %v2651_v16 }
 0x5f4   : > { %v2707_v22 = vadd.f32 %v2657_v9, %v6046_v5 }
 0x5f5   : > { %v2706_v54 = vadd.f32 %v2652_v13, %v6048_v57 }
 0x5f6   : > { %2723 = vst [vmem:[%s6156_s20 + $0x38] sm:$0xff] %v2707_v22 }
 0x5f7   : > { %2722 = vst [vmem:[%s6156_s20 + $0x30] sm:$0xff] %v2706_v54 }
 0x5fa   : > { %v3213_v2 = vpop.f32.mrb[56].mxu0 }
 0x5fb   : > { %v2667_v11 = vadd.f32 %v3213_v2, %v6149_v21  ;;  %v2661_v55 = vpop.f32.mrb[57].mxu0 }
 0x5fc   : > { %v2662_v20 = vadd.f32 %v6149_v21, %v2661_v55 }
 0x5fd   : > { %v2709_v1 = vadd.f32 %v2667_v11, %v6060_v23 }
 0x5fe   : > { %v2708_v30 = vadd.f32 %v2662_v20, %v6062_v31 }
 0x5ff   : > { %2725 = vst [vmem:[%s6156_s20 + $0x48] sm:$0xff] %v2709_v1 }
 0x600   : > { %2724 = vst [vmem:[%s6156_s20 + $0x40] sm:$0xff] %v2708_v30 }
 0x604   : > { %v3216_v5 = vpop.f32.mrb[58].mxu0 }
 0x605   : > { %v2677_v57 = vadd.f32 %v3216_v5, %v6149_v21  ;;  %v2671_v40 = vpop.f32.mrb[59].mxu0 }
 0x606   : > { %v2672_v26 = vadd.f32 %v6149_v21, %v2671_v40 }
 0x607   : > { %v2711_v3 = vadd.f32 %v2677_v57, %v6074_v51 }
 0x608   : > { %v2710_v45 = vadd.f32 %v2672_v26, %v6076_v58 }
 0x609   : > { %2727 = vst [vmem:[%s6156_s20 + $0x58] sm:$0xff] %v2711_v3 }
 0x60a   : > { %2726 = vst [vmem:[%s6156_s20 + $0x50] sm:$0xff] %v2710_v45 }
 0x60d   : > { %v3219_v23 = vpop.f32.mrb[60].mxu0 }
 0x60e   : > { %v2687_v31 = vadd.f32 %v3219_v23, %v6149_v21  ;;  %v2681_v52 = vpop.f32.mrb[61].mxu0 }
 0x60f   : > { %v2682_v53 = vadd.f32 %v6149_v21, %v2681_v52 }
 0x610   : > { %v2713_v47 = vadd.f32 %v2687_v31, %v6088_v48 }
 0x611   : > { %v2712_v8 = vadd.f32 %v2682_v53, %v6090_v12 }
 0x612   : > { %2729 = vst [vmem:[%s6156_s20 + $0x68] sm:$0xff] %v2713_v47 }
 0x613   : > { %2728 = vst [vmem:[%s6156_s20 + $0x60] sm:$0xff] %v2712_v8 }
 0x615   : > { %v3222_v51 = vpop.f32.mrb[62].mxu0 }
 0x616   : > { %v2697_v58 = vadd.f32 %v3222_v51, %v6149_v21  ;;  %v2691_v36 = vpop.f32.mrb[63].mxu0 }
 0x617   : > { %v2692_v60 = vadd.f32 %v6149_v21, %v2691_v36 }
 0x618   : > { %v2715_v48 = vadd.f32 %v2697_v58, %v6100_v39 }
 0x619   : > { %v2714_v12 = vadd.f32 %v2692_v60, %v6102_v50 }
 0x61a   : > { %2731 = vst [vmem:[%s6156_s20 + $0x78] sm:$0xff] %v2715_v48 }
 0x61b   : > { %2730 = vst [vmem:[%s6156_s20 + $0x70] sm:$0xff] %v2714_v12 }
 0x61c   : > { %4043 = shalt.err (!%p4040_p7)
}
 0x61d   : > { %s4044_s3 = scalar_lea.hbm %s6208_s27, 2048  ;;  %s4048_s22 = scalar_lea.hbm %s6653_s13, 8192 }
 0x61e   : > { %p4045_p4 = scmp.ne.s32.totalorder %s6208_s27, %s4044_s3  ;;  %p4049_p0 = scmp.lt.u32.totalorder %s6208_s27, %s6653_s13 }
 0x61f   : > { %p4050_p9 = scmp.lt.u32.totalorder %s4048_s22, %s4044_s3  ;;  %p4052_p3 = scmp.lt.u32.totalorder %s4044_s3, %s6208_s27 }
 0x620   : > { %p4046_p10 = pnand %p4045_p4, %p6654_p11 }
 0x621   : > { %p4051_p1 = por %p4050_p9, %p4049_p0 }
 0x622   : > { %p4047_p12 = pneg %p4046_p10 }
 0x623   : > { %p4053_p2 = por %p4052_p3, %p4051_p1 }
 0x625   : > { %p4054_p8 = pnand %p4053_p2, %p4047_p12 }
 0x627   : > { %4057 = shalt.err (!%p4054_p8)
}
 0x628   : > { %s4225_s20 = smov 128   ;;  %s4226_s10 = smov 8  }
 0x629   : > { %3461 = dma.vmem_to_hbm [thread:$0]  (%p6654_p11), %s6202_s25, 2048, %s6208_s27, %s6214_s15, %s4225_s20, %s4225_s20, %s4226_s10  }
 0x62a PF: > { %s6655_s24 = sld [smem:[#allocation36_spill]]  ;;  %s6656_s8 = sld [smem:[#allocation47_spill]] }
 0x62b   : > { %p3529_p6 = scmp.ge.s32.totalorder %s4204_s21, 2 }
 0x630   : > { %s2764_s9 = sand.u32 1, %s6655_s24   ;;  %p6657_p13 = scmp.ne.s32.totalorder %s6656_s8, 0 }
 0x631   : > { %s2765_s28 = scalar_lea.sflag [#allocation4], %s2764_s9 }
 0x632   : > { %p3505_p5 = pnand %p3529_p6, %p6657_p13 }
 0x634   : > { %4147 = dma.done.wait (!%p3505_p5), %s2765_s28, 2048  }
 0x635   : > { %4149 = vsyncadd (!%p3505_p5), %s2765_s28, 4294965248  ;;  %s37_s21 = sadd.s32 1, %s4204_s21   ;;  %s6659_s25 = sld [smem:[#allocation34_spill]] }
 0x636   : > { %p6243_p7 = scmp.ge.s32.totalorder %s37_s21, 6   ;;  %s6660_s26 = sld [smem:[#allocation35_spill]] }
 0x637   : > { %s6661_s14 = sld [smem:[#allocation38_spill]]  ;;  %s6662_s15 = sld [smem:[#allocation39_spill]] }
 0x638   : > { %s6663_s4 = sld [smem:[#allocation49_spill]]  ;;  %s6664_s17 = sld [smem:[#allocation42_spill]] }
 0x639   : > { %s6665_s11 = sld [smem:[#allocation43_spill]]  ;;  %s6666_s19 = sld [smem:[#allocation45_spill]] }
 0x63a   : > { %s6667_s20 = sld [smem:[#allocation48_spill]]  ;;  %s6669_s27 = smov %s6690_s16 }
 0x63b   : > { %s6670_s28 = smov %s4168_s29  ;;  %s6671_s29 = smov %s4172_s30 }
 0x63c   : > { %s6672_s30 = smov %s4738_s5  ;;  %36 = sbr.rel (!%p6243_p7) target bundleno = 32 (0x20), region = 181 }
 0x63e   : > { %s6673_s16 = smov %s6663_s4 }
 0x63f   : > { %s6674_s18 = smov %s6665_s11 }
 0x643   :  { %2770 = vsyncpa [#allocation3], 1 }
 0x644   :  { %2772 = vsyncpa [#allocation3 + $0x1], 1 }
 0x645   :  { %2773 = vsyncpa [#allocation6], 1 }
 0x646   :  { %2775 = vsyncpa [#allocation6 + $0x1], 1 }
 0x647   :  { %2776 = vsyncpa [#allocation9], 1 }
 0x648   :  { %2777 = vsyncpa [#allocation12], 1 }
 0x649   :  { %2778 = vsyncpa [#allocation15], 1 }
 0x64a   :  { %2779 = vsyncpa [#allocation18], 1 }
 0x64b   :  { %2780 = vsyncpa [#allocation21], 1 }
 0x64c   :  { %2781 = vsyncpa [#allocation4], 1 }
 0x64d   :  { %2783 = vsyncpa [#allocation4 + $0x1], 1 }

</bundles_post_ra>
